<compile_context>
chip_gen: v7x
topology: tpu7x:2x2x1
jax: 0.10.0
libtpu: 0.0.40
codegen_flags: <defaults>
</compile_context>

<pallas_src>
import functools

import jax
import jax.numpy as jnp
from jax.experimental import pallas as pl
from jax.experimental.pallas import tpu as pltpu

BN_EPS = 1e-5

_CONV_CFG = {
    "conv1": dict(k=11, stride=4, pad=2, cout=96),
    "conv2": dict(k=5, stride=1, pad=2, cout=256),
    "conv3": dict(k=3, stride=1, pad=1, cout=384),
    "conv4": dict(k=3, stride=1, pad=1, cout=384),
    "conv5": dict(k=3, stride=1, pad=1, cout=256),
}


def _round_up(x, m):
    return ((x + m - 1) // m) * m


def _select_tile(dim, cap, align):
    """Largest multiple of `align` that divides `dim` (dim is a multiple of align), <= cap."""
    t = min(cap, dim)
    t -= t % align
    while dim % t:
        t -= align
    return t


@functools.lru_cache(maxsize=None)
def _num_tensorcores():
    """2 for dual-TensorCore chips (v4 / v5p megacore, v7x), else 1."""
    try:
        kind = jax.devices()[0].device_kind.lower()
    except Exception:  # pragma: no cover
        return 1
    return 2 if any(t in kind for t in ("v4", "v5p", "v7")) else 1


def _matmul_tiles(M, Np, Kp, num_tc):
    """Tile selection: maximize tile size; keep >=2 parallel blocks on dual-TC chips."""
    tm = min(512, _round_up(M, 16))          # 16-aligned sublanes (bf16 packing)
    tn = _select_tile(Np, 512, 128)          # lane-dense, up to full N
    tk = _select_tile(Kp, 512, 128)          # Kp pre-padded so this reaches 512
    if num_tc > 1 and pl.cdiv(M, tm) * (Np // tn) < 2:
        # Dual-TensorCore chip with a (1,1,K) grid: split a parallel axis so the
        # second core gets work (opposite tuning to single-TC max-width tiles).
        if Np >= 256:
            tn = _select_tile(Np, Np // 2, 128)
        elif M > 16:
            tm = _round_up(pl.cdiv(M, 2), 16)
    return tm, tn, tk


# ---------------------------------------------------------------------------
# Pallas kernels
# ---------------------------------------------------------------------------
def _matmul_bias_act_kernel(x_ref, w_ref, b_ref, o_ref, acc_ref, *, activation):
    """Tiled o = act(x @ w + bias) with f32 accumulator resident across the K grid axis.

    NOTE: rows of the last partial M block beyond M contain garbage HBM data; they
    flow through dot/relu before being dropped by the masked partial output store.
    This is fine today, but do NOT add row reductions, unmasked writes, or (i,j)
    accumulator reuse without masking those rows first.
    """
    @pl.when(pl.program_id(2) == 0)
    def _():
        acc_ref[...] = jnp.zeros_like(acc_ref)

    acc_ref[...] += jnp.dot(x_ref[...], w_ref[...],
                            preferred_element_type=jnp.float32)

    @pl.when(pl.program_id(2) == pl.num_programs(2) - 1)
    def _():
        y = acc_ref[...] + b_ref[...]
        if activation == "relu":
            y = jnp.maximum(y, 0.0)
        elif activation == "sigmoid":
            y = 0.5 * (jnp.tanh(0.5 * y) + 1.0)
        o_ref[...] = y.astype(o_ref.dtype)


def _classifier_kernel(x_ref, w1_ref, b1_ref, w2_ref, b2_ref, w3_ref, b3_ref,
                       w4_ref, b4_ref, w5_ref, b5_ref, o_ref):
    """Fused fc1..fc5 (BN folded, Sigmoid between layers) with all weights in VMEM."""
    def sigmoid(v):  # exact, EUP-friendly (tanh), numerically stable
        return 0.5 * (jnp.tanh(0.5 * v) + 1.0)

    h = x_ref[...]
    for w_ref, b_ref in ((w1_ref, b1_ref), (w2_ref, b2_ref),
                         (w3_ref, b3_ref), (w4_ref, b4_ref)):
        h = sigmoid(jnp.dot(h, w_ref[...], preferred_element_type=jnp.float32)
                    + b_ref[...]).astype(jnp.bfloat16)
    o_ref[...] = (jnp.dot(h, w5_ref[...], preferred_element_type=jnp.float32)
                  + b5_ref[...])


# ---------------------------------------------------------------------------
# Pallas wrappers
# ---------------------------------------------------------------------------
def fused_matmul(x, w, b, *, activation, out_dtype=jnp.bfloat16):
    """x: (M, Kp) bf16 (K pre-padded); w: (Kp, Np) bf16 (BN folded, pre-padded);
    b: (1, Np) f32.  Returns (M, Np) in out_dtype.  M/N edges use Pallas
    partial-block masking; K padding is done upstream (no extra HBM copy here)."""
    M, Kp = x.shape
    Kw, Np = w.shape
    if Kp != Kw:
        raise ValueError(f"K mismatch: x has {Kp}, w has {Kw}")
    x = x.astype(jnp.bfloat16)

    tm, tn, tk = _matmul_tiles(M, Np, Kp, _num_tensorcores())
    grid = (pl.cdiv(M, tm), Np // tn, Kp // tk)

    out_bytes = jnp.dtype(out_dtype).itemsize
    # double-buffered bf16 input tiles + f32 bias + double-buffered out + f32 acc
    need = 2 * 2 * (tm * tk + tk * tn) + 2 * 4 * tn + 2 * tm * tn * out_bytes + 4 * tm * tn
    vmem_limit = int(min(64 << 20, max(32 << 20, 2 * need + (4 << 20))))

    return pl.pallas_call(
        functools.partial(_matmul_bias_act_kernel, activation=activation),
        out_shape=jax.ShapeDtypeStruct((M, Np), out_dtype),
        grid_spec=pltpu.PrefetchScalarGridSpec(
            num_scalar_prefetch=0,
            grid=grid,
            in_specs=[
                pl.BlockSpec((tm, tk), lambda i, j, k: (i, k)),
                pl.BlockSpec((tk, tn), lambda i, j, k: (k, j)),
                pl.BlockSpec((1, tn), lambda i, j, k: (0, j)),
            ],
            out_specs=pl.BlockSpec((tm, tn), lambda i, j, k: (i, j)),
            scratch_shapes=[pltpu.VMEM((tm, tn), jnp.float32)],
        ),
        compiler_params=pltpu.CompilerParams(
            dimension_semantics=("parallel", "parallel", "arbitrary"),
            vmem_limit_bytes=vmem_limit),
    )(x, w, b)


def classifier_forward(x, fc, num_classes):
    """Single fused Pallas call for fc1..fc5 (+BN, Sigmoid); weights stay in VMEM."""
    M, _ = x.shape
    Mp = _round_up(M, 16)                       # bf16 packs 16 sublanes per vreg
    xp = jnp.pad(x.astype(jnp.bfloat16), ((0, Mp - M), (0, 0)))
    Np = fc["w5"].shape[1]

    operands = (xp, fc["w1"], fc["b1"], fc["w2"], fc["b2"], fc["w3"], fc["b3"],
                fc["w4"], fc["b4"], fc["w5"], fc["b5"])
    need = sum(int(a.size) * a.dtype.itemsize for a in operands) + Mp * Np * 4
    vmem_limit = int(min(64 << 20, max(32 << 20, 2 * need + (4 << 20))))

    out = pl.pallas_call(
        _classifier_kernel,
        out_shape=jax.ShapeDtypeStruct((Mp, Np), jnp.float32),
        in_specs=[pl.BlockSpec(memory_space=pltpu.MemorySpace.VMEM)] * 11,
        out_specs=pl.BlockSpec(memory_space=pltpu.MemorySpace.VMEM),
        compiler_params=pltpu.CompilerParams(vmem_limit_bytes=vmem_limit),
    )(*operands)
    return out[:M, :num_classes]


# ---------------------------------------------------------------------------
# XLA glue: im2col, maxpool, adaptive average pool
# ---------------------------------------------------------------------------
def _im2col(x, k, stride, pad, kp=None):
    """x: NHWC -> (N*OH*OW, Kp) with K ordered (kh, kw, cin); zero-padded to Kp columns."""
    N, H, W, C = x.shape
    xp = jnp.pad(x, ((0, 0), (pad, pad), (pad, pad), (0, 0)))
    OH = (H + 2 * pad - k) // stride + 1
    OW = (W + 2 * pad - k) // stride + 1
    cols = []
    for i in range(k):
        for j in range(k):
            cols.append(
                xp[:, i: i + stride * (OH - 1) + 1: stride,
                      j: j + stride * (OW - 1) + 1: stride, :]
            )
    patches = jnp.stack(cols, axis=3).reshape(N * OH * OW, k * k * C)
    K = k * k * C
    if kp is not None and kp > K:                 # emit K-padded columns directly
        patches = jnp.concatenate(
            [patches, jnp.zeros((patches.shape[0], kp - K), patches.dtype)], axis=1)
    return patches, OH, OW


def maxpool2d(x, k=3, stride=2):
    """PyTorch MaxPool2d(3, 2): pairwise max tree over strided slices (fuses in XLA)."""
    N, H, W, C = x.shape
    OH = (H - k) // stride + 1
    OW = (W - k) // stride + 1
    out = None
    for i in range(k):
        for j in range(k):
            win = x[:, i: i + stride * (OH - 1) + 1: stride,
                       j: j + stride * (OW - 1) + 1: stride, :]
            out = win if out is None else jnp.maximum(out, win)
    return out


def _adaptive_avg_pool2d(x, out_hw):
    """x: NHWC, PyTorch AdaptiveAvgPool2d semantics."""
    N, H, W, C = x.shape
    oh, ow = out_hw
    if H % oh == 0 and W % ow == 0:                  # exact bins: reshape-mean
        return x.reshape(N, oh, H // oh, ow, W // ow, C).mean(axis=(2, 4))
    if oh % H == 0 and ow % W == 0:                  # upsample (e.g. 1x1 -> 6x6)
        return jnp.repeat(jnp.repeat(x, oh // H, axis=1), ow // W, axis=2)
    rows = []                                         # general fallback
    for i in range(oh):
        h0, h1 = (i * H) // oh, -(-((i + 1) * H) // oh)
        cols = []
        for j in range(ow):
            w0, w1 = (j * W) // ow, -(-((j + 1) * W) // ow)
            cols.append(jnp.mean(x[:, h0:h1, w0:w1, :], axis=(1, 2)))
        rows.append(jnp.stack(cols, axis=1))
    return jnp.stack(rows, axis=1)


# ---------------------------------------------------------------------------
# One-time parameter preparation (hoisted out of the forward path)
# ---------------------------------------------------------------------------
def _fold_bn(p):
    scale = p["gamma"] / jnp.sqrt(p["var"] + BN_EPS)
    bias = p["beta"] + scale * (p["b"] - p["mean"])
    return scale, bias


def prepare_params(raw):
    """Layout transform, eval-mode BN fold into weights, padding to tile multiples, bf16 cast."""
    prepped = {}
    for name, cfg in _CONV_CFG.items():
        p = raw[name]
        k = cfg["k"]
        cout, cin = p["w"].shape[0], p["w"].shape[1]
        scale, bias = _fold_bn(p)
        # PyTorch (Cout, Cin, KH, KW) -> (KH*KW*Cin, Cout) to match im2col order.
        w_mat = jnp.transpose(p["w"], (2, 3, 1, 0)).reshape(k * k * cin, cout)
        w_mat = w_mat * scale[None, :]                # fold BN scale into weights
        K, N = w_mat.shape
        # Pad K so tk can reach the 512 cap (few K grid steps); small K stays at 128.
        Kp = _round_up(K, 512) if K > 512 else _round_up(K, 128)
        Np = _round_up(N, 128)
        prepped[name] = dict(
            w=jnp.pad(w_mat, ((0, Kp - K), (0, Np - N))).astype(jnp.bfloat16),
            b=jnp.pad(bias.reshape(1, -1), ((0, 0), (0, Np - N))).astype(jnp.float32),
        )

    fc = {}
    for idx in range(1, 6):
        p = raw[f"fc{idx}"]
        w_mat = p["w"].T                              # PyTorch (out, in) -> (in, out)
        if "gamma" in p:
            scale, bias = _fold_bn(p)
            w_mat = w_mat * scale[None, :]
        else:
            bias = p["b"]
        N = w_mat.shape[1]
        Np = _round_up(N, 128)
        fc[f"w{idx}"] = jnp.pad(w_mat, ((0, 0), (0, Np - N))).astype(jnp.bfloat16)
        fc[f"b{idx}"] = jnp.pad(bias.reshape(1, -1),
                                ((0, 0), (0, Np - N))).astype(jnp.float32)
    prepped["fc"] = fc
    return prepped


# ---------------------------------------------------------------------------
# Layer compositions and full forward
# ---------------------------------------------------------------------------
def conv_bn_relu(x, p, *, k, stride, pad, cout):
    n = x.shape[0]
    kp = p["w"].shape[0]                              # pre-padded K from prepare_params
    patches, OH, OW = _im2col(x, k, stride, pad, kp)
    y = fused_matmul(patches, p["w"], p["b"], activation="relu",
                     out_dtype=jnp.bfloat16)
    if y.shape[1] != cout:
        y = y[:, :cout]
    return y.reshape(n, OH, OW, cout)


def emotion_cnn_forward(x_nchw, params, num_classes):
    x = jnp.transpose(x_nchw, (0, 2, 3, 1)).astype(jnp.bfloat16)   # NCHW -> NHWC

    # features
    x = conv_bn_relu(x, params["conv1"], **_CONV_CFG["conv1"])
    x = maxpool2d(x)
    x = conv_bn_relu(x, params["conv2"], **_CONV_CFG["conv2"])
    x = maxpool2d(x)
    x = conv_bn_relu(x, params["conv3"], **_CONV_CFG["conv3"])
    x = conv_bn_relu(x, params["conv4"], **_CONV_CFG["conv4"])
    x = conv_bn_relu(x, params["conv5"], **_CONV_CFG["conv5"])
    x = maxpool2d(x)

    # avgpool + flatten (flatten in PyTorch's C,H,W order)
    x = _adaptive_avg_pool2d(x, (6, 6))
    x = jnp.transpose(x, (0, 3, 1, 2)).reshape(x.shape[0], -1)     # (N, 256*6*6)

    # classifier: fc1..fc5 + BN + Sigmoid fused in one Pallas kernel
    # (Dropout = identity in eval mode)
    return classifier_forward(x, params["fc"], num_classes)


# ---------------------------------------------------------------------------
# Deterministic parameter init (shapes follow the PyTorch module)
# ---------------------------------------------------------------------------
def init_params(key, num_classes=7, in_ch=1):
    keys = jax.random.split(key, 10)

    def conv_p(k, cout, cin, ksz):
        k1, k2, k3, k4 = jax.random.split(k, 4)
        fan_in = cin * ksz * ksz
        return dict(
            w=jax.random.normal(k1, (cout, cin, ksz, ksz), jnp.float32) / jnp.sqrt(fan_in),
            b=0.01 * jax.random.normal(k2, (cout,), jnp.float32),
            gamma=1.0 + 0.1 * jax.random.normal(k3, (cout,), jnp.float32),
            beta=0.1 * jax.random.normal(k4, (cout,), jnp.float32),
            mean=jnp.zeros((cout,), jnp.float32),
            var=jnp.ones((cout,), jnp.float32),
        )

    def fc_p(k, dout, din, bn=True):
        k1, k2, k3, k4 = jax.random.split(k, 4)
        p = dict(
            w=jax.random.normal(k1, (dout, din), jnp.float32) / jnp.sqrt(din),
            b=0.01 * jax.random.normal(k2, (dout,), jnp.float32),
        )
        if bn:
            p.update(
                gamma=1.0 + 0.1 * jax.random.normal(k3, (dout,), jnp.float32),
                beta=0.1 * jax.random.normal(k4, (dout,), jnp.float32),
                mean=jnp.zeros((dout,), jnp.float32),
                var=jnp.ones((dout,), jnp.float32),
            )
        return p

    return dict(
        conv1=conv_p(keys[0], 96, in_ch, 11),
        conv2=conv_p(keys[1], 256, 96, 5),
        conv3=conv_p(keys[2], 384, 256, 3),
        conv4=conv_p(keys[3], 384, 384, 3),
        conv5=conv_p(keys[4], 256, 384, 3),
        fc1=fc_p(keys[5], 256, 256 * 6 * 6),
        fc2=fc_p(keys[6], 256, 256),
        fc3=fc_p(keys[7], 256, 256),
        fc4=fc_p(keys[8], 256, 256),
        fc5=fc_p(keys[9], num_classes, 256, bn=False),
    )


if __name__ == "__main__":
    num_classes = 7
    key = jax.random.PRNGKey(0)
    pkey, xkey = jax.random.split(key)

    raw_params = init_params(pkey, num_classes=num_classes, in_ch=1)
    params = prepare_params(raw_params)              # one-time weight prep

    # Small-but-valid spatial size: 64x64 survives the AlexNet stride/pool stack.
    x = jax.random.normal(xkey, (2, 1, 64, 64), jnp.float32)   # NCHW like PyTorch

    fwd = jax.jit(emotion_cnn_forward, static_argnames=("num_classes",))
    out = fwd(x, params, num_classes=num_classes)
    out = jax.block_until_ready(out)
    assert out.shape == (2, num_classes), out.shape
    assert bool(jnp.all(jnp.isfinite(out)))
    print("KERNEL_OK")
</pallas_src>

<mosaic_0001>
module attributes {stable_mosaic.version = 11 : i64} {
  func.func @_matmul_bias_act_kernel(%arg0: i32, %arg1: i32, %arg2: i32, %arg3: memref<464x128xbf16, #tpu.memory_space<vmem>>, %arg4: memref<128x128xbf16, #tpu.memory_space<vmem>>, %arg5: memref<1x128xf32, #tpu.memory_space<vmem>>, %arg6: memref<464x128xbf16, #tpu.memory_space<vmem>>, %arg7: memref<464x128xf32, #tpu.memory_space<vmem>>) attributes {dimension_semantics = [#tpu.dimension_semantics<parallel>, #tpu.dimension_semantics<parallel>, #tpu.dimension_semantics<arbitrary>], iteration_bounds = array<i64: 1, 1, 1>, scalar_prefetch = 0 : i64, scratch_operands = 1 : i64, tpu.core_type = #tpu.core_type<tc>, window_params = [{transform_indices = @transform_0, window_bounds = array<i64: 464, 128>}, {transform_indices = @transform_1, window_bounds = array<i64: 128, 128>}, {transform_indices = @transform_2, window_bounds = array<i64: 1, 128>}, {transform_indices = @transform_3, window_bounds = array<i64: 464, 128>}]} {
    %c0_i32 = arith.constant 0 : i32
    %0 = arith.cmpi eq, %arg2, %c0_i32 : i32
    %1 = arith.extui %0 : i1 to i32
    %c0_i32_0 = arith.constant 0 : i32
    %2 = arith.cmpi ne, %1, %c0_i32_0 : i32
    scf.if %2 {
      %cst_10 = arith.constant 0.000000e+00 : f32
      %12 = vector.broadcast %cst_10 : f32 to vector<464x128xf32>
      %c0_11 = arith.constant 0 : index
      %c0_12 = arith.constant 0 : index
      %13 = vector.load %arg7[%c0_11, %c0_12] : memref<464x128xf32, #tpu.memory_space<vmem>>, vector<464x128xf32>
      tpu.vector_store %arg7[%c0_11, %c0_12], %12 {strides = array<i32>} : memref<464x128xf32, #tpu.memory_space<vmem>>, vector<464x128xf32>,
    } else {
    }
    %c0 = arith.constant 0 : index
    %c0_1 = arith.constant 0 : index
    %3 = vector.load %arg7[%c0, %c0_1] : memref<464x128xf32, #tpu.memory_space<vmem>>, vector<464x128xf32>
    %c0_2 = arith.constant 0 : index
    %c0_3 = arith.constant 0 : index
    %4 = vector.load %arg3[%c0_2, %c0_3] : memref<464x128xbf16, #tpu.memory_space<vmem>>, vector<464x128xbf16>
    %c0_4 = arith.constant 0 : index
    %c0_5 = arith.constant 0 : index
    %5 = vector.load %arg4[%c0_4, %c0_5] : memref<128x128xbf16, #tpu.memory_space<vmem>>, vector<128x128xbf16>
    %cst = arith.constant dense<0.000000e+00> : vector<464x128xf32>
    %6 = tpu.matmul %4, %5, %cst {dimension_numbers = #tpu.dot_dimension_numbers<[1], [0], [0], [1], [0, 0, 1, 1], [], []>} : vector<464x128xbf16>, vector<128x128xbf16>, vector<464x128xf32> -> vector<464x128xf32>
    %7 = arith.addf %3, %6 : vector<464x128xf32>
    %c0_6 = arith.constant 0 : index
    %c0_7 = arith.constant 0 : index
    %8 = vector.load %arg7[%c0_6, %c0_7] : memref<464x128xf32, #tpu.memory_space<vmem>>, vector<464x128xf32>
    tpu.vector_store %arg7[%c0_6, %c0_7], %7 {strides = array<i32>} : memref<464x128xf32, #tpu.memory_space<vmem>>, vector<464x128xf32>,
    %c0_i32_8 = arith.constant 0 : i32
    %9 = arith.cmpi eq, %arg2, %c0_i32_8 : i32
    %10 = arith.extui %9 : i1 to i32
    %c0_i32_9 = arith.constant 0 : i32
    %11 = arith.cmpi ne, %10, %c0_i32_9 : i32
    scf.if %11 {
      %c0_10 = arith.constant 0 : index
      %c0_11 = arith.constant 0 : index
      %12 = vector.load %arg7[%c0_10, %c0_11] : memref<464x128xf32, #tpu.memory_space<vmem>>, vector<464x128xf32>
      %c0_12 = arith.constant 0 : index
      %c0_13 = arith.constant 0 : index
      %13 = vector.load %arg5[%c0_12, %c0_13] : memref<1x128xf32, #tpu.memory_space<vmem>>, vector<1x128xf32>
      %14 = vector.broadcast %13 : vector<1x128xf32> to vector<464x128xf32>
      %15 = arith.addf %12, %14 : vector<464x128xf32>
      %cst_14 = arith.constant 0.000000e+00 : f32
      %16 = vector.broadcast %cst_14 : f32 to vector<464x128xf32>
      %17 = arith.maximumf %15, %16 : vector<464x128xf32>
      %18 = arith.truncf %17 : vector<464x128xf32> to vector<464x128xbf16>
      %c0_15 = arith.constant 0 : index
      %c0_16 = arith.constant 0 : index
      %19 = vector.load %arg6[%c0_15, %c0_16] : memref<464x128xbf16, #tpu.memory_space<vmem>>, vector<464x128xbf16>
      tpu.vector_store %arg6[%c0_15, %c0_16], %18 {strides = array<i32>} : memref<464x128xbf16, #tpu.memory_space<vmem>>, vector<464x128xbf16>,
    } else {
    }
    return
  }
  func.func @transform_0(%arg0: i32, %arg1: i32, %arg2: i32) -> (i32, i32) {
    %c0_i32 = arith.constant 0 : i32
    return %arg0, %arg2 : i32, i32
  }
  func.func @transform_1(%arg0: i32, %arg1: i32, %arg2: i32) -> (i32, i32) {
    %c0_i32 = arith.constant 0 : i32
    return %arg2, %arg1 : i32, i32
  }
  func.func @transform_2(%arg0: i32, %arg1: i32, %arg2: i32) -> (i32, i32) {
    %c0_i32 = arith.constant 0 : i32
    %c0_i32_0 = arith.constant 0 : i32
    return %c0_i32, %arg1 : i32, i32
  }
  func.func @transform_3(%arg0: i32, %arg1: i32, %arg2: i32) -> (i32, i32) {
    %c0_i32 = arith.constant 0 : i32
    return %arg0, %arg1 : i32, i32
  }
}

module attributes {stable_mosaic.version = 11 : i64} {
  func.func @_matmul_bias_act_kernel(%arg0: i32, %arg1: i32, %arg2: i32, %arg3: memref<112x512xbf16, #tpu.memory_space<vmem>>, %arg4: memref<512x256xbf16, #tpu.memory_space<vmem>>, %arg5: memref<1x256xf32, #tpu.memory_space<vmem>>, %arg6: memref<112x256xbf16, #tpu.memory_space<vmem>>, %arg7: memref<112x256xf32, #tpu.memory_space<vmem>>) attributes {dimension_semantics = [#tpu.dimension_semantics<parallel>, #tpu.dimension_semantics<parallel>, #tpu.dimension_semantics<arbitrary>], iteration_bounds = array<i64: 1, 1, 5>, scalar_prefetch = 0 : i64, scratch_operands = 1 : i64, tpu.core_type = #tpu.core_type<tc>, window_params = [{transform_indices = @transform_0, window_bounds = array<i64: 112, 512>}, {transform_indices = @transform_1, window_bounds = array<i64: 512, 256>}, {transform_indices = @transform_2, window_bounds = array<i64: 1, 256>}, {transform_indices = @transform_3, window_bounds = array<i64: 112, 256>}]} {
    %c0_i32 = arith.constant 0 : i32
    %0 = arith.cmpi eq, %arg2, %c0_i32 : i32
    %1 = arith.extui %0 : i1 to i32
    %c0_i32_0 = arith.constant 0 : i32
    %2 = arith.cmpi ne, %1, %c0_i32_0 : i32
    scf.if %2 {
      %cst_9 = arith.constant 0.000000e+00 : f32
      %12 = vector.broadcast %cst_9 : f32 to vector<112x256xf32>
      %c0_10 = arith.constant 0 : index
      %c0_11 = arith.constant 0 : index
      %13 = vector.load %arg7[%c0_10, %c0_11] : memref<112x256xf32, #tpu.memory_space<vmem>>, vector<112x256xf32>
      tpu.vector_store %arg7[%c0_10, %c0_11], %12 {strides = array<i32>} : memref<112x256xf32, #tpu.memory_space<vmem>>, vector<112x256xf32>,
    } else {
    }
    %c0 = arith.constant 0 : index
    %c0_1 = arith.constant 0 : index
    %3 = vector.load %arg7[%c0, %c0_1] : memref<112x256xf32, #tpu.memory_space<vmem>>, vector<112x256xf32>
    %c0_2 = arith.constant 0 : index
    %c0_3 = arith.constant 0 : index
    %4 = vector.load %arg3[%c0_2, %c0_3] : memref<112x512xbf16, #tpu.memory_space<vmem>>, vector<112x512xbf16>
    %c0_4 = arith.constant 0 : index
    %c0_5 = arith.constant 0 : index
    %5 = vector.load %arg4[%c0_4, %c0_5] : memref<512x256xbf16, #tpu.memory_space<vmem>>, vector<512x256xbf16>
    %cst = arith.constant dense<0.000000e+00> : vector<112x256xf32>
    %6 = tpu.matmul %4, %5, %cst {dimension_numbers = #tpu.dot_dimension_numbers<[1], [0], [0], [1], [0, 0, 1, 1], [], []>} : vector<112x512xbf16>, vector<512x256xbf16>, vector<112x256xf32> -> vector<112x256xf32>
    %7 = arith.addf %3, %6 : vector<112x256xf32>
    %c0_6 = arith.constant 0 : index
    %c0_7 = arith.constant 0 : index
    %8 = vector.load %arg7[%c0_6, %c0_7] : memref<112x256xf32, #tpu.memory_space<vmem>>, vector<112x256xf32>
    tpu.vector_store %arg7[%c0_6, %c0_7], %7 {strides = array<i32>} : memref<112x256xf32, #tpu.memory_space<vmem>>, vector<112x256xf32>,
    %c4_i32 = arith.constant 4 : i32
    %9 = arith.cmpi eq, %arg2, %c4_i32 : i32
    %10 = arith.extui %9 : i1 to i32
    %c0_i32_8 = arith.constant 0 : i32
    %11 = arith.cmpi ne, %10, %c0_i32_8 : i32
    scf.if %11 {
      %c0_9 = arith.constant 0 : index
      %c0_10 = arith.constant 0 : index
      %12 = vector.load %arg7[%c0_9, %c0_10] : memref<112x256xf32, #tpu.memory_space<vmem>>, vector<112x256xf32>
      %c0_11 = arith.constant 0 : index
      %c0_12 = arith.constant 0 : index
      %13 = vector.load %arg5[%c0_11, %c0_12] : memref<1x256xf32, #tpu.memory_space<vmem>>, vector<1x256xf32>
      %14 = vector.broadcast %13 : vector<1x256xf32> to vector<112x256xf32>
      %15 = arith.addf %12, %14 : vector<112x256xf32>
      %cst_13 = arith.constant 0.000000e+00 : f32
      %16 = vector.broadcast %cst_13 : f32 to vector<112x256xf32>
      %17 = arith.maximumf %15, %16 : vector<112x256xf32>
      %18 = arith.truncf %17 : vector<112x256xf32> to vector<112x256xbf16>
      %c0_14 = arith.constant 0 : index
      %c0_15 = arith.constant 0 : index
      %19 = vector.load %arg6[%c0_14, %c0_15] : memref<112x256xbf16, #tpu.memory_space<vmem>>, vector<112x256xbf16>
      tpu.vector_store %arg6[%c0_14, %c0_15], %18 {strides = array<i32>} : memref<112x256xbf16, #tpu.memory_space<vmem>>, vector<112x256xbf16>,
    } else {
    }
    return
  }
  func.func @transform_0(%arg0: i32, %arg1: i32, %arg2: i32) -> (i32, i32) {
    %c0_i32 = arith.constant 0 : i32
    return %arg0, %arg2 : i32, i32
  }
  func.func @transform_1(%arg0: i32, %arg1: i32, %arg2: i32) -> (i32, i32) {
    %c0_i32 = arith.constant 0 : i32
    return %arg2, %arg1 : i32, i32
  }
  func.func @transform_2(%arg0: i32, %arg1: i32, %arg2: i32) -> (i32, i32) {
    %c0_i32 = arith.constant 0 : i32
    %c0_i32_0 = arith.constant 0 : i32
    return %c0_i32, %arg1 : i32, i32
  }
  func.func @transform_3(%arg0: i32, %arg1: i32, %arg2: i32) -> (i32, i32) {
    %c0_i32 = arith.constant 0 : i32
    return %arg0, %arg1 : i32, i32
  }
}

module attributes {stable_mosaic.version = 11 : i64} {
  func.func @_matmul_bias_act_kernel(%arg0: i32, %arg1: i32, %arg2: i32, %arg3: memref<32x512xbf16, #tpu.memory_space<vmem>>, %arg4: memref<512x384xbf16, #tpu.memory_space<vmem>>, %arg5: memref<1x384xf32, #tpu.memory_space<vmem>>, %arg6: memref<32x384xbf16, #tpu.memory_space<vmem>>, %arg7: memref<32x384xf32, #tpu.memory_space<vmem>>) attributes {dimension_semantics = [#tpu.dimension_semantics<parallel>, #tpu.dimension_semantics<parallel>, #tpu.dimension_semantics<arbitrary>], iteration_bounds = array<i64: 1, 1, 5>, scalar_prefetch = 0 : i64, scratch_operands = 1 : i64, tpu.core_type = #tpu.core_type<tc>, window_params = [{transform_indices = @transform_0, window_bounds = array<i64: 32, 512>}, {transform_indices = @transform_1, window_bounds = array<i64: 512, 384>}, {transform_indices = @transform_2, window_bounds = array<i64: 1, 384>}, {transform_indices = @transform_3, window_bounds = array<i64: 32, 384>}]} {
    %c0_i32 = arith.constant 0 : i32
    %0 = arith.cmpi eq, %arg2, %c0_i32 : i32
    %1 = arith.extui %0 : i1 to i32
    %c0_i32_0 = arith.constant 0 : i32
    %2 = arith.cmpi ne, %1, %c0_i32_0 : i32
    scf.if %2 {
      %cst_9 = arith.constant 0.000000e+00 : f32
      %12 = vector.broadcast %cst_9 : f32 to vector<32x384xf32>
      %c0_10 = arith.constant 0 : index
      %c0_11 = arith.constant 0 : index
      %13 = vector.load %arg7[%c0_10, %c0_11] : memref<32x384xf32, #tpu.memory_space<vmem>>, vector<32x384xf32>
      tpu.vector_store %arg7[%c0_10, %c0_11], %12 {strides = array<i32>} : memref<32x384xf32, #tpu.memory_space<vmem>>, vector<32x384xf32>,
    } else {
    }
    %c0 = arith.constant 0 : index
    %c0_1 = arith.constant 0 : index
    %3 = vector.load %arg7[%c0, %c0_1] : memref<32x384xf32, #tpu.memory_space<vmem>>, vector<32x384xf32>
    %c0_2 = arith.constant 0 : index
    %c0_3 = arith.constant 0 : index
    %4 = vector.load %arg3[%c0_2, %c0_3] : memref<32x512xbf16, #tpu.memory_space<vmem>>, vector<32x512xbf16>
    %c0_4 = arith.constant 0 : index
    %c0_5 = arith.constant 0 : index
    %5 = vector.load %arg4[%c0_4, %c0_5] : memref<512x384xbf16, #tpu.memory_space<vmem>>, vector<512x384xbf16>
    %cst = arith.constant dense<0.000000e+00> : vector<32x384xf32>
    %6 = tpu.matmul %4, %5, %cst {dimension_numbers = #tpu.dot_dimension_numbers<[1], [0], [0], [1], [0, 0, 1, 1], [], []>} : vector<32x512xbf16>, vector<512x384xbf16>, vector<32x384xf32> -> vector<32x384xf32>
    %7 = arith.addf %3, %6 : vector<32x384xf32>
    %c0_6 = arith.constant 0 : index
    %c0_7 = arith.constant 0 : index
    %8 = vector.load %arg7[%c0_6, %c0_7] : memref<32x384xf32, #tpu.memory_space<vmem>>, vector<32x384xf32>
    tpu.vector_store %arg7[%c0_6, %c0_7], %7 {strides = array<i32>} : memref<32x384xf32, #tpu.memory_space<vmem>>, vector<32x384xf32>,
    %c4_i32 = arith.constant 4 : i32
    %9 = arith.cmpi eq, %arg2, %c4_i32 : i32
    %10 = arith.extui %9 : i1 to i32
    %c0_i32_8 = arith.constant 0 : i32
    %11 = arith.cmpi ne, %10, %c0_i32_8 : i32
    scf.if %11 {
      %c0_9 = arith.constant 0 : index
      %c0_10 = arith.constant 0 : index
      %12 = vector.load %arg7[%c0_9, %c0_10] : memref<32x384xf32, #tpu.memory_space<vmem>>, vector<32x384xf32>
      %c0_11 = arith.constant 0 : index
      %c0_12 = arith.constant 0 : index
      %13 = vector.load %arg5[%c0_11, %c0_12] : memref<1x384xf32, #tpu.memory_space<vmem>>, vector<1x384xf32>
      %14 = vector.broadcast %13 : vector<1x384xf32> to vector<32x384xf32>
      %15 = arith.addf %12, %14 : vector<32x384xf32>
      %cst_13 = arith.constant 0.000000e+00 : f32
      %16 = vector.broadcast %cst_13 : f32 to vector<32x384xf32>
      %17 = arith.maximumf %15, %16 : vector<32x384xf32>
      %18 = arith.truncf %17 : vector<32x384xf32> to vector<32x384xbf16>
      %c0_14 = arith.constant 0 : index
      %c0_15 = arith.constant 0 : index
      %19 = vector.load %arg6[%c0_14, %c0_15] : memref<32x384xbf16, #tpu.memory_space<vmem>>, vector<32x384xbf16>
      tpu.vector_store %arg6[%c0_14, %c0_15], %18 {strides = array<i32>} : memref<32x384xbf16, #tpu.memory_space<vmem>>, vector<32x384xbf16>,
    } else {
    }
    return
  }
  func.func @transform_0(%arg0: i32, %arg1: i32, %arg2: i32) -> (i32, i32) {
    %c0_i32 = arith.constant 0 : i32
    return %arg0, %arg2 : i32, i32
  }
  func.func @transform_1(%arg0: i32, %arg1: i32, %arg2: i32) -> (i32, i32) {
    %c0_i32 = arith.constant 0 : i32
    return %arg2, %arg1 : i32, i32
  }
  func.func @transform_2(%arg0: i32, %arg1: i32, %arg2: i32) -> (i32, i32) {
    %c0_i32 = arith.constant 0 : i32
    %c0_i32_0 = arith.constant 0 : i32
    return %c0_i32, %arg1 : i32, i32
  }
  func.func @transform_3(%arg0: i32, %arg1: i32, %arg2: i32) -> (i32, i32) {
    %c0_i32 = arith.constant 0 : i32
    return %arg0, %arg1 : i32, i32
  }
}

module attributes {stable_mosaic.version = 11 : i64} {
  func.func @_matmul_bias_act_kernel(%arg0: i32, %arg1: i32, %arg2: i32, %arg3: memref<32x512xbf16, #tpu.memory_space<vmem>>, %arg4: memref<512x256xbf16, #tpu.memory_space<vmem>>, %arg5: memref<1x256xf32, #tpu.memory_space<vmem>>, %arg6: memref<32x256xbf16, #tpu.memory_space<vmem>>, %arg7: memref<32x256xf32, #tpu.memory_space<vmem>>) attributes {dimension_semantics = [#tpu.dimension_semantics<parallel>, #tpu.dimension_semantics<parallel>, #tpu.dimension_semantics<arbitrary>], iteration_bounds = array<i64: 1, 1, 7>, scalar_prefetch = 0 : i64, scratch_operands = 1 : i64, tpu.core_type = #tpu.core_type<tc>, window_params = [{transform_indices = @transform_0, window_bounds = array<i64: 32, 512>}, {transform_indices = @transform_1, window_bounds = array<i64: 512, 256>}, {transform_indices = @transform_2, window_bounds = array<i64: 1, 256>}, {transform_indices = @transform_3, window_bounds = array<i64: 32, 256>}]} {
    %c0_i32 = arith.constant 0 : i32
    %0 = arith.cmpi eq, %arg2, %c0_i32 : i32
    %1 = arith.extui %0 : i1 to i32
    %c0_i32_0 = arith.constant 0 : i32
    %2 = arith.cmpi ne, %1, %c0_i32_0 : i32
    scf.if %2 {
      %cst_9 = arith.constant 0.000000e+00 : f32
      %12 = vector.broadcast %cst_9 : f32 to vector<32x256xf32>
      %c0_10 = arith.constant 0 : index
      %c0_11 = arith.constant 0 : index
      %13 = vector.load %arg7[%c0_10, %c0_11] : memref<32x256xf32, #tpu.memory_space<vmem>>, vector<32x256xf32>
      tpu.vector_store %arg7[%c0_10, %c0_11], %12 {strides = array<i32>} : memref<32x256xf32, #tpu.memory_space<vmem>>, vector<32x256xf32>,
    } else {
    }
    %c0 = arith.constant 0 : index
    %c0_1 = arith.constant 0 : index
    %3 = vector.load %arg7[%c0, %c0_1] : memref<32x256xf32, #tpu.memory_space<vmem>>, vector<32x256xf32>
    %c0_2 = arith.constant 0 : index
    %c0_3 = arith.constant 0 : index
    %4 = vector.load %arg3[%c0_2, %c0_3] : memref<32x512xbf16, #tpu.memory_space<vmem>>, vector<32x512xbf16>
    %c0_4 = arith.constant 0 : index
    %c0_5 = arith.constant 0 : index
    %5 = vector.load %arg4[%c0_4, %c0_5] : memref<512x256xbf16, #tpu.memory_space<vmem>>, vector<512x256xbf16>
    %cst = arith.constant dense<0.000000e+00> : vector<32x256xf32>
    %6 = tpu.matmul %4, %5, %cst {dimension_numbers = #tpu.dot_dimension_numbers<[1], [0], [0], [1], [0, 0, 1, 1], [], []>} : vector<32x512xbf16>, vector<512x256xbf16>, vector<32x256xf32> -> vector<32x256xf32>
    %7 = arith.addf %3, %6 : vector<32x256xf32>
    %c0_6 = arith.constant 0 : index
    %c0_7 = arith.constant 0 : index
    %8 = vector.load %arg7[%c0_6, %c0_7] : memref<32x256xf32, #tpu.memory_space<vmem>>, vector<32x256xf32>
    tpu.vector_store %arg7[%c0_6, %c0_7], %7 {strides = array<i32>} : memref<32x256xf32, #tpu.memory_space<vmem>>, vector<32x256xf32>,
    %c6_i32 = arith.constant 6 : i32
    %9 = arith.cmpi eq, %arg2, %c6_i32 : i32
    %10 = arith.extui %9 : i1 to i32
    %c0_i32_8 = arith.constant 0 : i32
    %11 = arith.cmpi ne, %10, %c0_i32_8 : i32
    scf.if %11 {
      %c0_9 = arith.constant 0 : index
      %c0_10 = arith.constant 0 : index
      %12 = vector.load %arg7[%c0_9, %c0_10] : memref<32x256xf32, #tpu.memory_space<vmem>>, vector<32x256xf32>
      %c0_11 = arith.constant 0 : index
      %c0_12 = arith.constant 0 : index
      %13 = vector.load %arg5[%c0_11, %c0_12] : memref<1x256xf32, #tpu.memory_space<vmem>>, vector<1x256xf32>
      %14 = vector.broadcast %13 : vector<1x256xf32> to vector<32x256xf32>
      %15 = arith.addf %12, %14 : vector<32x256xf32>
      %cst_13 = arith.constant 0.000000e+00 : f32
      %16 = vector.broadcast %cst_13 : f32 to vector<32x256xf32>
      %17 = arith.maximumf %15, %16 : vector<32x256xf32>
      %18 = arith.truncf %17 : vector<32x256xf32> to vector<32x256xbf16>
      %c0_14 = arith.constant 0 : index
      %c0_15 = arith.constant 0 : index
      %19 = vector.load %arg6[%c0_14, %c0_15] : memref<32x256xbf16, #tpu.memory_space<vmem>>, vector<32x256xbf16>
      tpu.vector_store %arg6[%c0_14, %c0_15], %18 {strides = array<i32>} : memref<32x256xbf16, #tpu.memory_space<vmem>>, vector<32x256xbf16>,
    } else {
    }
    return
  }
  func.func @transform_0(%arg0: i32, %arg1: i32, %arg2: i32) -> (i32, i32) {
    %c0_i32 = arith.constant 0 : i32
    return %arg0, %arg2 : i32, i32
  }
  func.func @transform_1(%arg0: i32, %arg1: i32, %arg2: i32) -> (i32, i32) {
    %c0_i32 = arith.constant 0 : i32
    return %arg2, %arg1 : i32, i32
  }
  func.func @transform_2(%arg0: i32, %arg1: i32, %arg2: i32) -> (i32, i32) {
    %c0_i32 = arith.constant 0 : i32
    %c0_i32_0 = arith.constant 0 : i32
    return %c0_i32, %arg1 : i32, i32
  }
  func.func @transform_3(%arg0: i32, %arg1: i32, %arg2: i32) -> (i32, i32) {
    %c0_i32 = arith.constant 0 : i32
    return %arg0, %arg1 : i32, i32
  }
}

module attributes {stable_mosaic.version = 11 : i64} {
  func.func @_matmul_bias_act_kernel(%arg0: i32, %arg1: i32, %arg2: i32, %arg3: memref<32x512xbf16, #tpu.memory_space<vmem>>, %arg4: memref<512x384xbf16, #tpu.memory_space<vmem>>, %arg5: memref<1x384xf32, #tpu.memory_space<vmem>>, %arg6: memref<32x384xbf16, #tpu.memory_space<vmem>>, %arg7: memref<32x384xf32, #tpu.memory_space<vmem>>) attributes {dimension_semantics = [#tpu.dimension_semantics<parallel>, #tpu.dimension_semantics<parallel>, #tpu.dimension_semantics<arbitrary>], iteration_bounds = array<i64: 1, 1, 7>, scalar_prefetch = 0 : i64, scratch_operands = 1 : i64, tpu.core_type = #tpu.core_type<tc>, window_params = [{transform_indices = @transform_0, window_bounds = array<i64: 32, 512>}, {transform_indices = @transform_1, window_bounds = array<i64: 512, 384>}, {transform_indices = @transform_2, window_bounds = array<i64: 1, 384>}, {transform_indices = @transform_3, window_bounds = array<i64: 32, 384>}]} {
    %c0_i32 = arith.constant 0 : i32
    %0 = arith.cmpi eq, %arg2, %c0_i32 : i32
    %1 = arith.extui %0 : i1 to i32
    %c0_i32_0 = arith.constant 0 : i32
    %2 = arith.cmpi ne, %1, %c0_i32_0 : i32
    scf.if %2 {
      %cst_9 = arith.constant 0.000000e+00 : f32
      %12 = vector.broadcast %cst_9 : f32 to vector<32x384xf32>
      %c0_10 = arith.constant 0 : index
      %c0_11 = arith.constant 0 : index
      %13 = vector.load %arg7[%c0_10, %c0_11] : memref<32x384xf32, #tpu.memory_space<vmem>>, vector<32x384xf32>
      tpu.vector_store %arg7[%c0_10, %c0_11], %12 {strides = array<i32>} : memref<32x384xf32, #tpu.memory_space<vmem>>, vector<32x384xf32>,
    } else {
    }
    %c0 = arith.constant 0 : index
    %c0_1 = arith.constant 0 : index
    %3 = vector.load %arg7[%c0, %c0_1] : memref<32x384xf32, #tpu.memory_space<vmem>>, vector<32x384xf32>
    %c0_2 = arith.constant 0 : index
    %c0_3 = arith.constant 0 : index
    %4 = vector.load %arg3[%c0_2, %c0_3] : memref<32x512xbf16, #tpu.memory_space<vmem>>, vector<32x512xbf16>
    %c0_4 = arith.constant 0 : index
    %c0_5 = arith.constant 0 : index
    %5 = vector.load %arg4[%c0_4, %c0_5] : memref<512x384xbf16, #tpu.memory_space<vmem>>, vector<512x384xbf16>
    %cst = arith.constant dense<0.000000e+00> : vector<32x384xf32>
    %6 = tpu.matmul %4, %5, %cst {dimension_numbers = #tpu.dot_dimension_numbers<[1], [0], [0], [1], [0, 0, 1, 1], [], []>} : vector<32x512xbf16>, vector<512x384xbf16>, vector<32x384xf32> -> vector<32x384xf32>
    %7 = arith.addf %3, %6 : vector<32x384xf32>
    %c0_6 = arith.constant 0 : index
    %c0_7 = arith.constant 0 : index
    %8 = vector.load %arg7[%c0_6, %c0_7] : memref<32x384xf32, #tpu.memory_space<vmem>>, vector<32x384xf32>
    tpu.vector_store %arg7[%c0_6, %c0_7], %7 {strides = array<i32>} : memref<32x384xf32, #tpu.memory_space<vmem>>, vector<32x384xf32>,
    %c6_i32 = arith.constant 6 : i32
    %9 = arith.cmpi eq, %arg2, %c6_i32 : i32
    %10 = arith.extui %9 : i1 to i32
    %c0_i32_8 = arith.constant 0 : i32
    %11 = arith.cmpi ne, %10, %c0_i32_8 : i32
    scf.if %11 {
      %c0_9 = arith.constant 0 : index
      %c0_10 = arith.constant 0 : index
      %12 = vector.load %arg7[%c0_9, %c0_10] : memref<32x384xf32, #tpu.memory_space<vmem>>, vector<32x384xf32>
      %c0_11 = arith.constant 0 : index
      %c0_12 = arith.constant 0 : index
      %13 = vector.load %arg5[%c0_11, %c0_12] : memref<1x384xf32, #tpu.memory_space<vmem>>, vector<1x384xf32>
      %14 = vector.broadcast %13 : vector<1x384xf32> to vector<32x384xf32>
      %15 = arith.addf %12, %14 : vector<32x384xf32>
      %cst_13 = arith.constant 0.000000e+00 : f32
      %16 = vector.broadcast %cst_13 : f32 to vector<32x384xf32>
      %17 = arith.maximumf %15, %16 : vector<32x384xf32>
      %18 = arith.truncf %17 : vector<32x384xf32> to vector<32x384xbf16>
      %c0_14 = arith.constant 0 : index
      %c0_15 = arith.constant 0 : index
      %19 = vector.load %arg6[%c0_14, %c0_15] : memref<32x384xbf16, #tpu.memory_space<vmem>>, vector<32x384xbf16>
      tpu.vector_store %arg6[%c0_14, %c0_15], %18 {strides = array<i32>} : memref<32x384xbf16, #tpu.memory_space<vmem>>, vector<32x384xbf16>,
    } else {
    }
    return
  }
  func.func @transform_0(%arg0: i32, %arg1: i32, %arg2: i32) -> (i32, i32) {
    %c0_i32 = arith.constant 0 : i32
    return %arg0, %arg2 : i32, i32
  }
  func.func @transform_1(%arg0: i32, %arg1: i32, %arg2: i32) -> (i32, i32) {
    %c0_i32 = arith.constant 0 : i32
    return %arg2, %arg1 : i32, i32
  }
  func.func @transform_2(%arg0: i32, %arg1: i32, %arg2: i32) -> (i32, i32) {
    %c0_i32 = arith.constant 0 : i32
    %c0_i32_0 = arith.constant 0 : i32
    return %c0_i32, %arg1 : i32, i32
  }
  func.func @transform_3(%arg0: i32, %arg1: i32, %arg2: i32) -> (i32, i32) {
    %c0_i32 = arith.constant 0 : i32
    return %arg0, %arg1 : i32, i32
  }
}

module attributes {stable_mosaic.version = 11 : i64} {
  func.func @_classifier_kernel(%arg0: memref<16x9216xbf16, #tpu.memory_space<vmem>>, %arg1: memref<9216x256xbf16, #tpu.memory_space<vmem>>, %arg2: memref<1x256xf32, #tpu.memory_space<vmem>>, %arg3: memref<256x256xbf16, #tpu.memory_space<vmem>>, %arg4: memref<1x256xf32, #tpu.memory_space<vmem>>, %arg5: memref<256x256xbf16, #tpu.memory_space<vmem>>, %arg6: memref<1x256xf32, #tpu.memory_space<vmem>>, %arg7: memref<256x256xbf16, #tpu.memory_space<vmem>>, %arg8: memref<1x256xf32, #tpu.memory_space<vmem>>, %arg9: memref<256x128xbf16, #tpu.memory_space<vmem>>, %arg10: memref<1x128xf32, #tpu.memory_space<vmem>>, %arg11: memref<16x128xf32, #tpu.memory_space<vmem>>) attributes {dimension_semantics = [], scalar_prefetch = 0 : i64, scratch_operands = 0 : i64, tpu.core_type = #tpu.core_type<tc>} {
    %c0 = arith.constant 0 : index
    %c0_0 = arith.constant 0 : index
    %0 = vector.load %arg0[%c0, %c0_0] : memref<16x9216xbf16, #tpu.memory_space<vmem>>, vector<16x9216xbf16>
    %c0_1 = arith.constant 0 : index
    %c0_2 = arith.constant 0 : index
    %1 = vector.load %arg1[%c0_1, %c0_2] : memref<9216x256xbf16, #tpu.memory_space<vmem>>, vector<9216x256xbf16>
    %cst = arith.constant dense<0.000000e+00> : vector<16x256xf32>
    %2 = tpu.matmul %0, %1, %cst {dimension_numbers = #tpu.dot_dimension_numbers<[1], [0], [0], [1], [0, 0, 1, 1], [], []>} : vector<16x9216xbf16>, vector<9216x256xbf16>, vector<16x256xf32> -> vector<16x256xf32>
    %c0_3 = arith.constant 0 : index
    %c0_4 = arith.constant 0 : index
    %3 = vector.load %arg2[%c0_3, %c0_4] : memref<1x256xf32, #tpu.memory_space<vmem>>, vector<1x256xf32>
    %4 = vector.broadcast %3 : vector<1x256xf32> to vector<16x256xf32>
    %5 = arith.addf %2, %4 : vector<16x256xf32>
    %cst_5 = arith.constant 5.000000e-01 : f32
    %6 = vector.broadcast %cst_5 : f32 to vector<16x256xf32>
    %7 = arith.mulf %6, %5 : vector<16x256xf32>
    %8 = math.tanh %7 : vector<16x256xf32>
    %cst_6 = arith.constant 1.000000e+00 : f32
    %9 = vector.broadcast %cst_6 : f32 to vector<16x256xf32>
    %10 = arith.addf %8, %9 : vector<16x256xf32>
    %cst_7 = arith.constant 5.000000e-01 : f32
    %11 = vector.broadcast %cst_7 : f32 to vector<16x256xf32>
    %12 = arith.mulf %11, %10 : vector<16x256xf32>
    %13 = arith.truncf %12 : vector<16x256xf32> to vector<16x256xbf16>
    %c0_8 = arith.constant 0 : index
    %c0_9 = arith.constant 0 : index
    %14 = vector.load %arg3[%c0_8, %c0_9] : memref<256x256xbf16, #tpu.memory_space<vmem>>, vector<256x256xbf16>
    %cst_10 = arith.constant dense<0.000000e+00> : vector<16x256xf32>
    %15 = tpu.matmul %13, %14, %cst_10 {dimension_numbers = #tpu.dot_dimension_numbers<[1], [0], [0], [1], [0, 0, 1, 1], [], []>} : vector<16x256xbf16>, vector<256x256xbf16>, vector<16x256xf32> -> vector<16x256xf32>
    %c0_11 = arith.constant 0 : index
    %c0_12 = arith.constant 0 : index
    %16 = vector.load %arg4[%c0_11, %c0_12] : memref<1x256xf32, #tpu.memory_space<vmem>>, vector<1x256xf32>
    %17 = vector.broadcast %16 : vector<1x256xf32> to vector<16x256xf32>
    %18 = arith.addf %15, %17 : vector<16x256xf32>
    %cst_13 = arith.constant 5.000000e-01 : f32
    %19 = vector.broadcast %cst_13 : f32 to vector<16x256xf32>
    %20 = arith.mulf %19, %18 : vector<16x256xf32>
    %21 = math.tanh %20 : vector<16x256xf32>
    %cst_14 = arith.constant 1.000000e+00 : f32
    %22 = vector.broadcast %cst_14 : f32 to vector<16x256xf32>
    %23 = arith.addf %21, %22 : vector<16x256xf32>
    %cst_15 = arith.constant 5.000000e-01 : f32
    %24 = vector.broadcast %cst_15 : f32 to vector<16x256xf32>
    %25 = arith.mulf %24, %23 : vector<16x256xf32>
    %26 = arith.truncf %25 : vector<16x256xf32> to vector<16x256xbf16>
    %c0_16 = arith.constant 0 : index
    %c0_17 = arith.constant 0 : index
    %27 = vector.load %arg5[%c0_16, %c0_17] : memref<256x256xbf16, #tpu.memory_space<vmem>>, vector<256x256xbf16>
    %cst_18 = arith.constant dense<0.000000e+00> : vector<16x256xf32>
    %28 = tpu.matmul %26, %27, %cst_18 {dimension_numbers = #tpu.dot_dimension_numbers<[1], [0], [0], [1], [0, 0, 1, 1], [], []>} : vector<16x256xbf16>, vector<256x256xbf16>, vector<16x256xf32> -> vector<16x256xf32>
    %c0_19 = arith.constant 0 : index
    %c0_20 = arith.constant 0 : index
    %29 = vector.load %arg6[%c0_19, %c0_20] : memref<1x256xf32, #tpu.memory_space<vmem>>, vector<1x256xf32>
    %30 = vector.broadcast %29 : vector<1x256xf32> to vector<16x256xf32>
    %31 = arith.addf %28, %30 : vector<16x256xf32>
    %cst_21 = arith.constant 5.000000e-01 : f32
    %32 = vector.broadcast %cst_21 : f32 to vector<16x256xf32>
    %33 = arith.mulf %32, %31 : vector<16x256xf32>
    %34 = math.tanh %33 : vector<16x256xf32>
    %cst_22 = arith.constant 1.000000e+00 : f32
    %35 = vector.broadcast %cst_22 : f32 to vector<16x256xf32>
    %36 = arith.addf %34, %35 : vector<16x256xf32>
    %cst_23 = arith.constant 5.000000e-01 : f32
    %37 = vector.broadcast %cst_23 : f32 to vector<16x256xf32>
    %38 = arith.mulf %37, %36 : vector<16x256xf32>
    %39 = arith.truncf %38 : vector<16x256xf32> to vector<16x256xbf16>
    %c0_24 = arith.constant 0 : index
    %c0_25 = arith.constant 0 : index
    %40 = vector.load %arg7[%c0_24, %c0_25] : memref<256x256xbf16, #tpu.memory_space<vmem>>, vector<256x256xbf16>
    %cst_26 = arith.constant dense<0.000000e+00> : vector<16x256xf32>
    %41 = tpu.matmul %39, %40, %cst_26 {dimension_numbers = #tpu.dot_dimension_numbers<[1], [0], [0], [1], [0, 0, 1, 1], [], []>} : vector<16x256xbf16>, vector<256x256xbf16>, vector<16x256xf32> -> vector<16x256xf32>
    %c0_27 = arith.constant 0 : index
    %c0_28 = arith.constant 0 : index
    %42 = vector.load %arg8[%c0_27, %c0_28] : memref<1x256xf32, #tpu.memory_space<vmem>>, vector<1x256xf32>
    %43 = vector.broadcast %42 : vector<1x256xf32> to vector<16x256xf32>
    %44 = arith.addf %41, %43 : vector<16x256xf32>
    %cst_29 = arith.constant 5.000000e-01 : f32
    %45 = vector.broadcast %cst_29 : f32 to vector<16x256xf32>
    %46 = arith.mulf %45, %44 : vector<16x256xf32>
    %47 = math.tanh %46 : vector<16x256xf32>
    %cst_30 = arith.constant 1.000000e+00 : f32
    %48 = vector.broadcast %cst_30 : f32 to vector<16x256xf32>
    %49 = arith.addf %47, %48 : vector<16x256xf32>
    %cst_31 = arith.constant 5.000000e-01 : f32
    %50 = vector.broadcast %cst_31 : f32 to vector<16x256xf32>
    %51 = arith.mulf %50, %49 : vector<16x256xf32>
    %52 = arith.truncf %51 : vector<16x256xf32> to vector<16x256xbf16>
    %c0_32 = arith.constant 0 : index
    %c0_33 = arith.constant 0 : index
    %53 = vector.load %arg9[%c0_32, %c0_33] : memref<256x128xbf16, #tpu.memory_space<vmem>>, vector<256x128xbf16>
    %cst_34 = arith.constant dense<0.000000e+00> : vector<16x128xf32>
    %54 = tpu.matmul %52, %53, %cst_34 {dimension_numbers = #tpu.dot_dimension_numbers<[1], [0], [0], [1], [0, 0, 1, 1], [], []>} : vector<16x256xbf16>, vector<256x128xbf16>, vector<16x128xf32> -> vector<16x128xf32>
    %c0_35 = arith.constant 0 : index
    %c0_36 = arith.constant 0 : index
    %55 = vector.load %arg10[%c0_35, %c0_36] : memref<1x128xf32, #tpu.memory_space<vmem>>, vector<1x128xf32>
    %56 = vector.broadcast %55 : vector<1x128xf32> to vector<16x128xf32>
    %57 = arith.addf %54, %56 : vector<16x128xf32>
    %c0_37 = arith.constant 0 : index
    %c0_38 = arith.constant 0 : index
    %58 = vector.load %arg11[%c0_37, %c0_38] : memref<16x128xf32, #tpu.memory_space<vmem>>, vector<16x128xf32>
    tpu.vector_store %arg11[%c0_37, %c0_38], %57 {strides = array<i32>} : memref<16x128xf32, #tpu.memory_space<vmem>>, vector<16x128xf32>,
    return
  }
}

</mosaic_0001>

<bundles_post_ra>
// kernel: emotion_cnn_forward.6
= control target key start
LH: loop header
LB: loop body
LE: loop exit
PB: predicated region body
PF: predicated region fallthrough
CT: control target
= control target key end

     0   :  { %v2108_v1 = vmov 0.0   ;;  %vm2109_vm0 = vmmov 0   ;;  %s2465_s0 = inlined_call_operand.vmem [shape: bf16[450,128], index: 0, kind: input, shape index: {}]   ;;  %s2466_s1 = inlined_call_operand.vmem [shape: bf16[128,128], index: 1, kind: input, shape index: {}]   ;;  %s2467_s2 = inlined_call_operand.vmem [shape: f32[1,128], index: 2, kind: input, shape index: {}]   ;;  %s2468_s3 = inlined_call_operand.vmem [shape: bf16[450,128], index: 3, kind: output, shape index: {}]  }
   0x1   :  { %v2071_v0 = vld [vmem:[%s2466_s1] sm:$0xff]   ;;  %1921 = vmatprep.subr.bf16.mxu0 %v2108_v1  ;;  %2053 = vmatprep.subr.bf16.mxu1 %v2108_v1  ;;  %v2072_v2 = vld [vmem:[%s2466_s1 + $0x8] sm:$0xff]   ;;  %v2073_v3 = vld [vmem:[%s2466_s1 + $0x10] sm:$0xff]  }
   0x2   :  { %1922 = vmatpush3.bf16.msra.mxu0 %v2071_v0  ;;  %2061 = vmatpush3.bf16.msra.mxu1 %v2071_v0  ;;  %v2074_v4 = vld [vmem:[%s2466_s1 + $0x18] sm:$0xff]   ;;  %v2075_v5 = vld [vmem:[%s2466_s1 + $0x20] sm:$0xff]   ;;  %v2076_v6 = vld [vmem:[%s2466_s1 + $0x28] sm:$0xff]  }
   0x3   :  { %1923 = vmatprep.subr.bf16.mxu0 %v2108_v1  ;;  %2054 = vmatprep.subr.bf16.mxu1 %v2108_v1  ;;  %v2077_v7 = vld [vmem:[%s2466_s1 + $0x30] sm:$0xff]   ;;  %v2078_v8 = vld [vmem:[%s2466_s1 + $0x38] sm:$0xff]   ;;  %v2079_v9 = vld [vmem:[%s2465_s0] sm:$0xff]  }
   0x4   :  { %1937 = vmatprep.mubr.msk.bf16.mxu0 %vm2109_vm0, %v2108_v1  ;;  %1997 = vmatprep.mubr.msk.bf16.mxu1 %vm2109_vm0, %v2108_v1  ;;  %v2080_v10 = vld [vmem:[%s2465_s0 + $0x78] sm:$0xff]   ;;  %v2081_v11 = vld [vmem:[%s2465_s0 + $0x8] sm:$0xff]   ;;  %v2082_v12 = vld [vmem:[%s2465_s0 + $0x80] sm:$0xff]  }
   0x5   :  { %v2083_v13 = vld [vmem:[%s2465_s0 + $0x10] sm:$0xff]   ;;  %v2084_v14 = vld [vmem:[%s2465_s0 + $0x88] sm:$0xff]   ;;  %v2085_v15 = vld [vmem:[%s2465_s0 + $0x18] sm:$0xff]  }
   0x6   :  { %1924 = vmatpush3.bf16.msra.mxu0 %v2072_v2  ;;  %2062 = vmatpush3.bf16.msra.mxu1 %v2072_v2  ;;  %v2086_v16 = vld [vmem:[%s2465_s0 + $0x90] sm:$0xff]   ;;  %v2087_v17 = vld [vmem:[%s2465_s0 + $0x20] sm:$0xff]   ;;  %v2088_v18 = vld [vmem:[%s2465_s0 + $0x98] sm:$0xff]  }
   0x7   :  { %1925 = vmatprep.subr.bf16.mxu0 %v2108_v1  ;;  %2055 = vmatprep.subr.bf16.mxu1 %v2108_v1  ;;  %v2089_v19 = vld [vmem:[%s2465_s0 + $0x28] sm:$0xff]   ;;  %v2090_v20 = vld [vmem:[%s2465_s0 + $0xa0] sm:$0xff]   ;;  %v2091_v21 = vld [vmem:[%s2465_s0 + $0x30] sm:$0xff]  }
   0x8   :  { %v2092_v22 = vld [vmem:[%s2465_s0 + $0xa8] sm:$0xff]   ;;  %v2093_v23 = vld [vmem:[%s2465_s0 + $0x38] sm:$0xff]   ;;  %v2094_v24 = vld [vmem:[%s2465_s0 + $0xb0] sm:$0xff]  }
   0x9   :  { %v2095_v25 = vld [vmem:[%s2465_s0 + $0x40] sm:$0xff]   ;;  %v2096_v26 = vld [vmem:[%s2465_s0 + $0xb8] sm:$0xff]   ;;  %v2097_v27 = vld [vmem:[%s2465_s0 + $0x48] sm:$0xff]  }
   0xa   :  { %1926 = vmatpush3.bf16.msra.mxu0 %v2073_v3  ;;  %2063 = vmatpush3.bf16.msra.mxu1 %v2073_v3  ;;  %v2098_v28 = vld [vmem:[%s2465_s0 + $0xc0] sm:$0xff]   ;;  %v2099_v29 = vld [vmem:[%s2465_s0 + $0x50] sm:$0xff]   ;;  %v2100_v30 = vld [vmem:[%s2465_s0 + $0xc8] sm:$0xff]  }
   0xb   :  { %1927 = vmatprep.subr.bf16.mxu0 %v2108_v1  ;;  %2056 = vmatprep.subr.bf16.mxu1 %v2108_v1  ;;  %v2101_v31 = vld [vmem:[%s2465_s0 + $0x58] sm:$0xff]   ;;  %v2102_v32 = vld [vmem:[%s2465_s0 + $0xd0] sm:$0xff]   ;;  %v2103_v33 = vld [vmem:[%s2465_s0 + $0x60] sm:$0xff]  }
   0xc   :  { %v2104_v34 = vld [vmem:[%s2465_s0 + $0xd8] sm:$0xff]   ;;  %v2105_v35 = vld [vmem:[%s2465_s0 + $0x68] sm:$0xff]   ;;  %v2106_v36 = vld [vmem:[%s2465_s0 + $0xe0] sm:$0xff]  }
   0xd   :  { %v2107_v37 = vld [vmem:[%s2465_s0 + $0x70] sm:$0xff]   ;;  %v2318_v38 = vld [vmem:[%s2467_s2] ss:$0 sm:$0xff] }
   0xe   :  { %1928 = vmatpush3.bf16.msra.mxu0 %v2074_v4  ;;  %2064 = vmatpush3.bf16.msra.mxu1 %v2074_v4 }
   0xf   :  { %1929 = vmatprep.subr.bf16.mxu0 %v2108_v1  ;;  %2057 = vmatprep.subr.bf16.mxu1 %v2108_v1 }
  0x12   :  { %1930 = vmatpush3.bf16.msra.mxu0 %v2075_v5  ;;  %2065 = vmatpush3.bf16.msra.mxu1 %v2075_v5 }
  0x13   :  { %1931 = vmatprep.subr.bf16.mxu0 %v2108_v1  ;;  %2058 = vmatprep.subr.bf16.mxu1 %v2108_v1 }
  0x16   :  { %1932 = vmatpush3.bf16.msra.mxu0 %v2076_v6  ;;  %2066 = vmatpush3.bf16.msra.mxu1 %v2076_v6 }
  0x17   :  { %1933 = vmatprep.subr.bf16.mxu0 %v2108_v1  ;;  %2059 = vmatprep.subr.bf16.mxu1 %v2108_v1 }
  0x1a   :  { %1934 = vmatpush3.bf16.msra.mxu0 %v2077_v7  ;;  %2067 = vmatpush3.bf16.msra.mxu1 %v2077_v7 }
  0x1b   :  { %1935 = vmatprep.subr.bf16.mxu0 %v2108_v1  ;;  %2060 = vmatprep.subr.bf16.mxu1 %v2108_v1 }
  0x1e   :  { %1936 = vmatpush3.bf16.msra.mxu0 %v2078_v8  ;;  %2068 = vmatpush3.bf16.msra.mxu1 %v2078_v8 }
  0x21   :  { %1938 = vmatmul.mubr.bf16.vlgmr.msra.gmra.mrb[0].mxu0 %v2079_v9  ;;  %1998 = vmatmul.mubr.bf16.vlgmr.msra.gmra.mrb[0].mxu1 %v2080_v10 }
  0x22   :  { %1941 = vmatprep.mubr.msk.bf16.mxu0 %vm2109_vm0, %v2108_v1  ;;  %2001 = vmatprep.mubr.msk.bf16.mxu1 %vm2109_vm0, %v2108_v1 }
  0x29   :  { %1942 = vmatmul.mubr.bf16.gmra.mrb[4].mxu0 %v2081_v11  ;;  %2002 = vmatmul.mubr.bf16.gmra.mrb[4].mxu1 %v2082_v12 }
  0x2a   :  { %1945 = vmatprep.mubr.msk.bf16.mxu0 %vm2109_vm0, %v2108_v1  ;;  %2005 = vmatprep.mubr.msk.bf16.mxu1 %vm2109_vm0, %v2108_v1 }
  0x31   :  { %1946 = vmatmul.mubr.bf16.gmra.mrb[8].mxu0 %v2083_v13  ;;  %2006 = vmatmul.mubr.bf16.gmra.mrb[8].mxu1 %v2084_v14 }
  0x32   :  { %1949 = vmatprep.mubr.msk.bf16.mxu0 %vm2109_vm0, %v2108_v1  ;;  %2009 = vmatprep.mubr.msk.bf16.mxu1 %vm2109_vm0, %v2108_v1 }
  0x39   :  { %1950 = vmatmul.mubr.bf16.gmra.mrb[12].mxu0 %v2085_v15  ;;  %2010 = vmatmul.mubr.bf16.gmra.mrb[12].mxu1 %v2086_v16 }
  0x3a   :  { %1953 = vmatprep.mubr.msk.bf16.mxu0 %vm2109_vm0, %v2108_v1  ;;  %2013 = vmatprep.mubr.msk.bf16.mxu1 %vm2109_vm0, %v2108_v1 }
  0x41   :  { %1954 = vmatmul.mubr.bf16.gmra.mrb[16].mxu0 %v2087_v17  ;;  %2014 = vmatmul.mubr.bf16.gmra.mrb[16].mxu1 %v2088_v18 }
  0x42   :  { %1957 = vmatprep.mubr.msk.bf16.mxu0 %vm2109_vm0, %v2108_v1  ;;  %2017 = vmatprep.mubr.msk.bf16.mxu1 %vm2109_vm0, %v2108_v1 }
  0x49   :  { %1958 = vmatmul.mubr.bf16.gmra.mrb[20].mxu0 %v2089_v19  ;;  %2018 = vmatmul.mubr.bf16.gmra.mrb[20].mxu1 %v2090_v20 }
  0x4a   :  { %1961 = vmatprep.mubr.msk.bf16.mxu0 %vm2109_vm0, %v2108_v1  ;;  %2021 = vmatprep.mubr.msk.bf16.mxu1 %vm2109_vm0, %v2108_v1 }
  0x51   :  { %1962 = vmatmul.mubr.bf16.gmra.mrb[24].mxu0 %v2091_v21  ;;  %2022 = vmatmul.mubr.bf16.gmra.mrb[24].mxu1 %v2092_v22 }
  0x52   :  { %1965 = vmatprep.mubr.msk.bf16.mxu0 %vm2109_vm0, %v2108_v1  ;;  %2025 = vmatprep.mubr.msk.bf16.mxu1 %vm2109_vm0, %v2108_v1 }
  0x59   :  { %1966 = vmatmul.mubr.bf16.gmra.mrb[28].mxu0 %v2093_v23  ;;  %2026 = vmatmul.mubr.bf16.gmra.mrb[28].mxu1 %v2094_v24 }
  0x5a   :  { %1969 = vmatprep.mubr.msk.bf16.mxu0 %vm2109_vm0, %v2108_v1  ;;  %2029 = vmatprep.mubr.msk.bf16.mxu1 %vm2109_vm0, %v2108_v1 }
  0x61   :  { %1970 = vmatmul.mubr.bf16.gmra.mrb[32].mxu0 %v2095_v25  ;;  %2030 = vmatmul.mubr.bf16.gmra.mrb[32].mxu1 %v2096_v26 }
  0x62   :  { %1973 = vmatprep.mubr.msk.bf16.mxu0 %vm2109_vm0, %v2108_v1  ;;  %2033 = vmatprep.mubr.msk.bf16.mxu1 %vm2109_vm0, %v2108_v1 }
  0x69   :  { %1974 = vmatmul.mubr.bf16.gmra.mrb[36].mxu0 %v2097_v27  ;;  %2034 = vmatmul.mubr.bf16.gmra.mrb[36].mxu1 %v2098_v28 }
  0x6a   :  { %1977 = vmatprep.mubr.msk.bf16.mxu0 %vm2109_vm0, %v2108_v1  ;;  %2037 = vmatprep.mubr.msk.bf16.mxu1 %vm2109_vm0, %v2108_v1 }
  0x71   :  { %1978 = vmatmul.mubr.bf16.gmra.mrb[40].mxu0 %v2099_v29  ;;  %2038 = vmatmul.mubr.bf16.gmra.mrb[40].mxu1 %v2100_v30 }
  0x72   :  { %1981 = vmatprep.mubr.msk.bf16.mxu0 %vm2109_vm0, %v2108_v1  ;;  %2041 = vmatprep.mubr.msk.bf16.mxu1 %vm2109_vm0, %v2108_v1 }
  0x79   :  { %1982 = vmatmul.mubr.bf16.gmra.mrb[44].mxu0 %v2101_v31  ;;  %2042 = vmatmul.mubr.bf16.gmra.mrb[44].mxu1 %v2102_v32 }
  0x7a   :  { %1985 = vmatprep.mubr.msk.bf16.mxu0 %vm2109_vm0, %v2108_v1  ;;  %2045 = vmatprep.mubr.msk.bf16.mxu1 %vm2109_vm0, %v2108_v1 }
  0x81   :  { %1986 = vmatmul.mubr.bf16.gmra.mrb[48].mxu0 %v2103_v33  ;;  %2046 = vmatmul.mubr.bf16.gmra.mrb[48].mxu1 %v2104_v34 }
  0x82   :  { %1989 = vmatprep.mubr.msk.bf16.mxu0 %vm2109_vm0, %v2108_v1  ;;  %2049 = vmatprep.mubr.msk.bf16.mxu1 %vm2109_vm0, %v2108_v1 }
  0x89   :  { %1990 = vmatmul.mubr.bf16.gmra.mrb[52].mxu0 %v2105_v35  ;;  %2050 = vmatmul.mubr.bf16.gmra.mrb[52].mxu1 %v2106_v36 }
  0x8a   :  { %1993 = vmatprep.mubr.msk.bf16.mxu0 %vm2109_vm0, %v2108_v1 }
  0x91   :  { %1994 = vmatmul.mubr.bf16.gmra.mrb[56].mxu0 %v2107_v37 }
  0xf4   :  { %v465_v39 = vpop.f32.mrb[0].mxu0  ;;  %v585_v40 = vpop.f32.mrb[0].mxu1 }
  0xf5   :  { %v880_v41 = vadd.f32 %v2318_v38, %v465_v39  ;;  %v1939_v42 = vpop.f32.mrb[1].mxu0  ;;  %v910_v43 = vadd.f32 %v2318_v38, %v585_v40  ;;  %v1999_v44 = vpop.f32.mrb[1].mxu1 }
  0xf6   :  { %v468_v45 = vpop.f32.mrb[2].mxu0  ;;  %v588_v46 = vpop.f32.mrb[2].mxu1 }
  0xf7   :  { %v881_v47 = vadd.f32 %v2318_v38, %v468_v45  ;;  %v1940_v48 = vpop.f32.mrb[3].mxu0  ;;  %v968_v49 = vmax.f32 %v910_v43, 0.0  ;;  %v911_v50 = vadd.f32 %v2318_v38, %v588_v46  ;;  %v2000_v51 = vpop.f32.mrb[3].mxu1  ;;  %v938_v52 = vmax.f32 %v880_v41, 0.0 }
  0xf9   :  { %v939_v53 = vmax.f32 %v881_v47, 0.0  ;;  %v969_v54 = vmax.f32 %v911_v50, 0.0 }
  0xfb   :  { %v1714_v55 = vpack.c.bf16 %v939_v53, %v938_v52  ;;  %v1789_v56 = vpack.c.bf16 %v969_v54, %v968_v49 }
  0xfc   :  { %v473_v57 = vpop.f32.mrb[4].mxu0  ;;  %v593_v58 = vpop.f32.mrb[4].mxu1 }
  0xfd   :  { %1715 = vst [vmem:[#allocation3] sm:$0xff] %v1714_v55   ;;  %1870 = vst [vmem:[#allocation3 + $0x78] sm:$0xff] %v1789_v56   ;;  %v882_v59 = vadd.f32 %v2318_v38, %v473_v57  ;;  %v1943_v60 = vpop.f32.mrb[5].mxu0  ;;  %v912_v61 = vadd.f32 %v2318_v38, %v593_v58  ;;  %v2003_v62 = vpop.f32.mrb[5].mxu1 }
  0xfe   :  { %v476_v63 = vpop.f32.mrb[6].mxu0  ;;  %v596_v0 = vpop.f32.mrb[6].mxu1 }
  0xff   :  { %v883_v1 = vadd.f32 %v2318_v38, %v476_v63  ;;  %v1944_v2 = vpop.f32.mrb[7].mxu0  ;;  %v970_v3 = vmax.f32 %v912_v61, 0.0  ;;  %v913_v4 = vadd.f32 %v2318_v38, %v596_v0  ;;  %v2004_v5 = vpop.f32.mrb[7].mxu1  ;;  %v940_v6 = vmax.f32 %v882_v59, 0.0 }
 0x101   :  { %v941_v7 = vmax.f32 %v883_v1, 0.0  ;;  %v971_v8 = vmax.f32 %v913_v4, 0.0 }
 0x103   :  { %v1719_v9 = vpack.c.bf16 %v941_v7, %v940_v6  ;;  %v1794_v10 = vpack.c.bf16 %v971_v8, %v970_v3 }
 0x104   :  { %v1303_v11 = vld [vmem:[#allocation3] sm:$0xff]   ;;  %v1363_v12 = vld [vmem:[#allocation3 + $0x78] sm:$0xff]   ;;  %v481_v13 = vpop.f32.mrb[8].mxu0  ;;  %v601_v14 = vpop.f32.mrb[8].mxu1 }
 0x105   :  { %1304 = vst [vmem:[%s2468_s3] sm:$0xff] %v1303_v11   ;;  %1364 = vst [vmem:[%s2468_s3 + $0x78] sm:$0xff] %v1363_v12   ;;  %v884_v15 = vadd.f32 %v2318_v38, %v481_v13  ;;  %v1947_v16 = vpop.f32.mrb[9].mxu0  ;;  %v914_v17 = vadd.f32 %v2318_v38, %v601_v14  ;;  %v2007_v18 = vpop.f32.mrb[9].mxu1 }
 0x106   :  { %1856 = vst [vmem:[#allocation3 + $0x8] sm:$0xff] %v1719_v9   ;;  %1871 = vst [vmem:[#allocation3 + $0x80] sm:$0xff] %v1794_v10   ;;  %v484_v19 = vpop.f32.mrb[10].mxu0  ;;  %v604_v20 = vpop.f32.mrb[10].mxu1 }
 0x107   :  { %v885_v21 = vadd.f32 %v2318_v38, %v484_v19  ;;  %v1948_v22 = vpop.f32.mrb[11].mxu0  ;;  %v972_v23 = vmax.f32 %v914_v17, 0.0  ;;  %v915_v24 = vadd.f32 %v2318_v38, %v604_v20  ;;  %v2008_v25 = vpop.f32.mrb[11].mxu1  ;;  %v942_v26 = vmax.f32 %v884_v15, 0.0 }
 0x109   :  { %v943_v27 = vmax.f32 %v885_v21, 0.0  ;;  %v973_v28 = vmax.f32 %v915_v24, 0.0 }
 0x10b   :  { %v1724_v29 = vpack.c.bf16 %v943_v27, %v942_v26  ;;  %v1799_v30 = vpack.c.bf16 %v973_v28, %v972_v23 }
 0x10c   :  { %v489_v33 = vpop.f32.mrb[12].mxu0  ;;  %v609_v34 = vpop.f32.mrb[12].mxu1 }
 0x10d   :  { %v1307_v31 = vld [vmem:[#allocation3 + $0x8] sm:$0xff]   ;;  %v1367_v32 = vld [vmem:[#allocation3 + $0x80] sm:$0xff]   ;;  %1857 = vst [vmem:[#allocation3 + $0x10] sm:$0xff] %v1724_v29   ;;  %1872 = vst [vmem:[#allocation3 + $0x88] sm:$0xff] %v1799_v30   ;;  %v886_v35 = vadd.f32 %v2318_v38, %v489_v33  ;;  %v1951_v36 = vpop.f32.mrb[13].mxu0  ;;  %v916_v37 = vadd.f32 %v2318_v38, %v609_v34  ;;  %v2011_v39 = vpop.f32.mrb[13].mxu1 }
 0x10e   :  { %1308 = vst [vmem:[%s2468_s3 + $0x8] sm:$0xff] %v1307_v31   ;;  %1368 = vst [vmem:[%s2468_s3 + $0x80] sm:$0xff] %v1367_v32   ;;  %v492_v40 = vpop.f32.mrb[14].mxu0  ;;  %v612_v41 = vpop.f32.mrb[14].mxu1 }
 0x10f   :  { %v887_v42 = vadd.f32 %v2318_v38, %v492_v40  ;;  %v1952_v43 = vpop.f32.mrb[15].mxu0  ;;  %v974_v44 = vmax.f32 %v916_v37, 0.0  ;;  %v917_v45 = vadd.f32 %v2318_v38, %v612_v41  ;;  %v2012_v46 = vpop.f32.mrb[15].mxu1  ;;  %v944_v47 = vmax.f32 %v886_v35, 0.0 }
 0x111   :  { %v945_v48 = vmax.f32 %v887_v42, 0.0  ;;  %v975_v49 = vmax.f32 %v917_v45, 0.0 }
 0x113   :  { %v1729_v50 = vpack.c.bf16 %v945_v48, %v944_v47  ;;  %v1804_v51 = vpack.c.bf16 %v975_v49, %v974_v44 }
 0x114   :  { %v1311_v52 = vld [vmem:[#allocation3 + $0x10] sm:$0xff]   ;;  %v1371_v53 = vld [vmem:[#allocation3 + $0x88] sm:$0xff]   ;;  %v497_v54 = vpop.f32.mrb[16].mxu0  ;;  %v617_v55 = vpop.f32.mrb[16].mxu1 }
 0x115   :  { %1312 = vst [vmem:[%s2468_s3 + $0x10] sm:$0xff] %v1311_v52   ;;  %1372 = vst [vmem:[%s2468_s3 + $0x88] sm:$0xff] %v1371_v53   ;;  %v888_v56 = vadd.f32 %v2318_v38, %v497_v54  ;;  %v1955_v57 = vpop.f32.mrb[17].mxu0  ;;  %v918_v58 = vadd.f32 %v2318_v38, %v617_v55  ;;  %v2015_v59 = vpop.f32.mrb[17].mxu1 }
 0x116   :  { %1858 = vst [vmem:[#allocation3 + $0x18] sm:$0xff] %v1729_v50   ;;  %1873 = vst [vmem:[#allocation3 + $0x90] sm:$0xff] %v1804_v51   ;;  %v500_v60 = vpop.f32.mrb[18].mxu0  ;;  %v620_v61 = vpop.f32.mrb[18].mxu1 }
 0x117   :  { %v889_v62 = vadd.f32 %v2318_v38, %v500_v60  ;;  %v1956_v63 = vpop.f32.mrb[19].mxu0  ;;  %v976_v0 = vmax.f32 %v918_v58, 0.0  ;;  %v919_v1 = vadd.f32 %v2318_v38, %v620_v61  ;;  %v2016_v2 = vpop.f32.mrb[19].mxu1  ;;  %v946_v3 = vmax.f32 %v888_v56, 0.0 }
 0x119   :  { %v947_v4 = vmax.f32 %v889_v62, 0.0  ;;  %v977_v5 = vmax.f32 %v919_v1, 0.0 }
 0x11b   :  { %v1734_v6 = vpack.c.bf16 %v947_v4, %v946_v3  ;;  %v1809_v7 = vpack.c.bf16 %v977_v5, %v976_v0 }
 0x11c   :  { %v505_v10 = vpop.f32.mrb[20].mxu0  ;;  %v625_v11 = vpop.f32.mrb[20].mxu1 }
 0x11d   :  { %v1315_v8 = vld [vmem:[#allocation3 + $0x18] sm:$0xff]   ;;  %v1375_v9 = vld [vmem:[#allocation3 + $0x90] sm:$0xff]   ;;  %1859 = vst [vmem:[#allocation3 + $0x20] sm:$0xff] %v1734_v6   ;;  %1874 = vst [vmem:[#allocation3 + $0x98] sm:$0xff] %v1809_v7   ;;  %v890_v12 = vadd.f32 %v2318_v38, %v505_v10  ;;  %v1959_v13 = vpop.f32.mrb[21].mxu0  ;;  %v920_v14 = vadd.f32 %v2318_v38, %v625_v11  ;;  %v2019_v15 = vpop.f32.mrb[21].mxu1 }
 0x11e   :  { %1316 = vst [vmem:[%s2468_s3 + $0x18] sm:$0xff] %v1315_v8   ;;  %1376 = vst [vmem:[%s2468_s3 + $0x90] sm:$0xff] %v1375_v9   ;;  %v508_v16 = vpop.f32.mrb[22].mxu0  ;;  %v628_v17 = vpop.f32.mrb[22].mxu1 }
 0x11f   :  { %v891_v18 = vadd.f32 %v2318_v38, %v508_v16  ;;  %v1960_v19 = vpop.f32.mrb[23].mxu0  ;;  %v978_v20 = vmax.f32 %v920_v14, 0.0  ;;  %v921_v21 = vadd.f32 %v2318_v38, %v628_v17  ;;  %v2020_v22 = vpop.f32.mrb[23].mxu1  ;;  %v948_v23 = vmax.f32 %v890_v12, 0.0 }
 0x121   :  { %v949_v24 = vmax.f32 %v891_v18, 0.0  ;;  %v979_v25 = vmax.f32 %v921_v21, 0.0 }
 0x123   :  { %v1739_v26 = vpack.c.bf16 %v949_v24, %v948_v23  ;;  %v1814_v27 = vpack.c.bf16 %v979_v25, %v978_v20 }
 0x124   :  { %v1319_v28 = vld [vmem:[#allocation3 + $0x20] sm:$0xff]   ;;  %v1379_v29 = vld [vmem:[#allocation3 + $0x98] sm:$0xff]   ;;  %v513_v30 = vpop.f32.mrb[24].mxu0  ;;  %v633_v31 = vpop.f32.mrb[24].mxu1 }
 0x125   :  { %1320 = vst [vmem:[%s2468_s3 + $0x20] sm:$0xff] %v1319_v28   ;;  %1380 = vst [vmem:[%s2468_s3 + $0x98] sm:$0xff] %v1379_v29   ;;  %v892_v32 = vadd.f32 %v2318_v38, %v513_v30  ;;  %v1963_v33 = vpop.f32.mrb[25].mxu0  ;;  %v922_v34 = vadd.f32 %v2318_v38, %v633_v31  ;;  %v2023_v35 = vpop.f32.mrb[25].mxu1 }
 0x126   :  { %1860 = vst [vmem:[#allocation3 + $0x28] sm:$0xff] %v1739_v26   ;;  %1875 = vst [vmem:[#allocation3 + $0xa0] sm:$0xff] %v1814_v27   ;;  %v516_v36 = vpop.f32.mrb[26].mxu0  ;;  %v636_v37 = vpop.f32.mrb[26].mxu1 }
 0x127   :  { %v893_v39 = vadd.f32 %v2318_v38, %v516_v36  ;;  %v1964_v40 = vpop.f32.mrb[27].mxu0  ;;  %v980_v41 = vmax.f32 %v922_v34, 0.0  ;;  %v923_v42 = vadd.f32 %v2318_v38, %v636_v37  ;;  %v2024_v43 = vpop.f32.mrb[27].mxu1  ;;  %v950_v44 = vmax.f32 %v892_v32, 0.0 }
 0x129   :  { %v951_v45 = vmax.f32 %v893_v39, 0.0  ;;  %v981_v46 = vmax.f32 %v923_v42, 0.0 }
 0x12b   :  { %v1744_v47 = vpack.c.bf16 %v951_v45, %v950_v44  ;;  %v1819_v48 = vpack.c.bf16 %v981_v46, %v980_v41 }
 0x12c   :  { %v521_v51 = vpop.f32.mrb[28].mxu0  ;;  %v641_v52 = vpop.f32.mrb[28].mxu1 }
 0x12d   :  { %v1323_v49 = vld [vmem:[#allocation3 + $0x28] sm:$0xff]   ;;  %v1383_v50 = vld [vmem:[#allocation3 + $0xa0] sm:$0xff]   ;;  %1861 = vst [vmem:[#allocation3 + $0x30] sm:$0xff] %v1744_v47   ;;  %1876 = vst [vmem:[#allocation3 + $0xa8] sm:$0xff] %v1819_v48   ;;  %v894_v53 = vadd.f32 %v2318_v38, %v521_v51  ;;  %v1967_v54 = vpop.f32.mrb[29].mxu0  ;;  %v924_v55 = vadd.f32 %v2318_v38, %v641_v52  ;;  %v2027_v56 = vpop.f32.mrb[29].mxu1 }
 0x12e   :  { %1324 = vst [vmem:[%s2468_s3 + $0x28] sm:$0xff] %v1323_v49   ;;  %1384 = vst [vmem:[%s2468_s3 + $0xa0] sm:$0xff] %v1383_v50   ;;  %v524_v57 = vpop.f32.mrb[30].mxu0  ;;  %v644_v58 = vpop.f32.mrb[30].mxu1 }
 0x12f   :  { %v895_v59 = vadd.f32 %v2318_v38, %v524_v57  ;;  %v1968_v60 = vpop.f32.mrb[31].mxu0  ;;  %v982_v61 = vmax.f32 %v924_v55, 0.0  ;;  %v925_v62 = vadd.f32 %v2318_v38, %v644_v58  ;;  %v2028_v63 = vpop.f32.mrb[31].mxu1  ;;  %v952_v0 = vmax.f32 %v894_v53, 0.0 }
 0x131   :  { %v953_v1 = vmax.f32 %v895_v59, 0.0  ;;  %v983_v2 = vmax.f32 %v925_v62, 0.0 }
 0x133   :  { %v1749_v3 = vpack.c.bf16 %v953_v1, %v952_v0  ;;  %v1824_v4 = vpack.c.bf16 %v983_v2, %v982_v61 }
 0x134   :  { %v1327_v5 = vld [vmem:[#allocation3 + $0x30] sm:$0xff]   ;;  %v1387_v6 = vld [vmem:[#allocation3 + $0xa8] sm:$0xff]   ;;  %v529_v7 = vpop.f32.mrb[32].mxu0  ;;  %v649_v8 = vpop.f32.mrb[32].mxu1 }
 0x135   :  { %1328 = vst [vmem:[%s2468_s3 + $0x30] sm:$0xff] %v1327_v5   ;;  %1388 = vst [vmem:[%s2468_s3 + $0xa8] sm:$0xff] %v1387_v6   ;;  %v896_v9 = vadd.f32 %v2318_v38, %v529_v7  ;;  %v1971_v10 = vpop.f32.mrb[33].mxu0  ;;  %v926_v11 = vadd.f32 %v2318_v38, %v649_v8  ;;  %v2031_v12 = vpop.f32.mrb[33].mxu1 }
 0x136   :  { %1862 = vst [vmem:[#allocation3 + $0x38] sm:$0xff] %v1749_v3   ;;  %1877 = vst [vmem:[#allocation3 + $0xb0] sm:$0xff] %v1824_v4   ;;  %v532_v13 = vpop.f32.mrb[34].mxu0  ;;  %v652_v14 = vpop.f32.mrb[34].mxu1 }
 0x137   :  { %v897_v15 = vadd.f32 %v2318_v38, %v532_v13  ;;  %v1972_v16 = vpop.f32.mrb[35].mxu0  ;;  %v984_v17 = vmax.f32 %v926_v11, 0.0  ;;  %v927_v18 = vadd.f32 %v2318_v38, %v652_v14  ;;  %v2032_v19 = vpop.f32.mrb[35].mxu1  ;;  %v954_v20 = vmax.f32 %v896_v9, 0.0 }
 0x139   :  { %v955_v21 = vmax.f32 %v897_v15, 0.0  ;;  %v985_v22 = vmax.f32 %v927_v18, 0.0 }
 0x13b   :  { %v1754_v23 = vpack.c.bf16 %v955_v21, %v954_v20  ;;  %v1829_v24 = vpack.c.bf16 %v985_v22, %v984_v17 }
 0x13c   :  { %v537_v27 = vpop.f32.mrb[36].mxu0  ;;  %v657_v28 = vpop.f32.mrb[36].mxu1 }
 0x13d   :  { %v1331_v25 = vld [vmem:[#allocation3 + $0x38] sm:$0xff]   ;;  %v1391_v26 = vld [vmem:[#allocation3 + $0xb0] sm:$0xff]   ;;  %1863 = vst [vmem:[#allocation3 + $0x40] sm:$0xff] %v1754_v23   ;;  %1878 = vst [vmem:[#allocation3 + $0xb8] sm:$0xff] %v1829_v24   ;;  %v898_v29 = vadd.f32 %v2318_v38, %v537_v27  ;;  %v1975_v30 = vpop.f32.mrb[37].mxu0  ;;  %v928_v31 = vadd.f32 %v2318_v38, %v657_v28  ;;  %v2035_v32 = vpop.f32.mrb[37].mxu1 }
 0x13e   :  { %1332 = vst [vmem:[%s2468_s3 + $0x38] sm:$0xff] %v1331_v25   ;;  %1392 = vst [vmem:[%s2468_s3 + $0xb0] sm:$0xff] %v1391_v26   ;;  %v540_v33 = vpop.f32.mrb[38].mxu0  ;;  %v660_v34 = vpop.f32.mrb[38].mxu1 }
 0x13f   :  { %v899_v35 = vadd.f32 %v2318_v38, %v540_v33  ;;  %v1976_v36 = vpop.f32.mrb[39].mxu0  ;;  %v986_v37 = vmax.f32 %v928_v31, 0.0  ;;  %v929_v39 = vadd.f32 %v2318_v38, %v660_v34  ;;  %v2036_v40 = vpop.f32.mrb[39].mxu1  ;;  %v956_v41 = vmax.f32 %v898_v29, 0.0 }
 0x141   :  { %v957_v42 = vmax.f32 %v899_v35, 0.0  ;;  %v987_v43 = vmax.f32 %v929_v39, 0.0 }
 0x143   :  { %v1759_v44 = vpack.c.bf16 %v957_v42, %v956_v41  ;;  %v1834_v45 = vpack.c.bf16 %v987_v43, %v986_v37 }
 0x144   :  { %v1335_v46 = vld [vmem:[#allocation3 + $0x40] sm:$0xff]   ;;  %v1395_v47 = vld [vmem:[#allocation3 + $0xb8] sm:$0xff]   ;;  %v545_v48 = vpop.f32.mrb[40].mxu0  ;;  %v665_v49 = vpop.f32.mrb[40].mxu1 }
 0x145   :  { %1336 = vst [vmem:[%s2468_s3 + $0x40] sm:$0xff] %v1335_v46   ;;  %1396 = vst [vmem:[%s2468_s3 + $0xb8] sm:$0xff] %v1395_v47   ;;  %v900_v50 = vadd.f32 %v2318_v38, %v545_v48  ;;  %v1979_v51 = vpop.f32.mrb[41].mxu0  ;;  %v930_v52 = vadd.f32 %v2318_v38, %v665_v49  ;;  %v2039_v53 = vpop.f32.mrb[41].mxu1 }
 0x146   :  { %1864 = vst [vmem:[#allocation3 + $0x48] sm:$0xff] %v1759_v44   ;;  %1879 = vst [vmem:[#allocation3 + $0xc0] sm:$0xff] %v1834_v45   ;;  %v548_v54 = vpop.f32.mrb[42].mxu0  ;;  %v668_v55 = vpop.f32.mrb[42].mxu1 }
 0x147   :  { %v901_v56 = vadd.f32 %v2318_v38, %v548_v54  ;;  %v1980_v57 = vpop.f32.mrb[43].mxu0  ;;  %v988_v58 = vmax.f32 %v930_v52, 0.0  ;;  %v931_v59 = vadd.f32 %v2318_v38, %v668_v55  ;;  %v2040_v60 = vpop.f32.mrb[43].mxu1  ;;  %v958_v61 = vmax.f32 %v900_v50, 0.0 }
 0x149   :  { %v959_v62 = vmax.f32 %v901_v56, 0.0  ;;  %v989_v63 = vmax.f32 %v931_v59, 0.0 }
 0x14b   :  { %v1764_v0 = vpack.c.bf16 %v959_v62, %v958_v61  ;;  %v1839_v1 = vpack.c.bf16 %v989_v63, %v988_v58 }
 0x14c   :  { %v553_v4 = vpop.f32.mrb[44].mxu0  ;;  %v673_v5 = vpop.f32.mrb[44].mxu1 }
 0x14d   :  { %v1339_v2 = vld [vmem:[#allocation3 + $0x48] sm:$0xff]   ;;  %v1399_v3 = vld [vmem:[#allocation3 + $0xc0] sm:$0xff]   ;;  %1865 = vst [vmem:[#allocation3 + $0x50] sm:$0xff] %v1764_v0   ;;  %1880 = vst [vmem:[#allocation3 + $0xc8] sm:$0xff] %v1839_v1   ;;  %v902_v6 = vadd.f32 %v2318_v38, %v553_v4  ;;  %v1983_v7 = vpop.f32.mrb[45].mxu0  ;;  %v932_v8 = vadd.f32 %v2318_v38, %v673_v5  ;;  %v2043_v9 = vpop.f32.mrb[45].mxu1 }
 0x14e   :  { %1340 = vst [vmem:[%s2468_s3 + $0x48] sm:$0xff] %v1339_v2   ;;  %1400 = vst [vmem:[%s2468_s3 + $0xc0] sm:$0xff] %v1399_v3   ;;  %v556_v10 = vpop.f32.mrb[46].mxu0  ;;  %v676_v11 = vpop.f32.mrb[46].mxu1 }
 0x14f   :  { %v903_v12 = vadd.f32 %v2318_v38, %v556_v10  ;;  %v1984_v13 = vpop.f32.mrb[47].mxu0  ;;  %v990_v14 = vmax.f32 %v932_v8, 0.0  ;;  %v933_v15 = vadd.f32 %v2318_v38, %v676_v11  ;;  %v2044_v16 = vpop.f32.mrb[47].mxu1  ;;  %v960_v17 = vmax.f32 %v902_v6, 0.0 }
 0x151   :  { %v961_v18 = vmax.f32 %v903_v12, 0.0  ;;  %v991_v19 = vmax.f32 %v933_v15, 0.0 }
 0x153   :  { %v1769_v20 = vpack.c.bf16 %v961_v18, %v960_v17  ;;  %v1844_v21 = vpack.c.bf16 %v991_v19, %v990_v14 }
 0x154   :  { %v1343_v22 = vld [vmem:[#allocation3 + $0x50] sm:$0xff]   ;;  %v1403_v23 = vld [vmem:[#allocation3 + $0xc8] sm:$0xff]   ;;  %v561_v24 = vpop.f32.mrb[48].mxu0  ;;  %v681_v25 = vpop.f32.mrb[48].mxu1 }
 0x155   :  { %1344 = vst [vmem:[%s2468_s3 + $0x50] sm:$0xff] %v1343_v22   ;;  %1404 = vst [vmem:[%s2468_s3 + $0xc8] sm:$0xff] %v1403_v23   ;;  %v904_v26 = vadd.f32 %v2318_v38, %v561_v24  ;;  %v1987_v27 = vpop.f32.mrb[49].mxu0  ;;  %v934_v28 = vadd.f32 %v2318_v38, %v681_v25  ;;  %v2047_v29 = vpop.f32.mrb[49].mxu1 }
 0x156   :  { %1866 = vst [vmem:[#allocation3 + $0x58] sm:$0xff] %v1769_v20   ;;  %1881 = vst [vmem:[#allocation3 + $0xd0] sm:$0xff] %v1844_v21   ;;  %v564_v30 = vpop.f32.mrb[50].mxu0  ;;  %v684_v31 = vpop.f32.mrb[50].mxu1 }
 0x157   :  { %v905_v32 = vadd.f32 %v2318_v38, %v564_v30  ;;  %v1988_v33 = vpop.f32.mrb[51].mxu0  ;;  %v992_v34 = vmax.f32 %v934_v28, 0.0  ;;  %v935_v35 = vadd.f32 %v2318_v38, %v684_v31  ;;  %v2048_v36 = vpop.f32.mrb[51].mxu1  ;;  %v962_v37 = vmax.f32 %v904_v26, 0.0 }
 0x159   :  { %v963_v39 = vmax.f32 %v905_v32, 0.0  ;;  %v993_v40 = vmax.f32 %v935_v35, 0.0 }
 0x15b   :  { %v1774_v41 = vpack.c.bf16 %v963_v39, %v962_v37  ;;  %v1849_v42 = vpack.c.bf16 %v993_v40, %v992_v34 }
 0x15c   :  { %v569_v45 = vpop.f32.mrb[52].mxu0  ;;  %v689_v46 = vpop.f32.mrb[52].mxu1 }
 0x15d   :  { %v1347_v43 = vld [vmem:[#allocation3 + $0x58] sm:$0xff]   ;;  %v1407_v44 = vld [vmem:[#allocation3 + $0xd0] sm:$0xff]   ;;  %1867 = vst [vmem:[#allocation3 + $0x60] sm:$0xff] %v1774_v41   ;;  %1882 = vst [vmem:[#allocation3 + $0xd8] sm:$0xff] %v1849_v42   ;;  %v906_v47 = vadd.f32 %v2318_v38, %v569_v45  ;;  %v1991_v48 = vpop.f32.mrb[53].mxu0  ;;  %v936_v49 = vadd.f32 %v2318_v38, %v689_v46  ;;  %v2051_v50 = vpop.f32.mrb[53].mxu1 }
 0x15e   :  { %1348 = vst [vmem:[%s2468_s3 + $0x58] sm:$0xff] %v1347_v43   ;;  %1408 = vst [vmem:[%s2468_s3 + $0xd0] sm:$0xff] %v1407_v44   ;;  %v572_v51 = vpop.f32.mrb[54].mxu0  ;;  %v692_v52 = vpop.f32.mrb[54].mxu1 }
 0x15f   :  { %v907_v53 = vadd.f32 %v2318_v38, %v572_v51  ;;  %v1992_v54 = vpop.f32.mrb[55].mxu0  ;;  %v994_v55 = vmax.f32 %v936_v49, 0.0  ;;  %v937_v56 = vadd.f32 %v2318_v38, %v692_v52  ;;  %v2052_v57 = vpop.f32.mrb[55].mxu1  ;;  %v964_v58 = vmax.f32 %v906_v47, 0.0 }
 0x161   :  { %v965_v59 = vmax.f32 %v907_v53, 0.0  ;;  %v995_v60 = vmax.f32 %v937_v56, 0.0 }
 0x163   :  { %v1779_v61 = vpack.c.bf16 %v965_v59, %v964_v58  ;;  %v1854_v62 = vpack.c.bf16 %v995_v60, %v994_v55 }
 0x164   :  { %v1351_v63 = vld [vmem:[#allocation3 + $0x60] sm:$0xff]   ;;  %v1411_v0 = vld [vmem:[#allocation3 + $0xd8] sm:$0xff]   ;;  %v577_v1 = vpop.f32.mrb[56].mxu0 }
 0x165   :  { %1352 = vst [vmem:[%s2468_s3 + $0x60] sm:$0xff] %v1351_v63   ;;  %1412 = vst [vmem:[%s2468_s3 + $0xd8] sm:$0xff] %v1411_v0   ;;  %v908_v2 = vadd.f32 %v2318_v38, %v577_v1  ;;  %v1995_v3 = vpop.f32.mrb[57].mxu0 }
 0x166   :  { %1868 = vst [vmem:[#allocation3 + $0x68] sm:$0xff] %v1779_v61   ;;  %1883 = vst [vmem:[#allocation3 + $0xe0] sm:$0xff] %v1854_v62   ;;  %v580_v4 = vpop.f32.mrb[58].mxu0 }
 0x167   :  { %v909_v5 = vadd.f32 %v2318_v38, %v580_v4  ;;  %v1996_v6 = vpop.f32.mrb[59].mxu0  ;;  %v966_v7 = vmax.f32 %v908_v2, 0.0 }
 0x169   :  { %v967_v8 = vmax.f32 %v909_v5, 0.0 }
 0x16b   :  { %v1784_v9 = vpack.c.bf16 %v967_v8, %v966_v7 }
 0x16d   :  { %v1355_v10 = vld [vmem:[#allocation3 + $0x68] sm:$0xff]   ;;  %v1415_v11 = vld [vmem:[#allocation3 + $0xe0] sm:$0xf]  ;;  %1869 = vst [vmem:[#allocation3 + $0x70] sm:$0xff] %v1784_v9  }
 0x16e   :  { %1356 = vst [vmem:[%s2468_s3 + $0x68] sm:$0xff] %v1355_v10   ;;  %1416 = vst [vmem:[%s2468_s3 + $0xe0] sm:$0xf] %v1415_v11 }
 0x174   :  { %v1359_v12 = vld [vmem:[#allocation3 + $0x70] sm:$0xff]  }
 0x175   :  { %1360 = vst [vmem:[%s2468_s3 + $0x70] sm:$0xff] %v1359_v12  }

// kernel: emotion_cnn_forward.7
= control target key start
LH: loop header
LB: loop body
LE: loop exit
PB: predicated region body
PF: predicated region fallthrough
CT: control target
= control target key end

     0   :  { %s2300_s12 = smov 0   ;;  %s2302_s13 = smov 0   ;;  %s2610_s0 = inlined_call_operand.vmem [shape: bf16[98,2560], index: 0, kind: input, shape index: {}]   ;;  %s2611_s1 = inlined_call_operand.vmem [shape: bf16[2560,256], index: 1, kind: input, shape index: {}]   ;;  %s2612_s2 = inlined_call_operand.vmem [shape: f32[1,256], index: 2, kind: input, shape index: {}]   ;;  %s2613_s3 = inlined_call_operand.vmem [shape: bf16[98,256], index: 3, kind: output, shape index: {}]  }
   0x1   :  { %s2304_s14 = smov 0   ;;  %s2306_s15 = smov 0  }
   0x2   :  { %s2308_s16 = smov 0  }
   0x3 LB: > { %s1780_s17 = sadd.s32 4294967295, %s2269_s16   ;;  %s25_s18 = sadd.s32 1, %s2265_s15  ;;  %s2269_s16 = sphi %s2308_s16, %s13_s16   ;;  %s2265_s15 = sphi %s2306_s15, %s2617_s15   ;;  %s2261_s14 = sphi %s2304_s14, %s2616_s14   ;;  %s2257_s13 = sphi %s2302_s13, %s2615_s13   ;;  %s2253_s12 = sphi %s2300_s12, %s2614_s12  }
   0x4   : > { %p26_p0 = scmp.ge.s32.totalorder %s25_s18, 5  ;;  %p48_p1 = scmp.ne.s32.totalorder %s2257_s13, %s2253_s12 }
   0x5   : > { %p49_p2 = scmp.eq.s32.totalorder %s2269_s16, 0  ;;  %s41_s20 = sadd.s32 1, %s2257_s13 }
   0x6   : > { %s2619_s18 = smov (%p26_p0, %s25_s18), 0  ;;  %p1783_p5 = scmp.ge.s32.totalorder %s2269_s16, 5 }
   0x7   : > { %p50_p3 = por %p49_p2, %p48_p1  ;;  %s37_s19 = ssub.s32 %s2265_s15, %s2619_s18 }
   0x8   : > { %p39_p4 = scmp.eq.s32.totalorder %s37_s19, 0  ;;  %164 = sbr.rel (%p1783_p5) target bundleno = 36 (0x24), region = 20 }
   0xa   : > { %s2336_s21 = scalar_select %p39_p4, %s2257_s13, %s41_s20  }
   0xf   : > { %167 = sbr.rel (!%p50_p3) target bundleno = 36 (0x24), region = 24  ;;  %s169_s22 = sand.u32 (%p50_p3), 1, %s2257_s13  }
  0x10   : > { %s1910_s23 = sshll.u32 (%p50_p3), %s2265_s15, 4  ;;  %s1954_s24 = smul.u32 (%p50_p3), 224, %s169_s22 }
  0x11   : > { %s2344_s27 = scalar_lea.vmem (%p50_p3), %s2610_s0, %s1910_s23   ;;  %s2348_s29 = smov (%p50_p3), 0  }
  0x12   : > { %s2346_s28 = scalar_lea.vmem (%p50_p3), [#allocation3], %s1954_s24  }
  0x16 LB: >> { %v198_v0 = vld [vmem:[%s2344_s27] sm:$0xff]  ;;  %v200_v1 = vld [vmem:[%s2344_s27 + $0x50] sm:$0xff]  ;;  %v224_v13 = vld [vmem:[%s2344_s27 + $0x8] sm:$0xff]  ;;  %s192_s29 = sadd.s32 1, %s2273_s29   ;;  %s2273_s29 = sphi %s2348_s29, %s192_s29  }
  0x17   : >> { %v202_v2 = vld [vmem:[%s2344_s27 + $0xa0] sm:$0xff]  ;;  %199 = vst [vmem:[%s2346_s28] sm:$0xff] %v198_v0  ;;  %201 = vst [vmem:[%s2346_s28 + $0x10] sm:$0xff] %v200_v1  ;;  %v204_v3 = vld [vmem:[%s2344_s27 + $0xf0] sm:$0xff]  ;;  %p191_p6 = scmp.ge.s32.totalorder %s192_s29, 1 }
  0x18   : >> { %203 = vst [vmem:[%s2346_s28 + $0x20] sm:$0xff] %v202_v2  ;;  %v206_v4 = vld [vmem:[%s2344_s27 + $0x140] sm:$0xff]  ;;  %v208_v5 = vld [vmem:[%s2344_s27 + $0x190] sm:$0xff]  ;;  %205 = vst [vmem:[%s2346_s28 + $0x30] sm:$0xff] %v204_v3 }
  0x19   : >> { %207 = vst [vmem:[%s2346_s28 + $0x40] sm:$0xff] %v206_v4  ;;  %209 = vst [vmem:[%s2346_s28 + $0x50] sm:$0xff] %v208_v5  ;;  %v210_v6 = vld [vmem:[%s2344_s27 + $0x1e0] sm:$0xff]  ;;  %v212_v7 = vld [vmem:[%s2344_s27 + $0x230] sm:$0xff] }
  0x1a   : >> { %v214_v8 = vld [vmem:[%s2344_s27 + $0x280] sm:$0xff]  ;;  %211 = vst [vmem:[%s2346_s28 + $0x60] sm:$0xff] %v210_v6  ;;  %213 = vst [vmem:[%s2346_s28 + $0x70] sm:$0xff] %v212_v7  ;;  %v216_v9 = vld [vmem:[%s2344_s27 + $0x2d0] sm:$0xff] }
  0x1b   : >> { %215 = vst [vmem:[%s2346_s28 + $0x80] sm:$0xff] %v214_v8  ;;  %v218_v10 = vld [vmem:[%s2344_s27 + $0x320] sm:$0xff]  ;;  %v220_v11 = vld [vmem:[%s2344_s27 + $0x370] sm:$0xff]  ;;  %217 = vst [vmem:[%s2346_s28 + $0x90] sm:$0xff] %v216_v9 }
  0x1c   : >> { %219 = vst [vmem:[%s2346_s28 + $0xa0] sm:$0xff] %v218_v10  ;;  %221 = vst [vmem:[%s2346_s28 + $0xb0] sm:$0xff] %v220_v11  ;;  %v222_v12 = vld [vmem:[%s2344_s27 + $0x3c0] sm:$0xff]  ;;  %v226_v14 = vld [vmem:[%s2344_s27 + $0x58] sm:$0xff] }
  0x1d   : >> { %223 = vst [vmem:[%s2346_s28 + $0xc0] sm:$0xff] %v222_v12  ;;  %225 = vst [vmem:[%s2346_s28 + $0x8] sm:$0xff] %v224_v13  ;;  %v228_v15 = vld [vmem:[%s2344_s27 + $0xa8] sm:$0xff]  ;;  %v230_v16 = vld [vmem:[%s2344_s27 + $0xf8] sm:$0xff]  ;;  %194 = sbr.rel (!%p191_p6) target bundleno = 22 (0x16), region = 170 }
  0x1e   : >> { %227 = vst [vmem:[%s2346_s28 + $0x18] sm:$0xff] %v226_v14  ;;  %v232_v17 = vld [vmem:[%s2344_s27 + $0x148] sm:$0xff]  ;;  %229 = vst [vmem:[%s2346_s28 + $0x28] sm:$0xff] %v228_v15  ;;  %v234_v18 = vld [vmem:[%s2344_s27 + $0x198] sm:$0xff] }
  0x1f   : >> { %231 = vst [vmem:[%s2346_s28 + $0x38] sm:$0xff] %v230_v16  ;;  %233 = vst [vmem:[%s2346_s28 + $0x48] sm:$0xff] %v232_v17  ;;  %v236_v19 = vld [vmem:[%s2344_s27 + $0x1e8] sm:$0xff]  ;;  %v238_v20 = vld [vmem:[%s2344_s27 + $0x238] sm:$0xff] }
  0x20   : >> { %235 = vst [vmem:[%s2346_s28 + $0x58] sm:$0xff] %v234_v18  ;;  %237 = vst [vmem:[%s2346_s28 + $0x68] sm:$0xff] %v236_v19  ;;  %v240_v21 = vld [vmem:[%s2344_s27 + $0x288] sm:$0xff]  ;;  %v242_v22 = vld [vmem:[%s2344_s27 + $0x2d8] sm:$0xff] }
  0x21   : >> { %239 = vst [vmem:[%s2346_s28 + $0x78] sm:$0xff] %v238_v20  ;;  %v244_v23 = vld [vmem:[%s2344_s27 + $0x328] sm:$0xff]  ;;  %241 = vst [vmem:[%s2346_s28 + $0x88] sm:$0xff] %v240_v21  ;;  %v246_v24 = vld [vmem:[%s2344_s27 + $0x378] sm:$0xff] }
  0x22   : >> { %243 = vst [vmem:[%s2346_s28 + $0x98] sm:$0xff] %v242_v22  ;;  %245 = vst [vmem:[%s2346_s28 + $0xa8] sm:$0xff] %v244_v23  ;;  %v248_v25 = vld [vmem:[%s2344_s27 + $0x3c8] sm:$0xff] }
  0x23   : >> { %247 = vst [vmem:[%s2346_s28 + $0xb8] sm:$0xff] %v246_v24  ;;  %249 = vst [vmem:[%s2346_s28 + $0xc8] sm:$0xff] %v248_v25 }
  0x24 PF: > { %p1791_p7 = scmp.ge.s32.totalorder %s2269_s16, 1  ;;  %p303_p8 = scmp.lt.s32.totalorder %s2269_s16, 6 }
  0x26   : > { %p304_p9 = pnand %p1791_p7, %p303_p8 }
  0x27   : > { %s310_s30 = sand.u32 (!%p304_p9), 1, %s2253_s12   ;;  %s1792_s4 = sshll.u32 (!%p304_p9), %s2261_s14, 6 }
  0x28   : > { %307 = sbr.rel (%p304_p9) target bundleno = 428 (0x1ac), region = 58  ;;  %p349_p10 = scmp.lt.s32.totalorder (!%p304_p9), %s1792_s4, 319 }
  0x29   : > { %s1955_s5 = smul.u32 (!%p304_p9), 224, %s310_s30  ;;  %p1795_p11 = scmp.ne.s32.totalorder (!%p304_p9), %s2261_s14, 0 }
  0x2b   : > { %s2417_s10 = scalar_lea.vmem (!%p304_p9), [#allocation3], %s1955_s5 }
  0x2f   : > { %s2621_s4 = smov (!%p349_p10, %s1792_s4), 319  ;;  %372 = sbr.rel (%p1795_p11) target bundleno = 63 (0x3f), region = 66 }
  0x30   : > { %s1911_s6 = sshll.u32 %s2621_s4, 3  ;;  %v2279_v26 = vmov (!%p1795_p11), 0.0  }
  0x31   : > { %s2415_s9 = scalar_lea.vmem %s2611_s1, %s1911_s6  ;;  %373 = vst [vmem:[#allocation2] sm:$0xff] (!%p1795_p11), %v2279_v26  ;;  %374 = vst [vmem:[#allocation2 + $0x8] sm:$0xff] (!%p1795_p11), %v2279_v26 }
  0x32   : > { %375 = vst [vmem:[#allocation2 + $0x10] sm:$0xff] (!%p1795_p11), %v2279_v26  ;;  %376 = vst [vmem:[#allocation2 + $0x18] sm:$0xff] (!%p1795_p11), %v2279_v26 }
  0x33   : > { %377 = vst [vmem:[#allocation2 + $0x20] sm:$0xff] (!%p1795_p11), %v2279_v26  ;;  %378 = vst [vmem:[#allocation2 + $0x28] sm:$0xff] (!%p1795_p11), %v2279_v26 }
  0x34   : > { %379 = vst [vmem:[#allocation2 + $0x30] sm:$0xff] (!%p1795_p11), %v2279_v26  ;;  %380 = vst [vmem:[#allocation2 + $0x38] sm:$0xff] (!%p1795_p11), %v2279_v26 }
  0x35   : > { %381 = vst [vmem:[#allocation2 + $0x40] sm:$0xff] (!%p1795_p11), %v2279_v26  ;;  %382 = vst [vmem:[#allocation2 + $0x48] sm:$0xff] (!%p1795_p11), %v2279_v26 }
  0x36   : > { %383 = vst [vmem:[#allocation2 + $0x50] sm:$0xff] %v2279_v26  ;;  %384 = vst [vmem:[#allocation2 + $0x58] sm:$0xff] %v2279_v26 }
  0x37   : > { %385 = vst [vmem:[#allocation2 + $0x60] sm:$0xff] %v2279_v26  ;;  %386 = vst [vmem:[#allocation2 + $0x68] sm:$0xff] %v2279_v26 }
  0x38   : > { %387 = vst [vmem:[#allocation2 + $0x70] sm:$0xff] %v2279_v26  ;;  %388 = vst [vmem:[#allocation2 + $0x78] sm:$0xff] %v2279_v26 }
  0x39   : > { %389 = vst [vmem:[#allocation2 + $0x80] sm:$0xff] %v2279_v26  ;;  %390 = vst [vmem:[#allocation2 + $0x88] sm:$0xff] %v2279_v26 }
  0x3a   : > { %391 = vst [vmem:[#allocation2 + $0x90] sm:$0xff] %v2279_v26  ;;  %392 = vst [vmem:[#allocation2 + $0x98] sm:$0xff] %v2279_v26 }
  0x3b   : > { %393 = vst [vmem:[#allocation2 + $0xa0] sm:$0xff] %v2279_v26  ;;  %394 = vst [vmem:[#allocation2 + $0xa8] sm:$0xff] %v2279_v26 }
  0x3c   : > { %395 = vst [vmem:[#allocation2 + $0xb0] sm:$0xff] %v2279_v26  ;;  %396 = vst [vmem:[#allocation2 + $0xb8] sm:$0xff] %v2279_v26 }
  0x3d   : > { %397 = vst [vmem:[#allocation2 + $0xc0] sm:$0xff] %v2279_v26  ;;  %398 = vst [vmem:[#allocation2 + $0xc8] sm:$0xff] %v2279_v26 }
  0x3e   : > { %399 = vst [vmem:[#allocation2 + $0xd0] sm:$0xff] %v2279_v26  ;;  %400 = vst [vmem:[#allocation2 + $0xd8] sm:$0xff] %v2279_v26 }
  0x3f PF: > { %v2061_v27 = vld [vmem:[%s2415_s9 + $0x4] ss:$8 sps:$4 sm:$0xff]   ;;  %v2065_v29 = vld [vmem:[%s2415_s9] ss:$8 sps:$4 sm:$0xff]   ;;  %v2067_v31 = vld [vmem:[%s2415_s9 + $0x14] ss:$8 sps:$4 sm:$0xff]  }
  0x40   : > { %v2063_v28 = vld [vmem:[%s2415_s9 + $0x104] ss:$8 sps:$4 sm:$0xff]   ;;  %981 = vmatprep.subr.bf16.mxu1 %v2061_v27  ;;  %v2066_v30 = vld [vmem:[%s2415_s9 + $0x100] ss:$8 sps:$4 sm:$0xff]   ;;  %v2069_v32 = vld [vmem:[%s2415_s9 + $0x114] ss:$8 sps:$4 sm:$0xff]  }
  0x41   : > { %1084 = vmatprep.subr.bf16.mxu0 %v2063_v28  ;;  %982 = vmatpush1.bf16.msra.mxu1 %v2065_v29  ;;  %v2071_v33 = vld [vmem:[%s2415_s9 + $0x10] ss:$8 sps:$4 sm:$0xff]   ;;  %v2073_v35 = vld [vmem:[%s2415_s9 + $0x24] ss:$8 sps:$4 sm:$0xff]   ;;  %v2077_v37 = vld [vmem:[%s2415_s9 + $0x20] ss:$8 sps:$4 sm:$0xff]  }
  0x42   : > { %1085 = vmatpush1.bf16.msra.mxu0 %v2066_v30  ;;  %983 = vmatprep.subr.bf16.mxu1 %v2067_v31  ;;  %v2072_v34 = vld [vmem:[%s2415_s9 + $0x110] ss:$8 sps:$4 sm:$0xff]   ;;  %v2075_v36 = vld [vmem:[%s2415_s9 + $0x124] ss:$8 sps:$4 sm:$0xff]   ;;  %v2078_v38 = vld [vmem:[%s2415_s9 + $0x120] ss:$8 sps:$4 sm:$0xff]  }
  0x43   : > { %1086 = vmatprep.subr.bf16.mxu0 %v2069_v32  ;;  %v2079_v39 = vld [vmem:[%s2415_s9 + $0x34] ss:$8 sps:$4 sm:$0xff]   ;;  %v2083_v41 = vld [vmem:[%s2415_s9 + $0x30] ss:$8 sps:$4 sm:$0xff]   ;;  %v2085_v43 = vld [vmem:[%s2415_s9 + $0x44] ss:$8 sps:$4 sm:$0xff]  }
  0x44   : > { %v2081_v40 = vld [vmem:[%s2415_s9 + $0x134] ss:$8 sps:$4 sm:$0xff]   ;;  %v2084_v42 = vld [vmem:[%s2415_s9 + $0x130] ss:$8 sps:$4 sm:$0xff]   ;;  %v2087_v44 = vld [vmem:[%s2415_s9 + $0x144] ss:$8 sps:$4 sm:$0xff]  }
  0x45   : > { %984 = vmatpush1.bf16.msra.mxu1 %v2071_v33  ;;  %v2089_v45 = vld [vmem:[%s2415_s9 + $0x40] ss:$8 sps:$4 sm:$0xff]   ;;  %v2091_v47 = vld [vmem:[%s2415_s9 + $0x54] ss:$8 sps:$4 sm:$0xff]   ;;  %v2095_v49 = vld [vmem:[%s2415_s9 + $0x50] ss:$8 sps:$4 sm:$0xff]  }
  0x46   : > { %1087 = vmatpush1.bf16.msra.mxu0 %v2072_v34  ;;  %985 = vmatprep.subr.bf16.mxu1 %v2073_v35  ;;  %v2090_v46 = vld [vmem:[%s2415_s9 + $0x140] ss:$8 sps:$4 sm:$0xff]   ;;  %v2093_v48 = vld [vmem:[%s2415_s9 + $0x154] ss:$8 sps:$4 sm:$0xff]   ;;  %v2096_v50 = vld [vmem:[%s2415_s9 + $0x150] ss:$8 sps:$4 sm:$0xff]  }
  0x47   : > { %1088 = vmatprep.subr.bf16.mxu0 %v2075_v36  ;;  %v2097_v51 = vld [vmem:[%s2415_s9 + $0x64] ss:$8 sps:$4 sm:$0xff]   ;;  %v2101_v53 = vld [vmem:[%s2415_s9 + $0x60] ss:$8 sps:$4 sm:$0xff]   ;;  %v2103_v55 = vld [vmem:[%s2415_s9 + $0x74] ss:$8 sps:$4 sm:$0xff]  }
  0x48   : > { %v2099_v52 = vld [vmem:[%s2415_s9 + $0x164] ss:$8 sps:$4 sm:$0xff]   ;;  %v2102_v54 = vld [vmem:[%s2415_s9 + $0x160] ss:$8 sps:$4 sm:$0xff]   ;;  %v2105_v56 = vld [vmem:[%s2415_s9 + $0x174] ss:$8 sps:$4 sm:$0xff]  }
  0x49   : > { %986 = vmatpush1.bf16.msra.mxu1 %v2077_v37  ;;  %v2107_v57 = vld [vmem:[%s2415_s9 + $0x70] ss:$8 sps:$4 sm:$0xff]   ;;  %v2109_v59 = vld [vmem:[%s2415_s9 + $0x84] ss:$8 sps:$4 sm:$0xff]   ;;  %v2113_v61 = vld [vmem:[%s2415_s9 + $0x80] ss:$8 sps:$4 sm:$0xff]  }
  0x4a   : > { %1089 = vmatpush1.bf16.msra.mxu0 %v2078_v38  ;;  %987 = vmatprep.subr.bf16.mxu1 %v2079_v39  ;;  %v2108_v58 = vld [vmem:[%s2415_s9 + $0x170] ss:$8 sps:$4 sm:$0xff]   ;;  %v2111_v60 = vld [vmem:[%s2415_s9 + $0x184] ss:$8 sps:$4 sm:$0xff]   ;;  %v2114_v62 = vld [vmem:[%s2415_s9 + $0x180] ss:$8 sps:$4 sm:$0xff]  }
  0x4b   : > { %1090 = vmatprep.subr.bf16.mxu0 %v2081_v40  ;;  %v2115_v63 = vld [vmem:[%s2415_s9 + $0x94] ss:$8 sps:$4 sm:$0xff]   ;;  %v2119_v1 = vld [vmem:[%s2415_s9 + $0x90] ss:$8 sps:$4 sm:$0xff]   ;;  %v2121_v3 = vld [vmem:[%s2415_s9 + $0xa4] ss:$8 sps:$4 sm:$0xff]  }
  0x4c   : > { %v2117_v0 = vld [vmem:[%s2415_s9 + $0x194] ss:$8 sps:$4 sm:$0xff]   ;;  %v2120_v2 = vld [vmem:[%s2415_s9 + $0x190] ss:$8 sps:$4 sm:$0xff]   ;;  %v2123_v4 = vld [vmem:[%s2415_s9 + $0x1a4] ss:$8 sps:$4 sm:$0xff]  }
  0x4d   : > { %988 = vmatpush1.bf16.msra.mxu1 %v2083_v41  ;;  %v2125_v5 = vld [vmem:[%s2415_s9 + $0xa0] ss:$8 sps:$4 sm:$0xff]   ;;  %v2127_v7 = vld [vmem:[%s2415_s9 + $0xb4] ss:$8 sps:$4 sm:$0xff]   ;;  %v2131_v9 = vld [vmem:[%s2415_s9 + $0xb0] ss:$8 sps:$4 sm:$0xff]  }
  0x4e   : > { %1091 = vmatpush1.bf16.msra.mxu0 %v2084_v42  ;;  %989 = vmatprep.subr.bf16.mxu1 %v2085_v43  ;;  %v2126_v6 = vld [vmem:[%s2415_s9 + $0x1a0] ss:$8 sps:$4 sm:$0xff]   ;;  %v2129_v8 = vld [vmem:[%s2415_s9 + $0x1b4] ss:$8 sps:$4 sm:$0xff]   ;;  %v2132_v10 = vld [vmem:[%s2415_s9 + $0x1b0] ss:$8 sps:$4 sm:$0xff]  }
  0x4f   : > { %1092 = vmatprep.subr.bf16.mxu0 %v2087_v44  ;;  %v2133_v11 = vld [vmem:[%s2415_s9 + $0xc4] ss:$8 sps:$4 sm:$0xff]   ;;  %v2137_v15 = vld [vmem:[%s2415_s9 + $0xc0] ss:$8 sps:$4 sm:$0xff]   ;;  %v2139_v17 = vld [vmem:[%s2415_s9 + $0xd4] ss:$8 sps:$4 sm:$0xff]  }
  0x50   : > { %v2159_v12 = vld [vmem:[%s2417_s10 + $0x4] ss:$16 sps:$4 sm:$0xff]   ;;  %v2162_v14 = vld [vmem:[%s2417_s10 + $0xc] ss:$16 sps:$4 sm:$0xff]   ;;  %v2138_v16 = vld [vmem:[%s2415_s9 + $0x1c0] ss:$8 sps:$4 sm:$0xff]  }
  0x51   : > { %990 = vmatpush1.bf16.msra.mxu1 %v2089_v45  ;;  %v2135_v13 = vld [vmem:[%s2415_s9 + $0x1c4] ss:$8 sps:$4 sm:$0xff]   ;;  %1013 = vmatprep.mubr.bf16.mxu1 %v2159_v12  ;;  %v2141_v18 = vld [vmem:[%s2415_s9 + $0x1d4] ss:$8 sps:$4 sm:$0xff]   ;;  %v2143_v19 = vld [vmem:[%s2415_s9 + $0xd0] ss:$8 sps:$4 sm:$0xff]  }
  0x52   : > { %1093 = vmatpush1.bf16.msra.mxu0 %v2090_v46  ;;  %991 = vmatprep.subr.bf16.mxu1 %v2091_v47  ;;  %v2144_v20 = vld [vmem:[%s2415_s9 + $0x1d0] ss:$8 sps:$4 sm:$0xff]   ;;  %v2145_v21 = vld [vmem:[%s2415_s9 + $0xe4] ss:$8 sps:$4 sm:$0xff]   ;;  %v2149_v23 = vld [vmem:[%s2415_s9 + $0xe0] ss:$8 sps:$4 sm:$0xff]  }
  0x53   : > { %1094 = vmatprep.subr.bf16.mxu0 %v2093_v48  ;;  %1116 = vmatprep.mubr.bf16.mxu0 %v2162_v14  ;;  %v2147_v22 = vld [vmem:[%s2415_s9 + $0x1e4] ss:$8 sps:$4 sm:$0xff]   ;;  %v2150_v24 = vld [vmem:[%s2415_s9 + $0x1e0] ss:$8 sps:$4 sm:$0xff]   ;;  %v2151_v25 = vld [vmem:[%s2415_s9 + $0xf4] ss:$8 sps:$4 sm:$0xff]  }
  0x54   : > { %v2153_v26 = vld [vmem:[%s2415_s9 + $0x1f4] ss:$8 sps:$4 sm:$0xff]   ;;  %v2155_v27 = vld [vmem:[%s2415_s9 + $0xf0] ss:$8 sps:$4 sm:$0xff]   ;;  %v405_v12 = vld [vmem:[#allocation2 + $0x20] sm:$0xff]  ;;  %p1888_p12 = scmp.ne.s32.totalorder %s2261_s14, 4 }
  0x55   : > { %992 = vmatpush1.bf16.msra.mxu1 %v2095_v49  ;;  %v2156_v28 = vld [vmem:[%s2415_s9 + $0x1f0] ss:$8 sps:$4 sm:$0xff]   ;;  %v2163_v31 = vld [vmem:[%s2417_s10 + $0x24] ss:$16 sps:$4 sm:$0xff]   ;;  %v2165_v32 = vld [vmem:[%s2417_s10 + $0x2c] ss:$16 sps:$4 sm:$0xff]  }
  0x56   : > { %1095 = vmatpush1.bf16.msra.mxu0 %v2096_v50  ;;  %993 = vmatprep.subr.bf16.mxu1 %v2097_v51  ;;  %v2157_v29 = vld [vmem:[%s2417_s10] ss:$16 sps:$4 sm:$0xff]   ;;  %v2160_v30 = vld [vmem:[%s2417_s10 + $0x8] ss:$16 sps:$4 sm:$0xff]   ;;  %v2169_v35 = vld [vmem:[%s2417_s10 + $0x44] ss:$16 sps:$4 sm:$0xff]  }
  0x57   : > { %1096 = vmatprep.subr.bf16.mxu0 %v2099_v52  ;;  %v2167_v33 = vld [vmem:[%s2417_s10 + $0x20] ss:$16 sps:$4 sm:$0xff]   ;;  %v2168_v34 = vld [vmem:[%s2417_s10 + $0x28] ss:$16 sps:$4 sm:$0xff]   ;;  %v2171_v36 = vld [vmem:[%s2417_s10 + $0x4c] ss:$16 sps:$4 sm:$0xff]  }
  0x58   : > { %v2173_v37 = vld [vmem:[%s2417_s10 + $0x40] ss:$16 sps:$4 sm:$0xff]   ;;  %v2174_v38 = vld [vmem:[%s2417_s10 + $0x48] ss:$16 sps:$4 sm:$0xff]   ;;  %v2175_v39 = vld [vmem:[%s2417_s10 + $0x64] ss:$16 sps:$4 sm:$0xff]  }
  0x59   : > { %994 = vmatpush1.bf16.msra.mxu1 %v2101_v53  ;;  %v2177_v40 = vld [vmem:[%s2417_s10 + $0x6c] ss:$16 sps:$4 sm:$0xff]   ;;  %v2179_v41 = vld [vmem:[%s2417_s10 + $0x60] ss:$16 sps:$4 sm:$0xff]   ;;  %v2180_v42 = vld [vmem:[%s2417_s10 + $0x68] ss:$16 sps:$4 sm:$0xff]  }
  0x5a   : > { %1097 = vmatpush1.bf16.msra.mxu0 %v2102_v54  ;;  %995 = vmatprep.subr.bf16.mxu1 %v2103_v55  ;;  %v2181_v43 = vld [vmem:[%s2417_s10 + $0x84] ss:$16 sps:$4 sm:$0xff]   ;;  %v2183_v44 = vld [vmem:[%s2417_s10 + $0x8c] ss:$16 sps:$4 sm:$0xff]   ;;  %v2185_v45 = vld [vmem:[%s2417_s10 + $0x80] ss:$16 sps:$4 sm:$0xff]  }
  0x5b   : > { %1098 = vmatprep.subr.bf16.mxu0 %v2105_v56  ;;  %v2186_v46 = vld [vmem:[%s2417_s10 + $0x88] ss:$16 sps:$4 sm:$0xff]   ;;  %v2187_v47 = vld [vmem:[%s2417_s10 + $0xa4] ss:$16 sps:$4 sm:$0xff]   ;;  %v2189_v48 = vld [vmem:[%s2417_s10 + $0xac] ss:$16 sps:$4 sm:$0xff]  }
  0x5c   : > { %v2191_v49 = vld [vmem:[%s2417_s10 + $0xa0] ss:$16 sps:$4 sm:$0xff]   ;;  %v2192_v50 = vld [vmem:[%s2417_s10 + $0xa8] ss:$16 sps:$4 sm:$0xff]   ;;  %v2193_v51 = vld [vmem:[%s2417_s10 + $0xc4] ss:$16 sps:$4 sm:$0xff]  }
  0x5d   : > { %996 = vmatpush1.bf16.msra.mxu1 %v2107_v57  ;;  %v2195_v52 = vld [vmem:[%s2417_s10 + $0xcc] ss:$16 sps:$4 sm:$0xff]   ;;  %v2197_v53 = vld [vmem:[%s2417_s10 + $0xc0] ss:$16 sps:$4 sm:$0xff]   ;;  %v2198_v54 = vld [vmem:[%s2417_s10 + $0xc8] ss:$16 sps:$4 sm:$0xff]  }
  0x5e   : > { %1099 = vmatpush1.bf16.msra.mxu0 %v2108_v58  ;;  %997 = vmatprep.subr.bf16.mxu1 %v2109_v59  ;;  %v401_v56 = vld [vmem:[#allocation2] sm:$0xff] }
  0x5f   : > { %1100 = vmatprep.subr.bf16.mxu0 %v2111_v60  ;;  %v402_v60 = vld [vmem:[#allocation2 + $0x8] sm:$0xff] }
  0x61   : > { %998 = vmatpush1.bf16.msra.mxu1 %v2113_v61 }
  0x62   : > { %1101 = vmatpush1.bf16.msra.mxu0 %v2114_v62  ;;  %999 = vmatprep.subr.bf16.mxu1 %v2115_v63 }
  0x63   : > { %1102 = vmatprep.subr.bf16.mxu0 %v2117_v0  ;;  %v403_v0 = vld [vmem:[#allocation2 + $0x10] sm:$0xff] }
  0x65   : > { %1000 = vmatpush1.bf16.msra.mxu1 %v2119_v1 }
  0x66   : > { %1103 = vmatpush1.bf16.msra.mxu0 %v2120_v2  ;;  %1001 = vmatprep.subr.bf16.mxu1 %v2121_v3 }
  0x67   : > { %1104 = vmatprep.subr.bf16.mxu0 %v2123_v4 }
  0x69   : > { %1002 = vmatpush1.bf16.msra.mxu1 %v2125_v5  ;;  %v404_v5 = vld [vmem:[#allocation2 + $0x18] sm:$0xff] }
  0x6a   : > { %1105 = vmatpush1.bf16.msra.mxu0 %v2126_v6  ;;  %1003 = vmatprep.subr.bf16.mxu1 %v2127_v7 }
  0x6b   : > { %1106 = vmatprep.subr.bf16.mxu0 %v2129_v8 }
  0x6d   : > { %1004 = vmatpush1.bf16.msra.mxu1 %v2131_v9 }
  0x6e   : > { %1107 = vmatpush1.bf16.msra.mxu0 %v2132_v10  ;;  %1005 = vmatprep.subr.bf16.mxu1 %v2133_v11 }
  0x6f   : > { %1108 = vmatprep.subr.bf16.mxu0 %v2135_v13 }
  0x71   : > { %1006 = vmatpush1.bf16.msra.mxu1 %v2137_v15 }
  0x72   : > { %1109 = vmatpush1.bf16.msra.mxu0 %v2138_v16  ;;  %1007 = vmatprep.subr.bf16.mxu1 %v2139_v17  ;;  %v406_v16 = vld [vmem:[#allocation2 + $0x28] sm:$0xff] }
  0x73   : > { %1110 = vmatprep.subr.bf16.mxu0 %v2141_v18 }
  0x75   : > { %1008 = vmatpush1.bf16.msra.mxu1 %v2143_v19 }
  0x76   : > { %1111 = vmatpush1.bf16.msra.mxu0 %v2144_v20  ;;  %1009 = vmatprep.subr.bf16.mxu1 %v2145_v21  ;;  %v407_v20 = vld [vmem:[#allocation2 + $0x30] sm:$0xff] }
  0x77   : > { %1112 = vmatprep.subr.bf16.mxu0 %v2147_v22 }
  0x79   : > { %1010 = vmatpush1.bf16.msra.mxu1 %v2149_v23 }
  0x7a   : > { %1113 = vmatpush1.bf16.msra.mxu0 %v2150_v24  ;;  %1011 = vmatprep.subr.bf16.mxu1 %v2151_v25  ;;  %v408_v25 = vld [vmem:[#allocation2 + $0x38] sm:$0xff] }
  0x7b   : > { %1114 = vmatprep.subr.bf16.mxu0 %v2153_v26 }
  0x7d   : > { %1012 = vmatpush1.bf16.msra.mxu1 %v2155_v27 }
  0x7e   : > { %1115 = vmatpush1.bf16.msra.mxu0 %v2156_v28 }
  0x80   : > { %1014 = vmatmul.mubr.bf16.vlgmr.msra.gmra.mrb[0].mxu1 %v2157_v29 }
  0x81   : > { %1117 = vmatmul.mubr.bf16.vlgmr.msra.gmra.mrb[0].mxu0 %v2160_v30  ;;  %1023 = vmatprep.mubr.bf16.mxu1 %v2163_v31 }
  0x82   : > { %1126 = vmatprep.mubr.bf16.mxu0 %v2165_v32  ;;  %v409_v32 = vld [vmem:[#allocation2 + $0x40] sm:$0xff] }
  0x88   : > { %1024 = vmatmul.mubr.bf16.gmra.mrb[4].mxu1 %v2167_v33 }
  0x89   : > { %1127 = vmatmul.mubr.bf16.gmra.mrb[4].mxu0 %v2168_v34  ;;  %1033 = vmatprep.mubr.bf16.mxu1 %v2169_v35 }
  0x8a   : > { %1136 = vmatprep.mubr.bf16.mxu0 %v2171_v36  ;;  %v410_v36 = vld [vmem:[#allocation2 + $0x48] sm:$0xff] }
  0x90   : > { %1034 = vmatmul.mubr.bf16.gmra.mrb[8].mxu1 %v2173_v37 }
  0x91   : > { %1137 = vmatmul.mubr.bf16.gmra.mrb[8].mxu0 %v2174_v38  ;;  %1043 = vmatprep.mubr.bf16.mxu1 %v2175_v39 }
  0x92   : > { %1146 = vmatprep.mubr.bf16.mxu0 %v2177_v40  ;;  %v411_v40 = vld [vmem:[#allocation2 + $0x50] sm:$0xff] }
  0x98   : > { %1044 = vmatmul.mubr.bf16.gmra.mrb[12].mxu1 %v2179_v41 }
  0x99   : > { %1147 = vmatmul.mubr.bf16.gmra.mrb[12].mxu0 %v2180_v42  ;;  %1053 = vmatprep.mubr.bf16.mxu1 %v2181_v43 }
  0x9a   : > { %1156 = vmatprep.mubr.bf16.mxu0 %v2183_v44 }
  0xa0   : > { %1054 = vmatmul.mubr.bf16.gmra.mrb[16].mxu1 %v2185_v45  ;;  %v412_v45 = vld [vmem:[#allocation2 + $0x58] sm:$0xff] }
  0xa1   : > { %1157 = vmatmul.mubr.bf16.gmra.mrb[16].mxu0 %v2186_v46  ;;  %1063 = vmatprep.mubr.bf16.mxu1 %v2187_v47 }
  0xa2   : > { %1166 = vmatprep.mubr.bf16.mxu0 %v2189_v48 }
  0xa8   : > { %1064 = vmatmul.mubr.bf16.gmra.mrb[20].mxu1 %v2191_v49 }
  0xa9   : > { %1167 = vmatmul.mubr.bf16.gmra.mrb[20].mxu0 %v2192_v50  ;;  %1073 = vmatprep.mubr.bf16.mxu1 %v2193_v51 }
  0xaa   : > { %1176 = vmatprep.mubr.bf16.mxu0 %v2195_v52  ;;  %v413_v52 = vld [vmem:[#allocation2 + $0x60] sm:$0xff] }
  0xb0   : > { %1074 = vmatmul.mubr.bf16.gmra.mrb[24].mxu1 %v2197_v53 }
  0xb1   : > { %1177 = vmatmul.mubr.bf16.gmra.mrb[24].mxu0 %v2198_v54 }
 0x153   : > { %v1015_v55 = vpop.f32.mrb[0].mxu1 }
 0x154   : > { %v1118_v57 = vpop.f32.mrb[0].mxu0  ;;  %v1017_v59 = vpop.f32.mrb[1].mxu1 }
 0x155   : > { %v1119_v58 = vadd.f32 %v1118_v57, %v1015_v55  ;;  %v1120_v61 = vpop.f32.mrb[1].mxu0  ;;  %v1019_v63 = vpop.f32.mrb[2].mxu1 }
 0x156   : > { %v1121_v62 = vadd.f32 %v1120_v61, %v1017_v59  ;;  %v1122_v1 = vpop.f32.mrb[2].mxu0  ;;  %v1021_v4 = vpop.f32.mrb[3].mxu1 }
 0x157   : > { %v1187_v2 = vadd.f32 %v1119_v58, %v401_v56  ;;  %v1123_v3 = vadd.f32 %v1122_v1, %v1019_v63  ;;  %v1124_v6 = vpop.f32.mrb[3].mxu0  ;;  %v414_v56 = vld [vmem:[#allocation2 + $0x68] sm:$0xff]  ;;  %v416_v1 = vld [vmem:[#allocation2 + $0x78] sm:$0xff] }
 0x158   : > { %v1188_v7 = vadd.f32 %v1121_v62, %v402_v60  ;;  %v1125_v8 = vadd.f32 %v1124_v6, %v1021_v4  ;;  %v415_v60 = vld [vmem:[#allocation2 + $0x70] sm:$0xff] }
 0x159   : > { %1215 = vst [vmem:[#allocation2] sm:$0xff] %v1187_v2  ;;  %v1189_v9 = vadd.f32 %v1123_v3, %v403_v0 }
 0x15a   : > { %1216 = vst [vmem:[#allocation2 + $0x8] sm:$0xff] %v1188_v7  ;;  %v1190_v10 = vadd.f32 %v1125_v8, %v404_v5  ;;  %v417_v8 = vld [vmem:[#allocation2 + $0x80] sm:$0xff] }
 0x15b   : > { %1217 = vst [vmem:[#allocation2 + $0x10] sm:$0xff] %v1189_v9  ;;  %v1025_v11 = vpop.f32.mrb[4].mxu1 }
 0x15c   : > { %1218 = vst [vmem:[#allocation2 + $0x18] sm:$0xff] %v1190_v10  ;;  %v1128_v13 = vpop.f32.mrb[4].mxu0  ;;  %v1027_v15 = vpop.f32.mrb[5].mxu1 }
 0x15d   : > { %v1129_v14 = vadd.f32 %v1128_v13, %v1025_v11  ;;  %v1130_v17 = vpop.f32.mrb[5].mxu0  ;;  %v1029_v19 = vpop.f32.mrb[6].mxu1 }
 0x15e   : > { %v1131_v18 = vadd.f32 %v1130_v17, %v1027_v15  ;;  %v1132_v21 = vpop.f32.mrb[6].mxu0  ;;  %v1031_v24 = vpop.f32.mrb[7].mxu1 }
 0x15f   : > { %v1191_v22 = vadd.f32 %v1129_v14, %v405_v12  ;;  %v1133_v23 = vadd.f32 %v1132_v21, %v1029_v19  ;;  %v1134_v26 = vpop.f32.mrb[7].mxu0  ;;  %v418_v12 = vld [vmem:[#allocation2 + $0x88] sm:$0xff]  ;;  %v420_v21 = vld [vmem:[#allocation2 + $0x98] sm:$0xff] }
 0x160   : > { %v1192_v27 = vadd.f32 %v1131_v18, %v406_v16  ;;  %v1135_v28 = vadd.f32 %v1134_v26, %v1031_v24  ;;  %v419_v16 = vld [vmem:[#allocation2 + $0x90] sm:$0xff] }
 0x161   : > { %1219 = vst [vmem:[#allocation2 + $0x20] sm:$0xff] %v1191_v22  ;;  %v1193_v29 = vadd.f32 %v1133_v23, %v407_v20 }
 0x162   : > { %1220 = vst [vmem:[#allocation2 + $0x28] sm:$0xff] %v1192_v27  ;;  %v1194_v30 = vadd.f32 %v1135_v28, %v408_v25  ;;  %v421_v28 = vld [vmem:[#allocation2 + $0xa0] sm:$0xff] }
 0x163   : > { %1221 = vst [vmem:[#allocation2 + $0x30] sm:$0xff] %v1193_v29  ;;  %v1035_v31 = vpop.f32.mrb[8].mxu1 }
 0x164   : > { %1222 = vst [vmem:[#allocation2 + $0x38] sm:$0xff] %v1194_v30  ;;  %v1138_v33 = vpop.f32.mrb[8].mxu0  ;;  %v1037_v35 = vpop.f32.mrb[9].mxu1 }
 0x165   : > { %v1139_v34 = vadd.f32 %v1138_v33, %v1035_v31  ;;  %v1140_v37 = vpop.f32.mrb[9].mxu0  ;;  %v1039_v39 = vpop.f32.mrb[10].mxu1 }
 0x166   : > { %v1141_v38 = vadd.f32 %v1140_v37, %v1037_v35  ;;  %v1142_v41 = vpop.f32.mrb[10].mxu0  ;;  %v1041_v44 = vpop.f32.mrb[11].mxu1 }
 0x167   : > { %v1195_v42 = vadd.f32 %v1139_v34, %v409_v32  ;;  %v1143_v43 = vadd.f32 %v1142_v41, %v1039_v39  ;;  %v1144_v46 = vpop.f32.mrb[11].mxu0  ;;  %v422_v32 = vld [vmem:[#allocation2 + $0xa8] sm:$0xff]  ;;  %v424_v41 = vld [vmem:[#allocation2 + $0xb8] sm:$0xff] }
 0x168   : > { %v1196_v47 = vadd.f32 %v1141_v38, %v410_v36  ;;  %v1145_v48 = vadd.f32 %v1144_v46, %v1041_v44  ;;  %v423_v36 = vld [vmem:[#allocation2 + $0xb0] sm:$0xff] }
 0x169   : > { %1223 = vst [vmem:[#allocation2 + $0x40] sm:$0xff] %v1195_v42  ;;  %v1197_v49 = vadd.f32 %v1143_v43, %v411_v40 }
 0x16a   : > { %1224 = vst [vmem:[#allocation2 + $0x48] sm:$0xff] %v1196_v47  ;;  %v1198_v50 = vadd.f32 %v1145_v48, %v412_v45  ;;  %v425_v48 = vld [vmem:[#allocation2 + $0xc0] sm:$0xff] }
 0x16b   : > { %1225 = vst [vmem:[#allocation2 + $0x50] sm:$0xff] %v1197_v49  ;;  %v1045_v51 = vpop.f32.mrb[12].mxu1 }
 0x16c   : > { %1226 = vst [vmem:[#allocation2 + $0x58] sm:$0xff] %v1198_v50  ;;  %v1148_v53 = vpop.f32.mrb[12].mxu0  ;;  %v1047_v55 = vpop.f32.mrb[13].mxu1 }
 0x16d   : > { %v1149_v54 = vadd.f32 %v1148_v53, %v1045_v51  ;;  %v1150_v57 = vpop.f32.mrb[13].mxu0  ;;  %v1049_v59 = vpop.f32.mrb[14].mxu1 }
 0x16e   : > { %v1151_v58 = vadd.f32 %v1150_v57, %v1047_v55  ;;  %v1152_v61 = vpop.f32.mrb[14].mxu0  ;;  %v1051_v0 = vpop.f32.mrb[15].mxu1 }
 0x16f   : > { %v1199_v62 = vadd.f32 %v1149_v54, %v413_v52  ;;  %v1153_v63 = vadd.f32 %v1152_v61, %v1049_v59  ;;  %v1154_v2 = vpop.f32.mrb[15].mxu0  ;;  %v426_v52 = vld [vmem:[#allocation2 + $0xc8] sm:$0xff]  ;;  %v428_v61 = vld [vmem:[#allocation2 + $0xd8] sm:$0xff] }
 0x170   : > { %v1200_v3 = vadd.f32 %v1151_v58, %v414_v56  ;;  %v1155_v4 = vadd.f32 %v1154_v2, %v1051_v0  ;;  %v427_v56 = vld [vmem:[#allocation2 + $0xd0] sm:$0xff] }
 0x171   : > { %1227 = vst [vmem:[#allocation2 + $0x60] sm:$0xff] %v1199_v62  ;;  %v1201_v5 = vadd.f32 %v1153_v63, %v415_v60 }
 0x172   : > { %1228 = vst [vmem:[#allocation2 + $0x68] sm:$0xff] %v1200_v3  ;;  %v1202_v6 = vadd.f32 %v1155_v4, %v416_v1  ;;  %v1277_v3 = vlaneseq (!%p1888_p12) }
 0x173   : > { %1229 = vst [vmem:[#allocation2 + $0x70] sm:$0xff] %v1201_v5  ;;  %v1055_v7 = vpop.f32.mrb[16].mxu1  ;;  %v1275_v5 = vld [vmem:[%s2612_s2] sm:$0x3] (!%p1888_p12) }
 0x174   : > { %1230 = vst [vmem:[#allocation2 + $0x78] sm:$0xff] %v1202_v6  ;;  %v1158_v9 = vpop.f32.mrb[16].mxu0  ;;  %v1057_v11 = vpop.f32.mrb[17].mxu1  ;;  %v1278_v4 = vshrl.u32 (!%p1888_p12), %v1277_v3, 7  ;;  %v1247_v6 = vld [vmem:[#allocation2] sm:$0xff] (!%p1888_p12) }
 0x175   : > { %v1159_v10 = vadd.f32 %v1158_v9, %v1055_v7  ;;  %v1160_v13 = vpop.f32.mrb[17].mxu0  ;;  %v1059_v15 = vpop.f32.mrb[18].mxu1  ;;  %v1248_v7 = vld [vmem:[#allocation2 + $0x8] sm:$0xff] (!%p1888_p12) }
 0x176   : > { %v1161_v14 = vadd.f32 %v1160_v13, %v1057_v11  ;;  %v1162_v17 = vpop.f32.mrb[18].mxu0  ;;  %v1061_v20 = vpop.f32.mrb[19].mxu1  ;;  %v1283_v9 = vsub.s32 (!%p1888_p12), 1, %v1278_v4  ;;  %v1250_v11 = vld [vmem:[#allocation2 + $0x18] sm:$0xff] (!%p1888_p12) }
 0x177   : > { %v1203_v18 = vadd.f32 %v1159_v10, %v417_v8  ;;  %v1163_v19 = vadd.f32 %v1162_v17, %v1059_v15  ;;  %v1164_v22 = vpop.f32.mrb[19].mxu0  ;;  %v1279_v8 = vsub.s32 (!%p1888_p12), 0, %v1278_v4  ;;  %v1249_v10 = vld [vmem:[#allocation2 + $0x10] sm:$0xff] (!%p1888_p12)  ;;  %v1252_v15 = vld [vmem:[#allocation2 + $0x28] sm:$0xff] (!%p1888_p12)  ;;  %v1254_v17 = vld [vmem:[#allocation2 + $0x38] sm:$0xff] (!%p1888_p12) }
 0x178   : > { %v1204_v23 = vadd.f32 %v1161_v14, %v418_v12  ;;  %v1165_v24 = vadd.f32 %v1164_v22, %v1061_v20  ;;  %v1251_v12 = vld [vmem:[#allocation2 + $0x20] sm:$0xff] (!%p1888_p12)  ;;  %v2518_v14 = vrot.slane (!%p1888_p12), %v1275_v5, %v1283_v9 }
 0x179   : > { %1231 = vst [vmem:[#allocation2 + $0x80] sm:$0xff] %v1203_v18  ;;  %v1205_v25 = vadd.f32 %v1163_v19, %v419_v16  ;;  %v2516_v13 = vrot.slane (!%p1888_p12), %v1275_v5, %v1279_v8  ;;  %v1253_v16 = vld [vmem:[#allocation2 + $0x30] sm:$0xff] (!%p1888_p12) }
 0x17a   : > { %1232 = vst [vmem:[#allocation2 + $0x88] sm:$0xff] %v1204_v23  ;;  %v1206_v26 = vadd.f32 %v1165_v24, %v420_v21  ;;  %v1288_v19 = vadd.f32 (!%p1888_p12), %v2518_v14, %v1248_v7  ;;  %v1290_v21 = vadd.f32 (!%p1888_p12), %v2518_v14, %v1250_v11  ;;  %v1292_v23 = vadd.f32 (!%p1888_p12), %v2518_v14, %v1252_v15 }
 0x17b   : > { %1233 = vst [vmem:[#allocation2 + $0x90] sm:$0xff] %v1205_v25  ;;  %v1065_v27 = vpop.f32.mrb[20].mxu1  ;;  %v1287_v18 = vadd.f32 (!%p1888_p12), %v2516_v13, %v1247_v6  ;;  %v1289_v20 = vadd.f32 (!%p1888_p12), %v2516_v13, %v1249_v10  ;;  %v1291_v22 = vadd.f32 (!%p1888_p12), %v2516_v13, %v1251_v12  ;;  %v1293_v24 = vadd.f32 (!%p1888_p12), %v2516_v13, %v1253_v16 }
 0x17c   : > { %1234 = vst [vmem:[#allocation2 + $0x98] sm:$0xff] %v1206_v26  ;;  %v1168_v29 = vpop.f32.mrb[20].mxu0  ;;  %v1067_v31 = vpop.f32.mrb[21].mxu1  ;;  %v1294_v25 = vadd.f32 (!%p1888_p12), %v2518_v14, %v1254_v17  ;;  %v1255_v26 = vld [vmem:[#allocation2 + $0x40] sm:$0xff] (!%p1888_p12) }
 0x17d   : > { %v1169_v30 = vadd.f32 %v1168_v29, %v1065_v27  ;;  %v1170_v33 = vpop.f32.mrb[21].mxu0  ;;  %v1069_v35 = vpop.f32.mrb[22].mxu1  ;;  %v1256_v27 = vld [vmem:[#allocation2 + $0x48] sm:$0xff] (!%p1888_p12)  ;;  %v1316_v29 = vmax.f32 (!%p1888_p12), %v1288_v19, 0.0 }
 0x17e   : > { %v1171_v34 = vadd.f32 %v1170_v33, %v1067_v31  ;;  %v1172_v37 = vpop.f32.mrb[22].mxu0  ;;  %v1071_v40 = vpop.f32.mrb[23].mxu1  ;;  %v1318_v31 = vmax.f32 (!%p1888_p12), %v1290_v21, 0.0  ;;  %v1258_v33 = vld [vmem:[#allocation2 + $0x58] sm:$0xff] (!%p1888_p12) }
 0x17f   : > { %v1207_v38 = vadd.f32 %v1169_v30, %v421_v28  ;;  %v1173_v39 = vadd.f32 %v1172_v37, %v1069_v35  ;;  %v1174_v42 = vpop.f32.mrb[23].mxu0  ;;  %v1315_v28 = vmax.f32 (!%p1888_p12), %v1287_v18, 0.0  ;;  %v1317_v30 = vmax.f32 (!%p1888_p12), %v1289_v20, 0.0 }
 0x180   : > { %v1208_v43 = vadd.f32 %v1171_v34, %v422_v32  ;;  %v1175_v44 = vadd.f32 %v1174_v42, %v1071_v40  ;;  %v1257_v32 = vld [vmem:[#allocation2 + $0x50] sm:$0xff] (!%p1888_p12)  ;;  %v1319_v34 = vmax.f32 (!%p1888_p12), %v1291_v22, 0.0  ;;  %v1320_v35 = vmax.f32 (!%p1888_p12), %v1292_v23, 0.0 }
 0x181   : > { %1235 = vst [vmem:[#allocation2 + $0xa0] sm:$0xff] %v1207_v38  ;;  %v1209_v45 = vadd.f32 %v1173_v39, %v423_v36  ;;  %v1321_v36 = vmax.f32 (!%p1888_p12), %v1293_v24, 0.0  ;;  %v1322_v37 = vmax.f32 (!%p1888_p12), %v1294_v25, 0.0  ;;  %v1259_v38 = vld [vmem:[#allocation2 + $0x60] sm:$0xff] (!%p1888_p12)  ;;  %v1260_v39 = vld [vmem:[#allocation2 + $0x68] sm:$0xff] (!%p1888_p12)  ;;  %v1912_v40 = vpack.c.bf16 (!%p1888_p12), %v1316_v29, %v1315_v28 }
 0x182   : > { %1236 = vst [vmem:[#allocation2 + $0xa8] sm:$0xff] %v1208_v43  ;;  %v1210_v46 = vadd.f32 %v1175_v44, %v424_v41  ;;  %v1913_v41 = vpack.c.bf16 (!%p1888_p12), %v1318_v31, %v1317_v30  ;;  %v1295_v42 = vadd.f32 (!%p1888_p12), %v2516_v13, %v1255_v26  ;;  %v1296_v43 = vadd.f32 (!%p1888_p12), %v2518_v14, %v1256_v27  ;;  %v1261_v44 = vld [vmem:[#allocation2 + $0x70] sm:$0xff] (!%p1888_p12) }
 0x183   : > { %1237 = vst [vmem:[#allocation2 + $0xb0] sm:$0xff] %v1209_v45  ;;  %v1075_v47 = vpop.f32.mrb[24].mxu1  ;;  %v1262_v45 = vld [vmem:[#allocation2 + $0x78] sm:$0xff] (!%p1888_p12)  ;;  %1427 = vst [vmem:[#allocation4] sm:$0xff] (!%p1888_p12), %v1912_v40 }
 0x184   : > { %1238 = vst [vmem:[#allocation2 + $0xb8] sm:$0xff] %v1210_v46  ;;  %v1178_v49 = vpop.f32.mrb[24].mxu0  ;;  %v1077_v51 = vpop.f32.mrb[25].mxu1  ;;  %v1914_v46 = vpack.c.bf16 (!%p1888_p12), %v1320_v35, %v1319_v34  ;;  %1428 = vst [vmem:[#allocation4 + $0x8] sm:$0xff] (!%p1888_p12), %v1913_v41 }
 0x185   : > { %v1179_v50 = vadd.f32 %v1178_v49, %v1075_v47  ;;  %v1180_v53 = vpop.f32.mrb[25].mxu0  ;;  %v1079_v55 = vpop.f32.mrb[26].mxu1  ;;  %v1915_v47 = vpack.c.bf16 (!%p1888_p12), %v1322_v37, %v1321_v36  ;;  %v1298_v49 = vadd.f32 (!%p1888_p12), %v2518_v14, %v1258_v33 }
 0x186   : > { %v1181_v54 = vadd.f32 %v1180_v53, %v1077_v51  ;;  %v1182_v57 = vpop.f32.mrb[26].mxu0  ;;  %v1081_v60 = vpop.f32.mrb[27].mxu1  ;;  %1246 = sbr.rel (%p1888_p12) target bundleno = 409 (0x199), region = 70  ;;  %v1323_v51 = vmax.f32 (!%p1888_p12), %v1295_v42, 0.0  ;;  %v1299_v53 = vadd.f32 (!%p1888_p12), %v2516_v13, %v1259_v38  ;;  %1429 = vst [vmem:[#allocation4 + $0x10] sm:$0xff] (!%p1888_p12), %v1914_v46 }
 0x187   : > { %v1211_v58 = vadd.f32 %v1179_v50, %v425_v48  ;;  %v1183_v59 = vadd.f32 %v1182_v57, %v1079_v55  ;;  %v1184_v62 = vpop.f32.mrb[27].mxu0  ;;  %v1297_v48 = vadd.f32 (!%p1888_p12), %v2516_v13, %v1257_v32  ;;  %v1263_v50 = vld [vmem:[#allocation2 + $0x80] sm:$0xff] (!%p1888_p12)  ;;  %v1264_v55 = vld [vmem:[#allocation2 + $0x88] sm:$0xff] (!%p1888_p12)  ;;  %1430 = vst [vmem:[#allocation4 + $0x18] sm:$0xff] (!%p1888_p12), %v1915_v47  ;;  %v1326_v57 = vmax.f32 (!%p1888_p12), %v1298_v49, 0.0 }
 0x188   : > { %v1212_v63 = vadd.f32 %v1181_v54, %v426_v52  ;;  %v1185_v0 = vadd.f32 %v1184_v62, %v1081_v60  ;;  %v1324_v52 = vmax.f32 (!%p1888_p12), %v1296_v43, 0.0  ;;  %v1300_v54 = vadd.f32 (!%p1888_p12), %v2518_v14, %v1260_v39  ;;  %v1265_v60 = vld [vmem:[#allocation2 + $0x90] sm:$0xff] (!%p1888_p12) }
 0x189   : > { %1239 = vst [vmem:[#allocation2 + $0xc0] sm:$0xff] %v1211_v58  ;;  %v1213_v1 = vadd.f32 %v1183_v59, %v427_v56  ;;  %v1325_v56 = vmax.f32 (!%p1888_p12), %v1297_v48, 0.0  ;;  %v1301_v58 = vadd.f32 (!%p1888_p12), %v2516_v13, %v1261_v44  ;;  %v1302_v59 = vadd.f32 (!%p1888_p12), %v2518_v14, %v1262_v45  ;;  %v1268_v3 = vld [vmem:[#allocation2 + $0xa8] sm:$0xff] (!%p1888_p12) }
 0x18a   : > { %1240 = vst [vmem:[#allocation2 + $0xc8] sm:$0xff] %v1212_v63  ;;  %v1214_v2 = vadd.f32 %v1185_v0, %v428_v61  ;;  %v1266_v61 = vld [vmem:[#allocation2 + $0x98] sm:$0xff] (!%p1888_p12)  ;;  %v1916_v62 = vpack.c.bf16 (!%p1888_p12), %v1324_v52, %v1323_v51  ;;  %v1327_v63 = vmax.f32 (!%p1888_p12), %v1299_v53, 0.0  ;;  %v1328_v0 = vmax.f32 (!%p1888_p12), %v1300_v54, 0.0  ;;  %v1269_v8 = vld [vmem:[#allocation2 + $0xb0] sm:$0xff] (!%p1888_p12) }
 0x18b   : > { %1241 = vst [vmem:[#allocation2 + $0xd0] sm:$0xff] %v1213_v1  ;;  %v1303_v1 = vadd.f32 (!%p1888_p12), %v2516_v13, %v1263_v50  ;;  %v1917_v4 = vpack.c.bf16 (!%p1888_p12), %v1326_v57, %v1325_v56  ;;  %v1329_v5 = vmax.f32 (!%p1888_p12), %v1301_v58, 0.0  ;;  %v1330_v6 = vmax.f32 (!%p1888_p12), %v1302_v59, 0.0  ;;  %v1270_v9 = vld [vmem:[#allocation2 + $0xb8] sm:$0xff] (!%p1888_p12) }
 0x18c   : > { %1242 = vst [vmem:[#allocation2 + $0xd8] sm:$0xff] %v1214_v2  ;;  %v1267_v2 = vld [vmem:[#allocation2 + $0xa0] sm:$0xff] (!%p1888_p12)  ;;  %v1304_v7 = vadd.f32 (!%p1888_p12), %v2518_v14, %v1264_v55  ;;  %1431 = vst [vmem:[#allocation4 + $0x20] sm:$0xff] (!%p1888_p12), %v1916_v62  ;;  %v1918_v10 = vpack.c.bf16 (!%p1888_p12), %v1328_v0, %v1327_v63  ;;  %v1305_v12 = vadd.f32 (!%p1888_p12), %v2516_v13, %v1265_v60 }
 0x18d   : > { %v1331_v11 = vmax.f32 %v1303_v1, 0.0  ;;  %v1306_v15 = vadd.f32 %v2518_v14, %v1266_v61  ;;  %1432 = vst [vmem:[#allocation4 + $0x28] sm:$0xff] %v1917_v4  ;;  %v1919_v17 = vpack.c.bf16 %v1330_v6, %v1329_v5  ;;  %v1307_v19 = vadd.f32 %v2516_v13, %v1267_v2 }
 0x18e   : > { %v1332_v18 = vmax.f32 %v1304_v7, 0.0  ;;  %v1308_v20 = vadd.f32 %v2518_v14, %v1268_v3  ;;  %1433 = vst [vmem:[#allocation4 + $0x30] sm:$0xff] %v1918_v10  ;;  %v1333_v22 = vmax.f32 %v1305_v12, 0.0  ;;  %v1309_v24 = vadd.f32 %v2516_v13, %v1269_v8 }
 0x18f   : > { %v1334_v23 = vmax.f32 %v1306_v15, 0.0  ;;  %v1310_v25 = vadd.f32 %v2518_v14, %v1270_v9  ;;  %1434 = vst [vmem:[#allocation4 + $0x38] sm:$0xff] %v1919_v17  ;;  %v1335_v27 = vmax.f32 %v1307_v19, 0.0 }
 0x190   : > { %v1271_v16 = vld [vmem:[#allocation2 + $0xc0] sm:$0xff]  ;;  %v1920_v26 = vpack.c.bf16 %v1332_v18, %v1331_v11  ;;  %v1336_v28 = vmax.f32 %v1308_v20, 0.0  ;;  %v1337_v31 = vmax.f32 %v1309_v24, 0.0 }
 0x191   : > { %v1272_v21 = vld [vmem:[#allocation2 + $0xc8] sm:$0xff]  ;;  %v1311_v29 = vadd.f32 %v2516_v13, %v1271_v16  ;;  %v1921_v30 = vpack.c.bf16 %v1334_v23, %v1333_v22  ;;  %v1338_v32 = vmax.f32 %v1310_v25, 0.0 }
 0x192   : > { %v1312_v33 = vadd.f32 %v2518_v14, %v1272_v21  ;;  %1435 = vst [vmem:[#allocation4 + $0x40] sm:$0xff] %v1920_v26  ;;  %v1922_v34 = vpack.c.bf16 %v1336_v28, %v1335_v27 }
 0x193   : > { %v1339_v35 = vmax.f32 %v1311_v29, 0.0  ;;  %1436 = vst [vmem:[#allocation4 + $0x48] sm:$0xff] %v1921_v30  ;;  %v1923_v36 = vpack.c.bf16 %v1338_v32, %v1337_v31 }
 0x194   : > { %v1340_v37 = vmax.f32 %v1312_v33, 0.0  ;;  %1437 = vst [vmem:[#allocation4 + $0x50] sm:$0xff] %v1922_v34 }
 0x195   : > { %1438 = vst [vmem:[#allocation4 + $0x58] sm:$0xff] %v1923_v36 }
 0x196   : > { %v1924_v38 = vpack.c.bf16 %v1340_v37, %v1339_v35 }
 0x198   : > { %1439 = vst [vmem:[#allocation4 + $0x60] sm:$0xff] %v1924_v38 }
 0x199 PF: > { %p1903_p13 = scmp.ne.s32.totalorder %s1780_s17, 4 }
 0x19a   : > { %s2548_s14 = smov (!%p1903_p13), 0  }
 0x19b   : > { %1443 = sbr.rel (%p1903_p13) target bundleno = 428 (0x1ac), region = 74 }
 0x1a2 LB: >> { %v1544_v13 = vld [vmem:[#allocation4] sm:$0xff]  ;;  %v1546_v14 = vld [vmem:[#allocation4 + $0x8] sm:$0xff]  ;;  %v1548_v39 = vld [vmem:[#allocation4 + $0x10] sm:$0xff]  ;;  %s1538_s14 = sadd.s32 1, %s2277_s14   ;;  %s2277_s14 = sphi %s2548_s14, %s1538_s14  }
 0x1a3   : >> { %1545 = vst [vmem:[%s2613_s3] sm:$0xff] %v1544_v13  ;;  %1547 = vst [vmem:[%s2613_s3 + $0x8] sm:$0xff] %v1546_v14  ;;  %v1550_v40 = vld [vmem:[#allocation4 + $0x18] sm:$0xff]  ;;  %v1552_v41 = vld [vmem:[#allocation4 + $0x20] sm:$0xff]  ;;  %p1537_p0 = scmp.ge.s32.totalorder %s1538_s14, 1 }
 0x1a4   : >> { %1549 = vst [vmem:[%s2613_s3 + $0x10] sm:$0xff] %v1548_v39  ;;  %v1554_v42 = vld [vmem:[#allocation4 + $0x28] sm:$0xff]  ;;  %1551 = vst [vmem:[%s2613_s3 + $0x18] sm:$0xff] %v1550_v40  ;;  %v1556_v43 = vld [vmem:[#allocation4 + $0x30] sm:$0xff] }
 0x1a5   : >> { %1553 = vst [vmem:[%s2613_s3 + $0x20] sm:$0xff] %v1552_v41  ;;  %1555 = vst [vmem:[%s2613_s3 + $0x28] sm:$0xff] %v1554_v42  ;;  %v1558_v44 = vld [vmem:[#allocation4 + $0x38] sm:$0xff]  ;;  %v1560_v45 = vld [vmem:[#allocation4 + $0x40] sm:$0xff]  ;;  %1540 = sbr.rel (!%p1537_p0) target bundleno = 418 (0x1a2), region = 192 }
 0x1a6   : >> { %1557 = vst [vmem:[%s2613_s3 + $0x30] sm:$0xff] %v1556_v43  ;;  %1559 = vst [vmem:[%s2613_s3 + $0x38] sm:$0xff] %v1558_v44  ;;  %v1562_v46 = vld [vmem:[#allocation4 + $0x48] sm:$0xff]  ;;  %v1564_v47 = vld [vmem:[#allocation4 + $0x50] sm:$0xff] }
 0x1a7   : >> { %1561 = vst [vmem:[%s2613_s3 + $0x40] sm:$0xff] %v1560_v45  ;;  %v1566_v48 = vld [vmem:[#allocation4 + $0x58] sm:$0xff]  ;;  %1563 = vst [vmem:[%s2613_s3 + $0x48] sm:$0xff] %v1562_v46  ;;  %v1568_v49 = vld [vmem:[#allocation4 + $0x60] sm:$0xff] }
 0x1a8   : >> { %1565 = vst [vmem:[%s2613_s3 + $0x50] sm:$0xff] %v1564_v47  ;;  %1567 = vst [vmem:[%s2613_s3 + $0x58] sm:$0xff] %v1566_v48 }
 0x1a9   : >> { %1569 = vst [vmem:[%s2613_s3 + $0x60] sm:$0xff] %v1568_v49 }
 0x1ac PF: > { %s13_s16 = sadd.s32 1, %s2269_s16   ;;  %s2614_s12 = smov %s2257_s13 }
 0x1ad   : > { %p10_p1 = scmp.ge.s32.totalorder %s13_s16, 7   ;;  %s2615_s13 = smov %s2336_s21 }
 0x1ae   : > { %s2616_s14 = smov %s2265_s15  ;;  %s2617_s15 = smov %s2619_s18 }
 0x1af   :  { %12 = sbr.rel (!%p10_p1) target bundleno = 3 (0x3), region = 214 }

// kernel: emotion_cnn_forward.8
= control target key start
LH: loop header
LB: loop body
LE: loop exit
PB: predicated region body
PF: predicated region fallthrough
CT: control target
= control target key end

     0   :  { %s2329_s12 = smov 0   ;;  %s2331_s13 = smov 0   ;;  %s2530_s0 = inlined_call_operand.vmem [shape: bf16[18,2560], index: 0, kind: input, shape index: {}]   ;;  %s2531_s1 = inlined_call_operand.vmem [shape: bf16[2560,384], index: 1, kind: input, shape index: {}]   ;;  %s2532_s2 = inlined_call_operand.vmem [shape: f32[1,384], index: 2, kind: input, shape index: {}]   ;;  %s2533_s3 = inlined_call_operand.vmem [shape: bf16[18,384], index: 3, kind: output, shape index: {}]  }
   0x1   :  { %s2333_s14 = smov 0   ;;  %s2335_s15 = smov 0  }
   0x2   :  { %s2337_s16 = smov 0  }
   0x3 LB: > { %s1708_s17 = sadd.s32 4294967295, %s2285_s16   ;;  %s25_s18 = sadd.s32 1, %s2281_s15  ;;  %s2285_s16 = sphi %s2337_s16, %s13_s16   ;;  %s2281_s15 = sphi %s2335_s15, %s2537_s15   ;;  %s2277_s14 = sphi %s2333_s14, %s2536_s14   ;;  %s2273_s13 = sphi %s2331_s13, %s2535_s13   ;;  %s2269_s12 = sphi %s2329_s12, %s2534_s12  }
   0x4   : > { %p26_p0 = scmp.ge.s32.totalorder %s25_s18, 5  ;;  %p48_p1 = scmp.ne.s32.totalorder %s2273_s13, %s2269_s12 }
   0x5   : > { %p49_p2 = scmp.eq.s32.totalorder %s2285_s16, 0  ;;  %s41_s20 = sadd.s32 1, %s2273_s13 }
   0x6   : > { %s2539_s18 = smov (%p26_p0, %s25_s18), 0  ;;  %p1711_p5 = scmp.ge.s32.totalorder %s2285_s16, 5 }
   0x7   : > { %p50_p3 = por %p49_p2, %p48_p1  ;;  %s37_s19 = ssub.s32 %s2281_s15, %s2539_s18 }
   0x8   : > { %p39_p4 = scmp.eq.s32.totalorder %s37_s19, 0  ;;  %164 = sbr.rel (%p1711_p5) target bundleno = 32 (0x20), region = 20 }
   0xa   : > { %s2365_s21 = scalar_select %p39_p4, %s2273_s13, %s41_s20  }
   0xf   : > { %167 = sbr.rel (!%p50_p3) target bundleno = 32 (0x20), region = 24  ;;  %s169_s22 = sand.u32 (%p50_p3), 1, %s2273_s13  }
  0x10   : > { %s1848_s23 = sshll.u32 (%p50_p3), %s2281_s15, 4  ;;  %s1712_s24 = sshll.u32 (%p50_p3), %s169_s22, 6 }
  0x11   : > { %s181_s27 = scalar_lea.vmem (%p50_p3), %s2530_s0, %s1848_s23   ;;  %s171_s28 = scalar_lea.vmem (%p50_p3), [#allocation3], %s1712_s24  }
  0x12   : > { %s2287_s29 = smov (%p50_p3), 0  }
  0x16 LB: >> { %v198_v0 = vld [vmem:[%s181_s27] sm:$0xff]  ;;  %v200_v1 = vld [vmem:[%s181_s27 + $0x50] sm:$0xff]  ;;  %v204_v3 = vld [vmem:[%s181_s27 + $0x8] sm:$0xff]  ;;  %s192_s29 = sadd.s32 1, %s2289_s29   ;;  %s2289_s29 = sphi %s2287_s29, %s192_s29  }
  0x17   : >> { %v202_v2 = vld [vmem:[%s181_s27 + $0xa0] sm:$0xff]  ;;  %199 = vst [vmem:[%s171_s28] sm:$0xff] %v198_v0  ;;  %201 = vst [vmem:[%s171_s28 + $0x10] sm:$0xff] %v200_v1  ;;  %v206_v4 = vld [vmem:[%s181_s27 + $0x58] sm:$0xff]  ;;  %p191_p6 = scmp.ge.s32.totalorder %s192_s29, 1 }
  0x18   : >> { %203 = vst [vmem:[%s171_s28 + $0x20] sm:$0xff] %v202_v2  ;;  %v208_v5 = vld [vmem:[%s181_s27 + $0xa8] sm:$0xff]  ;;  %205 = vst [vmem:[%s171_s28 + $0x8] sm:$0xff] %v204_v3 }
  0x19   : >> { %207 = vst [vmem:[%s171_s28 + $0x18] sm:$0xff] %v206_v4  ;;  %209 = vst [vmem:[%s171_s28 + $0x28] sm:$0xff] %v208_v5  ;;  %194 = sbr.rel (!%p191_p6) target bundleno = 22 (0x16), region = 160 }
  0x20 PF: > { %p1720_p7 = scmp.ge.s32.totalorder %s2285_s16, 1  ;;  %p263_p8 = scmp.lt.s32.totalorder %s2285_s16, 6 }
  0x22   : > { %p264_p9 = pnand %p1720_p7, %p263_p8 }
  0x23   : > { %s270_s30 = sand.u32 (!%p264_p9), 1, %s2269_s12   ;;  %s1722_s4 = sshll.u32 (!%p264_p9), %s2277_s14, 6 }
  0x24   : > { %267 = sbr.rel (%p264_p9) target bundleno = 450 (0x1c2), region = 58  ;;  %s1721_s5 = sshll.u32 (!%p264_p9), %s270_s30, 6 }
  0x25   : > { %p309_p10 = scmp.lt.s32.totalorder (!%p264_p9), %s1722_s4, 319  ;;  %s2382_s10 = scalar_lea.vmem (!%p264_p9), [#allocation3], %s1721_s5 }
  0x26   : > { %p1724_p11 = scmp.ne.s32.totalorder (!%p264_p9), %s2277_s14, 0 }
  0x2b   : > { %s2541_s4 = smov (!%p309_p10, %s1722_s4), 319  ;;  %333 = sbr.rel (%p1724_p11) target bundleno = 51 (0x33), region = 66 }
  0x2c   : > { %s1921_s6 = smul.u32 12, %s2541_s4  ;;  %v2307_v6 = vmov (!%p1724_p11), 0.0  }
  0x2d   : > { %334 = vst [vmem:[#allocation2] sm:$0xff] (!%p1724_p11), %v2307_v6  ;;  %335 = vst [vmem:[#allocation2 + $0x8] sm:$0xff] (!%p1724_p11), %v2307_v6 }
  0x2e   : > { %s2380_s9 = scalar_lea.vmem %s2531_s1, %s1921_s6  ;;  %336 = vst [vmem:[#allocation2 + $0x10] sm:$0xff] (!%p1724_p11), %v2307_v6  ;;  %337 = vst [vmem:[#allocation2 + $0x18] sm:$0xff] (!%p1724_p11), %v2307_v6 }
  0x2f   : > { %338 = vst [vmem:[#allocation2 + $0x20] sm:$0xff] (!%p1724_p11), %v2307_v6  ;;  %339 = vst [vmem:[#allocation2 + $0x28] sm:$0xff] (!%p1724_p11), %v2307_v6 }
  0x30   : > { %340 = vst [vmem:[#allocation2 + $0x30] sm:$0xff] (!%p1724_p11), %v2307_v6  ;;  %341 = vst [vmem:[#allocation2 + $0x38] sm:$0xff] (!%p1724_p11), %v2307_v6 }
  0x31   : > { %342 = vst [vmem:[#allocation2 + $0x40] sm:$0xff] (!%p1724_p11), %v2307_v6  ;;  %343 = vst [vmem:[#allocation2 + $0x48] sm:$0xff] (!%p1724_p11), %v2307_v6 }
  0x32   : > { %344 = vst [vmem:[#allocation2 + $0x50] sm:$0xff] %v2307_v6  ;;  %345 = vst [vmem:[#allocation2 + $0x58] sm:$0xff] %v2307_v6 }
  0x33 PF: > { %v2059_v7 = vld [vmem:[%s2380_s9 + $0x4] ss:$12 sps:$4 sm:$0xff]   ;;  %v2061_v8 = vld [vmem:[%s2380_s9] ss:$12 sps:$4 sm:$0xff]   ;;  %v2062_v9 = vld [vmem:[%s2380_s9 + $0x1c] ss:$12 sps:$4 sm:$0xff]  }
  0x34   : > { %1046 = vmatprep.subr.bf16.mxu0 %v2059_v7  ;;  %v2064_v10 = vld [vmem:[%s2380_s9 + $0x18] ss:$12 sps:$4 sm:$0xff]   ;;  %v2065_v11 = vld [vmem:[%s2380_s9 + $0x34] ss:$12 sps:$4 sm:$0xff]   ;;  %v2067_v12 = vld [vmem:[%s2380_s9 + $0x30] ss:$12 sps:$4 sm:$0xff]  }
  0x35   : > { %1047 = vmatpush1.bf16.msra.mxu0 %v2061_v8  ;;  %v2068_v13 = vld [vmem:[%s2380_s9 + $0x4c] ss:$12 sps:$4 sm:$0xff]   ;;  %v2070_v14 = vld [vmem:[%s2380_s9 + $0x48] ss:$12 sps:$4 sm:$0xff]   ;;  %v2071_v17 = vld [vmem:[%s2380_s9 + $0x64] ss:$12 sps:$4 sm:$0xff]  }
  0x36   : > { %1048 = vmatprep.subr.bf16.mxu0 %v2062_v9  ;;  %v2080_v15 = vld [vmem:[%s2380_s9 + $0xc8] ss:$12 sps:$4 sm:$0xff]   ;;  %v2085_v18 = vld [vmem:[%s2380_s9 + $0xe0] ss:$12 sps:$4 sm:$0xff]   ;;  %v2090_v22 = vld [vmem:[%s2380_s9 + $0xf8] ss:$12 sps:$4 sm:$0xff]  }
  0x37   : > { %v2081_v16 = vld [vmem:[%s2380_s9 + $0x8] ss:$12 sps:$4 sm:$0xff]   ;;  %1857 = vmatprep.subr.bf16.mxu1 %v2080_v15  ;;  %v2086_v19 = vld [vmem:[%s2380_s9 + $0x20] ss:$12 sps:$4 sm:$0xff]   ;;  %v2091_v23 = vld [vmem:[%s2380_s9 + $0x38] ss:$12 sps:$4 sm:$0xff]  }
  0x38   : > { %1858 = vmatpush3.bf16.msra.mxu1 %v2081_v16  ;;  %v2073_v20 = vld [vmem:[%s2380_s9 + $0x60] ss:$12 sps:$4 sm:$0xff]   ;;  %v2074_v21 = vld [vmem:[%s2380_s9 + $0x7c] ss:$12 sps:$4 sm:$0xff]   ;;  %v2076_v24 = vld [vmem:[%s2380_s9 + $0x78] ss:$12 sps:$4 sm:$0xff]  }
  0x39   : > { %1049 = vmatpush1.bf16.msra.mxu0 %v2064_v10  ;;  %1859 = vmatprep.subr.bf16.mxu1 %v2085_v18  ;;  %v2077_v25 = vld [vmem:[%s2380_s9 + $0x94] ss:$12 sps:$4 sm:$0xff]   ;;  %v2095_v26 = vld [vmem:[%s2380_s9 + $0x110] ss:$12 sps:$4 sm:$0xff]   ;;  %v2082_v30 = vld [vmem:[%s2380_s9 + $0xac] ss:$12 sps:$4 sm:$0xff]  }
  0x3a   : > { %1050 = vmatprep.subr.bf16.mxu0 %v2065_v11  ;;  %v2096_v27 = vld [vmem:[%s2380_s9 + $0x50] ss:$12 sps:$4 sm:$0xff]   ;;  %v2100_v29 = vld [vmem:[%s2380_s9 + $0x128] ss:$12 sps:$4 sm:$0xff]   ;;  %v2105_v32 = vld [vmem:[%s2380_s9 + $0x140] ss:$12 sps:$4 sm:$0xff]  }
  0x3b   : > { %v2079_v28 = vld [vmem:[%s2380_s9 + $0x90] ss:$12 sps:$4 sm:$0xff]   ;;  %v2101_v31 = vld [vmem:[%s2380_s9 + $0x68] ss:$12 sps:$4 sm:$0xff]   ;;  %v2106_v35 = vld [vmem:[%s2380_s9 + $0x80] ss:$12 sps:$4 sm:$0xff]  }
  0x3c   : > { %1860 = vmatpush3.bf16.msra.mxu1 %v2086_v19  ;;  %v2084_v33 = vld [vmem:[%s2380_s9 + $0xa8] ss:$12 sps:$4 sm:$0xff]   ;;  %v2087_v34 = vld [vmem:[%s2380_s9 + $0xc4] ss:$12 sps:$4 sm:$0xff]   ;;  %v2089_v37 = vld [vmem:[%s2380_s9 + $0xc0] ss:$12 sps:$4 sm:$0xff]  }
  0x3d   : > { %1051 = vmatpush1.bf16.msra.mxu0 %v2067_v12  ;;  %1861 = vmatprep.subr.bf16.mxu1 %v2090_v22  ;;  %v2110_v36 = vld [vmem:[%s2380_s9 + $0x158] ss:$12 sps:$4 sm:$0xff]   ;;  %v2092_v38 = vld [vmem:[%s2380_s9 + $0xdc] ss:$12 sps:$4 sm:$0xff]   ;;  %v2097_v42 = vld [vmem:[%s2380_s9 + $0xf4] ss:$12 sps:$4 sm:$0xff]  }
  0x3e   : > { %1052 = vmatprep.subr.bf16.mxu0 %v2068_v13  ;;  %v2111_v39 = vld [vmem:[%s2380_s9 + $0x98] ss:$12 sps:$4 sm:$0xff]   ;;  %v2115_v40 = vld [vmem:[%s2380_s9 + $0x170] ss:$12 sps:$4 sm:$0xff]   ;;  %v2123_v45 = vld [vmem:[%s2380_s9 + $0x248] ss:$12 sps:$4 sm:$0xff]  }
  0x3f   : > { %v2094_v41 = vld [vmem:[%s2380_s9 + $0xd8] ss:$12 sps:$4 sm:$0xff]   ;;  %v2116_v43 = vld [vmem:[%s2380_s9 + $0xb0] ss:$12 sps:$4 sm:$0xff]   ;;  %v2124_v49 = vld [vmem:[%s2380_s9 + $0x188] ss:$12 sps:$4 sm:$0xff]  }
  0x40   : > { %1862 = vmatpush3.bf16.msra.mxu1 %v2091_v23  ;;  %v2122_v44 = vld [vmem:[%s2382_s10 + $0x4] ss:$16 sps:$4 sm:$0xff]   ;;  %v2099_v46 = vld [vmem:[%s2380_s9 + $0xf0] ss:$12 sps:$4 sm:$0xff]   ;;  %v2102_v47 = vld [vmem:[%s2380_s9 + $0x10c] ss:$12 sps:$4 sm:$0xff]  }
  0x41   : > { %1053 = vmatpush1.bf16.msra.mxu0 %v2070_v14  ;;  %1863 = vmatprep.subr.bf16.mxu1 %v2095_v26  ;;  %v2120_v48 = vld [vmem:[%s2382_s10] ss:$16 sps:$4 sm:$0xff]   ;;  %v2104_v51 = vld [vmem:[%s2380_s9 + $0x108] ss:$12 sps:$4 sm:$0xff]   ;;  %v2133_v54 = vld [vmem:[%s2380_s9 + $0x278] ss:$12 sps:$4 sm:$0xff]  }
  0x42   : > { %1054 = vmatprep.subr.bf16.mxu0 %v2071_v17  ;;  %1184 = vmatprep.mubr.bf16.mxu1 %v2122_v44  ;;  %v2128_v50 = vld [vmem:[%s2380_s9 + $0x260] ss:$12 sps:$4 sm:$0xff]   ;;  %v2107_v52 = vld [vmem:[%s2380_s9 + $0x124] ss:$12 sps:$4 sm:$0xff]   ;;  %v2112_v56 = vld [vmem:[%s2380_s9 + $0x13c] ss:$12 sps:$4 sm:$0xff]  }
  0x43   : > { %1078 = vmatprep.mubr.bf16.mxu0 %v2122_v44  ;;  %v2129_v53 = vld [vmem:[%s2380_s9 + $0x1a0] ss:$12 sps:$4 sm:$0xff]   ;;  %v2134_v57 = vld [vmem:[%s2380_s9 + $0x1b8] ss:$12 sps:$4 sm:$0xff]   ;;  %v2138_v58 = vld [vmem:[%s2380_s9 + $0x290] ss:$12 sps:$4 sm:$0xff]  }
  0x44   : > { %1864 = vmatpush3.bf16.msra.mxu1 %v2096_v27  ;;  %v2109_v55 = vld [vmem:[%s2380_s9 + $0x120] ss:$12 sps:$4 sm:$0xff]   ;;  %v2114_v59 = vld [vmem:[%s2380_s9 + $0x138] ss:$12 sps:$4 sm:$0xff]   ;;  %v2119_v61 = vld [vmem:[%s2380_s9 + $0x150] ss:$12 sps:$4 sm:$0xff]  }
  0x45   : > { %1055 = vmatpush1.bf16.msra.mxu0 %v2073_v20  ;;  %1865 = vmatprep.subr.bf16.mxu1 %v2100_v29  ;;  %v2117_v60 = vld [vmem:[%s2380_s9 + $0x154] ss:$12 sps:$4 sm:$0xff]   ;;  %v2139_v62 = vld [vmem:[%s2380_s9 + $0x1d0] ss:$12 sps:$4 sm:$0xff]   ;;  %v2125_v0 = vld [vmem:[%s2380_s9 + $0x16c] ss:$12 sps:$4 sm:$0xff]  }
  0x46   : > { %1056 = vmatprep.subr.bf16.mxu0 %v2074_v21  ;;  %v2143_v63 = vld [vmem:[%s2380_s9 + $0x2a8] ss:$12 sps:$4 sm:$0xff]   ;;  %v2148_v2 = vld [vmem:[%s2380_s9 + $0x2c0] ss:$12 sps:$4 sm:$0xff]   ;;  %v2132_v6 = vld [vmem:[%s2380_s9 + $0x184] ss:$12 sps:$4 sm:$0xff]  }
  0x47   : > { %v2144_v1 = vld [vmem:[%s2380_s9 + $0x1e8] ss:$12 sps:$4 sm:$0xff]   ;;  %v2155_v4 = vld [vmem:[%s2382_s10 + $0x20] ss:$16 sps:$4 sm:$0xff]   ;;  %v2156_v8 = vld [vmem:[%s2380_s9 + $0x2d8] ss:$12 sps:$4 sm:$0xff]  }
  0x48   : > { %1866 = vmatpush3.bf16.msra.mxu1 %v2101_v31  ;;  %v2153_v3 = vld [vmem:[%s2382_s10 + $0x24] ss:$16 sps:$4 sm:$0xff]   ;;  %v2149_v7 = vld [vmem:[%s2380_s9 + $0x200] ss:$12 sps:$4 sm:$0xff]   ;;  %v2137_v10 = vld [vmem:[%s2380_s9 + $0x19c] ss:$12 sps:$4 sm:$0xff]  }
  0x49   : > { %1057 = vmatpush1.bf16.msra.mxu0 %v2076_v24  ;;  %1867 = vmatprep.subr.bf16.mxu1 %v2105_v32  ;;  %v2127_v5 = vld [vmem:[%s2380_s9 + $0x168] ss:$12 sps:$4 sm:$0xff]   ;;  %v2130_v9 = vld [vmem:[%s2380_s9 + $0x180] ss:$12 sps:$4 sm:$0xff]   ;;  %v2157_v11 = vld [vmem:[%s2380_s9 + $0x218] ss:$12 sps:$4 sm:$0xff]  }
  0x4a   : > { %1058 = vmatprep.subr.bf16.mxu0 %v2077_v25  ;;  %v2161_v12 = vld [vmem:[%s2380_s9 + $0x2f0] ss:$12 sps:$4 sm:$0xff]   ;;  %v2135_v14 = vld [vmem:[%s2380_s9 + $0x198] ss:$12 sps:$4 sm:$0xff]   ;;  %v2142_v15 = vld [vmem:[%s2380_s9 + $0x1b4] ss:$12 sps:$4 sm:$0xff]  }
  0x4b   : > { %v2168_v13 = vld [vmem:[%s2382_s10 + $0xc] ss:$16 sps:$4 sm:$0xff]   ;;  %v2166_v19 = vld [vmem:[%s2382_s10 + $0x8] ss:$16 sps:$4 sm:$0xff]   ;;  %v2152_v22 = vld [vmem:[%s2380_s9 + $0x1e4] ss:$12 sps:$4 sm:$0xff]  }
  0x4c   : > { %1868 = vmatpush3.bf16.msra.mxu1 %v2106_v35  ;;  %v2162_v16 = vld [vmem:[%s2380_s9 + $0x230] ss:$12 sps:$4 sm:$0xff]   ;;  %v2147_v18 = vld [vmem:[%s2380_s9 + $0x1cc] ss:$12 sps:$4 sm:$0xff]   ;;  %v2145_v20 = vld [vmem:[%s2380_s9 + $0x1c8] ss:$12 sps:$4 sm:$0xff]  }
  0x4d   : > { %1059 = vmatpush1.bf16.msra.mxu0 %v2079_v28  ;;  %1869 = vmatprep.subr.bf16.mxu1 %v2110_v36  ;;  %v2140_v17 = vld [vmem:[%s2380_s9 + $0x1b0] ss:$12 sps:$4 sm:$0xff]   ;;  %v2150_v23 = vld [vmem:[%s2380_s9 + $0x1e0] ss:$12 sps:$4 sm:$0xff]   ;;  %v2189_v25 = vld [vmem:[%s2382_s10 + $0x28] ss:$16 sps:$4 sm:$0xff]  }
  0x4e   : > { %1060 = vmatprep.subr.bf16.mxu0 %v2082_v30  ;;  %v2187_v21 = vld [vmem:[%s2382_s10 + $0x2c] ss:$16 sps:$4 sm:$0xff]   ;;  %v2158_v26 = vld [vmem:[%s2380_s9 + $0x1f8] ss:$12 sps:$4 sm:$0xff]   ;;  %v2165_v27 = vld [vmem:[%s2380_s9 + $0x214] ss:$12 sps:$4 sm:$0xff]  }
  0x4f   : > { %v2160_v24 = vld [vmem:[%s2380_s9 + $0x1fc] ss:$12 sps:$4 sm:$0xff]   ;;  %v2171_v29 = vld [vmem:[%s2380_s9 + $0x22c] ss:$12 sps:$4 sm:$0xff]   ;;  %v2174_v31 = vld [vmem:[%s2380_s9 + $0x244] ss:$12 sps:$4 sm:$0xff]  }
  0x50   : > { %1870 = vmatpush3.bf16.msra.mxu1 %v2111_v39  ;;  %v2163_v28 = vld [vmem:[%s2380_s9 + $0x210] ss:$12 sps:$4 sm:$0xff]   ;;  %v2169_v30 = vld [vmem:[%s2380_s9 + $0x228] ss:$12 sps:$4 sm:$0xff]   ;;  %v2172_v32 = vld [vmem:[%s2380_s9 + $0x240] ss:$12 sps:$4 sm:$0xff]  }
  0x51   : > { %1061 = vmatpush1.bf16.msra.mxu0 %v2084_v33  ;;  %1871 = vmatprep.subr.bf16.mxu1 %v2115_v40  ;;  %v2177_v33 = vld [vmem:[%s2380_s9 + $0x25c] ss:$12 sps:$4 sm:$0xff]   ;;  %v2180_v35 = vld [vmem:[%s2380_s9 + $0x274] ss:$12 sps:$4 sm:$0xff]   ;;  %v2186_v39 = vld [vmem:[%s2380_s9 + $0x2a4] ss:$12 sps:$4 sm:$0xff]  }
  0x52   : > { %1062 = vmatprep.subr.bf16.mxu0 %v2087_v34  ;;  %v2175_v34 = vld [vmem:[%s2380_s9 + $0x258] ss:$12 sps:$4 sm:$0xff]   ;;  %v2178_v36 = vld [vmem:[%s2380_s9 + $0x270] ss:$12 sps:$4 sm:$0xff]   ;;  %v2184_v40 = vld [vmem:[%s2380_s9 + $0x2a0] ss:$12 sps:$4 sm:$0xff]  }
  0x53   : > { %v2193_v44 = vld [vmem:[%s2380_s9 + $0x2d0] ss:$12 sps:$4 sm:$0xff]   ;;  %p1829_p12 = scmp.ne.s32.totalorder %s2277_s14, 4 }
  0x54   : > { %1872 = vmatpush3.bf16.msra.mxu1 %v2116_v43  ;;  %v2195_v43 = vld [vmem:[%s2380_s9 + $0x2d4] ss:$12 sps:$4 sm:$0xff]  }
  0x55   : > { %1063 = vmatpush1.bf16.msra.mxu0 %v2089_v37  ;;  %1885 = vmatprep.subr.bf16.mxu1 %v2123_v45  ;;  %v2183_v37 = vld [vmem:[%s2380_s9 + $0x28c] ss:$12 sps:$4 sm:$0xff]  }
  0x56   : > { %1064 = vmatprep.subr.bf16.mxu0 %v2092_v38  ;;  %v2181_v38 = vld [vmem:[%s2380_s9 + $0x288] ss:$12 sps:$4 sm:$0xff]   ;;  %v2198_v45 = vld [vmem:[%s2380_s9 + $0x2ec] ss:$12 sps:$4 sm:$0xff]  }
  0x57   : > { %1185 = vmatmul.mubr.bf16.vlgmr.msra.gmra.mrb[0].mxu1 %v2120_v48 }
  0x58   : > { %1886 = vmatpush3.bf16.msra.mxu1 %v2124_v49  ;;  %1192 = vmatprep.mubr.bf16.mxu1 %v2153_v3 }
  0x59   : > { %1065 = vmatpush1.bf16.msra.mxu0 %v2094_v41  ;;  %1887 = vmatprep.subr.bf16.mxu1 %v2128_v50  ;;  %v2192_v41 = vld [vmem:[%s2380_s9 + $0x2bc] ss:$12 sps:$4 sm:$0xff]  }
  0x5a   : > { %1066 = vmatprep.subr.bf16.mxu0 %v2097_v42  ;;  %v2190_v42 = vld [vmem:[%s2380_s9 + $0x2b8] ss:$12 sps:$4 sm:$0xff]  }
  0x5c   : > { %1888 = vmatpush3.bf16.msra.mxu1 %v2129_v53 }
  0x5d   : > { %1067 = vmatpush1.bf16.msra.mxu0 %v2099_v46  ;;  %1889 = vmatprep.subr.bf16.mxu1 %v2133_v54  ;;  %v2196_v46 = vld [vmem:[%s2380_s9 + $0x2e8] ss:$12 sps:$4 sm:$0xff]  }
  0x5e   : > { %1068 = vmatprep.subr.bf16.mxu0 %v2102_v47 }
  0x5f   : > { %1193 = vmatmul.mubr.bf16.gmra.mrb[4].mxu1 %v2155_v4 }
  0x60   : > { %1890 = vmatpush3.bf16.msra.mxu1 %v2134_v57  ;;  %1233 = vmatprep.mubr.bf16.mxu1 %v2168_v13 }
  0x61   : > { %1069 = vmatpush1.bf16.msra.mxu0 %v2104_v51  ;;  %1891 = vmatprep.subr.bf16.mxu1 %v2138_v58 }
  0x62   : > { %1070 = vmatprep.subr.bf16.mxu0 %v2107_v52 }
  0x64   : > { %1892 = vmatpush3.bf16.msra.mxu1 %v2139_v62 }
  0x65   : > { %1071 = vmatpush1.bf16.msra.mxu0 %v2109_v55  ;;  %1893 = vmatprep.subr.bf16.mxu1 %v2143_v63  ;;  %v348_v63 = vld [vmem:[#allocation2 + $0x10] sm:$0xff] }
  0x66   : > { %1072 = vmatprep.subr.bf16.mxu0 %v2112_v56 }
  0x68   : > { %1894 = vmatpush3.bf16.msra.mxu1 %v2144_v1 }
  0x69   : > { %1073 = vmatpush1.bf16.msra.mxu0 %v2114_v59  ;;  %1895 = vmatprep.subr.bf16.mxu1 %v2148_v2 }
  0x6a   : > { %1074 = vmatprep.subr.bf16.mxu0 %v2117_v60 }
  0x6c   : > { %1896 = vmatpush3.bf16.msra.mxu1 %v2149_v7 }
  0x6d   : > { %1075 = vmatpush1.bf16.msra.mxu0 %v2119_v61  ;;  %1897 = vmatprep.subr.bf16.mxu1 %v2156_v8 }
  0x6e   : > { %1076 = vmatprep.subr.bf16.mxu0 %v2125_v0 }
  0x70   : > { %1898 = vmatpush3.bf16.msra.mxu1 %v2157_v11  ;;  %v354_v11 = vld [vmem:[#allocation2 + $0x40] sm:$0xff] }
  0x71   : > { %1077 = vmatpush1.bf16.msra.mxu0 %v2127_v5  ;;  %1899 = vmatprep.subr.bf16.mxu1 %v2161_v12 }
  0x72   : > { %1099 = vmatprep.subr.bf16.mxu0 %v2132_v6 }
  0x74   : > { %1079 = vmatmul.mubr.bf16.vlgmr.msra.gmra.mrb[0].mxu0 %v2120_v48  ;;  %1900 = vmatpush3.bf16.msra.mxu1 %v2162_v16 }
  0x75   : > { %1100 = vmatpush1.bf16.msra.mxu0 %v2130_v9  ;;  %1088 = vmatprep.mubr.bf16.mxu0 %v2153_v3  ;;  %v351_v3 = vld [vmem:[#allocation2 + $0x28] sm:$0xff] }
  0x76   : > { %1101 = vmatprep.subr.bf16.mxu0 %v2137_v10 }
  0x77   : > { %1234 = vmatmul.mubr.bf16.vlgmr.msra.gmra.mrb[8].mxu1 %v2166_v19 }
  0x78   : > { %1241 = vmatprep.mubr.bf16.mxu1 %v2187_v21 }
  0x79   : > { %1102 = vmatpush1.bf16.msra.mxu0 %v2135_v14 }
  0x7a   : > { %1103 = vmatprep.subr.bf16.mxu0 %v2142_v15  ;;  %v357_v15 = vld [vmem:[#allocation2 + $0x58] sm:$0xff] }
  0x7c   : > { %1089 = vmatmul.mubr.bf16.gmra.mrb[4].mxu0 %v2155_v4 }
  0x7d   : > { %1104 = vmatpush1.bf16.msra.mxu0 %v2140_v17  ;;  %1131 = vmatprep.mubr.bf16.mxu0 %v2168_v13 }
  0x7e   : > { %1105 = vmatprep.subr.bf16.mxu0 %v2147_v18 }
  0x7f   : > { %1242 = vmatmul.mubr.bf16.gmra.mrb[12].mxu1 %v2189_v25 }
  0x81   : > { %1106 = vmatpush1.bf16.msra.mxu0 %v2145_v20  ;;  %v347_v20 = vld [vmem:[#allocation2 + $0x8] sm:$0xff] }
  0x82   : > { %1107 = vmatprep.subr.bf16.mxu0 %v2152_v22  ;;  %v349_v22 = vld [vmem:[#allocation2 + $0x18] sm:$0xff] }
  0x85   : > { %1108 = vmatpush1.bf16.msra.mxu0 %v2150_v23 }
  0x86   : > { %1109 = vmatprep.subr.bf16.mxu0 %v2160_v24 }
  0x89   : > { %1110 = vmatpush1.bf16.msra.mxu0 %v2158_v26 }
  0x8a   : > { %1111 = vmatprep.subr.bf16.mxu0 %v2165_v27 }
  0x8d   : > { %1112 = vmatpush1.bf16.msra.mxu0 %v2163_v28 }
  0x8e   : > { %1113 = vmatprep.subr.bf16.mxu0 %v2171_v29 }
  0x91   : > { %1114 = vmatpush1.bf16.msra.mxu0 %v2169_v30 }
  0x92   : > { %1115 = vmatprep.subr.bf16.mxu0 %v2174_v31  ;;  %v352_v31 = vld [vmem:[#allocation2 + $0x30] sm:$0xff] }
  0x95   : > { %1116 = vmatpush1.bf16.msra.mxu0 %v2172_v32  ;;  %v353_v32 = vld [vmem:[#allocation2 + $0x38] sm:$0xff] }
  0x96   : > { %1117 = vmatprep.subr.bf16.mxu0 %v2177_v33 }
  0x99   : > { %1118 = vmatpush1.bf16.msra.mxu0 %v2175_v34  ;;  %v355_v34 = vld [vmem:[#allocation2 + $0x48] sm:$0xff] }
  0x9a   : > { %1119 = vmatprep.subr.bf16.mxu0 %v2180_v35 }
  0x9d   : > { %1120 = vmatpush1.bf16.msra.mxu0 %v2178_v36 }
  0x9e   : > { %1121 = vmatprep.subr.bf16.mxu0 %v2183_v37  ;;  %v356_v37 = vld [vmem:[#allocation2 + $0x50] sm:$0xff] }
  0xa1   : > { %1122 = vmatpush1.bf16.msra.mxu0 %v2181_v38 }
  0xa2   : > { %1123 = vmatprep.subr.bf16.mxu0 %v2186_v39 }
  0xa5   : > { %1124 = vmatpush1.bf16.msra.mxu0 %v2184_v40 }
  0xa6   : > { %1125 = vmatprep.subr.bf16.mxu0 %v2192_v41 }
  0xa9   : > { %1126 = vmatpush1.bf16.msra.mxu0 %v2190_v42 }
  0xaa   : > { %1127 = vmatprep.subr.bf16.mxu0 %v2195_v43  ;;  %v1292_v43 = vlaneseq (!%p1829_p12) }
  0xad   : > { %1128 = vmatpush1.bf16.msra.mxu0 %v2193_v44  ;;  %v1293_v44 = vshrl.u32 (!%p1829_p12), %v1292_v43, 7 }
  0xae   : > { %1129 = vmatprep.subr.bf16.mxu0 %v2198_v45  ;;  %v1290_v45 = vld [vmem:[%s2532_s2] sm:$0x7] (!%p1829_p12) }
  0xb1   : > { %1130 = vmatpush1.bf16.msra.mxu0 %v2196_v46 }
  0xb4   : > { %1132 = vmatmul.mubr.bf16.vlgmr.msra.gmra.mrb[0].mxu0 %v2166_v19  ;;  %v346_v19 = vld [vmem:[#allocation2] sm:$0xff] }
  0xb5   : > { %1141 = vmatprep.mubr.bf16.mxu0 %v2187_v21 }
  0xbc   : > { %1142 = vmatmul.mubr.bf16.gmra.mrb[4].mxu0 %v2189_v25  ;;  %v350_v25 = vld [vmem:[#allocation2 + $0x20] sm:$0xff] }
 0x12a   : > { %v1873_v47 = vpop.f32.mrb[0].mxu1 }
 0x12b   : > { %v1874_v48 = vpop.f32.mrb[1].mxu1 }
 0x12c   : > { %v1875_v49 = vadd.f32 %v1874_v48, %v1873_v47  ;;  %v1876_v50 = vpop.f32.mrb[2].mxu1  ;;  %v1294_v48 = vsub.s32 (!%p1829_p12), 0, %v1293_v44 }
 0x12d   : > { %v1877_v51 = vpop.f32.mrb[3].mxu1 }
 0x12e   : > { %v1878_v52 = vadd.f32 %v1877_v51, %v1876_v50  ;;  %v1302_v50 = vsub.s32 (!%p1829_p12), 2, %v1293_v44 }
 0x132   : > { %v1879_v53 = vpop.f32.mrb[4].mxu1 }
 0x133   : > { %v1880_v54 = vpop.f32.mrb[5].mxu1 }
 0x134   : > { %v1881_v55 = vadd.f32 %v1880_v54, %v1879_v53  ;;  %v1882_v56 = vpop.f32.mrb[6].mxu1  ;;  %v1295_v54 = vrot.slane (!%p1829_p12), %v1290_v45, %v1294_v48 }
 0x135   : > { %v1883_v57 = vpop.f32.mrb[7].mxu1 }
 0x136   : > { %v1884_v58 = vadd.f32 %v1883_v57, %v1882_v56  ;;  %v1303_v56 = vrot.slane (!%p1829_p12), %v1290_v45, %v1302_v50 }
 0x14a   : > { %v1901_v59 = vpop.f32.mrb[8].mxu1 }
 0x14b   : > { %v1902_v60 = vpop.f32.mrb[9].mxu1 }
 0x14c   : > { %v1903_v61 = vadd.f32 %v1902_v60, %v1901_v59  ;;  %v1904_v62 = vpop.f32.mrb[10].mxu1 }
 0x14d   : > { %v1905_v0 = vpop.f32.mrb[11].mxu1 }
 0x14e   : > { %v1236_v1 = vadd.f32 %v1903_v61, %v1875_v49  ;;  %v1906_v2 = vadd.f32 %v1905_v0, %v1904_v62  ;;  %v1298_v49 = vsub.s32 (!%p1829_p12), 1, %v1293_v44 }
 0x150   : > { %v1252_v4 = vadd.f32 %v1236_v1, %v348_v63  ;;  %v1239_v5 = vadd.f32 %v1906_v2, %v1878_v52 }
 0x152   : > { %1264 = vst [vmem:[#allocation2 + $0x10] sm:$0xff] %v1252_v4  ;;  %v1255_v6 = vadd.f32 %v1239_v5, %v351_v3  ;;  %v1907_v7 = vpop.f32.mrb[12].mxu1 }
 0x153   : > { %v1908_v8 = vpop.f32.mrb[13].mxu1 }
 0x154   : > { %1267 = vst [vmem:[#allocation2 + $0x28] sm:$0xff] %v1255_v6  ;;  %v1909_v9 = vadd.f32 %v1908_v8, %v1907_v7  ;;  %v1910_v10 = vpop.f32.mrb[14].mxu1 }
 0x155   : > { %v1911_v12 = vpop.f32.mrb[15].mxu1 }
 0x156   : > { %v1244_v13 = vadd.f32 %v1909_v9, %v1881_v55  ;;  %v1912_v14 = vadd.f32 %v1911_v12, %v1910_v10  ;;  %v1299_v55 = vrot.slane (!%p1829_p12), %v1290_v45, %v1298_v49 }
 0x158   : > { %v1258_v16 = vadd.f32 %v1244_v13, %v354_v11  ;;  %v1247_v17 = vadd.f32 %v1912_v14, %v1884_v58 }
 0x159   : > { %v1280_v51 = vld [vmem:[#allocation2 + $0x10] sm:$0xff] (!%p1829_p12) }
 0x15a   : > { %1270 = vst [vmem:[#allocation2 + $0x40] sm:$0xff] %v1258_v16  ;;  %v1261_v18 = vadd.f32 %v1247_v17, %v357_v15  ;;  %v1309_v62 = vadd.f32 (!%p1829_p12), %v1303_v56, %v1280_v51 }
 0x15b   : > { %v1283_v57 = vld [vmem:[#allocation2 + $0x28] sm:$0xff] (!%p1829_p12) }
 0x15c   : > { %1273 = vst [vmem:[#allocation2 + $0x58] sm:$0xff] %v1261_v18  ;;  %v1312_v1 = vadd.f32 (!%p1829_p12), %v1303_v56, %v1283_v57  ;;  %v1321_v8 = vmax.f32 (!%p1829_p12), %v1309_v62, 0.0 }
 0x15e   : > { %v1324_v12 = vmax.f32 (!%p1829_p12), %v1312_v1, 0.0  ;;  %v1850_v17 = vpack.c.bf16 (!%p1829_p12), %v1321_v8, %v1321_v8 }
 0x160   : > { %1372 = vst [vmem:[#allocation4 + $0x8] sm:$0xf] (!%p1829_p12), %v1850_v17 }
 0x161   : > { %v1286_v4 = vld [vmem:[#allocation2 + $0x40] sm:$0xff] (!%p1829_p12) }
 0x162   : > { %v1315_v18 = vadd.f32 (!%p1829_p12), %v1303_v56, %v1286_v4 }
 0x163   : > { %v1289_v15 = vld [vmem:[#allocation2 + $0x58] sm:$0xff] (!%p1829_p12) }
 0x187   : > { %v1133_v21 = vpop.f32.mrb[0].mxu0 }
 0x188   : > { %v1250_v23 = vadd.f32 %v1133_v21, %v346_v19  ;;  %v1135_v24 = vpop.f32.mrb[1].mxu0  ;;  %v1852_v21 = vpack.c.bf16 (!%p1829_p12), %v1324_v12, %v1324_v12 }
 0x189   : > { %v1251_v26 = vadd.f32 %v1135_v24, %v347_v20  ;;  %v1137_v27 = vpop.f32.mrb[2].mxu0  ;;  %v1327_v24 = vmax.f32 (!%p1829_p12), %v1315_v18, 0.0 }
 0x18a   : > { %1262 = vst [vmem:[#allocation2] sm:$0xff] %v1250_v23  ;;  %v1253_v28 = vadd.f32 %v1137_v27, %v349_v22  ;;  %v1139_v29 = vpop.f32.mrb[3].mxu0  ;;  %1374 = vst [vmem:[#allocation4 + $0x14] sm:$0xf] (!%p1829_p12), %v1852_v21 }
 0x18b   : > { %1263 = vst [vmem:[#allocation2 + $0x8] sm:$0xff] %v1251_v26  ;;  %v1254_v30 = vadd.f32 %v1139_v29, %v350_v25  ;;  %v1318_v26 = vadd.f32 (!%p1829_p12), %v1303_v56, %v1289_v15 }
 0x18c   : > { %1265 = vst [vmem:[#allocation2 + $0x18] sm:$0xff] %v1253_v28  ;;  %v1854_v28 = vpack.c.bf16 (!%p1829_p12), %v1327_v24, %v1327_v24 }
 0x18d   : > { %1266 = vst [vmem:[#allocation2 + $0x20] sm:$0xff] %v1254_v30  ;;  %v1330_v29 = vmax.f32 (!%p1829_p12), %v1318_v26, 0.0 }
 0x18e   : > { %1376 = vst [vmem:[#allocation4 + $0x20] sm:$0xf] (!%p1829_p12), %v1854_v28 }
 0x18f   : > { %v1143_v33 = vpop.f32.mrb[4].mxu0  ;;  %1277 = sbr.rel (%p1829_p12) target bundleno = 420 (0x1a4), region = 70 }
 0x190   : > { %v1256_v35 = vadd.f32 %v1143_v33, %v352_v31  ;;  %v1145_v36 = vpop.f32.mrb[5].mxu0  ;;  %v1856_v31 = vpack.c.bf16 (!%p1829_p12), %v1330_v29, %v1330_v29 }
 0x191   : > { %v1257_v38 = vadd.f32 %v1145_v36, %v353_v32  ;;  %v1147_v39 = vpop.f32.mrb[6].mxu0  ;;  %v1278_v46 = vld [vmem:[#allocation2] sm:$0xff] (!%p1829_p12) }
 0x192   : > { %1268 = vst [vmem:[#allocation2 + $0x30] sm:$0xff] %v1256_v35  ;;  %v1259_v40 = vadd.f32 %v1147_v39, %v355_v34  ;;  %v1149_v41 = vpop.f32.mrb[7].mxu0  ;;  %v1279_v47 = vld [vmem:[#allocation2 + $0x8] sm:$0xff] (!%p1829_p12)  ;;  %v1307_v60 = vadd.f32 (!%p1829_p12), %v1295_v54, %v1278_v46  ;;  %1378 = vst [vmem:[#allocation4 + $0x2c] sm:$0xf] (!%p1829_p12), %v1856_v31 }
 0x193   : > { %1269 = vst [vmem:[#allocation2 + $0x38] sm:$0xff] %v1257_v38  ;;  %v1260_v42 = vadd.f32 %v1149_v41, %v356_v37  ;;  %v1281_v52 = vld [vmem:[#allocation2 + $0x18] sm:$0xff] (!%p1829_p12)  ;;  %v1308_v61 = vadd.f32 (!%p1829_p12), %v1299_v55, %v1279_v47 }
 0x194   : > { %1271 = vst [vmem:[#allocation2 + $0x48] sm:$0xff] %v1259_v40  ;;  %v1282_v53 = vld [vmem:[#allocation2 + $0x20] sm:$0xff] (!%p1829_p12)  ;;  %v1310_v63 = vadd.f32 (!%p1829_p12), %v1295_v54, %v1281_v52  ;;  %v1319_v6 = vmax.f32 (!%p1829_p12), %v1307_v60, 0.0 }
 0x195   : > { %1272 = vst [vmem:[#allocation2 + $0x50] sm:$0xff] %v1260_v42  ;;  %v1311_v0 = vadd.f32 (!%p1829_p12), %v1299_v55, %v1282_v53  ;;  %v1320_v7 = vmax.f32 (!%p1829_p12), %v1308_v61, 0.0 }
 0x196   : > { %v1322_v9 = vmax.f32 %v1310_v63, 0.0 }
 0x197   : > { %v1323_v11 = vmax.f32 %v1311_v0, 0.0  ;;  %v1849_v16 = vpack.c.bf16 %v1320_v7, %v1319_v6 }
 0x199   : > { %v1284_v58 = vld [vmem:[#allocation2 + $0x30] sm:$0xff]  ;;  %v1851_v20 = vpack.c.bf16 %v1323_v11, %v1322_v9  ;;  %1371 = vst [vmem:[#allocation4] sm:$0xff] %v1849_v16 }
 0x19a   : > { %v1285_v59 = vld [vmem:[#allocation2 + $0x38] sm:$0xff]  ;;  %v1313_v2 = vadd.f32 %v1295_v54, %v1284_v58 }
 0x19b   : > { %v1314_v3 = vadd.f32 %v1299_v55, %v1285_v59  ;;  %v1287_v5 = vld [vmem:[#allocation2 + $0x48] sm:$0xff]  ;;  %1373 = vst [vmem:[#allocation4 + $0xc] sm:$0xff] %v1851_v20 }
 0x19c   : > { %v1288_v10 = vld [vmem:[#allocation2 + $0x50] sm:$0xff]  ;;  %v1325_v13 = vmax.f32 %v1313_v2, 0.0  ;;  %v1316_v19 = vadd.f32 %v1295_v54, %v1287_v5 }
 0x19d   : > { %v1326_v14 = vmax.f32 %v1314_v3, 0.0  ;;  %v1317_v23 = vadd.f32 %v1299_v55, %v1288_v10 }
 0x19e   : > { %v1328_v25 = vmax.f32 %v1316_v19, 0.0 }
 0x19f   : > { %v1853_v22 = vpack.c.bf16 %v1326_v14, %v1325_v13  ;;  %v1329_v27 = vmax.f32 %v1317_v23, 0.0 }
 0x1a1   : > { %1375 = vst [vmem:[#allocation4 + $0x18] sm:$0xff] %v1853_v22  ;;  %v1855_v30 = vpack.c.bf16 %v1329_v27, %v1328_v25 }
 0x1a3   : > { %1377 = vst [vmem:[#allocation4 + $0x24] sm:$0xff] %v1855_v30 }
 0x1a4 PF: > { %p1838_p13 = scmp.ne.s32.totalorder %s1708_s17, 4 }
 0x1a5   : > { %s1398_s20 = scalar_lea.vmem (!%p1838_p13), %s2533_s3, 8   ;;  %s2291_s22 = smov (!%p1838_p13), 0  }
 0x1a6   : > { %1381 = sbr.rel (%p1838_p13) target bundleno = 450 (0x1c2), region = 74 }
 0x1ad LB: >> { %v1410_v32 = vld [vmem:[#allocation4] sm:$0xff]  ;;  %v1412_v33 = vld [vmem:[#allocation4 + $0xc] sm:$0xff]  ;;  %v1414_v34 = vld [vmem:[#allocation4 + $0x18] sm:$0xff]  ;;  %s1404_s22 = sadd.s32 1, %s2293_s22   ;;  %s2293_s22 = sphi %s2291_s22, %s1404_s22  }
 0x1ae   : >> { %1411 = vst [vmem:[%s2533_s3] sm:$0xff] %v1410_v32  ;;  %1413 = vst [vmem:[%s2533_s3 + $0xc] sm:$0xff] %v1412_v33  ;;  %p1403_p0 = scmp.ge.s32.totalorder %s1404_s22, 1 }
 0x1af   : >> { %1415 = vst [vmem:[%s2533_s3 + $0x18] sm:$0xff] %v1414_v34  ;;  %s2295_s30 = smov (%p1403_p0), %s1398_s20   ;;  %s2299_s4 = smov (%p1403_p0), [#allocation4 + $0x8]  }
 0x1b0   : > { %1406 = sbr.rel (!%p1403_p0) target bundleno = 429 (0x1ad), region = 182  ;;  %s2303_s5 = smov (%p1403_p0), 0  }
 0x1b7 LB: >> { %v1460_v35 = vld [vmem:[%s2301_s4] sm:$0xf]  ;;  %v1462_v36 = vld [vmem:[%s2301_s4 + $0xc] sm:$0xf]  ;;  %v1464_v37 = vld [vmem:[%s2301_s4 + $0x18] sm:$0xf]  ;;  %s2305_s5 = sphi %s2303_s5, %s1454_s5   ;;  %s2301_s4 = sphi %s2299_s4, %s1564_s4   ;;  %s2297_s30 = sphi %s2295_s30, %s2296_s30  }
 0x1b8   : >> { %1461 = vst [vmem:[%s2297_s30] sm:$0xf] %v1460_v35  ;;  %1463 = vst [vmem:[%s2297_s30 + $0xc] sm:$0xf] %v1462_v36  ;;  %s2308_s6 = smov [#allocation4]   ;;  %s1454_s5 = sadd.s32 1, %s2305_s5  }
 0x1b9   : >> { %1465 = vst [vmem:[%s2297_s30 + $0x18] sm:$0xf] %v1464_v37  ;;  %s1564_s4 = scalar_lea.vmem %s2308_s6, 8   ;;  %p1453_p1 = scmp.ge.s32.totalorder %s1454_s5, 1 }
 0x1ba   : >> { %s2296_s30 = smov %s1398_s20  }
 0x1bb   : > { %1456 = sbr.rel (!%p1453_p1) target bundleno = 439 (0x1b7), region = 204 }
 0x1c2 PF: > { %s13_s16 = sadd.s32 1, %s2285_s16   ;;  %s2534_s12 = smov %s2273_s13 }
 0x1c3   : > { %p10_p2 = scmp.ge.s32.totalorder %s13_s16, 7   ;;  %s2535_s13 = smov %s2365_s21 }
 0x1c4   : > { %s2536_s14 = smov %s2281_s15  ;;  %s2537_s15 = smov %s2539_s18 }
 0x1c5   :  { %12 = sbr.rel (!%p10_p2) target bundleno = 3 (0x3), region = 226 }

// kernel: emotion_cnn_forward.10
= control target key start
LH: loop header
LB: loop body
LE: loop exit
PB: predicated region body
PF: predicated region fallthrough
CT: control target
= control target key end

     0   :  { %s1700_s12 = smov 0   ;;  %s1702_s13 = smov 0   ;;  %s1858_s0 = inlined_call_operand.vmem [shape: bf16[18,3584], index: 0, kind: input, shape index: {}]   ;;  %s1859_s1 = inlined_call_operand.vmem [shape: bf16[3584,256], index: 1, kind: input, shape index: {}]   ;;  %s1860_s2 = inlined_call_operand.vmem [shape: f32[1,256], index: 2, kind: input, shape index: {}]   ;;  %s1861_s3 = inlined_call_operand.vmem [shape: bf16[18,256], index: 3, kind: output, shape index: {}]  }
   0x1   :  { %s1704_s14 = smov 0   ;;  %s1706_s15 = smov 0  }
   0x2   :  { %s1708_s16 = smov 0  }
   0x3 LB: > { %s1270_s17 = sadd.s32 4294967295, %s1669_s16   ;;  %s25_s18 = sadd.s32 1, %s1665_s15  ;;  %s1669_s16 = sphi %s1708_s16, %s13_s16   ;;  %s1665_s15 = sphi %s1706_s15, %s1865_s15   ;;  %s1661_s14 = sphi %s1704_s14, %s1864_s14   ;;  %s1657_s13 = sphi %s1702_s13, %s1863_s13   ;;  %s1653_s12 = sphi %s1700_s12, %s1862_s12  }
   0x4   : > { %p26_p0 = scmp.ge.s32.totalorder %s25_s18, 7  ;;  %p48_p1 = scmp.ne.s32.totalorder %s1657_s13, %s1653_s12 }
   0x5   : > { %p49_p2 = scmp.eq.s32.totalorder %s1669_s16, 0  ;;  %s41_s20 = sadd.s32 1, %s1657_s13 }
   0x6   : > { %s1867_s18 = smov (%p26_p0, %s25_s18), 0  ;;  %p1273_p5 = scmp.ge.s32.totalorder %s1669_s16, 7 }
   0x7   : > { %p50_p3 = por %p49_p2, %p48_p1  ;;  %s37_s19 = ssub.s32 %s1665_s15, %s1867_s18 }
   0x8   : > { %p39_p4 = scmp.eq.s32.totalorder %s37_s19, 0  ;;  %164 = sbr.rel (%p1273_p5) target bundleno = 32 (0x20), region = 20 }
   0xa   : > { %s1736_s21 = scalar_select %p39_p4, %s1657_s13, %s41_s20  }
   0xf   : > { %167 = sbr.rel (!%p50_p3) target bundleno = 32 (0x20), region = 24  ;;  %s169_s22 = sand.u32 (%p50_p3), 1, %s1657_s13  }
  0x10   : > { %s1372_s23 = sshll.u32 (%p50_p3), %s1665_s15, 4  ;;  %s1274_s24 = sshll.u32 (%p50_p3), %s169_s22, 6 }
  0x11   : > { %s181_s27 = scalar_lea.vmem (%p50_p3), %s1858_s0, %s1372_s23   ;;  %s171_s28 = scalar_lea.vmem (%p50_p3), [#allocation3], %s1274_s24  }
  0x12   : > { %s1671_s29 = smov (%p50_p3), 0  }
  0x16 LB: >> { %v198_v0 = vld [vmem:[%s181_s27] sm:$0xff]  ;;  %v200_v1 = vld [vmem:[%s181_s27 + $0x70] sm:$0xff]  ;;  %v204_v3 = vld [vmem:[%s181_s27 + $0x8] sm:$0xff]  ;;  %s192_s29 = sadd.s32 1, %s1673_s29   ;;  %s1673_s29 = sphi %s1671_s29, %s192_s29  }
  0x17   : >> { %v202_v2 = vld [vmem:[%s181_s27 + $0xe0] sm:$0xff]  ;;  %199 = vst [vmem:[%s171_s28] sm:$0xff] %v198_v0  ;;  %201 = vst [vmem:[%s171_s28 + $0x10] sm:$0xff] %v200_v1  ;;  %v206_v4 = vld [vmem:[%s181_s27 + $0x78] sm:$0xff]  ;;  %p191_p6 = scmp.ge.s32.totalorder %s192_s29, 1 }
  0x18   : >> { %203 = vst [vmem:[%s171_s28 + $0x20] sm:$0xff] %v202_v2  ;;  %v208_v5 = vld [vmem:[%s181_s27 + $0xe8] sm:$0xff]  ;;  %205 = vst [vmem:[%s171_s28 + $0x8] sm:$0xff] %v204_v3 }
  0x19   : >> { %207 = vst [vmem:[%s171_s28 + $0x18] sm:$0xff] %v206_v4  ;;  %209 = vst [vmem:[%s171_s28 + $0x28] sm:$0xff] %v208_v5  ;;  %194 = sbr.rel (!%p191_p6) target bundleno = 22 (0x16), region = 170 }
  0x20 PF: > { %p1282_p7 = scmp.ge.s32.totalorder %s1669_s16, 1  ;;  %p263_p8 = scmp.lt.s32.totalorder %s1669_s16, 8 }
  0x22   : > { %p264_p9 = pnand %p1282_p7, %p263_p8 }
  0x23   : > { %s270_s30 = sand.u32 (!%p264_p9), 1, %s1653_s12   ;;  %s1284_s4 = sshll.u32 (!%p264_p9), %s1661_s14, 6 }
  0x24   : > { %267 = sbr.rel (%p264_p9) target bundleno = 375 (0x177), region = 58  ;;  %s1283_s5 = sshll.u32 (!%p264_p9), %s270_s30, 6 }
  0x25   : > { %p309_p10 = scmp.lt.s32.totalorder (!%p264_p9), %s1284_s4, 447  ;;  %s1753_s10 = scalar_lea.vmem (!%p264_p9), [#allocation3], %s1283_s5 }
  0x26   : > { %p1287_p11 = scmp.ne.s32.totalorder (!%p264_p9), %s1661_s14, 0 }
  0x2b   : > { %s1869_s4 = smov (!%p309_p10, %s1284_s4), 447  ;;  %332 = sbr.rel (%p1287_p11) target bundleno = 50 (0x32), region = 66 }
  0x2c   : > { %s1373_s6 = sshll.u32 %s1869_s4, 3  ;;  %v1679_v6 = vmov (!%p1287_p11), 0.0  }
  0x2d   : > { %s1751_s9 = scalar_lea.vmem %s1859_s1, %s1373_s6  ;;  %333 = vst [vmem:[#allocation2] sm:$0xff] (!%p1287_p11), %v1679_v6  ;;  %334 = vst [vmem:[#allocation2 + $0x8] sm:$0xff] (!%p1287_p11), %v1679_v6 }
  0x2e   : > { %335 = vst [vmem:[#allocation2 + $0x10] sm:$0xff] (!%p1287_p11), %v1679_v6  ;;  %336 = vst [vmem:[#allocation2 + $0x18] sm:$0xff] (!%p1287_p11), %v1679_v6 }
  0x2f   : > { %337 = vst [vmem:[#allocation2 + $0x20] sm:$0xff] (!%p1287_p11), %v1679_v6  ;;  %338 = vst [vmem:[#allocation2 + $0x28] sm:$0xff] (!%p1287_p11), %v1679_v6 }
  0x30   : > { %339 = vst [vmem:[#allocation2 + $0x30] sm:$0xff] (!%p1287_p11), %v1679_v6  ;;  %340 = vst [vmem:[#allocation2 + $0x38] sm:$0xff] (!%p1287_p11), %v1679_v6 }
  0x32 PF: > { %v1491_v7 = vld [vmem:[%s1751_s9 + $0x4] ss:$8 sps:$4 sm:$0xff]   ;;  %v1495_v9 = vld [vmem:[%s1751_s9] ss:$8 sps:$4 sm:$0xff]   ;;  %v1497_v11 = vld [vmem:[%s1751_s9 + $0x14] ss:$8 sps:$4 sm:$0xff]  }
  0x33   : > { %v1493_v8 = vld [vmem:[%s1751_s9 + $0x104] ss:$8 sps:$4 sm:$0xff]   ;;  %781 = vmatprep.subr.bf16.mxu1 %v1491_v7  ;;  %v1496_v10 = vld [vmem:[%s1751_s9 + $0x100] ss:$8 sps:$4 sm:$0xff]   ;;  %v1499_v12 = vld [vmem:[%s1751_s9 + $0x114] ss:$8 sps:$4 sm:$0xff]  }
  0x34   : > { %834 = vmatprep.subr.bf16.mxu0 %v1493_v8  ;;  %782 = vmatpush1.bf16.msra.mxu1 %v1495_v9  ;;  %v1501_v13 = vld [vmem:[%s1751_s9 + $0x10] ss:$8 sps:$4 sm:$0xff]   ;;  %v1503_v15 = vld [vmem:[%s1751_s9 + $0x24] ss:$8 sps:$4 sm:$0xff]   ;;  %v1507_v17 = vld [vmem:[%s1751_s9 + $0x20] ss:$8 sps:$4 sm:$0xff]  }
  0x35   : > { %835 = vmatpush1.bf16.msra.mxu0 %v1496_v10  ;;  %783 = vmatprep.subr.bf16.mxu1 %v1497_v11  ;;  %v1502_v14 = vld [vmem:[%s1751_s9 + $0x110] ss:$8 sps:$4 sm:$0xff]   ;;  %v1505_v16 = vld [vmem:[%s1751_s9 + $0x124] ss:$8 sps:$4 sm:$0xff]   ;;  %v1508_v18 = vld [vmem:[%s1751_s9 + $0x120] ss:$8 sps:$4 sm:$0xff]  }
  0x36   : > { %836 = vmatprep.subr.bf16.mxu0 %v1499_v12  ;;  %v1509_v19 = vld [vmem:[%s1751_s9 + $0x34] ss:$8 sps:$4 sm:$0xff]   ;;  %v1513_v21 = vld [vmem:[%s1751_s9 + $0x30] ss:$8 sps:$4 sm:$0xff]   ;;  %v1515_v23 = vld [vmem:[%s1751_s9 + $0x44] ss:$8 sps:$4 sm:$0xff]  }
  0x37   : > { %v1511_v20 = vld [vmem:[%s1751_s9 + $0x134] ss:$8 sps:$4 sm:$0xff]   ;;  %v1514_v22 = vld [vmem:[%s1751_s9 + $0x130] ss:$8 sps:$4 sm:$0xff]   ;;  %v1517_v24 = vld [vmem:[%s1751_s9 + $0x144] ss:$8 sps:$4 sm:$0xff]  }
  0x38   : > { %784 = vmatpush1.bf16.msra.mxu1 %v1501_v13  ;;  %v1519_v25 = vld [vmem:[%s1751_s9 + $0x40] ss:$8 sps:$4 sm:$0xff]   ;;  %v1521_v27 = vld [vmem:[%s1751_s9 + $0x54] ss:$8 sps:$4 sm:$0xff]   ;;  %v1525_v29 = vld [vmem:[%s1751_s9 + $0x50] ss:$8 sps:$4 sm:$0xff]  }
  0x39   : > { %837 = vmatpush1.bf16.msra.mxu0 %v1502_v14  ;;  %785 = vmatprep.subr.bf16.mxu1 %v1503_v15  ;;  %v1520_v26 = vld [vmem:[%s1751_s9 + $0x140] ss:$8 sps:$4 sm:$0xff]   ;;  %v1523_v28 = vld [vmem:[%s1751_s9 + $0x154] ss:$8 sps:$4 sm:$0xff]   ;;  %v1526_v30 = vld [vmem:[%s1751_s9 + $0x150] ss:$8 sps:$4 sm:$0xff]  }
  0x3a   : > { %838 = vmatprep.subr.bf16.mxu0 %v1505_v16  ;;  %v1527_v31 = vld [vmem:[%s1751_s9 + $0x64] ss:$8 sps:$4 sm:$0xff]   ;;  %v1531_v33 = vld [vmem:[%s1751_s9 + $0x60] ss:$8 sps:$4 sm:$0xff]   ;;  %v1533_v35 = vld [vmem:[%s1751_s9 + $0x74] ss:$8 sps:$4 sm:$0xff]  }
  0x3b   : > { %v1529_v32 = vld [vmem:[%s1751_s9 + $0x164] ss:$8 sps:$4 sm:$0xff]   ;;  %v1532_v34 = vld [vmem:[%s1751_s9 + $0x160] ss:$8 sps:$4 sm:$0xff]   ;;  %v1535_v36 = vld [vmem:[%s1751_s9 + $0x174] ss:$8 sps:$4 sm:$0xff]  }
  0x3c   : > { %786 = vmatpush1.bf16.msra.mxu1 %v1507_v17  ;;  %v1537_v37 = vld [vmem:[%s1751_s9 + $0x70] ss:$8 sps:$4 sm:$0xff]   ;;  %v1539_v39 = vld [vmem:[%s1751_s9 + $0x84] ss:$8 sps:$4 sm:$0xff]   ;;  %v1543_v41 = vld [vmem:[%s1751_s9 + $0x80] ss:$8 sps:$4 sm:$0xff]  }
  0x3d   : > { %839 = vmatpush1.bf16.msra.mxu0 %v1508_v18  ;;  %787 = vmatprep.subr.bf16.mxu1 %v1509_v19  ;;  %v1538_v38 = vld [vmem:[%s1751_s9 + $0x170] ss:$8 sps:$4 sm:$0xff]   ;;  %v1541_v40 = vld [vmem:[%s1751_s9 + $0x184] ss:$8 sps:$4 sm:$0xff]   ;;  %v1544_v42 = vld [vmem:[%s1751_s9 + $0x180] ss:$8 sps:$4 sm:$0xff]  }
  0x3e   : > { %840 = vmatprep.subr.bf16.mxu0 %v1511_v20  ;;  %v1545_v43 = vld [vmem:[%s1751_s9 + $0x94] ss:$8 sps:$4 sm:$0xff]   ;;  %v1549_v45 = vld [vmem:[%s1751_s9 + $0x90] ss:$8 sps:$4 sm:$0xff]   ;;  %v1551_v47 = vld [vmem:[%s1751_s9 + $0xa4] ss:$8 sps:$4 sm:$0xff]  }
  0x3f   : > { %v1547_v44 = vld [vmem:[%s1751_s9 + $0x194] ss:$8 sps:$4 sm:$0xff]   ;;  %v1550_v46 = vld [vmem:[%s1751_s9 + $0x190] ss:$8 sps:$4 sm:$0xff]   ;;  %v1553_v48 = vld [vmem:[%s1751_s9 + $0x1a4] ss:$8 sps:$4 sm:$0xff]  }
  0x40   : > { %788 = vmatpush1.bf16.msra.mxu1 %v1513_v21  ;;  %v1555_v49 = vld [vmem:[%s1751_s9 + $0xa0] ss:$8 sps:$4 sm:$0xff]   ;;  %v1557_v51 = vld [vmem:[%s1751_s9 + $0xb4] ss:$8 sps:$4 sm:$0xff]   ;;  %v1561_v53 = vld [vmem:[%s1751_s9 + $0xb0] ss:$8 sps:$4 sm:$0xff]  }
  0x41   : > { %841 = vmatpush1.bf16.msra.mxu0 %v1514_v22  ;;  %789 = vmatprep.subr.bf16.mxu1 %v1515_v23  ;;  %v1556_v50 = vld [vmem:[%s1751_s9 + $0x1a0] ss:$8 sps:$4 sm:$0xff]   ;;  %v1559_v52 = vld [vmem:[%s1751_s9 + $0x1b4] ss:$8 sps:$4 sm:$0xff]   ;;  %v1562_v54 = vld [vmem:[%s1751_s9 + $0x1b0] ss:$8 sps:$4 sm:$0xff]  }
  0x42   : > { %842 = vmatprep.subr.bf16.mxu0 %v1517_v24  ;;  %v1563_v55 = vld [vmem:[%s1751_s9 + $0xc4] ss:$8 sps:$4 sm:$0xff]   ;;  %v1567_v59 = vld [vmem:[%s1751_s9 + $0xc0] ss:$8 sps:$4 sm:$0xff]   ;;  %v1569_v61 = vld [vmem:[%s1751_s9 + $0xd4] ss:$8 sps:$4 sm:$0xff]  }
  0x43   : > { %v1589_v56 = vld [vmem:[%s1753_s10 + $0x4] ss:$16 sps:$4 sm:$0xff]   ;;  %v1592_v58 = vld [vmem:[%s1753_s10 + $0xc] ss:$16 sps:$4 sm:$0xff]   ;;  %v1568_v60 = vld [vmem:[%s1751_s9 + $0x1c0] ss:$8 sps:$4 sm:$0xff]  }
  0x44   : > { %790 = vmatpush1.bf16.msra.mxu1 %v1519_v25  ;;  %v1565_v57 = vld [vmem:[%s1751_s9 + $0x1c4] ss:$8 sps:$4 sm:$0xff]   ;;  %813 = vmatprep.mubr.bf16.mxu1 %v1589_v56  ;;  %v1571_v62 = vld [vmem:[%s1751_s9 + $0x1d4] ss:$8 sps:$4 sm:$0xff]   ;;  %v1573_v63 = vld [vmem:[%s1751_s9 + $0xd0] ss:$8 sps:$4 sm:$0xff]  }
  0x45   : > { %843 = vmatpush1.bf16.msra.mxu0 %v1520_v26  ;;  %791 = vmatprep.subr.bf16.mxu1 %v1521_v27  ;;  %v1574_v0 = vld [vmem:[%s1751_s9 + $0x1d0] ss:$8 sps:$4 sm:$0xff]   ;;  %v1575_v1 = vld [vmem:[%s1751_s9 + $0xe4] ss:$8 sps:$4 sm:$0xff]   ;;  %v1579_v3 = vld [vmem:[%s1751_s9 + $0xe0] ss:$8 sps:$4 sm:$0xff]  }
  0x46   : > { %844 = vmatprep.subr.bf16.mxu0 %v1523_v28  ;;  %866 = vmatprep.mubr.bf16.mxu0 %v1592_v58  ;;  %v1577_v2 = vld [vmem:[%s1751_s9 + $0x1e4] ss:$8 sps:$4 sm:$0xff]   ;;  %v1580_v4 = vld [vmem:[%s1751_s9 + $0x1e0] ss:$8 sps:$4 sm:$0xff]   ;;  %v1581_v5 = vld [vmem:[%s1751_s9 + $0xf4] ss:$8 sps:$4 sm:$0xff]  }
  0x47   : > { %v1583_v6 = vld [vmem:[%s1751_s9 + $0x1f4] ss:$8 sps:$4 sm:$0xff]   ;;  %v1585_v7 = vld [vmem:[%s1751_s9 + $0xf0] ss:$8 sps:$4 sm:$0xff]   ;;  %v341_v16 = vld [vmem:[#allocation2] sm:$0xff]  ;;  %p1360_p12 = scmp.ne.s32.totalorder %s1661_s14, 6 }
  0x48   : > { %792 = vmatpush1.bf16.msra.mxu1 %v1525_v29  ;;  %v1586_v8 = vld [vmem:[%s1751_s9 + $0x1f0] ss:$8 sps:$4 sm:$0xff]   ;;  %v1593_v11 = vld [vmem:[%s1753_s10 + $0x24] ss:$16 sps:$4 sm:$0xff]   ;;  %v1595_v12 = vld [vmem:[%s1753_s10 + $0x2c] ss:$16 sps:$4 sm:$0xff]  }
  0x49   : > { %845 = vmatpush1.bf16.msra.mxu0 %v1526_v30  ;;  %793 = vmatprep.subr.bf16.mxu1 %v1527_v31  ;;  %v1587_v9 = vld [vmem:[%s1753_s10] ss:$16 sps:$4 sm:$0xff]   ;;  %v1590_v10 = vld [vmem:[%s1753_s10 + $0x8] ss:$16 sps:$4 sm:$0xff]  }
  0x4a   : > { %846 = vmatprep.subr.bf16.mxu0 %v1529_v32  ;;  %v1597_v13 = vld [vmem:[%s1753_s10 + $0x20] ss:$16 sps:$4 sm:$0xff]   ;;  %v1598_v14 = vld [vmem:[%s1753_s10 + $0x28] ss:$16 sps:$4 sm:$0xff]  }
  0x4b   : > { %v342_v20 = vld [vmem:[#allocation2 + $0x8] sm:$0xff]  ;;  %v343_v24 = vld [vmem:[#allocation2 + $0x10] sm:$0xff]  ;;  %v344_v29 = vld [vmem:[#allocation2 + $0x18] sm:$0xff] }
  0x4c   : > { %794 = vmatpush1.bf16.msra.mxu1 %v1531_v33 }
  0x4d   : > { %847 = vmatpush1.bf16.msra.mxu0 %v1532_v34  ;;  %795 = vmatprep.subr.bf16.mxu1 %v1533_v35 }
  0x4e   : > { %848 = vmatprep.subr.bf16.mxu0 %v1535_v36  ;;  %v345_v36 = vld [vmem:[#allocation2 + $0x20] sm:$0xff] }
  0x50   : > { %796 = vmatpush1.bf16.msra.mxu1 %v1537_v37 }
  0x51   : > { %849 = vmatpush1.bf16.msra.mxu0 %v1538_v38  ;;  %797 = vmatprep.subr.bf16.mxu1 %v1539_v39 }
  0x52   : > { %850 = vmatprep.subr.bf16.mxu0 %v1541_v40  ;;  %v346_v40 = vld [vmem:[#allocation2 + $0x28] sm:$0xff] }
  0x54   : > { %798 = vmatpush1.bf16.msra.mxu1 %v1543_v41 }
  0x55   : > { %851 = vmatpush1.bf16.msra.mxu0 %v1544_v42  ;;  %799 = vmatprep.subr.bf16.mxu1 %v1545_v43 }
  0x56   : > { %852 = vmatprep.subr.bf16.mxu0 %v1547_v44  ;;  %v347_v44 = vld [vmem:[#allocation2 + $0x30] sm:$0xff] }
  0x58   : > { %800 = vmatpush1.bf16.msra.mxu1 %v1549_v45 }
  0x59   : > { %853 = vmatpush1.bf16.msra.mxu0 %v1550_v46  ;;  %801 = vmatprep.subr.bf16.mxu1 %v1551_v47 }
  0x5a   : > { %854 = vmatprep.subr.bf16.mxu0 %v1553_v48 }
  0x5c   : > { %802 = vmatpush1.bf16.msra.mxu1 %v1555_v49  ;;  %v348_v49 = vld [vmem:[#allocation2 + $0x38] sm:$0xff] }
  0x5d   : > { %855 = vmatpush1.bf16.msra.mxu0 %v1556_v50  ;;  %803 = vmatprep.subr.bf16.mxu1 %v1557_v51 }
  0x5e   : > { %856 = vmatprep.subr.bf16.mxu0 %v1559_v52 }
  0x60   : > { %804 = vmatpush1.bf16.msra.mxu1 %v1561_v53 }
  0x61   : > { %857 = vmatpush1.bf16.msra.mxu0 %v1562_v54  ;;  %805 = vmatprep.subr.bf16.mxu1 %v1563_v55  ;;  %v917_v55 = vlaneseq (!%p1360_p12) }
  0x62   : > { %858 = vmatprep.subr.bf16.mxu0 %v1565_v57  ;;  %v915_v57 = vld [vmem:[%s1860_s2] sm:$0x3] (!%p1360_p12) }
  0x63   : > { %v918_v56 = vshrl.u32 (!%p1360_p12), %v917_v55, 7 }
  0x64   : > { %806 = vmatpush1.bf16.msra.mxu1 %v1567_v59 }
  0x65   : > { %859 = vmatpush1.bf16.msra.mxu0 %v1568_v60  ;;  %807 = vmatprep.subr.bf16.mxu1 %v1569_v61  ;;  %v919_v60 = vsub.s32 (!%p1360_p12), 0, %v918_v56  ;;  %v923_v61 = vsub.s32 (!%p1360_p12), 1, %v918_v56 }
  0x66   : > { %860 = vmatprep.subr.bf16.mxu0 %v1571_v62 }
  0x68   : > { %808 = vmatpush1.bf16.msra.mxu1 %v1573_v63 }
  0x69   : > { %861 = vmatpush1.bf16.msra.mxu0 %v1574_v0  ;;  %809 = vmatprep.subr.bf16.mxu1 %v1575_v1  ;;  %v920_v1 = vrot.slane (!%p1360_p12), %v915_v57, %v919_v60 }
  0x6a   : > { %862 = vmatprep.subr.bf16.mxu0 %v1577_v2  ;;  %v924_v2 = vrot.slane (!%p1360_p12), %v915_v57, %v923_v61 }
  0x6c   : > { %810 = vmatpush1.bf16.msra.mxu1 %v1579_v3 }
  0x6d   : > { %863 = vmatpush1.bf16.msra.mxu0 %v1580_v4  ;;  %811 = vmatprep.subr.bf16.mxu1 %v1581_v5 }
  0x6e   : > { %864 = vmatprep.subr.bf16.mxu0 %v1583_v6 }
  0x70   : > { %812 = vmatpush1.bf16.msra.mxu1 %v1585_v7 }
  0x71   : > { %865 = vmatpush1.bf16.msra.mxu0 %v1586_v8 }
  0x73   : > { %814 = vmatmul.mubr.bf16.vlgmr.msra.gmra.mrb[0].mxu1 %v1587_v9 }
  0x74   : > { %867 = vmatmul.mubr.bf16.vlgmr.msra.gmra.mrb[0].mxu0 %v1590_v10  ;;  %823 = vmatprep.mubr.bf16.mxu1 %v1593_v11 }
  0x75   : > { %876 = vmatprep.mubr.bf16.mxu0 %v1595_v12 }
  0x7b   : > { %824 = vmatmul.mubr.bf16.gmra.mrb[4].mxu1 %v1597_v13 }
  0x7c   : > { %877 = vmatmul.mubr.bf16.gmra.mrb[4].mxu0 %v1598_v14 }
 0x146   : > { %v815_v15 = vpop.f32.mrb[0].mxu1 }
 0x147   : > { %v868_v17 = vpop.f32.mrb[0].mxu0  ;;  %v817_v19 = vpop.f32.mrb[1].mxu1 }
 0x148   : > { %v869_v18 = vadd.f32 %v868_v17, %v815_v15  ;;  %v870_v21 = vpop.f32.mrb[1].mxu0  ;;  %v819_v23 = vpop.f32.mrb[2].mxu1 }
 0x149   : > { %v871_v22 = vadd.f32 %v870_v21, %v817_v19  ;;  %v872_v25 = vpop.f32.mrb[2].mxu0  ;;  %v821_v28 = vpop.f32.mrb[3].mxu1 }
 0x14a   : > { %v887_v26 = vadd.f32 %v869_v18, %v341_v16  ;;  %v873_v27 = vadd.f32 %v872_v25, %v819_v23  ;;  %v874_v30 = vpop.f32.mrb[3].mxu0 }
 0x14b   : > { %v888_v31 = vadd.f32 %v871_v22, %v342_v20  ;;  %v875_v32 = vadd.f32 %v874_v30, %v821_v28 }
 0x14c   : > { %895 = vst [vmem:[#allocation2] sm:$0xff] %v887_v26  ;;  %v889_v33 = vadd.f32 %v873_v27, %v343_v24 }
 0x14d   : > { %896 = vst [vmem:[#allocation2 + $0x8] sm:$0xff] %v888_v31  ;;  %v890_v34 = vadd.f32 %v875_v32, %v344_v29 }
 0x14e   : > { %897 = vst [vmem:[#allocation2 + $0x10] sm:$0xff] %v889_v33  ;;  %v825_v35 = vpop.f32.mrb[4].mxu1 }
 0x14f   : > { %898 = vst [vmem:[#allocation2 + $0x18] sm:$0xff] %v890_v34  ;;  %v878_v37 = vpop.f32.mrb[4].mxu0  ;;  %v827_v39 = vpop.f32.mrb[5].mxu1 }
 0x150   : > { %v879_v38 = vadd.f32 %v878_v37, %v825_v35  ;;  %v880_v41 = vpop.f32.mrb[5].mxu0  ;;  %v829_v43 = vpop.f32.mrb[6].mxu1 }
 0x151   : > { %v881_v42 = vadd.f32 %v880_v41, %v827_v39  ;;  %v882_v45 = vpop.f32.mrb[6].mxu0  ;;  %v831_v48 = vpop.f32.mrb[7].mxu1  ;;  %906 = sbr.rel (%p1360_p12) target bundleno = 356 (0x164), region = 70 }
 0x152   : > { %v891_v46 = vadd.f32 %v879_v38, %v345_v36  ;;  %v883_v47 = vadd.f32 %v882_v45, %v829_v43  ;;  %v884_v50 = vpop.f32.mrb[7].mxu0 }
 0x153   : > { %v892_v51 = vadd.f32 %v881_v42, %v346_v40  ;;  %v885_v52 = vadd.f32 %v884_v50, %v831_v48  ;;  %v907_v58 = vld [vmem:[#allocation2] sm:$0xff] (!%p1360_p12) }
 0x154   : > { %899 = vst [vmem:[#allocation2 + $0x20] sm:$0xff] %v891_v46  ;;  %v893_v53 = vadd.f32 %v883_v47, %v347_v44  ;;  %v908_v59 = vld [vmem:[#allocation2 + $0x8] sm:$0xff] (!%p1360_p12)  ;;  %v927_v4 = vadd.f32 (!%p1360_p12), %v920_v1, %v907_v58 }
 0x155   : > { %900 = vst [vmem:[#allocation2 + $0x28] sm:$0xff] %v892_v51  ;;  %v894_v54 = vadd.f32 %v885_v52, %v348_v49  ;;  %v909_v62 = vld [vmem:[#allocation2 + $0x10] sm:$0xff] (!%p1360_p12)  ;;  %v928_v5 = vadd.f32 (!%p1360_p12), %v924_v2, %v908_v59 }
 0x156   : > { %901 = vst [vmem:[#allocation2 + $0x30] sm:$0xff] %v893_v53  ;;  %v910_v63 = vld [vmem:[#allocation2 + $0x18] sm:$0xff] (!%p1360_p12)  ;;  %v929_v6 = vadd.f32 (!%p1360_p12), %v920_v1, %v909_v62  ;;  %v935_v10 = vmax.f32 (!%p1360_p12), %v927_v4, 0.0 }
 0x157   : > { %902 = vst [vmem:[#allocation2 + $0x38] sm:$0xff] %v894_v54  ;;  %v930_v7 = vadd.f32 (!%p1360_p12), %v924_v2, %v910_v63  ;;  %v936_v11 = vmax.f32 (!%p1360_p12), %v928_v5, 0.0 }
 0x158   : > { %v937_v12 = vmax.f32 %v929_v6, 0.0 }
 0x159   : > { %v938_v13 = vmax.f32 %v930_v7, 0.0  ;;  %v1374_v16 = vpack.c.bf16 %v936_v11, %v935_v10 }
 0x15b   : > { %v911_v0 = vld [vmem:[#allocation2 + $0x20] sm:$0xff]  ;;  %v1375_v17 = vpack.c.bf16 %v938_v13, %v937_v12  ;;  %967 = vst [vmem:[#allocation4] sm:$0xff] %v1374_v16 }
 0x15c   : > { %v912_v3 = vld [vmem:[#allocation2 + $0x28] sm:$0xff]  ;;  %v931_v8 = vadd.f32 %v920_v1, %v911_v0 }
 0x15d   : > { %v932_v9 = vadd.f32 %v924_v2, %v912_v3  ;;  %968 = vst [vmem:[#allocation4 + $0x8] sm:$0xff] %v1375_v17 }
 0x15e   : > { %v939_v14 = vmax.f32 %v931_v8, 0.0 }
 0x15f   : > { %v940_v15 = vmax.f32 %v932_v9, 0.0 }
 0x161   : > { %v1376_v18 = vpack.c.bf16 %v940_v15, %v939_v14 }
 0x163   : > { %969 = vst [vmem:[#allocation4 + $0x10] sm:$0xff] %v1376_v18 }
 0x164 PF: > { %p1365_p13 = scmp.ne.s32.totalorder %s1270_s17, 6 }
 0x165   : > { %s1675_s14 = smov (!%p1365_p13), 0  }
 0x166   : > { %973 = sbr.rel (%p1365_p13) target bundleno = 375 (0x177), region = 74 }
 0x16d LB: >> { %v1054_v19 = vld [vmem:[#allocation4] sm:$0xff]  ;;  %v1056_v20 = vld [vmem:[#allocation4 + $0x8] sm:$0xff]  ;;  %v1058_v21 = vld [vmem:[#allocation4 + $0x10] sm:$0xff]  ;;  %s1048_s14 = sadd.s32 1, %s1677_s14   ;;  %s1677_s14 = sphi %s1675_s14, %s1048_s14  }
 0x16e   : >> { %1055 = vst [vmem:[%s1861_s3] sm:$0xff] %v1054_v19  ;;  %1057 = vst [vmem:[%s1861_s3 + $0x8] sm:$0xff] %v1056_v20  ;;  %p1047_p0 = scmp.ge.s32.totalorder %s1048_s14, 1 }
 0x16f   : >> { %1059 = vst [vmem:[%s1861_s3 + $0x10] sm:$0xff] %v1058_v21 }
 0x170   : > { %1050 = sbr.rel (!%p1047_p0) target bundleno = 365 (0x16d), region = 192 }
 0x177 PF: > { %s13_s16 = sadd.s32 1, %s1669_s16   ;;  %s1862_s12 = smov %s1657_s13 }
 0x178   : > { %p10_p1 = scmp.ge.s32.totalorder %s13_s16, 9   ;;  %s1863_s13 = smov %s1736_s21 }
 0x179   : > { %s1864_s14 = smov %s1665_s15  ;;  %s1865_s15 = smov %s1867_s18 }
 0x17a   :  { %12 = sbr.rel (!%p10_p1) target bundleno = 3 (0x3), region = 214 }

// kernel: emotion_cnn_forward.9
= control target key start
LH: loop header
LB: loop body
LE: loop exit
PB: predicated region body
PF: predicated region fallthrough
CT: control target
= control target key end

     0   :  { %s2329_s12 = smov 0   ;;  %s2331_s13 = smov 0   ;;  %s2530_s0 = inlined_call_operand.vmem [shape: bf16[18,3584], index: 0, kind: input, shape index: {}]   ;;  %s2531_s1 = inlined_call_operand.vmem [shape: bf16[3584,384], index: 1, kind: input, shape index: {}]   ;;  %s2532_s2 = inlined_call_operand.vmem [shape: f32[1,384], index: 2, kind: input, shape index: {}]   ;;  %s2533_s3 = inlined_call_operand.vmem [shape: bf16[18,384], index: 3, kind: output, shape index: {}]  }
   0x1   :  { %s2333_s14 = smov 0   ;;  %s2335_s15 = smov 0  }
   0x2   :  { %s2337_s16 = smov 0  }
   0x3 LB: > { %s1708_s17 = sadd.s32 4294967295, %s2285_s16   ;;  %s25_s18 = sadd.s32 1, %s2281_s15  ;;  %s2285_s16 = sphi %s2337_s16, %s13_s16   ;;  %s2281_s15 = sphi %s2335_s15, %s2537_s15   ;;  %s2277_s14 = sphi %s2333_s14, %s2536_s14   ;;  %s2273_s13 = sphi %s2331_s13, %s2535_s13   ;;  %s2269_s12 = sphi %s2329_s12, %s2534_s12  }
   0x4   : > { %p26_p0 = scmp.ge.s32.totalorder %s25_s18, 7  ;;  %p48_p1 = scmp.ne.s32.totalorder %s2273_s13, %s2269_s12 }
   0x5   : > { %p49_p2 = scmp.eq.s32.totalorder %s2285_s16, 0  ;;  %s41_s20 = sadd.s32 1, %s2273_s13 }
   0x6   : > { %s2539_s18 = smov (%p26_p0, %s25_s18), 0  ;;  %p1711_p5 = scmp.ge.s32.totalorder %s2285_s16, 7 }
   0x7   : > { %p50_p3 = por %p49_p2, %p48_p1  ;;  %s37_s19 = ssub.s32 %s2281_s15, %s2539_s18 }
   0x8   : > { %p39_p4 = scmp.eq.s32.totalorder %s37_s19, 0  ;;  %164 = sbr.rel (%p1711_p5) target bundleno = 32 (0x20), region = 20 }
   0xa   : > { %s2365_s21 = scalar_select %p39_p4, %s2273_s13, %s41_s20  }
   0xf   : > { %167 = sbr.rel (!%p50_p3) target bundleno = 32 (0x20), region = 24  ;;  %s169_s22 = sand.u32 (%p50_p3), 1, %s2273_s13  }
  0x10   : > { %s1848_s23 = sshll.u32 (%p50_p3), %s2281_s15, 4  ;;  %s1712_s24 = sshll.u32 (%p50_p3), %s169_s22, 6 }
  0x11   : > { %s181_s27 = scalar_lea.vmem (%p50_p3), %s2530_s0, %s1848_s23   ;;  %s171_s28 = scalar_lea.vmem (%p50_p3), [#allocation3], %s1712_s24  }
  0x12   : > { %s2287_s29 = smov (%p50_p3), 0  }
  0x16 LB: >> { %v198_v0 = vld [vmem:[%s181_s27] sm:$0xff]  ;;  %v200_v1 = vld [vmem:[%s181_s27 + $0x70] sm:$0xff]  ;;  %v204_v3 = vld [vmem:[%s181_s27 + $0x8] sm:$0xff]  ;;  %s192_s29 = sadd.s32 1, %s2289_s29   ;;  %s2289_s29 = sphi %s2287_s29, %s192_s29  }
  0x17   : >> { %v202_v2 = vld [vmem:[%s181_s27 + $0xe0] sm:$0xff]  ;;  %199 = vst [vmem:[%s171_s28] sm:$0xff] %v198_v0  ;;  %201 = vst [vmem:[%s171_s28 + $0x10] sm:$0xff] %v200_v1  ;;  %v206_v4 = vld [vmem:[%s181_s27 + $0x78] sm:$0xff]  ;;  %p191_p6 = scmp.ge.s32.totalorder %s192_s29, 1 }
  0x18   : >> { %203 = vst [vmem:[%s171_s28 + $0x20] sm:$0xff] %v202_v2  ;;  %v208_v5 = vld [vmem:[%s181_s27 + $0xe8] sm:$0xff]  ;;  %205 = vst [vmem:[%s171_s28 + $0x8] sm:$0xff] %v204_v3 }
  0x19   : >> { %207 = vst [vmem:[%s171_s28 + $0x18] sm:$0xff] %v206_v4  ;;  %209 = vst [vmem:[%s171_s28 + $0x28] sm:$0xff] %v208_v5  ;;  %194 = sbr.rel (!%p191_p6) target bundleno = 22 (0x16), region = 160 }
  0x20 PF: > { %p1720_p7 = scmp.ge.s32.totalorder %s2285_s16, 1  ;;  %p263_p8 = scmp.lt.s32.totalorder %s2285_s16, 8 }
  0x22   : > { %p264_p9 = pnand %p1720_p7, %p263_p8 }
  0x23   : > { %s270_s30 = sand.u32 (!%p264_p9), 1, %s2269_s12   ;;  %s1722_s4 = sshll.u32 (!%p264_p9), %s2277_s14, 6 }
  0x24   : > { %267 = sbr.rel (%p264_p9) target bundleno = 450 (0x1c2), region = 58  ;;  %s1721_s5 = sshll.u32 (!%p264_p9), %s270_s30, 6 }
  0x25   : > { %p309_p10 = scmp.lt.s32.totalorder (!%p264_p9), %s1722_s4, 447  ;;  %s2382_s10 = scalar_lea.vmem (!%p264_p9), [#allocation3], %s1721_s5 }
  0x26   : > { %p1724_p11 = scmp.ne.s32.totalorder (!%p264_p9), %s2277_s14, 0 }
  0x2b   : > { %s2541_s4 = smov (!%p309_p10, %s1722_s4), 447  ;;  %333 = sbr.rel (%p1724_p11) target bundleno = 51 (0x33), region = 66 }
  0x2c   : > { %s1921_s6 = smul.u32 12, %s2541_s4  ;;  %v2307_v6 = vmov (!%p1724_p11), 0.0  }
  0x2d   : > { %334 = vst [vmem:[#allocation2] sm:$0xff] (!%p1724_p11), %v2307_v6  ;;  %335 = vst [vmem:[#allocation2 + $0x8] sm:$0xff] (!%p1724_p11), %v2307_v6 }
  0x2e   : > { %s2380_s9 = scalar_lea.vmem %s2531_s1, %s1921_s6  ;;  %336 = vst [vmem:[#allocation2 + $0x10] sm:$0xff] (!%p1724_p11), %v2307_v6  ;;  %337 = vst [vmem:[#allocation2 + $0x18] sm:$0xff] (!%p1724_p11), %v2307_v6 }
  0x2f   : > { %338 = vst [vmem:[#allocation2 + $0x20] sm:$0xff] (!%p1724_p11), %v2307_v6  ;;  %339 = vst [vmem:[#allocation2 + $0x28] sm:$0xff] (!%p1724_p11), %v2307_v6 }
  0x30   : > { %340 = vst [vmem:[#allocation2 + $0x30] sm:$0xff] (!%p1724_p11), %v2307_v6  ;;  %341 = vst [vmem:[#allocation2 + $0x38] sm:$0xff] (!%p1724_p11), %v2307_v6 }
  0x31   : > { %342 = vst [vmem:[#allocation2 + $0x40] sm:$0xff] (!%p1724_p11), %v2307_v6  ;;  %343 = vst [vmem:[#allocation2 + $0x48] sm:$0xff] (!%p1724_p11), %v2307_v6 }
  0x32   : > { %344 = vst [vmem:[#allocation2 + $0x50] sm:$0xff] %v2307_v6  ;;  %345 = vst [vmem:[#allocation2 + $0x58] sm:$0xff] %v2307_v6 }
  0x33 PF: > { %v2059_v7 = vld [vmem:[%s2380_s9 + $0x4] ss:$12 sps:$4 sm:$0xff]   ;;  %v2061_v8 = vld [vmem:[%s2380_s9] ss:$12 sps:$4 sm:$0xff]   ;;  %v2062_v9 = vld [vmem:[%s2380_s9 + $0x1c] ss:$12 sps:$4 sm:$0xff]  }
  0x34   : > { %1046 = vmatprep.subr.bf16.mxu0 %v2059_v7  ;;  %v2064_v10 = vld [vmem:[%s2380_s9 + $0x18] ss:$12 sps:$4 sm:$0xff]   ;;  %v2065_v11 = vld [vmem:[%s2380_s9 + $0x34] ss:$12 sps:$4 sm:$0xff]   ;;  %v2067_v12 = vld [vmem:[%s2380_s9 + $0x30] ss:$12 sps:$4 sm:$0xff]  }
  0x35   : > { %1047 = vmatpush1.bf16.msra.mxu0 %v2061_v8  ;;  %v2068_v13 = vld [vmem:[%s2380_s9 + $0x4c] ss:$12 sps:$4 sm:$0xff]   ;;  %v2070_v14 = vld [vmem:[%s2380_s9 + $0x48] ss:$12 sps:$4 sm:$0xff]   ;;  %v2071_v17 = vld [vmem:[%s2380_s9 + $0x64] ss:$12 sps:$4 sm:$0xff]  }
  0x36   : > { %1048 = vmatprep.subr.bf16.mxu0 %v2062_v9  ;;  %v2080_v15 = vld [vmem:[%s2380_s9 + $0xc8] ss:$12 sps:$4 sm:$0xff]   ;;  %v2085_v18 = vld [vmem:[%s2380_s9 + $0xe0] ss:$12 sps:$4 sm:$0xff]   ;;  %v2090_v22 = vld [vmem:[%s2380_s9 + $0xf8] ss:$12 sps:$4 sm:$0xff]  }
  0x37   : > { %v2081_v16 = vld [vmem:[%s2380_s9 + $0x8] ss:$12 sps:$4 sm:$0xff]   ;;  %1857 = vmatprep.subr.bf16.mxu1 %v2080_v15  ;;  %v2086_v19 = vld [vmem:[%s2380_s9 + $0x20] ss:$12 sps:$4 sm:$0xff]   ;;  %v2091_v23 = vld [vmem:[%s2380_s9 + $0x38] ss:$12 sps:$4 sm:$0xff]  }
  0x38   : > { %1858 = vmatpush3.bf16.msra.mxu1 %v2081_v16  ;;  %v2073_v20 = vld [vmem:[%s2380_s9 + $0x60] ss:$12 sps:$4 sm:$0xff]   ;;  %v2074_v21 = vld [vmem:[%s2380_s9 + $0x7c] ss:$12 sps:$4 sm:$0xff]   ;;  %v2076_v24 = vld [vmem:[%s2380_s9 + $0x78] ss:$12 sps:$4 sm:$0xff]  }
  0x39   : > { %1049 = vmatpush1.bf16.msra.mxu0 %v2064_v10  ;;  %1859 = vmatprep.subr.bf16.mxu1 %v2085_v18  ;;  %v2077_v25 = vld [vmem:[%s2380_s9 + $0x94] ss:$12 sps:$4 sm:$0xff]   ;;  %v2095_v26 = vld [vmem:[%s2380_s9 + $0x110] ss:$12 sps:$4 sm:$0xff]   ;;  %v2082_v30 = vld [vmem:[%s2380_s9 + $0xac] ss:$12 sps:$4 sm:$0xff]  }
  0x3a   : > { %1050 = vmatprep.subr.bf16.mxu0 %v2065_v11  ;;  %v2096_v27 = vld [vmem:[%s2380_s9 + $0x50] ss:$12 sps:$4 sm:$0xff]   ;;  %v2100_v29 = vld [vmem:[%s2380_s9 + $0x128] ss:$12 sps:$4 sm:$0xff]   ;;  %v2105_v32 = vld [vmem:[%s2380_s9 + $0x140] ss:$12 sps:$4 sm:$0xff]  }
  0x3b   : > { %v2079_v28 = vld [vmem:[%s2380_s9 + $0x90] ss:$12 sps:$4 sm:$0xff]   ;;  %v2101_v31 = vld [vmem:[%s2380_s9 + $0x68] ss:$12 sps:$4 sm:$0xff]   ;;  %v2106_v35 = vld [vmem:[%s2380_s9 + $0x80] ss:$12 sps:$4 sm:$0xff]  }
  0x3c   : > { %1860 = vmatpush3.bf16.msra.mxu1 %v2086_v19  ;;  %v2084_v33 = vld [vmem:[%s2380_s9 + $0xa8] ss:$12 sps:$4 sm:$0xff]   ;;  %v2087_v34 = vld [vmem:[%s2380_s9 + $0xc4] ss:$12 sps:$4 sm:$0xff]   ;;  %v2089_v37 = vld [vmem:[%s2380_s9 + $0xc0] ss:$12 sps:$4 sm:$0xff]  }
  0x3d   : > { %1051 = vmatpush1.bf16.msra.mxu0 %v2067_v12  ;;  %1861 = vmatprep.subr.bf16.mxu1 %v2090_v22  ;;  %v2110_v36 = vld [vmem:[%s2380_s9 + $0x158] ss:$12 sps:$4 sm:$0xff]   ;;  %v2092_v38 = vld [vmem:[%s2380_s9 + $0xdc] ss:$12 sps:$4 sm:$0xff]   ;;  %v2097_v42 = vld [vmem:[%s2380_s9 + $0xf4] ss:$12 sps:$4 sm:$0xff]  }
  0x3e   : > { %1052 = vmatprep.subr.bf16.mxu0 %v2068_v13  ;;  %v2111_v39 = vld [vmem:[%s2380_s9 + $0x98] ss:$12 sps:$4 sm:$0xff]   ;;  %v2115_v40 = vld [vmem:[%s2380_s9 + $0x170] ss:$12 sps:$4 sm:$0xff]   ;;  %v2123_v45 = vld [vmem:[%s2380_s9 + $0x248] ss:$12 sps:$4 sm:$0xff]  }
  0x3f   : > { %v2094_v41 = vld [vmem:[%s2380_s9 + $0xd8] ss:$12 sps:$4 sm:$0xff]   ;;  %v2116_v43 = vld [vmem:[%s2380_s9 + $0xb0] ss:$12 sps:$4 sm:$0xff]   ;;  %v2124_v49 = vld [vmem:[%s2380_s9 + $0x188] ss:$12 sps:$4 sm:$0xff]  }
  0x40   : > { %1862 = vmatpush3.bf16.msra.mxu1 %v2091_v23  ;;  %v2122_v44 = vld [vmem:[%s2382_s10 + $0x4] ss:$16 sps:$4 sm:$0xff]   ;;  %v2099_v46 = vld [vmem:[%s2380_s9 + $0xf0] ss:$12 sps:$4 sm:$0xff]   ;;  %v2102_v47 = vld [vmem:[%s2380_s9 + $0x10c] ss:$12 sps:$4 sm:$0xff]  }
  0x41   : > { %1053 = vmatpush1.bf16.msra.mxu0 %v2070_v14  ;;  %1863 = vmatprep.subr.bf16.mxu1 %v2095_v26  ;;  %v2120_v48 = vld [vmem:[%s2382_s10] ss:$16 sps:$4 sm:$0xff]   ;;  %v2104_v51 = vld [vmem:[%s2380_s9 + $0x108] ss:$12 sps:$4 sm:$0xff]   ;;  %v2133_v54 = vld [vmem:[%s2380_s9 + $0x278] ss:$12 sps:$4 sm:$0xff]  }
  0x42   : > { %1054 = vmatprep.subr.bf16.mxu0 %v2071_v17  ;;  %1184 = vmatprep.mubr.bf16.mxu1 %v2122_v44  ;;  %v2128_v50 = vld [vmem:[%s2380_s9 + $0x260] ss:$12 sps:$4 sm:$0xff]   ;;  %v2107_v52 = vld [vmem:[%s2380_s9 + $0x124] ss:$12 sps:$4 sm:$0xff]   ;;  %v2112_v56 = vld [vmem:[%s2380_s9 + $0x13c] ss:$12 sps:$4 sm:$0xff]  }
  0x43   : > { %1078 = vmatprep.mubr.bf16.mxu0 %v2122_v44  ;;  %v2129_v53 = vld [vmem:[%s2380_s9 + $0x1a0] ss:$12 sps:$4 sm:$0xff]   ;;  %v2134_v57 = vld [vmem:[%s2380_s9 + $0x1b8] ss:$12 sps:$4 sm:$0xff]   ;;  %v2138_v58 = vld [vmem:[%s2380_s9 + $0x290] ss:$12 sps:$4 sm:$0xff]  }
  0x44   : > { %1864 = vmatpush3.bf16.msra.mxu1 %v2096_v27  ;;  %v2109_v55 = vld [vmem:[%s2380_s9 + $0x120] ss:$12 sps:$4 sm:$0xff]   ;;  %v2114_v59 = vld [vmem:[%s2380_s9 + $0x138] ss:$12 sps:$4 sm:$0xff]   ;;  %v2119_v61 = vld [vmem:[%s2380_s9 + $0x150] ss:$12 sps:$4 sm:$0xff]  }
  0x45   : > { %1055 = vmatpush1.bf16.msra.mxu0 %v2073_v20  ;;  %1865 = vmatprep.subr.bf16.mxu1 %v2100_v29  ;;  %v2117_v60 = vld [vmem:[%s2380_s9 + $0x154] ss:$12 sps:$4 sm:$0xff]   ;;  %v2139_v62 = vld [vmem:[%s2380_s9 + $0x1d0] ss:$12 sps:$4 sm:$0xff]   ;;  %v2125_v0 = vld [vmem:[%s2380_s9 + $0x16c] ss:$12 sps:$4 sm:$0xff]  }
  0x46   : > { %1056 = vmatprep.subr.bf16.mxu0 %v2074_v21  ;;  %v2143_v63 = vld [vmem:[%s2380_s9 + $0x2a8] ss:$12 sps:$4 sm:$0xff]   ;;  %v2148_v2 = vld [vmem:[%s2380_s9 + $0x2c0] ss:$12 sps:$4 sm:$0xff]   ;;  %v2132_v6 = vld [vmem:[%s2380_s9 + $0x184] ss:$12 sps:$4 sm:$0xff]  }
  0x47   : > { %v2144_v1 = vld [vmem:[%s2380_s9 + $0x1e8] ss:$12 sps:$4 sm:$0xff]   ;;  %v2155_v4 = vld [vmem:[%s2382_s10 + $0x20] ss:$16 sps:$4 sm:$0xff]   ;;  %v2156_v8 = vld [vmem:[%s2380_s9 + $0x2d8] ss:$12 sps:$4 sm:$0xff]  }
  0x48   : > { %1866 = vmatpush3.bf16.msra.mxu1 %v2101_v31  ;;  %v2153_v3 = vld [vmem:[%s2382_s10 + $0x24] ss:$16 sps:$4 sm:$0xff]   ;;  %v2149_v7 = vld [vmem:[%s2380_s9 + $0x200] ss:$12 sps:$4 sm:$0xff]   ;;  %v2137_v10 = vld [vmem:[%s2380_s9 + $0x19c] ss:$12 sps:$4 sm:$0xff]  }
  0x49   : > { %1057 = vmatpush1.bf16.msra.mxu0 %v2076_v24  ;;  %1867 = vmatprep.subr.bf16.mxu1 %v2105_v32  ;;  %v2127_v5 = vld [vmem:[%s2380_s9 + $0x168] ss:$12 sps:$4 sm:$0xff]   ;;  %v2130_v9 = vld [vmem:[%s2380_s9 + $0x180] ss:$12 sps:$4 sm:$0xff]   ;;  %v2157_v11 = vld [vmem:[%s2380_s9 + $0x218] ss:$12 sps:$4 sm:$0xff]  }
  0x4a   : > { %1058 = vmatprep.subr.bf16.mxu0 %v2077_v25  ;;  %v2161_v12 = vld [vmem:[%s2380_s9 + $0x2f0] ss:$12 sps:$4 sm:$0xff]   ;;  %v2135_v14 = vld [vmem:[%s2380_s9 + $0x198] ss:$12 sps:$4 sm:$0xff]   ;;  %v2142_v15 = vld [vmem:[%s2380_s9 + $0x1b4] ss:$12 sps:$4 sm:$0xff]  }
  0x4b   : > { %v2168_v13 = vld [vmem:[%s2382_s10 + $0xc] ss:$16 sps:$4 sm:$0xff]   ;;  %v2166_v19 = vld [vmem:[%s2382_s10 + $0x8] ss:$16 sps:$4 sm:$0xff]   ;;  %v2152_v22 = vld [vmem:[%s2380_s9 + $0x1e4] ss:$12 sps:$4 sm:$0xff]  }
  0x4c   : > { %1868 = vmatpush3.bf16.msra.mxu1 %v2106_v35  ;;  %v2162_v16 = vld [vmem:[%s2380_s9 + $0x230] ss:$12 sps:$4 sm:$0xff]   ;;  %v2147_v18 = vld [vmem:[%s2380_s9 + $0x1cc] ss:$12 sps:$4 sm:$0xff]   ;;  %v2145_v20 = vld [vmem:[%s2380_s9 + $0x1c8] ss:$12 sps:$4 sm:$0xff]  }
  0x4d   : > { %1059 = vmatpush1.bf16.msra.mxu0 %v2079_v28  ;;  %1869 = vmatprep.subr.bf16.mxu1 %v2110_v36  ;;  %v2140_v17 = vld [vmem:[%s2380_s9 + $0x1b0] ss:$12 sps:$4 sm:$0xff]   ;;  %v2150_v23 = vld [vmem:[%s2380_s9 + $0x1e0] ss:$12 sps:$4 sm:$0xff]   ;;  %v2189_v25 = vld [vmem:[%s2382_s10 + $0x28] ss:$16 sps:$4 sm:$0xff]  }
  0x4e   : > { %1060 = vmatprep.subr.bf16.mxu0 %v2082_v30  ;;  %v2187_v21 = vld [vmem:[%s2382_s10 + $0x2c] ss:$16 sps:$4 sm:$0xff]   ;;  %v2158_v26 = vld [vmem:[%s2380_s9 + $0x1f8] ss:$12 sps:$4 sm:$0xff]   ;;  %v2165_v27 = vld [vmem:[%s2380_s9 + $0x214] ss:$12 sps:$4 sm:$0xff]  }
  0x4f   : > { %v2160_v24 = vld [vmem:[%s2380_s9 + $0x1fc] ss:$12 sps:$4 sm:$0xff]   ;;  %v2171_v29 = vld [vmem:[%s2380_s9 + $0x22c] ss:$12 sps:$4 sm:$0xff]   ;;  %v2174_v31 = vld [vmem:[%s2380_s9 + $0x244] ss:$12 sps:$4 sm:$0xff]  }
  0x50   : > { %1870 = vmatpush3.bf16.msra.mxu1 %v2111_v39  ;;  %v2163_v28 = vld [vmem:[%s2380_s9 + $0x210] ss:$12 sps:$4 sm:$0xff]   ;;  %v2169_v30 = vld [vmem:[%s2380_s9 + $0x228] ss:$12 sps:$4 sm:$0xff]   ;;  %v2172_v32 = vld [vmem:[%s2380_s9 + $0x240] ss:$12 sps:$4 sm:$0xff]  }
  0x51   : > { %1061 = vmatpush1.bf16.msra.mxu0 %v2084_v33  ;;  %1871 = vmatprep.subr.bf16.mxu1 %v2115_v40  ;;  %v2177_v33 = vld [vmem:[%s2380_s9 + $0x25c] ss:$12 sps:$4 sm:$0xff]   ;;  %v2180_v35 = vld [vmem:[%s2380_s9 + $0x274] ss:$12 sps:$4 sm:$0xff]   ;;  %v2186_v39 = vld [vmem:[%s2380_s9 + $0x2a4] ss:$12 sps:$4 sm:$0xff]  }
  0x52   : > { %1062 = vmatprep.subr.bf16.mxu0 %v2087_v34  ;;  %v2175_v34 = vld [vmem:[%s2380_s9 + $0x258] ss:$12 sps:$4 sm:$0xff]   ;;  %v2178_v36 = vld [vmem:[%s2380_s9 + $0x270] ss:$12 sps:$4 sm:$0xff]   ;;  %v2184_v40 = vld [vmem:[%s2380_s9 + $0x2a0] ss:$12 sps:$4 sm:$0xff]  }
  0x53   : > { %v2193_v44 = vld [vmem:[%s2380_s9 + $0x2d0] ss:$12 sps:$4 sm:$0xff]   ;;  %p1829_p12 = scmp.ne.s32.totalorder %s2277_s14, 6 }
  0x54   : > { %1872 = vmatpush3.bf16.msra.mxu1 %v2116_v43  ;;  %v2195_v43 = vld [vmem:[%s2380_s9 + $0x2d4] ss:$12 sps:$4 sm:$0xff]  }
  0x55   : > { %1063 = vmatpush1.bf16.msra.mxu0 %v2089_v37  ;;  %1885 = vmatprep.subr.bf16.mxu1 %v2123_v45  ;;  %v2183_v37 = vld [vmem:[%s2380_s9 + $0x28c] ss:$12 sps:$4 sm:$0xff]  }
  0x56   : > { %1064 = vmatprep.subr.bf16.mxu0 %v2092_v38  ;;  %v2181_v38 = vld [vmem:[%s2380_s9 + $0x288] ss:$12 sps:$4 sm:$0xff]   ;;  %v2198_v45 = vld [vmem:[%s2380_s9 + $0x2ec] ss:$12 sps:$4 sm:$0xff]  }
  0x57   : > { %1185 = vmatmul.mubr.bf16.vlgmr.msra.gmra.mrb[0].mxu1 %v2120_v48 }
  0x58   : > { %1886 = vmatpush3.bf16.msra.mxu1 %v2124_v49  ;;  %1192 = vmatprep.mubr.bf16.mxu1 %v2153_v3 }
  0x59   : > { %1065 = vmatpush1.bf16.msra.mxu0 %v2094_v41  ;;  %1887 = vmatprep.subr.bf16.mxu1 %v2128_v50  ;;  %v2192_v41 = vld [vmem:[%s2380_s9 + $0x2bc] ss:$12 sps:$4 sm:$0xff]  }
  0x5a   : > { %1066 = vmatprep.subr.bf16.mxu0 %v2097_v42  ;;  %v2190_v42 = vld [vmem:[%s2380_s9 + $0x2b8] ss:$12 sps:$4 sm:$0xff]  }
  0x5c   : > { %1888 = vmatpush3.bf16.msra.mxu1 %v2129_v53 }
  0x5d   : > { %1067 = vmatpush1.bf16.msra.mxu0 %v2099_v46  ;;  %1889 = vmatprep.subr.bf16.mxu1 %v2133_v54  ;;  %v2196_v46 = vld [vmem:[%s2380_s9 + $0x2e8] ss:$12 sps:$4 sm:$0xff]  }
  0x5e   : > { %1068 = vmatprep.subr.bf16.mxu0 %v2102_v47 }
  0x5f   : > { %1193 = vmatmul.mubr.bf16.gmra.mrb[4].mxu1 %v2155_v4 }
  0x60   : > { %1890 = vmatpush3.bf16.msra.mxu1 %v2134_v57  ;;  %1233 = vmatprep.mubr.bf16.mxu1 %v2168_v13 }
  0x61   : > { %1069 = vmatpush1.bf16.msra.mxu0 %v2104_v51  ;;  %1891 = vmatprep.subr.bf16.mxu1 %v2138_v58 }
  0x62   : > { %1070 = vmatprep.subr.bf16.mxu0 %v2107_v52 }
  0x64   : > { %1892 = vmatpush3.bf16.msra.mxu1 %v2139_v62 }
  0x65   : > { %1071 = vmatpush1.bf16.msra.mxu0 %v2109_v55  ;;  %1893 = vmatprep.subr.bf16.mxu1 %v2143_v63  ;;  %v348_v63 = vld [vmem:[#allocation2 + $0x10] sm:$0xff] }
  0x66   : > { %1072 = vmatprep.subr.bf16.mxu0 %v2112_v56 }
  0x68   : > { %1894 = vmatpush3.bf16.msra.mxu1 %v2144_v1 }
  0x69   : > { %1073 = vmatpush1.bf16.msra.mxu0 %v2114_v59  ;;  %1895 = vmatprep.subr.bf16.mxu1 %v2148_v2 }
  0x6a   : > { %1074 = vmatprep.subr.bf16.mxu0 %v2117_v60 }
  0x6c   : > { %1896 = vmatpush3.bf16.msra.mxu1 %v2149_v7 }
  0x6d   : > { %1075 = vmatpush1.bf16.msra.mxu0 %v2119_v61  ;;  %1897 = vmatprep.subr.bf16.mxu1 %v2156_v8 }
  0x6e   : > { %1076 = vmatprep.subr.bf16.mxu0 %v2125_v0 }
  0x70   : > { %1898 = vmatpush3.bf16.msra.mxu1 %v2157_v11  ;;  %v354_v11 = vld [vmem:[#allocation2 + $0x40] sm:$0xff] }
  0x71   : > { %1077 = vmatpush1.bf16.msra.mxu0 %v2127_v5  ;;  %1899 = vmatprep.subr.bf16.mxu1 %v2161_v12 }
  0x72   : > { %1099 = vmatprep.subr.bf16.mxu0 %v2132_v6 }
  0x74   : > { %1079 = vmatmul.mubr.bf16.vlgmr.msra.gmra.mrb[0].mxu0 %v2120_v48  ;;  %1900 = vmatpush3.bf16.msra.mxu1 %v2162_v16 }
  0x75   : > { %1100 = vmatpush1.bf16.msra.mxu0 %v2130_v9  ;;  %1088 = vmatprep.mubr.bf16.mxu0 %v2153_v3  ;;  %v351_v3 = vld [vmem:[#allocation2 + $0x28] sm:$0xff] }
  0x76   : > { %1101 = vmatprep.subr.bf16.mxu0 %v2137_v10 }
  0x77   : > { %1234 = vmatmul.mubr.bf16.vlgmr.msra.gmra.mrb[8].mxu1 %v2166_v19 }
  0x78   : > { %1241 = vmatprep.mubr.bf16.mxu1 %v2187_v21 }
  0x79   : > { %1102 = vmatpush1.bf16.msra.mxu0 %v2135_v14 }
  0x7a   : > { %1103 = vmatprep.subr.bf16.mxu0 %v2142_v15  ;;  %v357_v15 = vld [vmem:[#allocation2 + $0x58] sm:$0xff] }
  0x7c   : > { %1089 = vmatmul.mubr.bf16.gmra.mrb[4].mxu0 %v2155_v4 }
  0x7d   : > { %1104 = vmatpush1.bf16.msra.mxu0 %v2140_v17  ;;  %1131 = vmatprep.mubr.bf16.mxu0 %v2168_v13 }
  0x7e   : > { %1105 = vmatprep.subr.bf16.mxu0 %v2147_v18 }
  0x7f   : > { %1242 = vmatmul.mubr.bf16.gmra.mrb[12].mxu1 %v2189_v25 }
  0x81   : > { %1106 = vmatpush1.bf16.msra.mxu0 %v2145_v20  ;;  %v347_v20 = vld [vmem:[#allocation2 + $0x8] sm:$0xff] }
  0x82   : > { %1107 = vmatprep.subr.bf16.mxu0 %v2152_v22  ;;  %v349_v22 = vld [vmem:[#allocation2 + $0x18] sm:$0xff] }
  0x85   : > { %1108 = vmatpush1.bf16.msra.mxu0 %v2150_v23 }
  0x86   : > { %1109 = vmatprep.subr.bf16.mxu0 %v2160_v24 }
  0x89   : > { %1110 = vmatpush1.bf16.msra.mxu0 %v2158_v26 }
  0x8a   : > { %1111 = vmatprep.subr.bf16.mxu0 %v2165_v27 }
  0x8d   : > { %1112 = vmatpush1.bf16.msra.mxu0 %v2163_v28 }
  0x8e   : > { %1113 = vmatprep.subr.bf16.mxu0 %v2171_v29 }
  0x91   : > { %1114 = vmatpush1.bf16.msra.mxu0 %v2169_v30 }
  0x92   : > { %1115 = vmatprep.subr.bf16.mxu0 %v2174_v31  ;;  %v352_v31 = vld [vmem:[#allocation2 + $0x30] sm:$0xff] }
  0x95   : > { %1116 = vmatpush1.bf16.msra.mxu0 %v2172_v32  ;;  %v353_v32 = vld [vmem:[#allocation2 + $0x38] sm:$0xff] }
  0x96   : > { %1117 = vmatprep.subr.bf16.mxu0 %v2177_v33 }
  0x99   : > { %1118 = vmatpush1.bf16.msra.mxu0 %v2175_v34  ;;  %v355_v34 = vld [vmem:[#allocation2 + $0x48] sm:$0xff] }
  0x9a   : > { %1119 = vmatprep.subr.bf16.mxu0 %v2180_v35 }
  0x9d   : > { %1120 = vmatpush1.bf16.msra.mxu0 %v2178_v36 }
  0x9e   : > { %1121 = vmatprep.subr.bf16.mxu0 %v2183_v37  ;;  %v356_v37 = vld [vmem:[#allocation2 + $0x50] sm:$0xff] }
  0xa1   : > { %1122 = vmatpush1.bf16.msra.mxu0 %v2181_v38 }
  0xa2   : > { %1123 = vmatprep.subr.bf16.mxu0 %v2186_v39 }
  0xa5   : > { %1124 = vmatpush1.bf16.msra.mxu0 %v2184_v40 }
  0xa6   : > { %1125 = vmatprep.subr.bf16.mxu0 %v2192_v41 }
  0xa9   : > { %1126 = vmatpush1.bf16.msra.mxu0 %v2190_v42 }
  0xaa   : > { %1127 = vmatprep.subr.bf16.mxu0 %v2195_v43  ;;  %v1292_v43 = vlaneseq (!%p1829_p12) }
  0xad   : > { %1128 = vmatpush1.bf16.msra.mxu0 %v2193_v44  ;;  %v1293_v44 = vshrl.u32 (!%p1829_p12), %v1292_v43, 7 }
  0xae   : > { %1129 = vmatprep.subr.bf16.mxu0 %v2198_v45  ;;  %v1290_v45 = vld [vmem:[%s2532_s2] sm:$0x7] (!%p1829_p12) }
  0xb1   : > { %1130 = vmatpush1.bf16.msra.mxu0 %v2196_v46 }
  0xb4   : > { %1132 = vmatmul.mubr.bf16.vlgmr.msra.gmra.mrb[0].mxu0 %v2166_v19  ;;  %v346_v19 = vld [vmem:[#allocation2] sm:$0xff] }
  0xb5   : > { %1141 = vmatprep.mubr.bf16.mxu0 %v2187_v21 }
  0xbc   : > { %1142 = vmatmul.mubr.bf16.gmra.mrb[4].mxu0 %v2189_v25  ;;  %v350_v25 = vld [vmem:[#allocation2 + $0x20] sm:$0xff] }
 0x12a   : > { %v1873_v47 = vpop.f32.mrb[0].mxu1 }
 0x12b   : > { %v1874_v48 = vpop.f32.mrb[1].mxu1 }
 0x12c   : > { %v1875_v49 = vadd.f32 %v1874_v48, %v1873_v47  ;;  %v1876_v50 = vpop.f32.mrb[2].mxu1  ;;  %v1294_v48 = vsub.s32 (!%p1829_p12), 0, %v1293_v44 }
 0x12d   : > { %v1877_v51 = vpop.f32.mrb[3].mxu1 }
 0x12e   : > { %v1878_v52 = vadd.f32 %v1877_v51, %v1876_v50  ;;  %v1302_v50 = vsub.s32 (!%p1829_p12), 2, %v1293_v44 }
 0x132   : > { %v1879_v53 = vpop.f32.mrb[4].mxu1 }
 0x133   : > { %v1880_v54 = vpop.f32.mrb[5].mxu1 }
 0x134   : > { %v1881_v55 = vadd.f32 %v1880_v54, %v1879_v53  ;;  %v1882_v56 = vpop.f32.mrb[6].mxu1  ;;  %v1295_v54 = vrot.slane (!%p1829_p12), %v1290_v45, %v1294_v48 }
 0x135   : > { %v1883_v57 = vpop.f32.mrb[7].mxu1 }
 0x136   : > { %v1884_v58 = vadd.f32 %v1883_v57, %v1882_v56  ;;  %v1303_v56 = vrot.slane (!%p1829_p12), %v1290_v45, %v1302_v50 }
 0x14a   : > { %v1901_v59 = vpop.f32.mrb[8].mxu1 }
 0x14b   : > { %v1902_v60 = vpop.f32.mrb[9].mxu1 }
 0x14c   : > { %v1903_v61 = vadd.f32 %v1902_v60, %v1901_v59  ;;  %v1904_v62 = vpop.f32.mrb[10].mxu1 }
 0x14d   : > { %v1905_v0 = vpop.f32.mrb[11].mxu1 }
 0x14e   : > { %v1236_v1 = vadd.f32 %v1903_v61, %v1875_v49  ;;  %v1906_v2 = vadd.f32 %v1905_v0, %v1904_v62  ;;  %v1298_v49 = vsub.s32 (!%p1829_p12), 1, %v1293_v44 }
 0x150   : > { %v1252_v4 = vadd.f32 %v1236_v1, %v348_v63  ;;  %v1239_v5 = vadd.f32 %v1906_v2, %v1878_v52 }
 0x152   : > { %1264 = vst [vmem:[#allocation2 + $0x10] sm:$0xff] %v1252_v4  ;;  %v1255_v6 = vadd.f32 %v1239_v5, %v351_v3  ;;  %v1907_v7 = vpop.f32.mrb[12].mxu1 }
 0x153   : > { %v1908_v8 = vpop.f32.mrb[13].mxu1 }
 0x154   : > { %1267 = vst [vmem:[#allocation2 + $0x28] sm:$0xff] %v1255_v6  ;;  %v1909_v9 = vadd.f32 %v1908_v8, %v1907_v7  ;;  %v1910_v10 = vpop.f32.mrb[14].mxu1 }
 0x155   : > { %v1911_v12 = vpop.f32.mrb[15].mxu1 }
 0x156   : > { %v1244_v13 = vadd.f32 %v1909_v9, %v1881_v55  ;;  %v1912_v14 = vadd.f32 %v1911_v12, %v1910_v10  ;;  %v1299_v55 = vrot.slane (!%p1829_p12), %v1290_v45, %v1298_v49 }
 0x158   : > { %v1258_v16 = vadd.f32 %v1244_v13, %v354_v11  ;;  %v1247_v17 = vadd.f32 %v1912_v14, %v1884_v58 }
 0x159   : > { %v1280_v51 = vld [vmem:[#allocation2 + $0x10] sm:$0xff] (!%p1829_p12) }
 0x15a   : > { %1270 = vst [vmem:[#allocation2 + $0x40] sm:$0xff] %v1258_v16  ;;  %v1261_v18 = vadd.f32 %v1247_v17, %v357_v15  ;;  %v1309_v62 = vadd.f32 (!%p1829_p12), %v1303_v56, %v1280_v51 }
 0x15b   : > { %v1283_v57 = vld [vmem:[#allocation2 + $0x28] sm:$0xff] (!%p1829_p12) }
 0x15c   : > { %1273 = vst [vmem:[#allocation2 + $0x58] sm:$0xff] %v1261_v18  ;;  %v1312_v1 = vadd.f32 (!%p1829_p12), %v1303_v56, %v1283_v57  ;;  %v1321_v8 = vmax.f32 (!%p1829_p12), %v1309_v62, 0.0 }
 0x15e   : > { %v1324_v12 = vmax.f32 (!%p1829_p12), %v1312_v1, 0.0  ;;  %v1850_v17 = vpack.c.bf16 (!%p1829_p12), %v1321_v8, %v1321_v8 }
 0x160   : > { %1372 = vst [vmem:[#allocation4 + $0x8] sm:$0xf] (!%p1829_p12), %v1850_v17 }
 0x161   : > { %v1286_v4 = vld [vmem:[#allocation2 + $0x40] sm:$0xff] (!%p1829_p12) }
 0x162   : > { %v1315_v18 = vadd.f32 (!%p1829_p12), %v1303_v56, %v1286_v4 }
 0x163   : > { %v1289_v15 = vld [vmem:[#allocation2 + $0x58] sm:$0xff] (!%p1829_p12) }
 0x187   : > { %v1133_v21 = vpop.f32.mrb[0].mxu0 }
 0x188   : > { %v1250_v23 = vadd.f32 %v1133_v21, %v346_v19  ;;  %v1135_v24 = vpop.f32.mrb[1].mxu0  ;;  %v1852_v21 = vpack.c.bf16 (!%p1829_p12), %v1324_v12, %v1324_v12 }
 0x189   : > { %v1251_v26 = vadd.f32 %v1135_v24, %v347_v20  ;;  %v1137_v27 = vpop.f32.mrb[2].mxu0  ;;  %v1327_v24 = vmax.f32 (!%p1829_p12), %v1315_v18, 0.0 }
 0x18a   : > { %1262 = vst [vmem:[#allocation2] sm:$0xff] %v1250_v23  ;;  %v1253_v28 = vadd.f32 %v1137_v27, %v349_v22  ;;  %v1139_v29 = vpop.f32.mrb[3].mxu0  ;;  %1374 = vst [vmem:[#allocation4 + $0x14] sm:$0xf] (!%p1829_p12), %v1852_v21 }
 0x18b   : > { %1263 = vst [vmem:[#allocation2 + $0x8] sm:$0xff] %v1251_v26  ;;  %v1254_v30 = vadd.f32 %v1139_v29, %v350_v25  ;;  %v1318_v26 = vadd.f32 (!%p1829_p12), %v1303_v56, %v1289_v15 }
 0x18c   : > { %1265 = vst [vmem:[#allocation2 + $0x18] sm:$0xff] %v1253_v28  ;;  %v1854_v28 = vpack.c.bf16 (!%p1829_p12), %v1327_v24, %v1327_v24 }
 0x18d   : > { %1266 = vst [vmem:[#allocation2 + $0x20] sm:$0xff] %v1254_v30  ;;  %v1330_v29 = vmax.f32 (!%p1829_p12), %v1318_v26, 0.0 }
 0x18e   : > { %1376 = vst [vmem:[#allocation4 + $0x20] sm:$0xf] (!%p1829_p12), %v1854_v28 }
 0x18f   : > { %v1143_v33 = vpop.f32.mrb[4].mxu0  ;;  %1277 = sbr.rel (%p1829_p12) target bundleno = 420 (0x1a4), region = 70 }
 0x190   : > { %v1256_v35 = vadd.f32 %v1143_v33, %v352_v31  ;;  %v1145_v36 = vpop.f32.mrb[5].mxu0  ;;  %v1856_v31 = vpack.c.bf16 (!%p1829_p12), %v1330_v29, %v1330_v29 }
 0x191   : > { %v1257_v38 = vadd.f32 %v1145_v36, %v353_v32  ;;  %v1147_v39 = vpop.f32.mrb[6].mxu0  ;;  %v1278_v46 = vld [vmem:[#allocation2] sm:$0xff] (!%p1829_p12) }
 0x192   : > { %1268 = vst [vmem:[#allocation2 + $0x30] sm:$0xff] %v1256_v35  ;;  %v1259_v40 = vadd.f32 %v1147_v39, %v355_v34  ;;  %v1149_v41 = vpop.f32.mrb[7].mxu0  ;;  %v1279_v47 = vld [vmem:[#allocation2 + $0x8] sm:$0xff] (!%p1829_p12)  ;;  %v1307_v60 = vadd.f32 (!%p1829_p12), %v1295_v54, %v1278_v46  ;;  %1378 = vst [vmem:[#allocation4 + $0x2c] sm:$0xf] (!%p1829_p12), %v1856_v31 }
 0x193   : > { %1269 = vst [vmem:[#allocation2 + $0x38] sm:$0xff] %v1257_v38  ;;  %v1260_v42 = vadd.f32 %v1149_v41, %v356_v37  ;;  %v1281_v52 = vld [vmem:[#allocation2 + $0x18] sm:$0xff] (!%p1829_p12)  ;;  %v1308_v61 = vadd.f32 (!%p1829_p12), %v1299_v55, %v1279_v47 }
 0x194   : > { %1271 = vst [vmem:[#allocation2 + $0x48] sm:$0xff] %v1259_v40  ;;  %v1282_v53 = vld [vmem:[#allocation2 + $0x20] sm:$0xff] (!%p1829_p12)  ;;  %v1310_v63 = vadd.f32 (!%p1829_p12), %v1295_v54, %v1281_v52  ;;  %v1319_v6 = vmax.f32 (!%p1829_p12), %v1307_v60, 0.0 }
 0x195   : > { %1272 = vst [vmem:[#allocation2 + $0x50] sm:$0xff] %v1260_v42  ;;  %v1311_v0 = vadd.f32 (!%p1829_p12), %v1299_v55, %v1282_v53  ;;  %v1320_v7 = vmax.f32 (!%p1829_p12), %v1308_v61, 0.0 }
 0x196   : > { %v1322_v9 = vmax.f32 %v1310_v63, 0.0 }
 0x197   : > { %v1323_v11 = vmax.f32 %v1311_v0, 0.0  ;;  %v1849_v16 = vpack.c.bf16 %v1320_v7, %v1319_v6 }
 0x199   : > { %v1284_v58 = vld [vmem:[#allocation2 + $0x30] sm:$0xff]  ;;  %v1851_v20 = vpack.c.bf16 %v1323_v11, %v1322_v9  ;;  %1371 = vst [vmem:[#allocation4] sm:$0xff] %v1849_v16 }
 0x19a   : > { %v1285_v59 = vld [vmem:[#allocation2 + $0x38] sm:$0xff]  ;;  %v1313_v2 = vadd.f32 %v1295_v54, %v1284_v58 }
 0x19b   : > { %v1314_v3 = vadd.f32 %v1299_v55, %v1285_v59  ;;  %v1287_v5 = vld [vmem:[#allocation2 + $0x48] sm:$0xff]  ;;  %1373 = vst [vmem:[#allocation4 + $0xc] sm:$0xff] %v1851_v20 }
 0x19c   : > { %v1288_v10 = vld [vmem:[#allocation2 + $0x50] sm:$0xff]  ;;  %v1325_v13 = vmax.f32 %v1313_v2, 0.0  ;;  %v1316_v19 = vadd.f32 %v1295_v54, %v1287_v5 }
 0x19d   : > { %v1326_v14 = vmax.f32 %v1314_v3, 0.0  ;;  %v1317_v23 = vadd.f32 %v1299_v55, %v1288_v10 }
 0x19e   : > { %v1328_v25 = vmax.f32 %v1316_v19, 0.0 }
 0x19f   : > { %v1853_v22 = vpack.c.bf16 %v1326_v14, %v1325_v13  ;;  %v1329_v27 = vmax.f32 %v1317_v23, 0.0 }
 0x1a1   : > { %1375 = vst [vmem:[#allocation4 + $0x18] sm:$0xff] %v1853_v22  ;;  %v1855_v30 = vpack.c.bf16 %v1329_v27, %v1328_v25 }
 0x1a3   : > { %1377 = vst [vmem:[#allocation4 + $0x24] sm:$0xff] %v1855_v30 }
 0x1a4 PF: > { %p1838_p13 = scmp.ne.s32.totalorder %s1708_s17, 6 }
 0x1a5   : > { %s1398_s20 = scalar_lea.vmem (!%p1838_p13), %s2533_s3, 8   ;;  %s2291_s22 = smov (!%p1838_p13), 0  }
 0x1a6   : > { %1381 = sbr.rel (%p1838_p13) target bundleno = 450 (0x1c2), region = 74 }
 0x1ad LB: >> { %v1410_v32 = vld [vmem:[#allocation4] sm:$0xff]  ;;  %v1412_v33 = vld [vmem:[#allocation4 + $0xc] sm:$0xff]  ;;  %v1414_v34 = vld [vmem:[#allocation4 + $0x18] sm:$0xff]  ;;  %s1404_s22 = sadd.s32 1, %s2293_s22   ;;  %s2293_s22 = sphi %s2291_s22, %s1404_s22  }
 0x1ae   : >> { %1411 = vst [vmem:[%s2533_s3] sm:$0xff] %v1410_v32  ;;  %1413 = vst [vmem:[%s2533_s3 + $0xc] sm:$0xff] %v1412_v33  ;;  %p1403_p0 = scmp.ge.s32.totalorder %s1404_s22, 1 }
 0x1af   : >> { %1415 = vst [vmem:[%s2533_s3 + $0x18] sm:$0xff] %v1414_v34  ;;  %s2295_s30 = smov (%p1403_p0), %s1398_s20   ;;  %s2299_s4 = smov (%p1403_p0), [#allocation4 + $0x8]  }
 0x1b0   : > { %1406 = sbr.rel (!%p1403_p0) target bundleno = 429 (0x1ad), region = 182  ;;  %s2303_s5 = smov (%p1403_p0), 0  }
 0x1b7 LB: >> { %v1460_v35 = vld [vmem:[%s2301_s4] sm:$0xf]  ;;  %v1462_v36 = vld [vmem:[%s2301_s4 + $0xc] sm:$0xf]  ;;  %v1464_v37 = vld [vmem:[%s2301_s4 + $0x18] sm:$0xf]  ;;  %s2305_s5 = sphi %s2303_s5, %s1454_s5   ;;  %s2301_s4 = sphi %s2299_s4, %s1564_s4   ;;  %s2297_s30 = sphi %s2295_s30, %s2296_s30  }
 0x1b8   : >> { %1461 = vst [vmem:[%s2297_s30] sm:$0xf] %v1460_v35  ;;  %1463 = vst [vmem:[%s2297_s30 + $0xc] sm:$0xf] %v1462_v36  ;;  %s2308_s6 = smov [#allocation4]   ;;  %s1454_s5 = sadd.s32 1, %s2305_s5  }
 0x1b9   : >> { %1465 = vst [vmem:[%s2297_s30 + $0x18] sm:$0xf] %v1464_v37  ;;  %s1564_s4 = scalar_lea.vmem %s2308_s6, 8   ;;  %p1453_p1 = scmp.ge.s32.totalorder %s1454_s5, 1 }
 0x1ba   : >> { %s2296_s30 = smov %s1398_s20  }
 0x1bb   : > { %1456 = sbr.rel (!%p1453_p1) target bundleno = 439 (0x1b7), region = 204 }
 0x1c2 PF: > { %s13_s16 = sadd.s32 1, %s2285_s16   ;;  %s2534_s12 = smov %s2273_s13 }
 0x1c3   : > { %p10_p2 = scmp.ge.s32.totalorder %s13_s16, 9   ;;  %s2535_s13 = smov %s2365_s21 }
 0x1c4   : > { %s2536_s14 = smov %s2281_s15  ;;  %s2537_s15 = smov %s2539_s18 }
 0x1c5   :  { %12 = sbr.rel (!%p10_p2) target bundleno = 3 (0x3), region = 226 }

// kernel: emotion_cnn_forward.11
= control target key start
LH: loop header
LB: loop body
LE: loop exit
PB: predicated region body
PF: predicated region fallthrough
CT: control target
= control target key end

     0   :  { %s17746_s1 = inlined_call_operand.vmem [shape: bf16[9216,256], index: 1, kind: input, shape index: {}]   ;;  %s17747_s0 = inlined_call_operand.vmem [shape: bf16[16,9216], index: 0, kind: input, shape index: {}]   ;;  %s17748_s3 = inlined_call_operand.vmem [shape: bf16[256,256], index: 3, kind: input, shape index: {}]   ;;  %s17749_s5 = inlined_call_operand.vmem [shape: bf16[256,256], index: 5, kind: input, shape index: {}]   ;;  %s17750_s2 = inlined_call_operand.vmem [shape: f32[1,256], index: 2, kind: input, shape index: {}]   ;;  %s17751_s7 = inlined_call_operand.vmem [shape: bf16[256,256], index: 7, kind: input, shape index: {}]   ;;  %s17752_s4 = inlined_call_operand.vmem [shape: f32[1,256], index: 4, kind: input, shape index: {}]   ;;  %s17753_s9 = inlined_call_operand.vmem [shape: bf16[256,128], index: 9, kind: input, shape index: {}]   ;;  %s17754_s6 = inlined_call_operand.vmem [shape: f32[1,256], index: 6, kind: input, shape index: {}]   ;;  %s17755_s8 = inlined_call_operand.vmem [shape: f32[1,256], index: 8, kind: input, shape index: {}]   ;;  %s17756_s10 = inlined_call_operand.vmem [shape: f32[1,128], index: 10, kind: input, shape index: {}]   ;;  %s17757_s11 = inlined_call_operand.vmem [shape: f32[16,128], index: 11, kind: output, shape index: {}]  }
   0x1   :  { %v11441_v0 = vld [vmem:[%s17746_s1 + $0x4] ss:$8 sps:$4 sm:$0xff]   ;;  %v11445_v2 = vld [vmem:[%s17746_s1] ss:$8 sps:$4 sm:$0xff]   ;;  %v11447_v4 = vld [vmem:[%s17746_s1 + $0x14] ss:$8 sps:$4 sm:$0xff]  }
   0x2   :  { %v11443_v1 = vld [vmem:[%s17746_s1 + $0x1004] ss:$8 sps:$4 sm:$0xff]   ;;  %7395 = vmatprep.subr.bf16.mxu1 %v11441_v0  ;;  %v11446_v3 = vld [vmem:[%s17746_s1 + $0x1000] ss:$8 sps:$4 sm:$0xff]   ;;  %v11449_v5 = vld [vmem:[%s17746_s1 + $0x1014] ss:$8 sps:$4 sm:$0xff]  }
   0x3   :  { %8083 = vmatprep.subr.bf16.mxu0 %v11443_v1  ;;  %7396 = vmatpush1.bf16.msra.mxu1 %v11445_v2  ;;  %v11451_v6 = vld [vmem:[%s17746_s1 + $0x10] ss:$8 sps:$4 sm:$0xff]   ;;  %v11453_v8 = vld [vmem:[%s17746_s1 + $0x24] ss:$8 sps:$4 sm:$0xff]   ;;  %v11457_v10 = vld [vmem:[%s17746_s1 + $0x20] ss:$8 sps:$4 sm:$0xff]  }
   0x4   :  { %8084 = vmatpush1.bf16.msra.mxu0 %v11446_v3  ;;  %7397 = vmatprep.subr.bf16.mxu1 %v11447_v4  ;;  %v11452_v7 = vld [vmem:[%s17746_s1 + $0x1010] ss:$8 sps:$4 sm:$0xff]   ;;  %v11455_v9 = vld [vmem:[%s17746_s1 + $0x1024] ss:$8 sps:$4 sm:$0xff]   ;;  %v11458_v11 = vld [vmem:[%s17746_s1 + $0x1020] ss:$8 sps:$4 sm:$0xff]  }
   0x5   :  { %8085 = vmatprep.subr.bf16.mxu0 %v11449_v5  ;;  %v11459_v12 = vld [vmem:[%s17746_s1 + $0x34] ss:$8 sps:$4 sm:$0xff]   ;;  %v11463_v14 = vld [vmem:[%s17746_s1 + $0x30] ss:$8 sps:$4 sm:$0xff]   ;;  %v11465_v16 = vld [vmem:[%s17746_s1 + $0x44] ss:$8 sps:$4 sm:$0xff]  }
   0x6   :  { %v11461_v13 = vld [vmem:[%s17746_s1 + $0x1034] ss:$8 sps:$4 sm:$0xff]   ;;  %v11464_v15 = vld [vmem:[%s17746_s1 + $0x1030] ss:$8 sps:$4 sm:$0xff]   ;;  %v11467_v17 = vld [vmem:[%s17746_s1 + $0x1044] ss:$8 sps:$4 sm:$0xff]  }
   0x7   :  { %7398 = vmatpush1.bf16.msra.mxu1 %v11451_v6  ;;  %v11469_v18 = vld [vmem:[%s17746_s1 + $0x40] ss:$8 sps:$4 sm:$0xff]   ;;  %v11471_v20 = vld [vmem:[%s17746_s1 + $0x54] ss:$8 sps:$4 sm:$0xff]   ;;  %v11475_v22 = vld [vmem:[%s17746_s1 + $0x50] ss:$8 sps:$4 sm:$0xff]  }
   0x8   :  { %8086 = vmatpush1.bf16.msra.mxu0 %v11452_v7  ;;  %7399 = vmatprep.subr.bf16.mxu1 %v11453_v8  ;;  %v11470_v19 = vld [vmem:[%s17746_s1 + $0x1040] ss:$8 sps:$4 sm:$0xff]   ;;  %v11473_v21 = vld [vmem:[%s17746_s1 + $0x1054] ss:$8 sps:$4 sm:$0xff]   ;;  %v11476_v23 = vld [vmem:[%s17746_s1 + $0x1050] ss:$8 sps:$4 sm:$0xff]  }
   0x9   :  { %8087 = vmatprep.subr.bf16.mxu0 %v11455_v9  ;;  %v11477_v24 = vld [vmem:[%s17746_s1 + $0x64] ss:$8 sps:$4 sm:$0xff]   ;;  %v11481_v26 = vld [vmem:[%s17746_s1 + $0x60] ss:$8 sps:$4 sm:$0xff]   ;;  %v11483_v28 = vld [vmem:[%s17746_s1 + $0x74] ss:$8 sps:$4 sm:$0xff]  }
   0xa   :  { %v11479_v25 = vld [vmem:[%s17746_s1 + $0x1064] ss:$8 sps:$4 sm:$0xff]   ;;  %v11482_v27 = vld [vmem:[%s17746_s1 + $0x1060] ss:$8 sps:$4 sm:$0xff]   ;;  %v11485_v29 = vld [vmem:[%s17746_s1 + $0x1074] ss:$8 sps:$4 sm:$0xff]  }
   0xb   :  { %7400 = vmatpush1.bf16.msra.mxu1 %v11457_v10  ;;  %v11487_v30 = vld [vmem:[%s17746_s1 + $0x70] ss:$8 sps:$4 sm:$0xff]   ;;  %v11489_v32 = vld [vmem:[%s17746_s1 + $0x84] ss:$8 sps:$4 sm:$0xff]   ;;  %v11493_v34 = vld [vmem:[%s17746_s1 + $0x80] ss:$8 sps:$4 sm:$0xff]  }
   0xc   :  { %8088 = vmatpush1.bf16.msra.mxu0 %v11458_v11  ;;  %7401 = vmatprep.subr.bf16.mxu1 %v11459_v12  ;;  %v11488_v31 = vld [vmem:[%s17746_s1 + $0x1070] ss:$8 sps:$4 sm:$0xff]   ;;  %v11491_v33 = vld [vmem:[%s17746_s1 + $0x1084] ss:$8 sps:$4 sm:$0xff]   ;;  %v11494_v35 = vld [vmem:[%s17746_s1 + $0x1080] ss:$8 sps:$4 sm:$0xff]  }
   0xd   :  { %8089 = vmatprep.subr.bf16.mxu0 %v11461_v13  ;;  %v11495_v36 = vld [vmem:[%s17746_s1 + $0x94] ss:$8 sps:$4 sm:$0xff]   ;;  %v11499_v38 = vld [vmem:[%s17746_s1 + $0x90] ss:$8 sps:$4 sm:$0xff]   ;;  %v11501_v40 = vld [vmem:[%s17746_s1 + $0xa4] ss:$8 sps:$4 sm:$0xff]  }
   0xe   :  { %v11497_v37 = vld [vmem:[%s17746_s1 + $0x1094] ss:$8 sps:$4 sm:$0xff]   ;;  %v11500_v39 = vld [vmem:[%s17746_s1 + $0x1090] ss:$8 sps:$4 sm:$0xff]   ;;  %v11503_v41 = vld [vmem:[%s17746_s1 + $0x10a4] ss:$8 sps:$4 sm:$0xff]  }
   0xf   :  { %7402 = vmatpush1.bf16.msra.mxu1 %v11463_v14  ;;  %v11505_v42 = vld [vmem:[%s17746_s1 + $0xa0] ss:$8 sps:$4 sm:$0xff]   ;;  %v11507_v44 = vld [vmem:[%s17746_s1 + $0xb4] ss:$8 sps:$4 sm:$0xff]   ;;  %v11511_v46 = vld [vmem:[%s17746_s1 + $0xb0] ss:$8 sps:$4 sm:$0xff]  }
  0x10   :  { %8090 = vmatpush1.bf16.msra.mxu0 %v11464_v15  ;;  %7403 = vmatprep.subr.bf16.mxu1 %v11465_v16  ;;  %v11506_v43 = vld [vmem:[%s17746_s1 + $0x10a0] ss:$8 sps:$4 sm:$0xff]   ;;  %v11509_v45 = vld [vmem:[%s17746_s1 + $0x10b4] ss:$8 sps:$4 sm:$0xff]   ;;  %v11512_v47 = vld [vmem:[%s17746_s1 + $0x10b0] ss:$8 sps:$4 sm:$0xff]  }
  0x11   :  { %8091 = vmatprep.subr.bf16.mxu0 %v11467_v17  ;;  %v39_v48 = vld [vmem:[%s17747_s0] sm:$0xff]  ;;  %v11519_v58 = vld [vmem:[%s17746_s1 + $0xd4] ss:$8 sps:$4 sm:$0xff]   ;;  %v11523_v60 = vld [vmem:[%s17746_s1 + $0xd0] ss:$8 sps:$4 sm:$0xff]  }
  0x12   :  { %v75_v49 = vld [vmem:[%s17747_s0 + $0x120] sm:$0xff]  ;;  %v11521_v59 = vld [vmem:[%s17746_s1 + $0x10d4] ss:$8 sps:$4 sm:$0xff]   ;;  %v11524_v61 = vld [vmem:[%s17746_s1 + $0x10d0] ss:$8 sps:$4 sm:$0xff]  }
  0x13   :  { %7404 = vmatpush1.bf16.msra.mxu1 %v11469_v18  ;;  %v11513_v50 = vld [vmem:[%s17746_s1 + $0xc4] ss:$8 sps:$4 sm:$0xff]   ;;  %v9939_v52 = vcombine.high %v39_v48, %v75_v49  ;;  %v11517_v56 = vld [vmem:[%s17746_s1 + $0xc0] ss:$8 sps:$4 sm:$0xff]   ;;  %v11531_v2 = vld [vmem:[%s17746_s1 + $0xf4] ss:$8 sps:$4 sm:$0xff]   ;;  %v9938_v8 = vcombine.low %v39_v48, %v75_v49 }
  0x14   :  { %8092 = vmatpush1.bf16.msra.mxu0 %v11470_v19  ;;  %7405 = vmatprep.subr.bf16.mxu1 %v11471_v20  ;;  %v11515_v51 = vld [vmem:[%s17746_s1 + $0x10c4] ss:$8 sps:$4 sm:$0xff]   ;;  %v11518_v57 = vld [vmem:[%s17746_s1 + $0x10c0] ss:$8 sps:$4 sm:$0xff]   ;;  %v11533_v3 = vld [vmem:[%s17746_s1 + $0x10f4] ss:$8 sps:$4 sm:$0xff]  }
  0x15   :  { %8093 = vmatprep.subr.bf16.mxu0 %v11473_v21  ;;  %v55_v53 = vld [vmem:[%s17747_s0 + $0x80] sm:$0xff]  ;;  %7427 = vmatprep.mubr.bf16.mxu1 %v9939_v52  ;;  %v11535_v4 = vld [vmem:[%s17746_s1 + $0xf0] ss:$8 sps:$4 sm:$0xff]   ;;  %v11545_v12 = vld [vmem:[%s17746_s1 + $0x114] ss:$8 sps:$4 sm:$0xff]  }
  0x16   :  { %v91_v54 = vld [vmem:[%s17747_s0 + $0x1a0] sm:$0xff]  ;;  %v11536_v5 = vld [vmem:[%s17746_s1 + $0x10f0] ss:$8 sps:$4 sm:$0xff]   ;;  %v11548_v13 = vld [vmem:[%s17746_s1 + $0x1114] ss:$8 sps:$4 sm:$0xff]  }
  0x17   :  { %7406 = vmatpush1.bf16.msra.mxu1 %v11475_v22  ;;  %v9971_v55 = vcombine.high %v55_v53, %v91_v54  ;;  %v11525_v62 = vld [vmem:[%s17746_s1 + $0xe4] ss:$8 sps:$4 sm:$0xff]   ;;  %v11529_v0 = vld [vmem:[%s17746_s1 + $0xe0] ss:$8 sps:$4 sm:$0xff]   ;;  %v9970_v10 = vcombine.low %v55_v53, %v91_v54  ;;  %v11543_v14 = vld [vmem:[%s17746_s1 + $0x110] ss:$8 sps:$4 sm:$0xff]  }
  0x18   :  { %8094 = vmatpush1.bf16.msra.mxu0 %v11476_v23  ;;  %7407 = vmatprep.subr.bf16.mxu1 %v11477_v24  ;;  %v11527_v63 = vld [vmem:[%s17746_s1 + $0x10e4] ss:$8 sps:$4 sm:$0xff]   ;;  %v11530_v1 = vld [vmem:[%s17746_s1 + $0x10e0] ss:$8 sps:$4 sm:$0xff]   ;;  %v11546_v15 = vld [vmem:[%s17746_s1 + $0x1110] ss:$8 sps:$4 sm:$0xff]  }
  0x19   :  { %8095 = vmatprep.subr.bf16.mxu0 %v11479_v25  ;;  %8115 = vmatprep.mubr.bf16.mxu0 %v9971_v55  ;;  %v11539_v6 = vld [vmem:[%s17746_s1 + $0x104] ss:$8 sps:$4 sm:$0xff]   ;;  %v11537_v9 = vld [vmem:[%s17746_s1 + $0x100] ss:$8 sps:$4 sm:$0xff]   ;;  %v11557_v20 = vld [vmem:[%s17746_s1 + $0x134] ss:$8 sps:$4 sm:$0xff]  }
  0x1a   :  { %v11542_v7 = vld [vmem:[%s17746_s1 + $0x1104] ss:$8 sps:$4 sm:$0xff]   ;;  %v11540_v11 = vld [vmem:[%s17746_s1 + $0x1100] ss:$8 sps:$4 sm:$0xff]   ;;  %v11560_v21 = vld [vmem:[%s17746_s1 + $0x1134] ss:$8 sps:$4 sm:$0xff]  }
  0x1b   :  { %7408 = vmatpush1.bf16.msra.mxu1 %v11481_v26  ;;  %v11551_v16 = vld [vmem:[%s17746_s1 + $0x124] ss:$8 sps:$4 sm:$0xff]   ;;  %v11549_v18 = vld [vmem:[%s17746_s1 + $0x120] ss:$8 sps:$4 sm:$0xff]   ;;  %v11555_v22 = vld [vmem:[%s17746_s1 + $0x130] ss:$8 sps:$4 sm:$0xff]  }
  0x1c   :  { %8096 = vmatpush1.bf16.msra.mxu0 %v11482_v27  ;;  %7409 = vmatprep.subr.bf16.mxu1 %v11483_v28  ;;  %v11554_v17 = vld [vmem:[%s17746_s1 + $0x1124] ss:$8 sps:$4 sm:$0xff]   ;;  %v11552_v19 = vld [vmem:[%s17746_s1 + $0x1120] ss:$8 sps:$4 sm:$0xff]   ;;  %v11558_v23 = vld [vmem:[%s17746_s1 + $0x1130] ss:$8 sps:$4 sm:$0xff]  }
  0x1d   :  { %8097 = vmatprep.subr.bf16.mxu0 %v11485_v29  ;;  %v11563_v24 = vld [vmem:[%s17746_s1 + $0x144] ss:$8 sps:$4 sm:$0xff]   ;;  %v11561_v26 = vld [vmem:[%s17746_s1 + $0x140] ss:$8 sps:$4 sm:$0xff]   ;;  %v11569_v28 = vld [vmem:[%s17746_s1 + $0x154] ss:$8 sps:$4 sm:$0xff]  }
  0x1e   :  { %v11566_v25 = vld [vmem:[%s17746_s1 + $0x1144] ss:$8 sps:$4 sm:$0xff]   ;;  %v11564_v27 = vld [vmem:[%s17746_s1 + $0x1140] ss:$8 sps:$4 sm:$0xff]   ;;  %v11572_v29 = vld [vmem:[%s17746_s1 + $0x1154] ss:$8 sps:$4 sm:$0xff]  }
  0x1f   :  { %7410 = vmatpush1.bf16.msra.mxu1 %v11487_v30  ;;  %v11567_v30 = vld [vmem:[%s17746_s1 + $0x150] ss:$8 sps:$4 sm:$0xff]   ;;  %v11585_v48 = vld [vmem:[%s17746_s1 + $0x180] ss:$8 sps:$4 sm:$0xff]   ;;  %v11599_v54 = vld [vmem:[%s17746_s1 + $0x1a4] ss:$8 sps:$4 sm:$0xff]  }
  0x20   :  { %8098 = vmatpush1.bf16.msra.mxu0 %v11488_v31  ;;  %7411 = vmatprep.subr.bf16.mxu1 %v11489_v32  ;;  %v11570_v31 = vld [vmem:[%s17746_s1 + $0x1150] ss:$8 sps:$4 sm:$0xff]   ;;  %v11575_v32 = vld [vmem:[%s17746_s1 + $0x164] ss:$8 sps:$4 sm:$0xff]   ;;  %v11588_v49 = vld [vmem:[%s17746_s1 + $0x1180] ss:$8 sps:$4 sm:$0xff]  }
  0x21   :  { %8099 = vmatprep.subr.bf16.mxu0 %v11491_v33  ;;  %v11578_v33 = vld [vmem:[%s17746_s1 + $0x1164] ss:$8 sps:$4 sm:$0xff]   ;;  %v11591_v52 = vld [vmem:[%s17746_s1 + $0x190] ss:$8 sps:$4 sm:$0xff]  }
  0x22   :  { %v11594_v53 = vld [vmem:[%s17746_s1 + $0x1190] ss:$8 sps:$4 sm:$0xff]   ;;  %v11602_v55 = vld [vmem:[%s17746_s1 + $0x11a4] ss:$8 sps:$4 sm:$0xff]  }
  0x23   :  { %7412 = vmatpush1.bf16.msra.mxu1 %v11493_v34  ;;  %v11573_v34 = vld [vmem:[%s17746_s1 + $0x160] ss:$8 sps:$4 sm:$0xff]  }
  0x24   :  { %8100 = vmatpush1.bf16.msra.mxu0 %v11494_v35  ;;  %7413 = vmatprep.subr.bf16.mxu1 %v11495_v36  ;;  %v11576_v35 = vld [vmem:[%s17746_s1 + $0x1160] ss:$8 sps:$4 sm:$0xff]  }
  0x25   :  { %8101 = vmatprep.subr.bf16.mxu0 %v11497_v37  ;;  %v13712_v36 = vld [vmem:[%s17747_s0 + $0x8] sm:$0xff] }
  0x26   :  { %v13717_v37 = vld [vmem:[%s17747_s0 + $0x128] sm:$0xff] }
  0x27   :  { %7414 = vmatpush1.bf16.msra.mxu1 %v11499_v38  ;;  %v11581_v38 = vld [vmem:[%s17746_s1 + $0x174] ss:$8 sps:$4 sm:$0xff]  }
  0x28   :  { %8102 = vmatpush1.bf16.msra.mxu0 %v11500_v39  ;;  %7415 = vmatprep.subr.bf16.mxu1 %v11501_v40  ;;  %v11584_v39 = vld [vmem:[%s17746_s1 + $0x1174] ss:$8 sps:$4 sm:$0xff]   ;;  %v9941_v40 = vcombine.high %v13712_v36, %v13717_v37 }
  0x29   :  { %8103 = vmatprep.subr.bf16.mxu0 %v11503_v41  ;;  %v13730_v41 = vld [vmem:[%s17747_s0 + $0x88] sm:$0xff] }
  0x2b   :  { %7416 = vmatpush1.bf16.msra.mxu1 %v11505_v42  ;;  %v13735_v42 = vld [vmem:[%s17747_s0 + $0x1a8] sm:$0xff] }
  0x2c   :  { %8104 = vmatpush1.bf16.msra.mxu0 %v11506_v43  ;;  %7417 = vmatprep.subr.bf16.mxu1 %v11507_v44  ;;  %v9973_v43 = vcombine.high %v13730_v41, %v13735_v42  ;;  %v11579_v44 = vld [vmem:[%s17746_s1 + $0x170] ss:$8 sps:$4 sm:$0xff]  }
  0x2d   :  { %8105 = vmatprep.subr.bf16.mxu0 %v11509_v45  ;;  %v11582_v45 = vld [vmem:[%s17746_s1 + $0x1170] ss:$8 sps:$4 sm:$0xff]  }
  0x2f   :  { %7418 = vmatpush1.bf16.msra.mxu1 %v11511_v46  ;;  %v11587_v46 = vld [vmem:[%s17746_s1 + $0x184] ss:$8 sps:$4 sm:$0xff]  }
  0x30   :  { %8106 = vmatpush1.bf16.msra.mxu0 %v11512_v47  ;;  %7419 = vmatprep.subr.bf16.mxu1 %v11513_v50  ;;  %v11590_v47 = vld [vmem:[%s17746_s1 + $0x1184] ss:$8 sps:$4 sm:$0xff]   ;;  %v11593_v50 = vld [vmem:[%s17746_s1 + $0x194] ss:$8 sps:$4 sm:$0xff]  }
  0x31   :  { %8107 = vmatprep.subr.bf16.mxu0 %v11515_v51  ;;  %v11596_v51 = vld [vmem:[%s17746_s1 + $0x1194] ss:$8 sps:$4 sm:$0xff]  }
  0x33   :  { %7420 = vmatpush1.bf16.msra.mxu1 %v11517_v56  ;;  %v11597_v56 = vld [vmem:[%s17746_s1 + $0x1a0] ss:$8 sps:$4 sm:$0xff]  }
  0x34   :  { %8108 = vmatpush1.bf16.msra.mxu0 %v11518_v57  ;;  %7421 = vmatprep.subr.bf16.mxu1 %v11519_v58  ;;  %v11600_v57 = vld [vmem:[%s17746_s1 + $0x11a0] ss:$8 sps:$4 sm:$0xff]   ;;  %v11605_v58 = vld [vmem:[%s17746_s1 + $0x1b4] ss:$8 sps:$4 sm:$0xff]  }
  0x35   :  { %8109 = vmatprep.subr.bf16.mxu0 %v11521_v59  ;;  %v11608_v59 = vld [vmem:[%s17746_s1 + $0x11b4] ss:$8 sps:$4 sm:$0xff]  }
  0x37   :  { %7422 = vmatpush1.bf16.msra.mxu1 %v11523_v60  ;;  %v11603_v60 = vld [vmem:[%s17746_s1 + $0x1b0] ss:$8 sps:$4 sm:$0xff]  }
  0x38   :  { %8110 = vmatpush1.bf16.msra.mxu0 %v11524_v61  ;;  %7423 = vmatprep.subr.bf16.mxu1 %v11525_v62  ;;  %v11606_v61 = vld [vmem:[%s17746_s1 + $0x11b0] ss:$8 sps:$4 sm:$0xff]   ;;  %v11611_v62 = vld [vmem:[%s17746_s1 + $0x1c4] ss:$8 sps:$4 sm:$0xff]  }
  0x39   :  { %8111 = vmatprep.subr.bf16.mxu0 %v11527_v63  ;;  %v11614_v63 = vld [vmem:[%s17746_s1 + $0x11c4] ss:$8 sps:$4 sm:$0xff]  }
  0x3b   :  { %7424 = vmatpush1.bf16.msra.mxu1 %v11529_v0  ;;  %v11609_v0 = vld [vmem:[%s17746_s1 + $0x1c0] ss:$8 sps:$4 sm:$0xff]  }
  0x3c   :  { %8112 = vmatpush1.bf16.msra.mxu0 %v11530_v1  ;;  %7425 = vmatprep.subr.bf16.mxu1 %v11531_v2  ;;  %v11612_v1 = vld [vmem:[%s17746_s1 + $0x11c0] ss:$8 sps:$4 sm:$0xff]   ;;  %v11617_v2 = vld [vmem:[%s17746_s1 + $0x1d4] ss:$8 sps:$4 sm:$0xff]  }
  0x3d   :  { %8113 = vmatprep.subr.bf16.mxu0 %v11533_v3  ;;  %v11620_v3 = vld [vmem:[%s17746_s1 + $0x11d4] ss:$8 sps:$4 sm:$0xff]  }
  0x3f   :  { %7426 = vmatpush1.bf16.msra.mxu1 %v11535_v4  ;;  %v11615_v4 = vld [vmem:[%s17746_s1 + $0x1d0] ss:$8 sps:$4 sm:$0xff]  }
  0x40   :  { %8114 = vmatpush1.bf16.msra.mxu0 %v11536_v5  ;;  %7438 = vmatprep.subr.bf16.mxu1 %v11539_v6  ;;  %v11618_v5 = vld [vmem:[%s17746_s1 + $0x11d0] ss:$8 sps:$4 sm:$0xff]   ;;  %v11623_v6 = vld [vmem:[%s17746_s1 + $0x1e4] ss:$8 sps:$4 sm:$0xff]  }
  0x41   :  { %8126 = vmatprep.subr.bf16.mxu0 %v11542_v7  ;;  %v11626_v7 = vld [vmem:[%s17746_s1 + $0x11e4] ss:$8 sps:$4 sm:$0xff]  }
  0x42   :  { %7428 = vmatmul.mubr.bf16.vlgmr.msra.gmra.mrb[0].mxu1 %v9938_v8  ;;  %v11621_v8 = vld [vmem:[%s17746_s1 + $0x1e0] ss:$8 sps:$4 sm:$0xff]  }
  0x43   :  { %8116 = vmatmul.mubr.bf16.vlgmr.msra.gmra.mrb[0].mxu0 %v9970_v10  ;;  %7439 = vmatpush1.bf16.msra.mxu1 %v11537_v9  ;;  %v11624_v9 = vld [vmem:[%s17746_s1 + $0x11e0] ss:$8 sps:$4 sm:$0xff]   ;;  %v11629_v10 = vld [vmem:[%s17746_s1 + $0x1f4] ss:$8 sps:$4 sm:$0xff]  }
  0x44   :  { %8127 = vmatpush1.bf16.msra.mxu0 %v11540_v11  ;;  %7440 = vmatprep.subr.bf16.mxu1 %v11545_v12  ;;  %v11632_v11 = vld [vmem:[%s17746_s1 + $0x11f4] ss:$8 sps:$4 sm:$0xff]   ;;  %v11627_v12 = vld [vmem:[%s17746_s1 + $0x1f0] ss:$8 sps:$4 sm:$0xff]  }
  0x45   :  { %8128 = vmatprep.subr.bf16.mxu0 %v11548_v13  ;;  %7470 = vmatprep.mubr.bf16.mxu1 %v9941_v40  ;;  %v11630_v13 = vld [vmem:[%s17746_s1 + $0x11f0] ss:$8 sps:$4 sm:$0xff]   ;;  %v11657_v40 = vld [vmem:[%s17746_s1 + $0x240] ss:$8 sps:$4 sm:$0xff]  }
  0x46   :  { %8158 = vmatprep.mubr.bf16.mxu0 %v9973_v43  ;;  %v11668_v43 = vld [vmem:[%s17746_s1 + $0x1254] ss:$8 sps:$4 sm:$0xff]  }
  0x47   :  { %7441 = vmatpush1.bf16.msra.mxu1 %v11543_v14  ;;  %v11635_v14 = vld [vmem:[%s17746_s1 + $0x204] ss:$8 sps:$4 sm:$0xff]  }
  0x48   :  { %8129 = vmatpush1.bf16.msra.mxu0 %v11546_v15  ;;  %7442 = vmatprep.subr.bf16.mxu1 %v11551_v16  ;;  %v11638_v15 = vld [vmem:[%s17746_s1 + $0x1204] ss:$8 sps:$4 sm:$0xff]   ;;  %v9940_v16 = vcombine.low %v13712_v36, %v13717_v37  ;;  %v11651_v36 = vld [vmem:[%s17746_s1 + $0x230] ss:$8 sps:$4 sm:$0xff]  }
  0x49   :  { %8130 = vmatprep.subr.bf16.mxu0 %v11554_v17  ;;  %v11633_v17 = vld [vmem:[%s17746_s1 + $0x200] ss:$8 sps:$4 sm:$0xff]   ;;  %v11654_v37 = vld [vmem:[%s17746_s1 + $0x1230] ss:$8 sps:$4 sm:$0xff]  }
  0x4b   :  { %7443 = vmatpush1.bf16.msra.mxu1 %v11549_v18  ;;  %v9972_v18 = vcombine.low %v13730_v41, %v13735_v42  ;;  %v11660_v41 = vld [vmem:[%s17746_s1 + $0x1240] ss:$8 sps:$4 sm:$0xff]   ;;  %v11665_v42 = vld [vmem:[%s17746_s1 + $0x254] ss:$8 sps:$4 sm:$0xff]  }
  0x4c   :  { %8131 = vmatpush1.bf16.msra.mxu0 %v11552_v19  ;;  %7444 = vmatprep.subr.bf16.mxu1 %v11557_v20  ;;  %v11636_v19 = vld [vmem:[%s17746_s1 + $0x1200] ss:$8 sps:$4 sm:$0xff]   ;;  %v11641_v20 = vld [vmem:[%s17746_s1 + $0x214] ss:$8 sps:$4 sm:$0xff]  }
  0x4d   :  { %8132 = vmatprep.subr.bf16.mxu0 %v11560_v21  ;;  %v11644_v21 = vld [vmem:[%s17746_s1 + $0x1214] ss:$8 sps:$4 sm:$0xff]  }
  0x4f   :  { %7445 = vmatpush1.bf16.msra.mxu1 %v11555_v22  ;;  %v11639_v22 = vld [vmem:[%s17746_s1 + $0x210] ss:$8 sps:$4 sm:$0xff]  }
  0x50   :  { %8133 = vmatpush1.bf16.msra.mxu0 %v11558_v23  ;;  %7446 = vmatprep.subr.bf16.mxu1 %v11563_v24  ;;  %v11642_v23 = vld [vmem:[%s17746_s1 + $0x1210] ss:$8 sps:$4 sm:$0xff]  }
  0x51   :  { %8134 = vmatprep.subr.bf16.mxu0 %v11566_v25  ;;  %v13872_v24 = vld [vmem:[%s17747_s0 + $0x10] sm:$0xff] }
  0x52   :  { %v13877_v25 = vld [vmem:[%s17747_s0 + $0x130] sm:$0xff] }
  0x53   :  { %7447 = vmatpush1.bf16.msra.mxu1 %v11561_v26  ;;  %v11647_v26 = vld [vmem:[%s17746_s1 + $0x224] ss:$8 sps:$4 sm:$0xff]  }
  0x54   :  { %8135 = vmatpush1.bf16.msra.mxu0 %v11564_v27  ;;  %7448 = vmatprep.subr.bf16.mxu1 %v11569_v28  ;;  %v11650_v27 = vld [vmem:[%s17746_s1 + $0x1224] ss:$8 sps:$4 sm:$0xff]   ;;  %v9943_v28 = vcombine.high %v13872_v24, %v13877_v25 }
  0x55   :  { %8136 = vmatprep.subr.bf16.mxu0 %v11572_v29  ;;  %v13890_v29 = vld [vmem:[%s17747_s0 + $0x90] sm:$0xff] }
  0x57   :  { %7449 = vmatpush1.bf16.msra.mxu1 %v11567_v30  ;;  %v13895_v30 = vld [vmem:[%s17747_s0 + $0x1b0] sm:$0xff] }
  0x58   :  { %8137 = vmatpush1.bf16.msra.mxu0 %v11570_v31  ;;  %7450 = vmatprep.subr.bf16.mxu1 %v11575_v32  ;;  %v9975_v31 = vcombine.high %v13890_v29, %v13895_v30  ;;  %v11645_v32 = vld [vmem:[%s17746_s1 + $0x220] ss:$8 sps:$4 sm:$0xff]  }
  0x59   :  { %8138 = vmatprep.subr.bf16.mxu0 %v11578_v33  ;;  %v11648_v33 = vld [vmem:[%s17746_s1 + $0x1220] ss:$8 sps:$4 sm:$0xff]  }
  0x5b   :  { %7451 = vmatpush1.bf16.msra.mxu1 %v11573_v34  ;;  %v11653_v34 = vld [vmem:[%s17746_s1 + $0x234] ss:$8 sps:$4 sm:$0xff]  }
  0x5c   :  { %8139 = vmatpush1.bf16.msra.mxu0 %v11576_v35  ;;  %7452 = vmatprep.subr.bf16.mxu1 %v11581_v38  ;;  %v11656_v35 = vld [vmem:[%s17746_s1 + $0x1234] ss:$8 sps:$4 sm:$0xff]   ;;  %v11659_v38 = vld [vmem:[%s17746_s1 + $0x244] ss:$8 sps:$4 sm:$0xff]  }
  0x5d   :  { %8140 = vmatprep.subr.bf16.mxu0 %v11584_v39  ;;  %v11662_v39 = vld [vmem:[%s17746_s1 + $0x1244] ss:$8 sps:$4 sm:$0xff]  }
  0x5f   :  { %7453 = vmatpush1.bf16.msra.mxu1 %v11579_v44  ;;  %v11663_v44 = vld [vmem:[%s17746_s1 + $0x250] ss:$8 sps:$4 sm:$0xff]  }
  0x60   :  { %8141 = vmatpush1.bf16.msra.mxu0 %v11582_v45  ;;  %7454 = vmatprep.subr.bf16.mxu1 %v11587_v46  ;;  %v11666_v45 = vld [vmem:[%s17746_s1 + $0x1250] ss:$8 sps:$4 sm:$0xff]   ;;  %v11671_v46 = vld [vmem:[%s17746_s1 + $0x264] ss:$8 sps:$4 sm:$0xff]  }
  0x61   :  { %8142 = vmatprep.subr.bf16.mxu0 %v11590_v47  ;;  %v11674_v47 = vld [vmem:[%s17746_s1 + $0x1264] ss:$8 sps:$4 sm:$0xff]  }
  0x63   :  { %7455 = vmatpush1.bf16.msra.mxu1 %v11585_v48  ;;  %v11669_v48 = vld [vmem:[%s17746_s1 + $0x260] ss:$8 sps:$4 sm:$0xff]  }
  0x64   :  { %8143 = vmatpush1.bf16.msra.mxu0 %v11588_v49  ;;  %7456 = vmatprep.subr.bf16.mxu1 %v11593_v50  ;;  %v11672_v49 = vld [vmem:[%s17746_s1 + $0x1260] ss:$8 sps:$4 sm:$0xff]   ;;  %v11677_v50 = vld [vmem:[%s17746_s1 + $0x274] ss:$8 sps:$4 sm:$0xff]  }
  0x65   :  { %8144 = vmatprep.subr.bf16.mxu0 %v11596_v51  ;;  %v11680_v51 = vld [vmem:[%s17746_s1 + $0x1274] ss:$8 sps:$4 sm:$0xff]  }
  0x67   :  { %7457 = vmatpush1.bf16.msra.mxu1 %v11591_v52  ;;  %v11675_v52 = vld [vmem:[%s17746_s1 + $0x270] ss:$8 sps:$4 sm:$0xff]  }
  0x68   :  { %8145 = vmatpush1.bf16.msra.mxu0 %v11594_v53  ;;  %7458 = vmatprep.subr.bf16.mxu1 %v11599_v54  ;;  %v11678_v53 = vld [vmem:[%s17746_s1 + $0x1270] ss:$8 sps:$4 sm:$0xff]   ;;  %v11683_v54 = vld [vmem:[%s17746_s1 + $0x284] ss:$8 sps:$4 sm:$0xff]  }
  0x69   :  { %8146 = vmatprep.subr.bf16.mxu0 %v11602_v55  ;;  %v11686_v55 = vld [vmem:[%s17746_s1 + $0x1284] ss:$8 sps:$4 sm:$0xff]  }
  0x6b   :  { %7459 = vmatpush1.bf16.msra.mxu1 %v11597_v56  ;;  %v11681_v56 = vld [vmem:[%s17746_s1 + $0x280] ss:$8 sps:$4 sm:$0xff]  }
  0x6c   :  { %8147 = vmatpush1.bf16.msra.mxu0 %v11600_v57  ;;  %7460 = vmatprep.subr.bf16.mxu1 %v11605_v58  ;;  %v11684_v57 = vld [vmem:[%s17746_s1 + $0x1280] ss:$8 sps:$4 sm:$0xff]   ;;  %v11689_v58 = vld [vmem:[%s17746_s1 + $0x294] ss:$8 sps:$4 sm:$0xff]  }
  0x6d   :  { %8148 = vmatprep.subr.bf16.mxu0 %v11608_v59  ;;  %v11692_v59 = vld [vmem:[%s17746_s1 + $0x1294] ss:$8 sps:$4 sm:$0xff]  }
  0x6f   :  { %7461 = vmatpush1.bf16.msra.mxu1 %v11603_v60  ;;  %v11687_v60 = vld [vmem:[%s17746_s1 + $0x290] ss:$8 sps:$4 sm:$0xff]  }
  0x70   :  { %8149 = vmatpush1.bf16.msra.mxu0 %v11606_v61  ;;  %7462 = vmatprep.subr.bf16.mxu1 %v11611_v62  ;;  %v11690_v61 = vld [vmem:[%s17746_s1 + $0x1290] ss:$8 sps:$4 sm:$0xff]   ;;  %v11695_v62 = vld [vmem:[%s17746_s1 + $0x2a4] ss:$8 sps:$4 sm:$0xff]  }
  0x71   :  { %8150 = vmatprep.subr.bf16.mxu0 %v11614_v63  ;;  %v11698_v63 = vld [vmem:[%s17746_s1 + $0x12a4] ss:$8 sps:$4 sm:$0xff]  }
  0x73   :  { %7463 = vmatpush1.bf16.msra.mxu1 %v11609_v0  ;;  %v11693_v0 = vld [vmem:[%s17746_s1 + $0x2a0] ss:$8 sps:$4 sm:$0xff]  }
  0x74   :  { %8151 = vmatpush1.bf16.msra.mxu0 %v11612_v1  ;;  %7464 = vmatprep.subr.bf16.mxu1 %v11617_v2  ;;  %v11696_v1 = vld [vmem:[%s17746_s1 + $0x12a0] ss:$8 sps:$4 sm:$0xff]   ;;  %v11701_v2 = vld [vmem:[%s17746_s1 + $0x2b4] ss:$8 sps:$4 sm:$0xff]  }
  0x75   :  { %8152 = vmatprep.subr.bf16.mxu0 %v11620_v3  ;;  %v11704_v3 = vld [vmem:[%s17746_s1 + $0x12b4] ss:$8 sps:$4 sm:$0xff]  }
  0x77   :  { %7465 = vmatpush1.bf16.msra.mxu1 %v11615_v4  ;;  %v11699_v4 = vld [vmem:[%s17746_s1 + $0x2b0] ss:$8 sps:$4 sm:$0xff]  }
  0x78   :  { %8153 = vmatpush1.bf16.msra.mxu0 %v11618_v5  ;;  %7466 = vmatprep.subr.bf16.mxu1 %v11623_v6  ;;  %v11702_v5 = vld [vmem:[%s17746_s1 + $0x12b0] ss:$8 sps:$4 sm:$0xff]   ;;  %v11707_v6 = vld [vmem:[%s17746_s1 + $0x2c4] ss:$8 sps:$4 sm:$0xff]  }
  0x79   :  { %8154 = vmatprep.subr.bf16.mxu0 %v11626_v7  ;;  %v11710_v7 = vld [vmem:[%s17746_s1 + $0x12c4] ss:$8 sps:$4 sm:$0xff]  }
  0x7b   :  { %7467 = vmatpush1.bf16.msra.mxu1 %v11621_v8  ;;  %v11705_v8 = vld [vmem:[%s17746_s1 + $0x2c0] ss:$8 sps:$4 sm:$0xff]  }
  0x7c   :  { %8155 = vmatpush1.bf16.msra.mxu0 %v11624_v9  ;;  %7468 = vmatprep.subr.bf16.mxu1 %v11629_v10  ;;  %v11708_v9 = vld [vmem:[%s17746_s1 + $0x12c0] ss:$8 sps:$4 sm:$0xff]   ;;  %v11713_v10 = vld [vmem:[%s17746_s1 + $0x2d4] ss:$8 sps:$4 sm:$0xff]  }
  0x7d   :  { %8156 = vmatprep.subr.bf16.mxu0 %v11632_v11  ;;  %v11716_v11 = vld [vmem:[%s17746_s1 + $0x12d4] ss:$8 sps:$4 sm:$0xff]  }
  0x7f   :  { %7469 = vmatpush1.bf16.msra.mxu1 %v11627_v12  ;;  %v11711_v12 = vld [vmem:[%s17746_s1 + $0x2d0] ss:$8 sps:$4 sm:$0xff]  }
  0x80   :  { %8157 = vmatpush1.bf16.msra.mxu0 %v11630_v13  ;;  %7481 = vmatprep.subr.bf16.mxu1 %v11635_v14  ;;  %v11714_v13 = vld [vmem:[%s17746_s1 + $0x12d0] ss:$8 sps:$4 sm:$0xff]   ;;  %v11719_v14 = vld [vmem:[%s17746_s1 + $0x2e4] ss:$8 sps:$4 sm:$0xff]  }
  0x81   :  { %8169 = vmatprep.subr.bf16.mxu0 %v11638_v15  ;;  %v11722_v15 = vld [vmem:[%s17746_s1 + $0x12e4] ss:$8 sps:$4 sm:$0xff]  }
  0x82   :  { %7471 = vmatmul.mubr.bf16.vlgmr.msra.gmra.mrb[0].mxu1 %v9940_v16  ;;  %v11717_v16 = vld [vmem:[%s17746_s1 + $0x2e0] ss:$8 sps:$4 sm:$0xff]  }
  0x83   :  { %8159 = vmatmul.mubr.bf16.vlgmr.msra.gmra.mrb[0].mxu0 %v9972_v18  ;;  %7482 = vmatpush1.bf16.msra.mxu1 %v11633_v17  ;;  %v11720_v17 = vld [vmem:[%s17746_s1 + $0x12e0] ss:$8 sps:$4 sm:$0xff]   ;;  %v11725_v18 = vld [vmem:[%s17746_s1 + $0x2f4] ss:$8 sps:$4 sm:$0xff]  }
  0x84   :  { %8170 = vmatpush1.bf16.msra.mxu0 %v11636_v19  ;;  %7483 = vmatprep.subr.bf16.mxu1 %v11641_v20  ;;  %v11728_v19 = vld [vmem:[%s17746_s1 + $0x12f4] ss:$8 sps:$4 sm:$0xff]   ;;  %v11723_v20 = vld [vmem:[%s17746_s1 + $0x2f0] ss:$8 sps:$4 sm:$0xff]  }
  0x85   :  { %8171 = vmatprep.subr.bf16.mxu0 %v11644_v21  ;;  %7513 = vmatprep.mubr.bf16.mxu1 %v9943_v28  ;;  %v11726_v21 = vld [vmem:[%s17746_s1 + $0x12f0] ss:$8 sps:$4 sm:$0xff]  }
  0x86   :  { %8201 = vmatprep.mubr.bf16.mxu0 %v9975_v31  ;;  %v14076_v28 = vld [vmem:[%s17747_s0 + $0x18] sm:$0xff] }
  0x87   :  { %7484 = vmatpush1.bf16.msra.mxu1 %v11639_v22  ;;  %v11731_v22 = vld [vmem:[%s17746_s1 + $0x304] ss:$8 sps:$4 sm:$0xff]   ;;  %v14081_v31 = vld [vmem:[%s17747_s0 + $0x138] sm:$0xff] }
  0x88   :  { %8172 = vmatpush1.bf16.msra.mxu0 %v11642_v23  ;;  %7485 = vmatprep.subr.bf16.mxu1 %v11647_v26  ;;  %v11734_v23 = vld [vmem:[%s17746_s1 + $0x1304] ss:$8 sps:$4 sm:$0xff]   ;;  %v11729_v26 = vld [vmem:[%s17746_s1 + $0x300] ss:$8 sps:$4 sm:$0xff]  }
  0x89   :  { %8173 = vmatprep.subr.bf16.mxu0 %v11650_v27  ;;  %v11732_v27 = vld [vmem:[%s17746_s1 + $0x1300] ss:$8 sps:$4 sm:$0xff]  }
  0x8b   :  { %7486 = vmatpush1.bf16.msra.mxu1 %v11645_v32  ;;  %v9942_v32 = vcombine.low %v13872_v24, %v13877_v25  ;;  %v11740_v24 = vld [vmem:[%s17746_s1 + $0x1314] ss:$8 sps:$4 sm:$0xff]   ;;  %v9945_v25 = vcombine.high %v14076_v28, %v14081_v31 }
  0x8c   :  { %8174 = vmatpush1.bf16.msra.mxu0 %v11648_v33  ;;  %7487 = vmatprep.subr.bf16.mxu1 %v11653_v34  ;;  %v9974_v33 = vcombine.low %v13890_v29, %v13895_v30  ;;  %v14090_v34 = vld [vmem:[%s17747_s0 + $0x98] sm:$0xff] }
  0x8d   :  { %8175 = vmatprep.subr.bf16.mxu0 %v11656_v35  ;;  %v14095_v35 = vld [vmem:[%s17747_s0 + $0x1b8] sm:$0xff] }
  0x8e   :  { %v9977_v29 = vcombine.high %v14090_v34, %v14095_v35  ;;  %v11735_v30 = vld [vmem:[%s17746_s1 + $0x310] ss:$8 sps:$4 sm:$0xff]  }
  0x8f   :  { %7488 = vmatpush1.bf16.msra.mxu1 %v11651_v36  ;;  %v11737_v36 = vld [vmem:[%s17746_s1 + $0x314] ss:$8 sps:$4 sm:$0xff]  }
  0x90   :  { %8176 = vmatpush1.bf16.msra.mxu0 %v11654_v37  ;;  %7489 = vmatprep.subr.bf16.mxu1 %v11659_v38  ;;  %v11738_v37 = vld [vmem:[%s17746_s1 + $0x1310] ss:$8 sps:$4 sm:$0xff]   ;;  %v11743_v38 = vld [vmem:[%s17746_s1 + $0x324] ss:$8 sps:$4 sm:$0xff]  }
  0x91   :  { %8177 = vmatprep.subr.bf16.mxu0 %v11662_v39  ;;  %v11746_v39 = vld [vmem:[%s17746_s1 + $0x1324] ss:$8 sps:$4 sm:$0xff]  }
  0x93   :  { %7490 = vmatpush1.bf16.msra.mxu1 %v11657_v40  ;;  %v11741_v40 = vld [vmem:[%s17746_s1 + $0x320] ss:$8 sps:$4 sm:$0xff]  }
  0x94   :  { %8178 = vmatpush1.bf16.msra.mxu0 %v11660_v41  ;;  %7491 = vmatprep.subr.bf16.mxu1 %v11665_v42  ;;  %v11744_v41 = vld [vmem:[%s17746_s1 + $0x1320] ss:$8 sps:$4 sm:$0xff]   ;;  %v11749_v42 = vld [vmem:[%s17746_s1 + $0x334] ss:$8 sps:$4 sm:$0xff]  }
  0x95   :  { %8179 = vmatprep.subr.bf16.mxu0 %v11668_v43  ;;  %v11752_v43 = vld [vmem:[%s17746_s1 + $0x1334] ss:$8 sps:$4 sm:$0xff]  }
  0x97   :  { %7492 = vmatpush1.bf16.msra.mxu1 %v11663_v44  ;;  %v11747_v44 = vld [vmem:[%s17746_s1 + $0x330] ss:$8 sps:$4 sm:$0xff]  }
  0x98   :  { %8180 = vmatpush1.bf16.msra.mxu0 %v11666_v45  ;;  %7493 = vmatprep.subr.bf16.mxu1 %v11671_v46  ;;  %v11750_v45 = vld [vmem:[%s17746_s1 + $0x1330] ss:$8 sps:$4 sm:$0xff]   ;;  %v11755_v46 = vld [vmem:[%s17746_s1 + $0x344] ss:$8 sps:$4 sm:$0xff]  }
  0x99   :  { %8181 = vmatprep.subr.bf16.mxu0 %v11674_v47  ;;  %v11758_v47 = vld [vmem:[%s17746_s1 + $0x1344] ss:$8 sps:$4 sm:$0xff]  }
  0x9b   :  { %7494 = vmatpush1.bf16.msra.mxu1 %v11669_v48  ;;  %v11753_v48 = vld [vmem:[%s17746_s1 + $0x340] ss:$8 sps:$4 sm:$0xff]  }
  0x9c   :  { %8182 = vmatpush1.bf16.msra.mxu0 %v11672_v49  ;;  %7495 = vmatprep.subr.bf16.mxu1 %v11677_v50  ;;  %v11756_v49 = vld [vmem:[%s17746_s1 + $0x1340] ss:$8 sps:$4 sm:$0xff]   ;;  %v11761_v50 = vld [vmem:[%s17746_s1 + $0x354] ss:$8 sps:$4 sm:$0xff]  }
  0x9d   :  { %8183 = vmatprep.subr.bf16.mxu0 %v11680_v51  ;;  %v11764_v51 = vld [vmem:[%s17746_s1 + $0x1354] ss:$8 sps:$4 sm:$0xff]  }
  0x9f   :  { %7496 = vmatpush1.bf16.msra.mxu1 %v11675_v52  ;;  %v11759_v52 = vld [vmem:[%s17746_s1 + $0x350] ss:$8 sps:$4 sm:$0xff]  }
  0xa0   :  { %8184 = vmatpush1.bf16.msra.mxu0 %v11678_v53  ;;  %7497 = vmatprep.subr.bf16.mxu1 %v11683_v54  ;;  %v11762_v53 = vld [vmem:[%s17746_s1 + $0x1350] ss:$8 sps:$4 sm:$0xff]   ;;  %v11767_v54 = vld [vmem:[%s17746_s1 + $0x364] ss:$8 sps:$4 sm:$0xff]  }
  0xa1   :  { %8185 = vmatprep.subr.bf16.mxu0 %v11686_v55  ;;  %v11770_v55 = vld [vmem:[%s17746_s1 + $0x1364] ss:$8 sps:$4 sm:$0xff]  }
  0xa3   :  { %7498 = vmatpush1.bf16.msra.mxu1 %v11681_v56  ;;  %v11765_v56 = vld [vmem:[%s17746_s1 + $0x360] ss:$8 sps:$4 sm:$0xff]  }
  0xa4   :  { %8186 = vmatpush1.bf16.msra.mxu0 %v11684_v57  ;;  %7499 = vmatprep.subr.bf16.mxu1 %v11689_v58  ;;  %v11768_v57 = vld [vmem:[%s17746_s1 + $0x1360] ss:$8 sps:$4 sm:$0xff]   ;;  %v11773_v58 = vld [vmem:[%s17746_s1 + $0x374] ss:$8 sps:$4 sm:$0xff]  }
  0xa5   :  { %8187 = vmatprep.subr.bf16.mxu0 %v11692_v59  ;;  %v11776_v59 = vld [vmem:[%s17746_s1 + $0x1374] ss:$8 sps:$4 sm:$0xff]  }
  0xa7   :  { %7500 = vmatpush1.bf16.msra.mxu1 %v11687_v60  ;;  %v11771_v60 = vld [vmem:[%s17746_s1 + $0x370] ss:$8 sps:$4 sm:$0xff]  }
  0xa8   :  { %8188 = vmatpush1.bf16.msra.mxu0 %v11690_v61  ;;  %7501 = vmatprep.subr.bf16.mxu1 %v11695_v62  ;;  %v11774_v61 = vld [vmem:[%s17746_s1 + $0x1370] ss:$8 sps:$4 sm:$0xff]   ;;  %v11779_v62 = vld [vmem:[%s17746_s1 + $0x384] ss:$8 sps:$4 sm:$0xff]  }
  0xa9   :  { %8189 = vmatprep.subr.bf16.mxu0 %v11698_v63  ;;  %v11782_v63 = vld [vmem:[%s17746_s1 + $0x1384] ss:$8 sps:$4 sm:$0xff]  }
  0xab   :  { %7502 = vmatpush1.bf16.msra.mxu1 %v11693_v0  ;;  %v11777_v0 = vld [vmem:[%s17746_s1 + $0x380] ss:$8 sps:$4 sm:$0xff]  }
  0xac   :  { %8190 = vmatpush1.bf16.msra.mxu0 %v11696_v1  ;;  %7503 = vmatprep.subr.bf16.mxu1 %v11701_v2  ;;  %v11780_v1 = vld [vmem:[%s17746_s1 + $0x1380] ss:$8 sps:$4 sm:$0xff]   ;;  %v11785_v2 = vld [vmem:[%s17746_s1 + $0x394] ss:$8 sps:$4 sm:$0xff]  }
  0xad   :  { %8191 = vmatprep.subr.bf16.mxu0 %v11704_v3  ;;  %v11788_v3 = vld [vmem:[%s17746_s1 + $0x1394] ss:$8 sps:$4 sm:$0xff]  }
  0xaf   :  { %7504 = vmatpush1.bf16.msra.mxu1 %v11699_v4  ;;  %v11783_v4 = vld [vmem:[%s17746_s1 + $0x390] ss:$8 sps:$4 sm:$0xff]  }
  0xb0   :  { %8192 = vmatpush1.bf16.msra.mxu0 %v11702_v5  ;;  %7505 = vmatprep.subr.bf16.mxu1 %v11707_v6  ;;  %v11786_v5 = vld [vmem:[%s17746_s1 + $0x1390] ss:$8 sps:$4 sm:$0xff]   ;;  %v11791_v6 = vld [vmem:[%s17746_s1 + $0x3a4] ss:$8 sps:$4 sm:$0xff]  }
  0xb1   :  { %8193 = vmatprep.subr.bf16.mxu0 %v11710_v7  ;;  %v11794_v7 = vld [vmem:[%s17746_s1 + $0x13a4] ss:$8 sps:$4 sm:$0xff]  }
  0xb3   :  { %7506 = vmatpush1.bf16.msra.mxu1 %v11705_v8  ;;  %v11789_v8 = vld [vmem:[%s17746_s1 + $0x3a0] ss:$8 sps:$4 sm:$0xff]  }
  0xb4   :  { %8194 = vmatpush1.bf16.msra.mxu0 %v11708_v9  ;;  %7507 = vmatprep.subr.bf16.mxu1 %v11713_v10  ;;  %v11792_v9 = vld [vmem:[%s17746_s1 + $0x13a0] ss:$8 sps:$4 sm:$0xff]   ;;  %v11797_v10 = vld [vmem:[%s17746_s1 + $0x3b4] ss:$8 sps:$4 sm:$0xff]  }
  0xb5   :  { %8195 = vmatprep.subr.bf16.mxu0 %v11716_v11  ;;  %v11800_v11 = vld [vmem:[%s17746_s1 + $0x13b4] ss:$8 sps:$4 sm:$0xff]  }
  0xb7   :  { %7508 = vmatpush1.bf16.msra.mxu1 %v11711_v12  ;;  %v11795_v12 = vld [vmem:[%s17746_s1 + $0x3b0] ss:$8 sps:$4 sm:$0xff]  }
  0xb8   :  { %8196 = vmatpush1.bf16.msra.mxu0 %v11714_v13  ;;  %7509 = vmatprep.subr.bf16.mxu1 %v11719_v14  ;;  %v11798_v13 = vld [vmem:[%s17746_s1 + $0x13b0] ss:$8 sps:$4 sm:$0xff]   ;;  %v11803_v14 = vld [vmem:[%s17746_s1 + $0x3c4] ss:$8 sps:$4 sm:$0xff]  }
  0xb9   :  { %8197 = vmatprep.subr.bf16.mxu0 %v11722_v15  ;;  %v11806_v15 = vld [vmem:[%s17746_s1 + $0x13c4] ss:$8 sps:$4 sm:$0xff]  }
  0xbb   :  { %7510 = vmatpush1.bf16.msra.mxu1 %v11717_v16  ;;  %v11801_v16 = vld [vmem:[%s17746_s1 + $0x3c0] ss:$8 sps:$4 sm:$0xff]  }
  0xbc   :  { %8198 = vmatpush1.bf16.msra.mxu0 %v11720_v17  ;;  %7511 = vmatprep.subr.bf16.mxu1 %v11725_v18  ;;  %v11804_v17 = vld [vmem:[%s17746_s1 + $0x13c0] ss:$8 sps:$4 sm:$0xff]   ;;  %v11809_v18 = vld [vmem:[%s17746_s1 + $0x3d4] ss:$8 sps:$4 sm:$0xff]  }
  0xbd   :  { %8199 = vmatprep.subr.bf16.mxu0 %v11728_v19  ;;  %v11812_v19 = vld [vmem:[%s17746_s1 + $0x13d4] ss:$8 sps:$4 sm:$0xff]  }
  0xbf   :  { %7512 = vmatpush1.bf16.msra.mxu1 %v11723_v20  ;;  %v11807_v20 = vld [vmem:[%s17746_s1 + $0x3d0] ss:$8 sps:$4 sm:$0xff]  }
  0xc0   :  { %8200 = vmatpush1.bf16.msra.mxu0 %v11726_v21  ;;  %7524 = vmatprep.subr.bf16.mxu1 %v11731_v22  ;;  %v11810_v21 = vld [vmem:[%s17746_s1 + $0x13d0] ss:$8 sps:$4 sm:$0xff]   ;;  %v11815_v22 = vld [vmem:[%s17746_s1 + $0x3e4] ss:$8 sps:$4 sm:$0xff]  }
  0xc1   :  { %8212 = vmatprep.subr.bf16.mxu0 %v11734_v23  ;;  %v11818_v23 = vld [vmem:[%s17746_s1 + $0x13e4] ss:$8 sps:$4 sm:$0xff]  }
  0xc2   :  { %7514 = vmatmul.mubr.bf16.vlgmr.msra.gmra.mrb[0].mxu1 %v9942_v32  ;;  %v11821_v32 = vld [vmem:[%s17746_s1 + $0x3f4] ss:$8 sps:$4 sm:$0xff]  }
  0xc3   :  { %8202 = vmatmul.mubr.bf16.vlgmr.msra.gmra.mrb[0].mxu0 %v9974_v33  ;;  %7525 = vmatpush1.bf16.msra.mxu1 %v11729_v26  ;;  %v11813_v26 = vld [vmem:[%s17746_s1 + $0x3e0] ss:$8 sps:$4 sm:$0xff]   ;;  %v11824_v33 = vld [vmem:[%s17746_s1 + $0x13f4] ss:$8 sps:$4 sm:$0xff]  }
  0xc4   :  { %8213 = vmatpush1.bf16.msra.mxu0 %v11732_v27  ;;  %7526 = vmatprep.subr.bf16.mxu1 %v11737_v36  ;;  %v11816_v27 = vld [vmem:[%s17746_s1 + $0x13e0] ss:$8 sps:$4 sm:$0xff]   ;;  %v11819_v36 = vld [vmem:[%s17746_s1 + $0x3f0] ss:$8 sps:$4 sm:$0xff]  }
  0xc5   :  { %8214 = vmatprep.subr.bf16.mxu0 %v11740_v24  ;;  %7556 = vmatprep.mubr.bf16.mxu1 %v9945_v25  ;;  %v11822_v24 = vld [vmem:[%s17746_s1 + $0x13f0] ss:$8 sps:$4 sm:$0xff]   ;;  %v11827_v25 = vld [vmem:[%s17746_s1 + $0x404] ss:$8 sps:$4 sm:$0xff]  }
  0xc6   :  { %8244 = vmatprep.mubr.bf16.mxu0 %v9977_v29  ;;  %v11830_v29 = vld [vmem:[%s17746_s1 + $0x1404] ss:$8 sps:$4 sm:$0xff]  }
  0xc7   :  { %7527 = vmatpush1.bf16.msra.mxu1 %v11735_v30  ;;  %v11825_v30 = vld [vmem:[%s17746_s1 + $0x400] ss:$8 sps:$4 sm:$0xff]  }
  0xc8   :  { %8215 = vmatpush1.bf16.msra.mxu0 %v11738_v37  ;;  %7528 = vmatprep.subr.bf16.mxu1 %v11743_v38  ;;  %v11828_v37 = vld [vmem:[%s17746_s1 + $0x1400] ss:$8 sps:$4 sm:$0xff]  }
  0xc9   :  { %8216 = vmatprep.subr.bf16.mxu0 %v11746_v39  ;;  %v14296_v38 = vld [vmem:[%s17747_s0 + $0x20] sm:$0xff] }
  0xca   :  { %v14301_v39 = vld [vmem:[%s17747_s0 + $0x140] sm:$0xff] }
  0xcb   :  { %7529 = vmatpush1.bf16.msra.mxu1 %v11741_v40  ;;  %v9944_v40 = vcombine.low %v14076_v28, %v14081_v31  ;;  %v11836_v28 = vld [vmem:[%s17746_s1 + $0x1414] ss:$8 sps:$4 sm:$0xff]   ;;  %v9947_v31 = vcombine.high %v14296_v38, %v14301_v39 }
  0xcc   :  { %8217 = vmatpush1.bf16.msra.mxu0 %v11744_v41  ;;  %7530 = vmatprep.subr.bf16.mxu1 %v11749_v42  ;;  %v9976_v41 = vcombine.low %v14090_v34, %v14095_v35  ;;  %v14310_v42 = vld [vmem:[%s17747_s0 + $0xa0] sm:$0xff]  ;;  %v11831_v35 = vld [vmem:[%s17746_s1 + $0x410] ss:$8 sps:$4 sm:$0xff]  }
  0xcd   :  { %8218 = vmatprep.subr.bf16.mxu0 %v11752_v43  ;;  %v14315_v43 = vld [vmem:[%s17747_s0 + $0x1c0] sm:$0xff] }
  0xce   :  { %v9979_v34 = vcombine.high %v14310_v42, %v14315_v43 }
  0xcf   :  { %7531 = vmatpush1.bf16.msra.mxu1 %v11747_v44  ;;  %v11833_v44 = vld [vmem:[%s17746_s1 + $0x414] ss:$8 sps:$4 sm:$0xff]  }
  0xd0   :  { %8219 = vmatpush1.bf16.msra.mxu0 %v11750_v45  ;;  %7532 = vmatprep.subr.bf16.mxu1 %v11755_v46  ;;  %v11834_v45 = vld [vmem:[%s17746_s1 + $0x1410] ss:$8 sps:$4 sm:$0xff]   ;;  %v11839_v46 = vld [vmem:[%s17746_s1 + $0x424] ss:$8 sps:$4 sm:$0xff]  }
  0xd1   :  { %8220 = vmatprep.subr.bf16.mxu0 %v11758_v47  ;;  %v11842_v47 = vld [vmem:[%s17746_s1 + $0x1424] ss:$8 sps:$4 sm:$0xff]  }
  0xd3   :  { %7533 = vmatpush1.bf16.msra.mxu1 %v11753_v48  ;;  %v11837_v48 = vld [vmem:[%s17746_s1 + $0x420] ss:$8 sps:$4 sm:$0xff]  }
  0xd4   :  { %8221 = vmatpush1.bf16.msra.mxu0 %v11756_v49  ;;  %7534 = vmatprep.subr.bf16.mxu1 %v11761_v50  ;;  %v11840_v49 = vld [vmem:[%s17746_s1 + $0x1420] ss:$8 sps:$4 sm:$0xff]   ;;  %v11845_v50 = vld [vmem:[%s17746_s1 + $0x434] ss:$8 sps:$4 sm:$0xff]  }
  0xd5   :  { %8222 = vmatprep.subr.bf16.mxu0 %v11764_v51  ;;  %v11848_v51 = vld [vmem:[%s17746_s1 + $0x1434] ss:$8 sps:$4 sm:$0xff]  }
  0xd7   :  { %7535 = vmatpush1.bf16.msra.mxu1 %v11759_v52  ;;  %v11843_v52 = vld [vmem:[%s17746_s1 + $0x430] ss:$8 sps:$4 sm:$0xff]  }
  0xd8   :  { %8223 = vmatpush1.bf16.msra.mxu0 %v11762_v53  ;;  %7536 = vmatprep.subr.bf16.mxu1 %v11767_v54  ;;  %v11846_v53 = vld [vmem:[%s17746_s1 + $0x1430] ss:$8 sps:$4 sm:$0xff]   ;;  %v11851_v54 = vld [vmem:[%s17746_s1 + $0x444] ss:$8 sps:$4 sm:$0xff]  }
  0xd9   :  { %8224 = vmatprep.subr.bf16.mxu0 %v11770_v55  ;;  %v11854_v55 = vld [vmem:[%s17746_s1 + $0x1444] ss:$8 sps:$4 sm:$0xff]  }
  0xdb   :  { %7537 = vmatpush1.bf16.msra.mxu1 %v11765_v56  ;;  %v11849_v56 = vld [vmem:[%s17746_s1 + $0x440] ss:$8 sps:$4 sm:$0xff]  }
  0xdc   :  { %8225 = vmatpush1.bf16.msra.mxu0 %v11768_v57  ;;  %7538 = vmatprep.subr.bf16.mxu1 %v11773_v58  ;;  %v11852_v57 = vld [vmem:[%s17746_s1 + $0x1440] ss:$8 sps:$4 sm:$0xff]   ;;  %v11857_v58 = vld [vmem:[%s17746_s1 + $0x454] ss:$8 sps:$4 sm:$0xff]  }
  0xdd   :  { %8226 = vmatprep.subr.bf16.mxu0 %v11776_v59  ;;  %v11860_v59 = vld [vmem:[%s17746_s1 + $0x1454] ss:$8 sps:$4 sm:$0xff]  }
  0xdf   :  { %7539 = vmatpush1.bf16.msra.mxu1 %v11771_v60  ;;  %v11855_v60 = vld [vmem:[%s17746_s1 + $0x450] ss:$8 sps:$4 sm:$0xff]  }
  0xe0   :  { %8227 = vmatpush1.bf16.msra.mxu0 %v11774_v61  ;;  %7540 = vmatprep.subr.bf16.mxu1 %v11779_v62  ;;  %v11858_v61 = vld [vmem:[%s17746_s1 + $0x1450] ss:$8 sps:$4 sm:$0xff]   ;;  %v11863_v62 = vld [vmem:[%s17746_s1 + $0x464] ss:$8 sps:$4 sm:$0xff]  }
  0xe1   :  { %8228 = vmatprep.subr.bf16.mxu0 %v11782_v63  ;;  %v11866_v63 = vld [vmem:[%s17746_s1 + $0x1464] ss:$8 sps:$4 sm:$0xff]  }
  0xe3   :  { %7541 = vmatpush1.bf16.msra.mxu1 %v11777_v0  ;;  %v11861_v0 = vld [vmem:[%s17746_s1 + $0x460] ss:$8 sps:$4 sm:$0xff]  }
  0xe4   :  { %8229 = vmatpush1.bf16.msra.mxu0 %v11780_v1  ;;  %7542 = vmatprep.subr.bf16.mxu1 %v11785_v2  ;;  %v11864_v1 = vld [vmem:[%s17746_s1 + $0x1460] ss:$8 sps:$4 sm:$0xff]   ;;  %v11869_v2 = vld [vmem:[%s17746_s1 + $0x474] ss:$8 sps:$4 sm:$0xff]  }
  0xe5   :  { %8230 = vmatprep.subr.bf16.mxu0 %v11788_v3  ;;  %v11872_v3 = vld [vmem:[%s17746_s1 + $0x1474] ss:$8 sps:$4 sm:$0xff]  }
  0xe7   :  { %7543 = vmatpush1.bf16.msra.mxu1 %v11783_v4  ;;  %v11867_v4 = vld [vmem:[%s17746_s1 + $0x470] ss:$8 sps:$4 sm:$0xff]  }
  0xe8   :  { %8231 = vmatpush1.bf16.msra.mxu0 %v11786_v5  ;;  %7544 = vmatprep.subr.bf16.mxu1 %v11791_v6  ;;  %v11870_v5 = vld [vmem:[%s17746_s1 + $0x1470] ss:$8 sps:$4 sm:$0xff]   ;;  %v11875_v6 = vld [vmem:[%s17746_s1 + $0x484] ss:$8 sps:$4 sm:$0xff]  }
  0xe9   :  { %8232 = vmatprep.subr.bf16.mxu0 %v11794_v7  ;;  %v11878_v7 = vld [vmem:[%s17746_s1 + $0x1484] ss:$8 sps:$4 sm:$0xff]  }
  0xeb   :  { %7545 = vmatpush1.bf16.msra.mxu1 %v11789_v8  ;;  %v11873_v8 = vld [vmem:[%s17746_s1 + $0x480] ss:$8 sps:$4 sm:$0xff]  }
  0xec   :  { %8233 = vmatpush1.bf16.msra.mxu0 %v11792_v9  ;;  %7546 = vmatprep.subr.bf16.mxu1 %v11797_v10  ;;  %v11876_v9 = vld [vmem:[%s17746_s1 + $0x1480] ss:$8 sps:$4 sm:$0xff]   ;;  %v11881_v10 = vld [vmem:[%s17746_s1 + $0x494] ss:$8 sps:$4 sm:$0xff]  }
  0xed   :  { %8234 = vmatprep.subr.bf16.mxu0 %v11800_v11  ;;  %v11884_v11 = vld [vmem:[%s17746_s1 + $0x1494] ss:$8 sps:$4 sm:$0xff]  }
  0xef   :  { %7547 = vmatpush1.bf16.msra.mxu1 %v11795_v12  ;;  %v11879_v12 = vld [vmem:[%s17746_s1 + $0x490] ss:$8 sps:$4 sm:$0xff]  }
  0xf0   :  { %8235 = vmatpush1.bf16.msra.mxu0 %v11798_v13  ;;  %7548 = vmatprep.subr.bf16.mxu1 %v11803_v14  ;;  %v11882_v13 = vld [vmem:[%s17746_s1 + $0x1490] ss:$8 sps:$4 sm:$0xff]   ;;  %v11887_v14 = vld [vmem:[%s17746_s1 + $0x4a4] ss:$8 sps:$4 sm:$0xff]  }
  0xf1   :  { %8236 = vmatprep.subr.bf16.mxu0 %v11806_v15  ;;  %v11890_v15 = vld [vmem:[%s17746_s1 + $0x14a4] ss:$8 sps:$4 sm:$0xff]  }
  0xf3   :  { %7549 = vmatpush1.bf16.msra.mxu1 %v11801_v16  ;;  %v11885_v16 = vld [vmem:[%s17746_s1 + $0x4a0] ss:$8 sps:$4 sm:$0xff]  }
  0xf4   :  { %8237 = vmatpush1.bf16.msra.mxu0 %v11804_v17  ;;  %7550 = vmatprep.subr.bf16.mxu1 %v11809_v18  ;;  %v11888_v17 = vld [vmem:[%s17746_s1 + $0x14a0] ss:$8 sps:$4 sm:$0xff]   ;;  %v11893_v18 = vld [vmem:[%s17746_s1 + $0x4b4] ss:$8 sps:$4 sm:$0xff]  }
  0xf5   :  { %8238 = vmatprep.subr.bf16.mxu0 %v11812_v19  ;;  %v11896_v19 = vld [vmem:[%s17746_s1 + $0x14b4] ss:$8 sps:$4 sm:$0xff]  }
  0xf7   :  { %7551 = vmatpush1.bf16.msra.mxu1 %v11807_v20  ;;  %v11891_v20 = vld [vmem:[%s17746_s1 + $0x4b0] ss:$8 sps:$4 sm:$0xff]  }
  0xf8   :  { %8239 = vmatpush1.bf16.msra.mxu0 %v11810_v21  ;;  %7552 = vmatprep.subr.bf16.mxu1 %v11815_v22  ;;  %v11894_v21 = vld [vmem:[%s17746_s1 + $0x14b0] ss:$8 sps:$4 sm:$0xff]   ;;  %v11899_v22 = vld [vmem:[%s17746_s1 + $0x4c4] ss:$8 sps:$4 sm:$0xff]  }
  0xf9   :  { %8240 = vmatprep.subr.bf16.mxu0 %v11818_v23  ;;  %v11902_v23 = vld [vmem:[%s17746_s1 + $0x14c4] ss:$8 sps:$4 sm:$0xff]  }
  0xfb   :  { %7553 = vmatpush1.bf16.msra.mxu1 %v11813_v26  ;;  %v11897_v26 = vld [vmem:[%s17746_s1 + $0x4c0] ss:$8 sps:$4 sm:$0xff]  }
  0xfc   :  { %8241 = vmatpush1.bf16.msra.mxu0 %v11816_v27  ;;  %7554 = vmatprep.subr.bf16.mxu1 %v11821_v32  ;;  %v11900_v27 = vld [vmem:[%s17746_s1 + $0x14c0] ss:$8 sps:$4 sm:$0xff]   ;;  %v11905_v32 = vld [vmem:[%s17746_s1 + $0x4d4] ss:$8 sps:$4 sm:$0xff]  }
  0xfd   :  { %8242 = vmatprep.subr.bf16.mxu0 %v11824_v33  ;;  %v11908_v33 = vld [vmem:[%s17746_s1 + $0x14d4] ss:$8 sps:$4 sm:$0xff]  }
  0xff   :  { %7555 = vmatpush1.bf16.msra.mxu1 %v11819_v36  ;;  %v11903_v36 = vld [vmem:[%s17746_s1 + $0x4d0] ss:$8 sps:$4 sm:$0xff]  }
 0x100   :  { %8243 = vmatpush1.bf16.msra.mxu0 %v11822_v24  ;;  %7567 = vmatprep.subr.bf16.mxu1 %v11827_v25  ;;  %v11906_v24 = vld [vmem:[%s17746_s1 + $0x14d0] ss:$8 sps:$4 sm:$0xff]   ;;  %v11911_v25 = vld [vmem:[%s17746_s1 + $0x4e4] ss:$8 sps:$4 sm:$0xff]  }
 0x101   :  { %8255 = vmatprep.subr.bf16.mxu0 %v11830_v29  ;;  %v11914_v29 = vld [vmem:[%s17746_s1 + $0x14e4] ss:$8 sps:$4 sm:$0xff]  }
 0x102   :  { %7557 = vmatmul.mubr.bf16.vlgmr.msra.gmra.mrb[0].mxu1 %v9944_v40  ;;  %v11917_v40 = vld [vmem:[%s17746_s1 + $0x4f4] ss:$8 sps:$4 sm:$0xff]  }
 0x103   :  { %8245 = vmatmul.mubr.bf16.vlgmr.msra.gmra.mrb[0].mxu0 %v9976_v41  ;;  %7568 = vmatpush1.bf16.msra.mxu1 %v11825_v30  ;;  %v11909_v30 = vld [vmem:[%s17746_s1 + $0x4e0] ss:$8 sps:$4 sm:$0xff]   ;;  %v11920_v41 = vld [vmem:[%s17746_s1 + $0x14f4] ss:$8 sps:$4 sm:$0xff]  }
 0x104   :  { %8256 = vmatpush1.bf16.msra.mxu0 %v11828_v37  ;;  %7569 = vmatprep.subr.bf16.mxu1 %v11833_v44  ;;  %v11912_v37 = vld [vmem:[%s17746_s1 + $0x14e0] ss:$8 sps:$4 sm:$0xff]   ;;  %v11915_v44 = vld [vmem:[%s17746_s1 + $0x4f0] ss:$8 sps:$4 sm:$0xff]  }
 0x105   :  { %8257 = vmatprep.subr.bf16.mxu0 %v11836_v28  ;;  %7599 = vmatprep.mubr.bf16.mxu1 %v9947_v31  ;;  %v11918_v28 = vld [vmem:[%s17746_s1 + $0x14f0] ss:$8 sps:$4 sm:$0xff]   ;;  %v11923_v31 = vld [vmem:[%s17746_s1 + $0x504] ss:$8 sps:$4 sm:$0xff]  }
 0x106   :  { %8287 = vmatprep.mubr.bf16.mxu0 %v9979_v34  ;;  %v11926_v34 = vld [vmem:[%s17746_s1 + $0x1504] ss:$8 sps:$4 sm:$0xff]  }
 0x107   :  { %7570 = vmatpush1.bf16.msra.mxu1 %v11831_v35  ;;  %v14510_v35 = vld [vmem:[%s17747_s0 + $0x28] sm:$0xff] }
 0x108   :  { %8258 = vmatpush1.bf16.msra.mxu0 %v11834_v45  ;;  %7571 = vmatprep.subr.bf16.mxu1 %v11839_v46  ;;  %v14515_v45 = vld [vmem:[%s17747_s0 + $0x148] sm:$0xff] }
 0x109   :  { %8259 = vmatprep.subr.bf16.mxu0 %v11842_v47  ;;  %v14520_v46 = vld [vmem:[%s17747_s0 + $0xa8] sm:$0xff] }
 0x10a   :  { %v14525_v47 = vld [vmem:[%s17747_s0 + $0x1c8] sm:$0xff] }
 0x10b   :  { %7572 = vmatpush1.bf16.msra.mxu1 %v11837_v48  ;;  %v9946_v48 = vcombine.low %v14296_v38, %v14301_v39  ;;  %v11932_v38 = vld [vmem:[%s17746_s1 + $0x1514] ss:$8 sps:$4 sm:$0xff]   ;;  %v9949_v39 = vcombine.high %v14510_v35, %v14515_v45 }
 0x10c   :  { %8260 = vmatpush1.bf16.msra.mxu0 %v11840_v49  ;;  %7573 = vmatprep.subr.bf16.mxu1 %v11845_v50  ;;  %v9978_v49 = vcombine.low %v14310_v42, %v14315_v43  ;;  %v11921_v50 = vld [vmem:[%s17746_s1 + $0x500] ss:$8 sps:$4 sm:$0xff]   ;;  %v9981_v42 = vcombine.high %v14520_v46, %v14525_v47  ;;  %v11927_v43 = vld [vmem:[%s17746_s1 + $0x510] ss:$8 sps:$4 sm:$0xff]  }
 0x10d   :  { %8261 = vmatprep.subr.bf16.mxu0 %v11848_v51  ;;  %v11924_v51 = vld [vmem:[%s17746_s1 + $0x1500] ss:$8 sps:$4 sm:$0xff]  }
 0x10f   :  { %7574 = vmatpush1.bf16.msra.mxu1 %v11843_v52  ;;  %v11929_v52 = vld [vmem:[%s17746_s1 + $0x514] ss:$8 sps:$4 sm:$0xff]  }
 0x110   :  { %8262 = vmatpush1.bf16.msra.mxu0 %v11846_v53  ;;  %7575 = vmatprep.subr.bf16.mxu1 %v11851_v54  ;;  %v11930_v53 = vld [vmem:[%s17746_s1 + $0x1510] ss:$8 sps:$4 sm:$0xff]   ;;  %v11935_v54 = vld [vmem:[%s17746_s1 + $0x524] ss:$8 sps:$4 sm:$0xff]  }
 0x111   :  { %8263 = vmatprep.subr.bf16.mxu0 %v11854_v55  ;;  %v11938_v55 = vld [vmem:[%s17746_s1 + $0x1524] ss:$8 sps:$4 sm:$0xff]  }
 0x113   :  { %7576 = vmatpush1.bf16.msra.mxu1 %v11849_v56  ;;  %v11933_v56 = vld [vmem:[%s17746_s1 + $0x520] ss:$8 sps:$4 sm:$0xff]  }
 0x114   :  { %8264 = vmatpush1.bf16.msra.mxu0 %v11852_v57  ;;  %7577 = vmatprep.subr.bf16.mxu1 %v11857_v58  ;;  %v11936_v57 = vld [vmem:[%s17746_s1 + $0x1520] ss:$8 sps:$4 sm:$0xff]   ;;  %v11941_v58 = vld [vmem:[%s17746_s1 + $0x534] ss:$8 sps:$4 sm:$0xff]  }
 0x115   :  { %8265 = vmatprep.subr.bf16.mxu0 %v11860_v59  ;;  %v11944_v59 = vld [vmem:[%s17746_s1 + $0x1534] ss:$8 sps:$4 sm:$0xff]  }
 0x117   :  { %7578 = vmatpush1.bf16.msra.mxu1 %v11855_v60  ;;  %v11939_v60 = vld [vmem:[%s17746_s1 + $0x530] ss:$8 sps:$4 sm:$0xff]  }
 0x118   :  { %8266 = vmatpush1.bf16.msra.mxu0 %v11858_v61  ;;  %7579 = vmatprep.subr.bf16.mxu1 %v11863_v62  ;;  %v11942_v61 = vld [vmem:[%s17746_s1 + $0x1530] ss:$8 sps:$4 sm:$0xff]   ;;  %v11947_v62 = vld [vmem:[%s17746_s1 + $0x544] ss:$8 sps:$4 sm:$0xff]  }
 0x119   :  { %8267 = vmatprep.subr.bf16.mxu0 %v11866_v63  ;;  %v11950_v63 = vld [vmem:[%s17746_s1 + $0x1544] ss:$8 sps:$4 sm:$0xff]  }
 0x11b   :  { %7580 = vmatpush1.bf16.msra.mxu1 %v11861_v0  ;;  %v11945_v0 = vld [vmem:[%s17746_s1 + $0x540] ss:$8 sps:$4 sm:$0xff]  }
 0x11c   :  { %8268 = vmatpush1.bf16.msra.mxu0 %v11864_v1  ;;  %7581 = vmatprep.subr.bf16.mxu1 %v11869_v2  ;;  %v11948_v1 = vld [vmem:[%s17746_s1 + $0x1540] ss:$8 sps:$4 sm:$0xff]   ;;  %v11953_v2 = vld [vmem:[%s17746_s1 + $0x554] ss:$8 sps:$4 sm:$0xff]  }
 0x11d   :  { %8269 = vmatprep.subr.bf16.mxu0 %v11872_v3  ;;  %v11956_v3 = vld [vmem:[%s17746_s1 + $0x1554] ss:$8 sps:$4 sm:$0xff]  }
 0x11f   :  { %7582 = vmatpush1.bf16.msra.mxu1 %v11867_v4  ;;  %v11951_v4 = vld [vmem:[%s17746_s1 + $0x550] ss:$8 sps:$4 sm:$0xff]  }
 0x120   :  { %8270 = vmatpush1.bf16.msra.mxu0 %v11870_v5  ;;  %7583 = vmatprep.subr.bf16.mxu1 %v11875_v6  ;;  %v11954_v5 = vld [vmem:[%s17746_s1 + $0x1550] ss:$8 sps:$4 sm:$0xff]   ;;  %v11959_v6 = vld [vmem:[%s17746_s1 + $0x564] ss:$8 sps:$4 sm:$0xff]  }
 0x121   :  { %8271 = vmatprep.subr.bf16.mxu0 %v11878_v7  ;;  %v11962_v7 = vld [vmem:[%s17746_s1 + $0x1564] ss:$8 sps:$4 sm:$0xff]  }
 0x123   :  { %7584 = vmatpush1.bf16.msra.mxu1 %v11873_v8  ;;  %v11957_v8 = vld [vmem:[%s17746_s1 + $0x560] ss:$8 sps:$4 sm:$0xff]  }
 0x124   :  { %8272 = vmatpush1.bf16.msra.mxu0 %v11876_v9  ;;  %7585 = vmatprep.subr.bf16.mxu1 %v11881_v10  ;;  %v11960_v9 = vld [vmem:[%s17746_s1 + $0x1560] ss:$8 sps:$4 sm:$0xff]   ;;  %v11965_v10 = vld [vmem:[%s17746_s1 + $0x574] ss:$8 sps:$4 sm:$0xff]  }
 0x125   :  { %8273 = vmatprep.subr.bf16.mxu0 %v11884_v11  ;;  %v11968_v11 = vld [vmem:[%s17746_s1 + $0x1574] ss:$8 sps:$4 sm:$0xff]  }
 0x127   :  { %7586 = vmatpush1.bf16.msra.mxu1 %v11879_v12  ;;  %v11963_v12 = vld [vmem:[%s17746_s1 + $0x570] ss:$8 sps:$4 sm:$0xff]  }
 0x128   :  { %8274 = vmatpush1.bf16.msra.mxu0 %v11882_v13  ;;  %7587 = vmatprep.subr.bf16.mxu1 %v11887_v14  ;;  %v11966_v13 = vld [vmem:[%s17746_s1 + $0x1570] ss:$8 sps:$4 sm:$0xff]   ;;  %v11971_v14 = vld [vmem:[%s17746_s1 + $0x584] ss:$8 sps:$4 sm:$0xff]  }
 0x129   :  { %8275 = vmatprep.subr.bf16.mxu0 %v11890_v15  ;;  %v11974_v15 = vld [vmem:[%s17746_s1 + $0x1584] ss:$8 sps:$4 sm:$0xff]  }
 0x12b   :  { %7588 = vmatpush1.bf16.msra.mxu1 %v11885_v16  ;;  %v11969_v16 = vld [vmem:[%s17746_s1 + $0x580] ss:$8 sps:$4 sm:$0xff]  }
 0x12c   :  { %8276 = vmatpush1.bf16.msra.mxu0 %v11888_v17  ;;  %7589 = vmatprep.subr.bf16.mxu1 %v11893_v18  ;;  %v11972_v17 = vld [vmem:[%s17746_s1 + $0x1580] ss:$8 sps:$4 sm:$0xff]   ;;  %v11977_v18 = vld [vmem:[%s17746_s1 + $0x594] ss:$8 sps:$4 sm:$0xff]  }
 0x12d   :  { %8277 = vmatprep.subr.bf16.mxu0 %v11896_v19  ;;  %v11980_v19 = vld [vmem:[%s17746_s1 + $0x1594] ss:$8 sps:$4 sm:$0xff]  }
 0x12f   :  { %7590 = vmatpush1.bf16.msra.mxu1 %v11891_v20  ;;  %v11975_v20 = vld [vmem:[%s17746_s1 + $0x590] ss:$8 sps:$4 sm:$0xff]  }
 0x130   :  { %8278 = vmatpush1.bf16.msra.mxu0 %v11894_v21  ;;  %7591 = vmatprep.subr.bf16.mxu1 %v11899_v22  ;;  %v11978_v21 = vld [vmem:[%s17746_s1 + $0x1590] ss:$8 sps:$4 sm:$0xff]   ;;  %v11983_v22 = vld [vmem:[%s17746_s1 + $0x5a4] ss:$8 sps:$4 sm:$0xff]  }
 0x131   :  { %8279 = vmatprep.subr.bf16.mxu0 %v11902_v23  ;;  %v11986_v23 = vld [vmem:[%s17746_s1 + $0x15a4] ss:$8 sps:$4 sm:$0xff]  }
 0x133   :  { %7592 = vmatpush1.bf16.msra.mxu1 %v11897_v26  ;;  %v11981_v26 = vld [vmem:[%s17746_s1 + $0x5a0] ss:$8 sps:$4 sm:$0xff]  }
 0x134   :  { %8280 = vmatpush1.bf16.msra.mxu0 %v11900_v27  ;;  %7593 = vmatprep.subr.bf16.mxu1 %v11905_v32  ;;  %v11984_v27 = vld [vmem:[%s17746_s1 + $0x15a0] ss:$8 sps:$4 sm:$0xff]   ;;  %v11989_v32 = vld [vmem:[%s17746_s1 + $0x5b4] ss:$8 sps:$4 sm:$0xff]  }
 0x135   :  { %8281 = vmatprep.subr.bf16.mxu0 %v11908_v33  ;;  %v11992_v33 = vld [vmem:[%s17746_s1 + $0x15b4] ss:$8 sps:$4 sm:$0xff]  }
 0x137   :  { %7594 = vmatpush1.bf16.msra.mxu1 %v11903_v36  ;;  %v11987_v36 = vld [vmem:[%s17746_s1 + $0x5b0] ss:$8 sps:$4 sm:$0xff]  }
 0x138   :  { %8282 = vmatpush1.bf16.msra.mxu0 %v11906_v24  ;;  %7595 = vmatprep.subr.bf16.mxu1 %v11911_v25  ;;  %v11990_v24 = vld [vmem:[%s17746_s1 + $0x15b0] ss:$8 sps:$4 sm:$0xff]   ;;  %v11995_v25 = vld [vmem:[%s17746_s1 + $0x5c4] ss:$8 sps:$4 sm:$0xff]  }
 0x139   :  { %8283 = vmatprep.subr.bf16.mxu0 %v11914_v29  ;;  %v11998_v29 = vld [vmem:[%s17746_s1 + $0x15c4] ss:$8 sps:$4 sm:$0xff]  }
 0x13b   :  { %7596 = vmatpush1.bf16.msra.mxu1 %v11909_v30  ;;  %v11993_v30 = vld [vmem:[%s17746_s1 + $0x5c0] ss:$8 sps:$4 sm:$0xff]  }
 0x13c   :  { %8284 = vmatpush1.bf16.msra.mxu0 %v11912_v37  ;;  %7597 = vmatprep.subr.bf16.mxu1 %v11917_v40  ;;  %v11996_v37 = vld [vmem:[%s17746_s1 + $0x15c0] ss:$8 sps:$4 sm:$0xff]   ;;  %v12001_v40 = vld [vmem:[%s17746_s1 + $0x5d4] ss:$8 sps:$4 sm:$0xff]  }
 0x13d   :  { %8285 = vmatprep.subr.bf16.mxu0 %v11920_v41  ;;  %v12004_v41 = vld [vmem:[%s17746_s1 + $0x15d4] ss:$8 sps:$4 sm:$0xff]  }
 0x13f   :  { %7598 = vmatpush1.bf16.msra.mxu1 %v11915_v44  ;;  %v11999_v44 = vld [vmem:[%s17746_s1 + $0x5d0] ss:$8 sps:$4 sm:$0xff]  }
 0x140   :  { %8286 = vmatpush1.bf16.msra.mxu0 %v11918_v28  ;;  %7610 = vmatprep.subr.bf16.mxu1 %v11923_v31  ;;  %v12002_v28 = vld [vmem:[%s17746_s1 + $0x15d0] ss:$8 sps:$4 sm:$0xff]   ;;  %v12007_v31 = vld [vmem:[%s17746_s1 + $0x5e4] ss:$8 sps:$4 sm:$0xff]  }
 0x141   :  { %8298 = vmatprep.subr.bf16.mxu0 %v11926_v34  ;;  %v12010_v34 = vld [vmem:[%s17746_s1 + $0x15e4] ss:$8 sps:$4 sm:$0xff]  }
 0x142   :  { %7600 = vmatmul.mubr.bf16.vlgmr.msra.gmra.mrb[0].mxu1 %v9946_v48  ;;  %v12005_v48 = vld [vmem:[%s17746_s1 + $0x5e0] ss:$8 sps:$4 sm:$0xff]  }
 0x143   :  { %8288 = vmatmul.mubr.bf16.vlgmr.msra.gmra.mrb[0].mxu0 %v9978_v49  ;;  %7611 = vmatpush1.bf16.msra.mxu1 %v11921_v50  ;;  %v12008_v49 = vld [vmem:[%s17746_s1 + $0x15e0] ss:$8 sps:$4 sm:$0xff]   ;;  %v12013_v50 = vld [vmem:[%s17746_s1 + $0x5f4] ss:$8 sps:$4 sm:$0xff]  }
 0x144   :  { %8299 = vmatpush1.bf16.msra.mxu0 %v11924_v51  ;;  %7612 = vmatprep.subr.bf16.mxu1 %v11929_v52  ;;  %v12016_v51 = vld [vmem:[%s17746_s1 + $0x15f4] ss:$8 sps:$4 sm:$0xff]   ;;  %v12011_v52 = vld [vmem:[%s17746_s1 + $0x5f0] ss:$8 sps:$4 sm:$0xff]  }
 0x145   :  { %8300 = vmatprep.subr.bf16.mxu0 %v11932_v38  ;;  %7642 = vmatprep.mubr.bf16.mxu1 %v9949_v39  ;;  %v12014_v38 = vld [vmem:[%s17746_s1 + $0x15f0] ss:$8 sps:$4 sm:$0xff]   ;;  %v12019_v39 = vld [vmem:[%s17746_s1 + $0x604] ss:$8 sps:$4 sm:$0xff]  }
 0x146   :  { %8330 = vmatprep.mubr.bf16.mxu0 %v9981_v42  ;;  %v12022_v42 = vld [vmem:[%s17746_s1 + $0x1604] ss:$8 sps:$4 sm:$0xff]  }
 0x147   :  { %7613 = vmatpush1.bf16.msra.mxu1 %v11927_v43  ;;  %v14730_v43 = vld [vmem:[%s17747_s0 + $0x30] sm:$0xff] }
 0x148   :  { %8301 = vmatpush1.bf16.msra.mxu0 %v11930_v53  ;;  %7614 = vmatprep.subr.bf16.mxu1 %v11935_v54  ;;  %v14735_v53 = vld [vmem:[%s17747_s0 + $0x150] sm:$0xff] }
 0x149   :  { %8302 = vmatprep.subr.bf16.mxu0 %v11938_v55  ;;  %v14740_v54 = vld [vmem:[%s17747_s0 + $0xb0] sm:$0xff] }
 0x14a   :  { %v14745_v55 = vld [vmem:[%s17747_s0 + $0x1d0] sm:$0xff] }
 0x14b   :  { %7615 = vmatpush1.bf16.msra.mxu1 %v11933_v56  ;;  %v9948_v56 = vcombine.low %v14510_v35, %v14515_v45  ;;  %v12028_v35 = vld [vmem:[%s17746_s1 + $0x1614] ss:$8 sps:$4 sm:$0xff]   ;;  %v9951_v45 = vcombine.high %v14730_v43, %v14735_v53 }
 0x14c   :  { %8303 = vmatpush1.bf16.msra.mxu0 %v11936_v57  ;;  %7616 = vmatprep.subr.bf16.mxu1 %v11941_v58  ;;  %v9980_v57 = vcombine.low %v14520_v46, %v14525_v47  ;;  %v12017_v58 = vld [vmem:[%s17746_s1 + $0x600] ss:$8 sps:$4 sm:$0xff]   ;;  %v9983_v46 = vcombine.high %v14740_v54, %v14745_v55  ;;  %v12023_v47 = vld [vmem:[%s17746_s1 + $0x610] ss:$8 sps:$4 sm:$0xff]  }
 0x14d   :  { %8304 = vmatprep.subr.bf16.mxu0 %v11944_v59  ;;  %v12020_v59 = vld [vmem:[%s17746_s1 + $0x1600] ss:$8 sps:$4 sm:$0xff]  }
 0x14f   :  { %7617 = vmatpush1.bf16.msra.mxu1 %v11939_v60  ;;  %v12025_v60 = vld [vmem:[%s17746_s1 + $0x614] ss:$8 sps:$4 sm:$0xff]  }
 0x150   :  { %8305 = vmatpush1.bf16.msra.mxu0 %v11942_v61  ;;  %7618 = vmatprep.subr.bf16.mxu1 %v11947_v62  ;;  %v12026_v61 = vld [vmem:[%s17746_s1 + $0x1610] ss:$8 sps:$4 sm:$0xff]   ;;  %v12031_v62 = vld [vmem:[%s17746_s1 + $0x624] ss:$8 sps:$4 sm:$0xff]  }
 0x151   :  { %8306 = vmatprep.subr.bf16.mxu0 %v11950_v63  ;;  %v12034_v63 = vld [vmem:[%s17746_s1 + $0x1624] ss:$8 sps:$4 sm:$0xff]  }
 0x153   :  { %7619 = vmatpush1.bf16.msra.mxu1 %v11945_v0  ;;  %v12029_v0 = vld [vmem:[%s17746_s1 + $0x620] ss:$8 sps:$4 sm:$0xff]  }
 0x154   :  { %8307 = vmatpush1.bf16.msra.mxu0 %v11948_v1  ;;  %7620 = vmatprep.subr.bf16.mxu1 %v11953_v2  ;;  %v12032_v1 = vld [vmem:[%s17746_s1 + $0x1620] ss:$8 sps:$4 sm:$0xff]   ;;  %v12037_v2 = vld [vmem:[%s17746_s1 + $0x634] ss:$8 sps:$4 sm:$0xff]  }
 0x155   :  { %8308 = vmatprep.subr.bf16.mxu0 %v11956_v3  ;;  %v12040_v3 = vld [vmem:[%s17746_s1 + $0x1634] ss:$8 sps:$4 sm:$0xff]  }
 0x157   :  { %7621 = vmatpush1.bf16.msra.mxu1 %v11951_v4  ;;  %v12035_v4 = vld [vmem:[%s17746_s1 + $0x630] ss:$8 sps:$4 sm:$0xff]  }
 0x158   :  { %8309 = vmatpush1.bf16.msra.mxu0 %v11954_v5  ;;  %7622 = vmatprep.subr.bf16.mxu1 %v11959_v6  ;;  %v12038_v5 = vld [vmem:[%s17746_s1 + $0x1630] ss:$8 sps:$4 sm:$0xff]   ;;  %v12043_v6 = vld [vmem:[%s17746_s1 + $0x644] ss:$8 sps:$4 sm:$0xff]  }
 0x159   :  { %8310 = vmatprep.subr.bf16.mxu0 %v11962_v7  ;;  %v12046_v7 = vld [vmem:[%s17746_s1 + $0x1644] ss:$8 sps:$4 sm:$0xff]  }
 0x15b   :  { %7623 = vmatpush1.bf16.msra.mxu1 %v11957_v8  ;;  %v12041_v8 = vld [vmem:[%s17746_s1 + $0x640] ss:$8 sps:$4 sm:$0xff]  }
 0x15c   :  { %8311 = vmatpush1.bf16.msra.mxu0 %v11960_v9  ;;  %7624 = vmatprep.subr.bf16.mxu1 %v11965_v10  ;;  %v12044_v9 = vld [vmem:[%s17746_s1 + $0x1640] ss:$8 sps:$4 sm:$0xff]   ;;  %v12049_v10 = vld [vmem:[%s17746_s1 + $0x654] ss:$8 sps:$4 sm:$0xff]  }
 0x15d   :  { %8312 = vmatprep.subr.bf16.mxu0 %v11968_v11  ;;  %v12052_v11 = vld [vmem:[%s17746_s1 + $0x1654] ss:$8 sps:$4 sm:$0xff]  }
 0x15f   :  { %7625 = vmatpush1.bf16.msra.mxu1 %v11963_v12  ;;  %v12047_v12 = vld [vmem:[%s17746_s1 + $0x650] ss:$8 sps:$4 sm:$0xff]  }
 0x160   :  { %8313 = vmatpush1.bf16.msra.mxu0 %v11966_v13  ;;  %7626 = vmatprep.subr.bf16.mxu1 %v11971_v14  ;;  %v12050_v13 = vld [vmem:[%s17746_s1 + $0x1650] ss:$8 sps:$4 sm:$0xff]   ;;  %v12055_v14 = vld [vmem:[%s17746_s1 + $0x664] ss:$8 sps:$4 sm:$0xff]  }
 0x161   :  { %8314 = vmatprep.subr.bf16.mxu0 %v11974_v15  ;;  %v12058_v15 = vld [vmem:[%s17746_s1 + $0x1664] ss:$8 sps:$4 sm:$0xff]  }
 0x163   :  { %7627 = vmatpush1.bf16.msra.mxu1 %v11969_v16  ;;  %v12053_v16 = vld [vmem:[%s17746_s1 + $0x660] ss:$8 sps:$4 sm:$0xff]  }
 0x164   :  { %8315 = vmatpush1.bf16.msra.mxu0 %v11972_v17  ;;  %7628 = vmatprep.subr.bf16.mxu1 %v11977_v18  ;;  %v12056_v17 = vld [vmem:[%s17746_s1 + $0x1660] ss:$8 sps:$4 sm:$0xff]   ;;  %v12061_v18 = vld [vmem:[%s17746_s1 + $0x674] ss:$8 sps:$4 sm:$0xff]  }
 0x165   :  { %8316 = vmatprep.subr.bf16.mxu0 %v11980_v19  ;;  %v12064_v19 = vld [vmem:[%s17746_s1 + $0x1674] ss:$8 sps:$4 sm:$0xff]  }
 0x167   :  { %7629 = vmatpush1.bf16.msra.mxu1 %v11975_v20  ;;  %v12059_v20 = vld [vmem:[%s17746_s1 + $0x670] ss:$8 sps:$4 sm:$0xff]  }
 0x168   :  { %8317 = vmatpush1.bf16.msra.mxu0 %v11978_v21  ;;  %7630 = vmatprep.subr.bf16.mxu1 %v11983_v22  ;;  %v12062_v21 = vld [vmem:[%s17746_s1 + $0x1670] ss:$8 sps:$4 sm:$0xff]   ;;  %v12067_v22 = vld [vmem:[%s17746_s1 + $0x684] ss:$8 sps:$4 sm:$0xff]  }
 0x169   :  { %8318 = vmatprep.subr.bf16.mxu0 %v11986_v23  ;;  %v12070_v23 = vld [vmem:[%s17746_s1 + $0x1684] ss:$8 sps:$4 sm:$0xff]  }
 0x16b   :  { %7631 = vmatpush1.bf16.msra.mxu1 %v11981_v26  ;;  %v12065_v26 = vld [vmem:[%s17746_s1 + $0x680] ss:$8 sps:$4 sm:$0xff]  }
 0x16c   :  { %8319 = vmatpush1.bf16.msra.mxu0 %v11984_v27  ;;  %7632 = vmatprep.subr.bf16.mxu1 %v11989_v32  ;;  %v12068_v27 = vld [vmem:[%s17746_s1 + $0x1680] ss:$8 sps:$4 sm:$0xff]   ;;  %v12073_v32 = vld [vmem:[%s17746_s1 + $0x694] ss:$8 sps:$4 sm:$0xff]  }
 0x16d   :  { %8320 = vmatprep.subr.bf16.mxu0 %v11992_v33  ;;  %v12076_v33 = vld [vmem:[%s17746_s1 + $0x1694] ss:$8 sps:$4 sm:$0xff]  }
 0x16f   :  { %7633 = vmatpush1.bf16.msra.mxu1 %v11987_v36  ;;  %v12071_v36 = vld [vmem:[%s17746_s1 + $0x690] ss:$8 sps:$4 sm:$0xff]  }
 0x170   :  { %8321 = vmatpush1.bf16.msra.mxu0 %v11990_v24  ;;  %7634 = vmatprep.subr.bf16.mxu1 %v11995_v25  ;;  %v12074_v24 = vld [vmem:[%s17746_s1 + $0x1690] ss:$8 sps:$4 sm:$0xff]   ;;  %v12079_v25 = vld [vmem:[%s17746_s1 + $0x6a4] ss:$8 sps:$4 sm:$0xff]  }
 0x171   :  { %8322 = vmatprep.subr.bf16.mxu0 %v11998_v29  ;;  %v12082_v29 = vld [vmem:[%s17746_s1 + $0x16a4] ss:$8 sps:$4 sm:$0xff]  }
 0x173   :  { %7635 = vmatpush1.bf16.msra.mxu1 %v11993_v30  ;;  %v12077_v30 = vld [vmem:[%s17746_s1 + $0x6a0] ss:$8 sps:$4 sm:$0xff]  }
 0x174   :  { %8323 = vmatpush1.bf16.msra.mxu0 %v11996_v37  ;;  %7636 = vmatprep.subr.bf16.mxu1 %v12001_v40  ;;  %v12080_v37 = vld [vmem:[%s17746_s1 + $0x16a0] ss:$8 sps:$4 sm:$0xff]   ;;  %v12085_v40 = vld [vmem:[%s17746_s1 + $0x6b4] ss:$8 sps:$4 sm:$0xff]  }
 0x175   :  { %8324 = vmatprep.subr.bf16.mxu0 %v12004_v41  ;;  %v12088_v41 = vld [vmem:[%s17746_s1 + $0x16b4] ss:$8 sps:$4 sm:$0xff]  }
 0x177   :  { %7637 = vmatpush1.bf16.msra.mxu1 %v11999_v44  ;;  %v12083_v44 = vld [vmem:[%s17746_s1 + $0x6b0] ss:$8 sps:$4 sm:$0xff]  }
 0x178   :  { %8325 = vmatpush1.bf16.msra.mxu0 %v12002_v28  ;;  %7638 = vmatprep.subr.bf16.mxu1 %v12007_v31  ;;  %v12086_v28 = vld [vmem:[%s17746_s1 + $0x16b0] ss:$8 sps:$4 sm:$0xff]   ;;  %v12091_v31 = vld [vmem:[%s17746_s1 + $0x6c4] ss:$8 sps:$4 sm:$0xff]  }
 0x179   :  { %8326 = vmatprep.subr.bf16.mxu0 %v12010_v34  ;;  %v12094_v34 = vld [vmem:[%s17746_s1 + $0x16c4] ss:$8 sps:$4 sm:$0xff]  }
 0x17b   :  { %7639 = vmatpush1.bf16.msra.mxu1 %v12005_v48  ;;  %v12089_v48 = vld [vmem:[%s17746_s1 + $0x6c0] ss:$8 sps:$4 sm:$0xff]  }
 0x17c   :  { %8327 = vmatpush1.bf16.msra.mxu0 %v12008_v49  ;;  %7640 = vmatprep.subr.bf16.mxu1 %v12013_v50  ;;  %v12092_v49 = vld [vmem:[%s17746_s1 + $0x16c0] ss:$8 sps:$4 sm:$0xff]   ;;  %v12097_v50 = vld [vmem:[%s17746_s1 + $0x6d4] ss:$8 sps:$4 sm:$0xff]  }
 0x17d   :  { %8328 = vmatprep.subr.bf16.mxu0 %v12016_v51  ;;  %v12100_v51 = vld [vmem:[%s17746_s1 + $0x16d4] ss:$8 sps:$4 sm:$0xff]  }
 0x17f   :  { %7641 = vmatpush1.bf16.msra.mxu1 %v12011_v52  ;;  %v12095_v52 = vld [vmem:[%s17746_s1 + $0x6d0] ss:$8 sps:$4 sm:$0xff]  }
 0x180   :  { %8329 = vmatpush1.bf16.msra.mxu0 %v12014_v38  ;;  %7653 = vmatprep.subr.bf16.mxu1 %v12019_v39  ;;  %v12098_v38 = vld [vmem:[%s17746_s1 + $0x16d0] ss:$8 sps:$4 sm:$0xff]   ;;  %v12103_v39 = vld [vmem:[%s17746_s1 + $0x6e4] ss:$8 sps:$4 sm:$0xff]  }
 0x181   :  { %8341 = vmatprep.subr.bf16.mxu0 %v12022_v42  ;;  %v12106_v42 = vld [vmem:[%s17746_s1 + $0x16e4] ss:$8 sps:$4 sm:$0xff]  }
 0x182   :  { %7643 = vmatmul.mubr.bf16.vlgmr.msra.gmra.mrb[0].mxu1 %v9948_v56  ;;  %v12101_v56 = vld [vmem:[%s17746_s1 + $0x6e0] ss:$8 sps:$4 sm:$0xff]  }
 0x183   :  { %8331 = vmatmul.mubr.bf16.vlgmr.msra.gmra.mrb[0].mxu0 %v9980_v57  ;;  %7654 = vmatpush1.bf16.msra.mxu1 %v12017_v58  ;;  %v12104_v57 = vld [vmem:[%s17746_s1 + $0x16e0] ss:$8 sps:$4 sm:$0xff]   ;;  %v12109_v58 = vld [vmem:[%s17746_s1 + $0x6f4] ss:$8 sps:$4 sm:$0xff]  }
 0x184   :  { %8342 = vmatpush1.bf16.msra.mxu0 %v12020_v59  ;;  %7655 = vmatprep.subr.bf16.mxu1 %v12025_v60  ;;  %v12112_v59 = vld [vmem:[%s17746_s1 + $0x16f4] ss:$8 sps:$4 sm:$0xff]   ;;  %v12107_v60 = vld [vmem:[%s17746_s1 + $0x6f0] ss:$8 sps:$4 sm:$0xff]  }
 0x185   :  { %8343 = vmatprep.subr.bf16.mxu0 %v12028_v35  ;;  %7685 = vmatprep.mubr.bf16.mxu1 %v9951_v45  ;;  %v12110_v35 = vld [vmem:[%s17746_s1 + $0x16f0] ss:$8 sps:$4 sm:$0xff]   ;;  %v12115_v45 = vld [vmem:[%s17746_s1 + $0x704] ss:$8 sps:$4 sm:$0xff]  }
 0x186   :  { %8373 = vmatprep.mubr.bf16.mxu0 %v9983_v46  ;;  %v12118_v46 = vld [vmem:[%s17746_s1 + $0x1704] ss:$8 sps:$4 sm:$0xff]  }
 0x187   :  { %7656 = vmatpush1.bf16.msra.mxu1 %v12023_v47  ;;  %v14950_v47 = vld [vmem:[%s17747_s0 + $0x38] sm:$0xff] }
 0x188   :  { %8344 = vmatpush1.bf16.msra.mxu0 %v12026_v61  ;;  %7657 = vmatprep.subr.bf16.mxu1 %v12031_v62  ;;  %v14955_v61 = vld [vmem:[%s17747_s0 + $0x158] sm:$0xff] }
 0x189   :  { %8345 = vmatprep.subr.bf16.mxu0 %v12034_v63  ;;  %v14960_v62 = vld [vmem:[%s17747_s0 + $0xb8] sm:$0xff] }
 0x18a   :  { %v14965_v63 = vld [vmem:[%s17747_s0 + $0x1d8] sm:$0xff] }
 0x18b   :  { %7658 = vmatpush1.bf16.msra.mxu1 %v12029_v0  ;;  %v9950_v0 = vcombine.low %v14730_v43, %v14735_v53  ;;  %v12124_v43 = vld [vmem:[%s17746_s1 + $0x1714] ss:$8 sps:$4 sm:$0xff]   ;;  %v9953_v53 = vcombine.high %v14950_v47, %v14955_v61 }
 0x18c   :  { %8346 = vmatpush1.bf16.msra.mxu0 %v12032_v1  ;;  %7659 = vmatprep.subr.bf16.mxu1 %v12037_v2  ;;  %v9982_v1 = vcombine.low %v14740_v54, %v14745_v55  ;;  %v12113_v2 = vld [vmem:[%s17746_s1 + $0x700] ss:$8 sps:$4 sm:$0xff]   ;;  %v9985_v54 = vcombine.high %v14960_v62, %v14965_v63  ;;  %v12119_v55 = vld [vmem:[%s17746_s1 + $0x710] ss:$8 sps:$4 sm:$0xff]  }
 0x18d   :  { %8347 = vmatprep.subr.bf16.mxu0 %v12040_v3  ;;  %v12116_v3 = vld [vmem:[%s17746_s1 + $0x1700] ss:$8 sps:$4 sm:$0xff]  }
 0x18f   :  { %7660 = vmatpush1.bf16.msra.mxu1 %v12035_v4  ;;  %v12121_v4 = vld [vmem:[%s17746_s1 + $0x714] ss:$8 sps:$4 sm:$0xff]  }
 0x190   :  { %8348 = vmatpush1.bf16.msra.mxu0 %v12038_v5  ;;  %7661 = vmatprep.subr.bf16.mxu1 %v12043_v6  ;;  %v12122_v5 = vld [vmem:[%s17746_s1 + $0x1710] ss:$8 sps:$4 sm:$0xff]   ;;  %v12127_v6 = vld [vmem:[%s17746_s1 + $0x724] ss:$8 sps:$4 sm:$0xff]  }
 0x191   :  { %8349 = vmatprep.subr.bf16.mxu0 %v12046_v7  ;;  %v12130_v7 = vld [vmem:[%s17746_s1 + $0x1724] ss:$8 sps:$4 sm:$0xff]  }
 0x193   :  { %7662 = vmatpush1.bf16.msra.mxu1 %v12041_v8  ;;  %v12125_v8 = vld [vmem:[%s17746_s1 + $0x720] ss:$8 sps:$4 sm:$0xff]  }
 0x194   :  { %8350 = vmatpush1.bf16.msra.mxu0 %v12044_v9  ;;  %7663 = vmatprep.subr.bf16.mxu1 %v12049_v10  ;;  %v12128_v9 = vld [vmem:[%s17746_s1 + $0x1720] ss:$8 sps:$4 sm:$0xff]   ;;  %v12133_v10 = vld [vmem:[%s17746_s1 + $0x734] ss:$8 sps:$4 sm:$0xff]  }
 0x195   :  { %8351 = vmatprep.subr.bf16.mxu0 %v12052_v11  ;;  %v12136_v11 = vld [vmem:[%s17746_s1 + $0x1734] ss:$8 sps:$4 sm:$0xff]  }
 0x197   :  { %7664 = vmatpush1.bf16.msra.mxu1 %v12047_v12  ;;  %v12131_v12 = vld [vmem:[%s17746_s1 + $0x730] ss:$8 sps:$4 sm:$0xff]  }
 0x198   :  { %8352 = vmatpush1.bf16.msra.mxu0 %v12050_v13  ;;  %7665 = vmatprep.subr.bf16.mxu1 %v12055_v14  ;;  %v12134_v13 = vld [vmem:[%s17746_s1 + $0x1730] ss:$8 sps:$4 sm:$0xff]   ;;  %v12139_v14 = vld [vmem:[%s17746_s1 + $0x744] ss:$8 sps:$4 sm:$0xff]  }
 0x199   :  { %8353 = vmatprep.subr.bf16.mxu0 %v12058_v15  ;;  %v12142_v15 = vld [vmem:[%s17746_s1 + $0x1744] ss:$8 sps:$4 sm:$0xff]  }
 0x19b   :  { %7666 = vmatpush1.bf16.msra.mxu1 %v12053_v16  ;;  %v12137_v16 = vld [vmem:[%s17746_s1 + $0x740] ss:$8 sps:$4 sm:$0xff]  }
 0x19c   :  { %8354 = vmatpush1.bf16.msra.mxu0 %v12056_v17  ;;  %7667 = vmatprep.subr.bf16.mxu1 %v12061_v18  ;;  %v12140_v17 = vld [vmem:[%s17746_s1 + $0x1740] ss:$8 sps:$4 sm:$0xff]   ;;  %v12145_v18 = vld [vmem:[%s17746_s1 + $0x754] ss:$8 sps:$4 sm:$0xff]  }
 0x19d   :  { %8355 = vmatprep.subr.bf16.mxu0 %v12064_v19  ;;  %v12148_v19 = vld [vmem:[%s17746_s1 + $0x1754] ss:$8 sps:$4 sm:$0xff]  }
 0x19f   :  { %7668 = vmatpush1.bf16.msra.mxu1 %v12059_v20  ;;  %v12143_v20 = vld [vmem:[%s17746_s1 + $0x750] ss:$8 sps:$4 sm:$0xff]  }
 0x1a0   :  { %8356 = vmatpush1.bf16.msra.mxu0 %v12062_v21  ;;  %7669 = vmatprep.subr.bf16.mxu1 %v12067_v22  ;;  %v12146_v21 = vld [vmem:[%s17746_s1 + $0x1750] ss:$8 sps:$4 sm:$0xff]   ;;  %v12151_v22 = vld [vmem:[%s17746_s1 + $0x764] ss:$8 sps:$4 sm:$0xff]  }
 0x1a1   :  { %8357 = vmatprep.subr.bf16.mxu0 %v12070_v23  ;;  %v12154_v23 = vld [vmem:[%s17746_s1 + $0x1764] ss:$8 sps:$4 sm:$0xff]  }
 0x1a3   :  { %7670 = vmatpush1.bf16.msra.mxu1 %v12065_v26  ;;  %v12149_v26 = vld [vmem:[%s17746_s1 + $0x760] ss:$8 sps:$4 sm:$0xff]  }
 0x1a4   :  { %8358 = vmatpush1.bf16.msra.mxu0 %v12068_v27  ;;  %7671 = vmatprep.subr.bf16.mxu1 %v12073_v32  ;;  %v12152_v27 = vld [vmem:[%s17746_s1 + $0x1760] ss:$8 sps:$4 sm:$0xff]   ;;  %v12157_v32 = vld [vmem:[%s17746_s1 + $0x774] ss:$8 sps:$4 sm:$0xff]  }
 0x1a5   :  { %8359 = vmatprep.subr.bf16.mxu0 %v12076_v33  ;;  %v12160_v33 = vld [vmem:[%s17746_s1 + $0x1774] ss:$8 sps:$4 sm:$0xff]  }
 0x1a7   :  { %7672 = vmatpush1.bf16.msra.mxu1 %v12071_v36  ;;  %v12155_v36 = vld [vmem:[%s17746_s1 + $0x770] ss:$8 sps:$4 sm:$0xff]  }
 0x1a8   :  { %8360 = vmatpush1.bf16.msra.mxu0 %v12074_v24  ;;  %7673 = vmatprep.subr.bf16.mxu1 %v12079_v25  ;;  %v12158_v24 = vld [vmem:[%s17746_s1 + $0x1770] ss:$8 sps:$4 sm:$0xff]   ;;  %v12163_v25 = vld [vmem:[%s17746_s1 + $0x784] ss:$8 sps:$4 sm:$0xff]  }
 0x1a9   :  { %8361 = vmatprep.subr.bf16.mxu0 %v12082_v29  ;;  %v12166_v29 = vld [vmem:[%s17746_s1 + $0x1784] ss:$8 sps:$4 sm:$0xff]  }
 0x1ab   :  { %7674 = vmatpush1.bf16.msra.mxu1 %v12077_v30  ;;  %v12161_v30 = vld [vmem:[%s17746_s1 + $0x780] ss:$8 sps:$4 sm:$0xff]  }
 0x1ac   :  { %8362 = vmatpush1.bf16.msra.mxu0 %v12080_v37  ;;  %7675 = vmatprep.subr.bf16.mxu1 %v12085_v40  ;;  %v12164_v37 = vld [vmem:[%s17746_s1 + $0x1780] ss:$8 sps:$4 sm:$0xff]   ;;  %v12169_v40 = vld [vmem:[%s17746_s1 + $0x794] ss:$8 sps:$4 sm:$0xff]  }
 0x1ad   :  { %8363 = vmatprep.subr.bf16.mxu0 %v12088_v41  ;;  %v12172_v41 = vld [vmem:[%s17746_s1 + $0x1794] ss:$8 sps:$4 sm:$0xff]  }
 0x1af   :  { %7676 = vmatpush1.bf16.msra.mxu1 %v12083_v44  ;;  %v12167_v44 = vld [vmem:[%s17746_s1 + $0x790] ss:$8 sps:$4 sm:$0xff]  }
 0x1b0   :  { %8364 = vmatpush1.bf16.msra.mxu0 %v12086_v28  ;;  %7677 = vmatprep.subr.bf16.mxu1 %v12091_v31  ;;  %v12170_v28 = vld [vmem:[%s17746_s1 + $0x1790] ss:$8 sps:$4 sm:$0xff]   ;;  %v12175_v31 = vld [vmem:[%s17746_s1 + $0x7a4] ss:$8 sps:$4 sm:$0xff]  }
 0x1b1   :  { %8365 = vmatprep.subr.bf16.mxu0 %v12094_v34  ;;  %v12178_v34 = vld [vmem:[%s17746_s1 + $0x17a4] ss:$8 sps:$4 sm:$0xff]  }
 0x1b3   :  { %7678 = vmatpush1.bf16.msra.mxu1 %v12089_v48  ;;  %v12173_v48 = vld [vmem:[%s17746_s1 + $0x7a0] ss:$8 sps:$4 sm:$0xff]  }
 0x1b4   :  { %8366 = vmatpush1.bf16.msra.mxu0 %v12092_v49  ;;  %7679 = vmatprep.subr.bf16.mxu1 %v12097_v50  ;;  %v12176_v49 = vld [vmem:[%s17746_s1 + $0x17a0] ss:$8 sps:$4 sm:$0xff]   ;;  %v12181_v50 = vld [vmem:[%s17746_s1 + $0x7b4] ss:$8 sps:$4 sm:$0xff]  }
 0x1b5   :  { %8367 = vmatprep.subr.bf16.mxu0 %v12100_v51  ;;  %v12184_v51 = vld [vmem:[%s17746_s1 + $0x17b4] ss:$8 sps:$4 sm:$0xff]  }
 0x1b7   :  { %7680 = vmatpush1.bf16.msra.mxu1 %v12095_v52  ;;  %v12179_v52 = vld [vmem:[%s17746_s1 + $0x7b0] ss:$8 sps:$4 sm:$0xff]  }
 0x1b8   :  { %8368 = vmatpush1.bf16.msra.mxu0 %v12098_v38  ;;  %7681 = vmatprep.subr.bf16.mxu1 %v12103_v39  ;;  %v12182_v38 = vld [vmem:[%s17746_s1 + $0x17b0] ss:$8 sps:$4 sm:$0xff]   ;;  %v12187_v39 = vld [vmem:[%s17746_s1 + $0x7c4] ss:$8 sps:$4 sm:$0xff]  }
 0x1b9   :  { %8369 = vmatprep.subr.bf16.mxu0 %v12106_v42  ;;  %v12190_v42 = vld [vmem:[%s17746_s1 + $0x17c4] ss:$8 sps:$4 sm:$0xff]  }
 0x1bb   :  { %7682 = vmatpush1.bf16.msra.mxu1 %v12101_v56  ;;  %v12185_v56 = vld [vmem:[%s17746_s1 + $0x7c0] ss:$8 sps:$4 sm:$0xff]  }
 0x1bc   :  { %8370 = vmatpush1.bf16.msra.mxu0 %v12104_v57  ;;  %7683 = vmatprep.subr.bf16.mxu1 %v12109_v58  ;;  %v12188_v57 = vld [vmem:[%s17746_s1 + $0x17c0] ss:$8 sps:$4 sm:$0xff]   ;;  %v12193_v58 = vld [vmem:[%s17746_s1 + $0x7d4] ss:$8 sps:$4 sm:$0xff]  }
 0x1bd   :  { %8371 = vmatprep.subr.bf16.mxu0 %v12112_v59  ;;  %v12196_v59 = vld [vmem:[%s17746_s1 + $0x17d4] ss:$8 sps:$4 sm:$0xff]  }
 0x1bf   :  { %7684 = vmatpush1.bf16.msra.mxu1 %v12107_v60  ;;  %v12191_v60 = vld [vmem:[%s17746_s1 + $0x7d0] ss:$8 sps:$4 sm:$0xff]  }
 0x1c0   :  { %8372 = vmatpush1.bf16.msra.mxu0 %v12110_v35  ;;  %7696 = vmatprep.subr.bf16.mxu1 %v12115_v45  ;;  %v12194_v35 = vld [vmem:[%s17746_s1 + $0x17d0] ss:$8 sps:$4 sm:$0xff]   ;;  %v12199_v45 = vld [vmem:[%s17746_s1 + $0x7e4] ss:$8 sps:$4 sm:$0xff]  }
 0x1c1   :  { %8384 = vmatprep.subr.bf16.mxu0 %v12118_v46  ;;  %v12202_v46 = vld [vmem:[%s17746_s1 + $0x17e4] ss:$8 sps:$4 sm:$0xff]  }
 0x1c2   :  { %7686 = vmatmul.mubr.bf16.vlgmr.msra.gmra.mrb[0].mxu1 %v9950_v0  ;;  %v12197_v0 = vld [vmem:[%s17746_s1 + $0x7e0] ss:$8 sps:$4 sm:$0xff]  }
 0x1c3   :  { %8374 = vmatmul.mubr.bf16.vlgmr.msra.gmra.mrb[0].mxu0 %v9982_v1  ;;  %7697 = vmatpush1.bf16.msra.mxu1 %v12113_v2  ;;  %v12200_v1 = vld [vmem:[%s17746_s1 + $0x17e0] ss:$8 sps:$4 sm:$0xff]   ;;  %v12205_v2 = vld [vmem:[%s17746_s1 + $0x7f4] ss:$8 sps:$4 sm:$0xff]  }
 0x1c4   :  { %8385 = vmatpush1.bf16.msra.mxu0 %v12116_v3  ;;  %7698 = vmatprep.subr.bf16.mxu1 %v12121_v4  ;;  %v12208_v3 = vld [vmem:[%s17746_s1 + $0x17f4] ss:$8 sps:$4 sm:$0xff]   ;;  %v12203_v4 = vld [vmem:[%s17746_s1 + $0x7f0] ss:$8 sps:$4 sm:$0xff]  }
 0x1c5   :  { %8386 = vmatprep.subr.bf16.mxu0 %v12124_v43  ;;  %7728 = vmatprep.mubr.bf16.mxu1 %v9953_v53  ;;  %v12206_v43 = vld [vmem:[%s17746_s1 + $0x17f0] ss:$8 sps:$4 sm:$0xff]   ;;  %v12211_v53 = vld [vmem:[%s17746_s1 + $0x804] ss:$8 sps:$4 sm:$0xff]  }
 0x1c6   :  { %8416 = vmatprep.mubr.bf16.mxu0 %v9985_v54  ;;  %v12214_v54 = vld [vmem:[%s17746_s1 + $0x1804] ss:$8 sps:$4 sm:$0xff]  }
 0x1c7   :  { %7699 = vmatpush1.bf16.msra.mxu1 %v12119_v55  ;;  %v15170_v55 = vld [vmem:[%s17747_s0 + $0x40] sm:$0xff] }
 0x1c8   :  { %8387 = vmatpush1.bf16.msra.mxu0 %v12122_v5  ;;  %7700 = vmatprep.subr.bf16.mxu1 %v12127_v6  ;;  %v15175_v5 = vld [vmem:[%s17747_s0 + $0x160] sm:$0xff] }
 0x1c9   :  { %8388 = vmatprep.subr.bf16.mxu0 %v12130_v7  ;;  %v15180_v6 = vld [vmem:[%s17747_s0 + $0xc0] sm:$0xff] }
 0x1ca   :  { %v15185_v7 = vld [vmem:[%s17747_s0 + $0x1e0] sm:$0xff] }
 0x1cb   :  { %7701 = vmatpush1.bf16.msra.mxu1 %v12125_v8  ;;  %v9952_v8 = vcombine.low %v14950_v47, %v14955_v61  ;;  %v12220_v47 = vld [vmem:[%s17746_s1 + $0x1814] ss:$8 sps:$4 sm:$0xff]   ;;  %v9955_v61 = vcombine.high %v15170_v55, %v15175_v5 }
 0x1cc   :  { %8389 = vmatpush1.bf16.msra.mxu0 %v12128_v9  ;;  %7702 = vmatprep.subr.bf16.mxu1 %v12133_v10  ;;  %v9984_v9 = vcombine.low %v14960_v62, %v14965_v63  ;;  %v12209_v10 = vld [vmem:[%s17746_s1 + $0x800] ss:$8 sps:$4 sm:$0xff]   ;;  %v9987_v62 = vcombine.high %v15180_v6, %v15185_v7  ;;  %v12215_v63 = vld [vmem:[%s17746_s1 + $0x810] ss:$8 sps:$4 sm:$0xff]  }
 0x1cd   :  { %8390 = vmatprep.subr.bf16.mxu0 %v12136_v11  ;;  %v12212_v11 = vld [vmem:[%s17746_s1 + $0x1800] ss:$8 sps:$4 sm:$0xff]  }
 0x1cf   :  { %7703 = vmatpush1.bf16.msra.mxu1 %v12131_v12  ;;  %v12217_v12 = vld [vmem:[%s17746_s1 + $0x814] ss:$8 sps:$4 sm:$0xff]  }
 0x1d0   :  { %8391 = vmatpush1.bf16.msra.mxu0 %v12134_v13  ;;  %7704 = vmatprep.subr.bf16.mxu1 %v12139_v14  ;;  %v12218_v13 = vld [vmem:[%s17746_s1 + $0x1810] ss:$8 sps:$4 sm:$0xff]   ;;  %v12223_v14 = vld [vmem:[%s17746_s1 + $0x824] ss:$8 sps:$4 sm:$0xff]  }
 0x1d1   :  { %8392 = vmatprep.subr.bf16.mxu0 %v12142_v15  ;;  %v12226_v15 = vld [vmem:[%s17746_s1 + $0x1824] ss:$8 sps:$4 sm:$0xff]  }
 0x1d3   :  { %7705 = vmatpush1.bf16.msra.mxu1 %v12137_v16  ;;  %v12221_v16 = vld [vmem:[%s17746_s1 + $0x820] ss:$8 sps:$4 sm:$0xff]  }
 0x1d4   :  { %8393 = vmatpush1.bf16.msra.mxu0 %v12140_v17  ;;  %7706 = vmatprep.subr.bf16.mxu1 %v12145_v18  ;;  %v12224_v17 = vld [vmem:[%s17746_s1 + $0x1820] ss:$8 sps:$4 sm:$0xff]   ;;  %v12229_v18 = vld [vmem:[%s17746_s1 + $0x834] ss:$8 sps:$4 sm:$0xff]  }
 0x1d5   :  { %8394 = vmatprep.subr.bf16.mxu0 %v12148_v19  ;;  %v12232_v19 = vld [vmem:[%s17746_s1 + $0x1834] ss:$8 sps:$4 sm:$0xff]  }
 0x1d7   :  { %7707 = vmatpush1.bf16.msra.mxu1 %v12143_v20  ;;  %v12227_v20 = vld [vmem:[%s17746_s1 + $0x830] ss:$8 sps:$4 sm:$0xff]  }
 0x1d8   :  { %8395 = vmatpush1.bf16.msra.mxu0 %v12146_v21  ;;  %7708 = vmatprep.subr.bf16.mxu1 %v12151_v22  ;;  %v12230_v21 = vld [vmem:[%s17746_s1 + $0x1830] ss:$8 sps:$4 sm:$0xff]   ;;  %v12235_v22 = vld [vmem:[%s17746_s1 + $0x844] ss:$8 sps:$4 sm:$0xff]  }
 0x1d9   :  { %8396 = vmatprep.subr.bf16.mxu0 %v12154_v23  ;;  %v12238_v23 = vld [vmem:[%s17746_s1 + $0x1844] ss:$8 sps:$4 sm:$0xff]  }
 0x1db   :  { %7709 = vmatpush1.bf16.msra.mxu1 %v12149_v26  ;;  %v12233_v26 = vld [vmem:[%s17746_s1 + $0x840] ss:$8 sps:$4 sm:$0xff]  }
 0x1dc   :  { %8397 = vmatpush1.bf16.msra.mxu0 %v12152_v27  ;;  %7710 = vmatprep.subr.bf16.mxu1 %v12157_v32  ;;  %v12236_v27 = vld [vmem:[%s17746_s1 + $0x1840] ss:$8 sps:$4 sm:$0xff]   ;;  %v12241_v32 = vld [vmem:[%s17746_s1 + $0x854] ss:$8 sps:$4 sm:$0xff]  }
 0x1dd   :  { %8398 = vmatprep.subr.bf16.mxu0 %v12160_v33  ;;  %v12244_v33 = vld [vmem:[%s17746_s1 + $0x1854] ss:$8 sps:$4 sm:$0xff]  }
 0x1df   :  { %7711 = vmatpush1.bf16.msra.mxu1 %v12155_v36  ;;  %v12239_v36 = vld [vmem:[%s17746_s1 + $0x850] ss:$8 sps:$4 sm:$0xff]  }
 0x1e0   :  { %8399 = vmatpush1.bf16.msra.mxu0 %v12158_v24  ;;  %7712 = vmatprep.subr.bf16.mxu1 %v12163_v25  ;;  %v12242_v24 = vld [vmem:[%s17746_s1 + $0x1850] ss:$8 sps:$4 sm:$0xff]   ;;  %v12247_v25 = vld [vmem:[%s17746_s1 + $0x864] ss:$8 sps:$4 sm:$0xff]  }
 0x1e1   :  { %8400 = vmatprep.subr.bf16.mxu0 %v12166_v29  ;;  %v12250_v29 = vld [vmem:[%s17746_s1 + $0x1864] ss:$8 sps:$4 sm:$0xff]  }
 0x1e3   :  { %7713 = vmatpush1.bf16.msra.mxu1 %v12161_v30  ;;  %v12245_v30 = vld [vmem:[%s17746_s1 + $0x860] ss:$8 sps:$4 sm:$0xff]  }
 0x1e4   :  { %8401 = vmatpush1.bf16.msra.mxu0 %v12164_v37  ;;  %7714 = vmatprep.subr.bf16.mxu1 %v12169_v40  ;;  %v12248_v37 = vld [vmem:[%s17746_s1 + $0x1860] ss:$8 sps:$4 sm:$0xff]   ;;  %v12253_v40 = vld [vmem:[%s17746_s1 + $0x874] ss:$8 sps:$4 sm:$0xff]  }
 0x1e5   :  { %8402 = vmatprep.subr.bf16.mxu0 %v12172_v41  ;;  %v12256_v41 = vld [vmem:[%s17746_s1 + $0x1874] ss:$8 sps:$4 sm:$0xff]  }
 0x1e7   :  { %7715 = vmatpush1.bf16.msra.mxu1 %v12167_v44  ;;  %v12251_v44 = vld [vmem:[%s17746_s1 + $0x870] ss:$8 sps:$4 sm:$0xff]  }
 0x1e8   :  { %8403 = vmatpush1.bf16.msra.mxu0 %v12170_v28  ;;  %7716 = vmatprep.subr.bf16.mxu1 %v12175_v31  ;;  %v12254_v28 = vld [vmem:[%s17746_s1 + $0x1870] ss:$8 sps:$4 sm:$0xff]   ;;  %v12259_v31 = vld [vmem:[%s17746_s1 + $0x884] ss:$8 sps:$4 sm:$0xff]  }
 0x1e9   :  { %8404 = vmatprep.subr.bf16.mxu0 %v12178_v34  ;;  %v12262_v34 = vld [vmem:[%s17746_s1 + $0x1884] ss:$8 sps:$4 sm:$0xff]  }
 0x1eb   :  { %7717 = vmatpush1.bf16.msra.mxu1 %v12173_v48  ;;  %v12257_v48 = vld [vmem:[%s17746_s1 + $0x880] ss:$8 sps:$4 sm:$0xff]  }
 0x1ec   :  { %8405 = vmatpush1.bf16.msra.mxu0 %v12176_v49  ;;  %7718 = vmatprep.subr.bf16.mxu1 %v12181_v50  ;;  %v12260_v49 = vld [vmem:[%s17746_s1 + $0x1880] ss:$8 sps:$4 sm:$0xff]   ;;  %v12265_v50 = vld [vmem:[%s17746_s1 + $0x894] ss:$8 sps:$4 sm:$0xff]  }
 0x1ed   :  { %8406 = vmatprep.subr.bf16.mxu0 %v12184_v51  ;;  %v12268_v51 = vld [vmem:[%s17746_s1 + $0x1894] ss:$8 sps:$4 sm:$0xff]  }
 0x1ef   :  { %7719 = vmatpush1.bf16.msra.mxu1 %v12179_v52  ;;  %v12263_v52 = vld [vmem:[%s17746_s1 + $0x890] ss:$8 sps:$4 sm:$0xff]  }
 0x1f0   :  { %8407 = vmatpush1.bf16.msra.mxu0 %v12182_v38  ;;  %7720 = vmatprep.subr.bf16.mxu1 %v12187_v39  ;;  %v12266_v38 = vld [vmem:[%s17746_s1 + $0x1890] ss:$8 sps:$4 sm:$0xff]   ;;  %v12271_v39 = vld [vmem:[%s17746_s1 + $0x8a4] ss:$8 sps:$4 sm:$0xff]  }
 0x1f1   :  { %8408 = vmatprep.subr.bf16.mxu0 %v12190_v42  ;;  %v12274_v42 = vld [vmem:[%s17746_s1 + $0x18a4] ss:$8 sps:$4 sm:$0xff]  }
 0x1f3   :  { %7721 = vmatpush1.bf16.msra.mxu1 %v12185_v56  ;;  %v12269_v56 = vld [vmem:[%s17746_s1 + $0x8a0] ss:$8 sps:$4 sm:$0xff]  }
 0x1f4   :  { %8409 = vmatpush1.bf16.msra.mxu0 %v12188_v57  ;;  %7722 = vmatprep.subr.bf16.mxu1 %v12193_v58  ;;  %v12272_v57 = vld [vmem:[%s17746_s1 + $0x18a0] ss:$8 sps:$4 sm:$0xff]   ;;  %v12277_v58 = vld [vmem:[%s17746_s1 + $0x8b4] ss:$8 sps:$4 sm:$0xff]  }
 0x1f5   :  { %8410 = vmatprep.subr.bf16.mxu0 %v12196_v59  ;;  %v12280_v59 = vld [vmem:[%s17746_s1 + $0x18b4] ss:$8 sps:$4 sm:$0xff]  }
 0x1f7   :  { %7723 = vmatpush1.bf16.msra.mxu1 %v12191_v60  ;;  %v12275_v60 = vld [vmem:[%s17746_s1 + $0x8b0] ss:$8 sps:$4 sm:$0xff]  }
 0x1f8   :  { %8411 = vmatpush1.bf16.msra.mxu0 %v12194_v35  ;;  %7724 = vmatprep.subr.bf16.mxu1 %v12199_v45  ;;  %v12278_v35 = vld [vmem:[%s17746_s1 + $0x18b0] ss:$8 sps:$4 sm:$0xff]   ;;  %v12283_v45 = vld [vmem:[%s17746_s1 + $0x8c4] ss:$8 sps:$4 sm:$0xff]  }
 0x1f9   :  { %8412 = vmatprep.subr.bf16.mxu0 %v12202_v46  ;;  %v12286_v46 = vld [vmem:[%s17746_s1 + $0x18c4] ss:$8 sps:$4 sm:$0xff]  }
 0x1fb   :  { %7725 = vmatpush1.bf16.msra.mxu1 %v12197_v0  ;;  %v12281_v0 = vld [vmem:[%s17746_s1 + $0x8c0] ss:$8 sps:$4 sm:$0xff]  }
 0x1fc   :  { %8413 = vmatpush1.bf16.msra.mxu0 %v12200_v1  ;;  %7726 = vmatprep.subr.bf16.mxu1 %v12205_v2  ;;  %v12284_v1 = vld [vmem:[%s17746_s1 + $0x18c0] ss:$8 sps:$4 sm:$0xff]   ;;  %v12289_v2 = vld [vmem:[%s17746_s1 + $0x8d4] ss:$8 sps:$4 sm:$0xff]  }
 0x1fd   :  { %8414 = vmatprep.subr.bf16.mxu0 %v12208_v3  ;;  %v12292_v3 = vld [vmem:[%s17746_s1 + $0x18d4] ss:$8 sps:$4 sm:$0xff]  }
 0x1ff   :  { %7727 = vmatpush1.bf16.msra.mxu1 %v12203_v4  ;;  %v12287_v4 = vld [vmem:[%s17746_s1 + $0x8d0] ss:$8 sps:$4 sm:$0xff]  }
 0x200   :  { %8415 = vmatpush1.bf16.msra.mxu0 %v12206_v43  ;;  %7739 = vmatprep.subr.bf16.mxu1 %v12211_v53  ;;  %v12290_v43 = vld [vmem:[%s17746_s1 + $0x18d0] ss:$8 sps:$4 sm:$0xff]   ;;  %v12295_v53 = vld [vmem:[%s17746_s1 + $0x8e4] ss:$8 sps:$4 sm:$0xff]  }
 0x201   :  { %8427 = vmatprep.subr.bf16.mxu0 %v12214_v54  ;;  %v12298_v54 = vld [vmem:[%s17746_s1 + $0x18e4] ss:$8 sps:$4 sm:$0xff]  }
 0x202   :  { %7729 = vmatmul.mubr.bf16.vlgmr.msra.gmra.mrb[0].mxu1 %v9952_v8  ;;  %v12293_v8 = vld [vmem:[%s17746_s1 + $0x8e0] ss:$8 sps:$4 sm:$0xff]  }
 0x203   :  { %8417 = vmatmul.mubr.bf16.vlgmr.msra.gmra.mrb[0].mxu0 %v9984_v9  ;;  %7740 = vmatpush1.bf16.msra.mxu1 %v12209_v10  ;;  %v12296_v9 = vld [vmem:[%s17746_s1 + $0x18e0] ss:$8 sps:$4 sm:$0xff]   ;;  %v12301_v10 = vld [vmem:[%s17746_s1 + $0x8f4] ss:$8 sps:$4 sm:$0xff]  }
 0x204   :  { %8428 = vmatpush1.bf16.msra.mxu0 %v12212_v11  ;;  %7741 = vmatprep.subr.bf16.mxu1 %v12217_v12  ;;  %v12304_v11 = vld [vmem:[%s17746_s1 + $0x18f4] ss:$8 sps:$4 sm:$0xff]   ;;  %v12299_v12 = vld [vmem:[%s17746_s1 + $0x8f0] ss:$8 sps:$4 sm:$0xff]  }
 0x205   :  { %8429 = vmatprep.subr.bf16.mxu0 %v12220_v47  ;;  %7771 = vmatprep.mubr.bf16.mxu1 %v9955_v61  ;;  %v12302_v47 = vld [vmem:[%s17746_s1 + $0x18f0] ss:$8 sps:$4 sm:$0xff]   ;;  %v12307_v61 = vld [vmem:[%s17746_s1 + $0x904] ss:$8 sps:$4 sm:$0xff]  }
 0x206   :  { %8459 = vmatprep.mubr.bf16.mxu0 %v9987_v62  ;;  %v12310_v62 = vld [vmem:[%s17746_s1 + $0x1904] ss:$8 sps:$4 sm:$0xff]  }
 0x207   :  { %7742 = vmatpush1.bf16.msra.mxu1 %v12215_v63  ;;  %v15390_v63 = vld [vmem:[%s17747_s0 + $0x48] sm:$0xff] }
 0x208   :  { %8430 = vmatpush1.bf16.msra.mxu0 %v12218_v13  ;;  %7743 = vmatprep.subr.bf16.mxu1 %v12223_v14  ;;  %v15395_v13 = vld [vmem:[%s17747_s0 + $0x168] sm:$0xff] }
 0x209   :  { %8431 = vmatprep.subr.bf16.mxu0 %v12226_v15  ;;  %v15400_v14 = vld [vmem:[%s17747_s0 + $0xc8] sm:$0xff] }
 0x20a   :  { %v15405_v15 = vld [vmem:[%s17747_s0 + $0x1e8] sm:$0xff] }
 0x20b   :  { %7744 = vmatpush1.bf16.msra.mxu1 %v12221_v16  ;;  %v9954_v16 = vcombine.low %v15170_v55, %v15175_v5  ;;  %v12316_v55 = vld [vmem:[%s17746_s1 + $0x1914] ss:$8 sps:$4 sm:$0xff]   ;;  %v9957_v5 = vcombine.high %v15390_v63, %v15395_v13 }
 0x20c   :  { %8432 = vmatpush1.bf16.msra.mxu0 %v12224_v17  ;;  %7745 = vmatprep.subr.bf16.mxu1 %v12229_v18  ;;  %v9986_v17 = vcombine.low %v15180_v6, %v15185_v7  ;;  %v12305_v18 = vld [vmem:[%s17746_s1 + $0x900] ss:$8 sps:$4 sm:$0xff]   ;;  %v9989_v6 = vcombine.high %v15400_v14, %v15405_v15  ;;  %v12311_v7 = vld [vmem:[%s17746_s1 + $0x910] ss:$8 sps:$4 sm:$0xff]  }
 0x20d   :  { %8433 = vmatprep.subr.bf16.mxu0 %v12232_v19  ;;  %v12308_v19 = vld [vmem:[%s17746_s1 + $0x1900] ss:$8 sps:$4 sm:$0xff]  }
 0x20f   :  { %7746 = vmatpush1.bf16.msra.mxu1 %v12227_v20  ;;  %v12313_v20 = vld [vmem:[%s17746_s1 + $0x914] ss:$8 sps:$4 sm:$0xff]  }
 0x210   :  { %8434 = vmatpush1.bf16.msra.mxu0 %v12230_v21  ;;  %7747 = vmatprep.subr.bf16.mxu1 %v12235_v22  ;;  %v12314_v21 = vld [vmem:[%s17746_s1 + $0x1910] ss:$8 sps:$4 sm:$0xff]   ;;  %v12319_v22 = vld [vmem:[%s17746_s1 + $0x924] ss:$8 sps:$4 sm:$0xff]  }
 0x211   :  { %8435 = vmatprep.subr.bf16.mxu0 %v12238_v23  ;;  %v12322_v23 = vld [vmem:[%s17746_s1 + $0x1924] ss:$8 sps:$4 sm:$0xff]  }
 0x213   :  { %7748 = vmatpush1.bf16.msra.mxu1 %v12233_v26  ;;  %v12317_v26 = vld [vmem:[%s17746_s1 + $0x920] ss:$8 sps:$4 sm:$0xff]  }
 0x214   :  { %8436 = vmatpush1.bf16.msra.mxu0 %v12236_v27  ;;  %7749 = vmatprep.subr.bf16.mxu1 %v12241_v32  ;;  %v12320_v27 = vld [vmem:[%s17746_s1 + $0x1920] ss:$8 sps:$4 sm:$0xff]   ;;  %v12325_v32 = vld [vmem:[%s17746_s1 + $0x934] ss:$8 sps:$4 sm:$0xff]  }
 0x215   :  { %8437 = vmatprep.subr.bf16.mxu0 %v12244_v33  ;;  %v12328_v33 = vld [vmem:[%s17746_s1 + $0x1934] ss:$8 sps:$4 sm:$0xff]  }
 0x217   :  { %7750 = vmatpush1.bf16.msra.mxu1 %v12239_v36  ;;  %v12323_v36 = vld [vmem:[%s17746_s1 + $0x930] ss:$8 sps:$4 sm:$0xff]  }
 0x218   :  { %8438 = vmatpush1.bf16.msra.mxu0 %v12242_v24  ;;  %7751 = vmatprep.subr.bf16.mxu1 %v12247_v25  ;;  %v12326_v24 = vld [vmem:[%s17746_s1 + $0x1930] ss:$8 sps:$4 sm:$0xff]   ;;  %v12331_v25 = vld [vmem:[%s17746_s1 + $0x944] ss:$8 sps:$4 sm:$0xff]  }
 0x219   :  { %8439 = vmatprep.subr.bf16.mxu0 %v12250_v29  ;;  %v12334_v29 = vld [vmem:[%s17746_s1 + $0x1944] ss:$8 sps:$4 sm:$0xff]  }
 0x21b   :  { %7752 = vmatpush1.bf16.msra.mxu1 %v12245_v30  ;;  %v12329_v30 = vld [vmem:[%s17746_s1 + $0x940] ss:$8 sps:$4 sm:$0xff]  }
 0x21c   :  { %8440 = vmatpush1.bf16.msra.mxu0 %v12248_v37  ;;  %7753 = vmatprep.subr.bf16.mxu1 %v12253_v40  ;;  %v12332_v37 = vld [vmem:[%s17746_s1 + $0x1940] ss:$8 sps:$4 sm:$0xff]   ;;  %v12337_v40 = vld [vmem:[%s17746_s1 + $0x954] ss:$8 sps:$4 sm:$0xff]  }
 0x21d   :  { %8441 = vmatprep.subr.bf16.mxu0 %v12256_v41  ;;  %v12340_v41 = vld [vmem:[%s17746_s1 + $0x1954] ss:$8 sps:$4 sm:$0xff]  }
 0x21f   :  { %7754 = vmatpush1.bf16.msra.mxu1 %v12251_v44  ;;  %v12335_v44 = vld [vmem:[%s17746_s1 + $0x950] ss:$8 sps:$4 sm:$0xff]  }
 0x220   :  { %8442 = vmatpush1.bf16.msra.mxu0 %v12254_v28  ;;  %7755 = vmatprep.subr.bf16.mxu1 %v12259_v31  ;;  %v12338_v28 = vld [vmem:[%s17746_s1 + $0x1950] ss:$8 sps:$4 sm:$0xff]   ;;  %v12343_v31 = vld [vmem:[%s17746_s1 + $0x964] ss:$8 sps:$4 sm:$0xff]  }
 0x221   :  { %8443 = vmatprep.subr.bf16.mxu0 %v12262_v34  ;;  %v12346_v34 = vld [vmem:[%s17746_s1 + $0x1964] ss:$8 sps:$4 sm:$0xff]  }
 0x223   :  { %7756 = vmatpush1.bf16.msra.mxu1 %v12257_v48  ;;  %v12341_v48 = vld [vmem:[%s17746_s1 + $0x960] ss:$8 sps:$4 sm:$0xff]  }
 0x224   :  { %8444 = vmatpush1.bf16.msra.mxu0 %v12260_v49  ;;  %7757 = vmatprep.subr.bf16.mxu1 %v12265_v50  ;;  %v12344_v49 = vld [vmem:[%s17746_s1 + $0x1960] ss:$8 sps:$4 sm:$0xff]   ;;  %v12349_v50 = vld [vmem:[%s17746_s1 + $0x974] ss:$8 sps:$4 sm:$0xff]  }
 0x225   :  { %8445 = vmatprep.subr.bf16.mxu0 %v12268_v51  ;;  %v12352_v51 = vld [vmem:[%s17746_s1 + $0x1974] ss:$8 sps:$4 sm:$0xff]  }
 0x227   :  { %7758 = vmatpush1.bf16.msra.mxu1 %v12263_v52  ;;  %v12347_v52 = vld [vmem:[%s17746_s1 + $0x970] ss:$8 sps:$4 sm:$0xff]  }
 0x228   :  { %8446 = vmatpush1.bf16.msra.mxu0 %v12266_v38  ;;  %7759 = vmatprep.subr.bf16.mxu1 %v12271_v39  ;;  %v12350_v38 = vld [vmem:[%s17746_s1 + $0x1970] ss:$8 sps:$4 sm:$0xff]   ;;  %v12355_v39 = vld [vmem:[%s17746_s1 + $0x984] ss:$8 sps:$4 sm:$0xff]  }
 0x229   :  { %8447 = vmatprep.subr.bf16.mxu0 %v12274_v42  ;;  %v12358_v42 = vld [vmem:[%s17746_s1 + $0x1984] ss:$8 sps:$4 sm:$0xff]  }
 0x22b   :  { %7760 = vmatpush1.bf16.msra.mxu1 %v12269_v56  ;;  %v12353_v56 = vld [vmem:[%s17746_s1 + $0x980] ss:$8 sps:$4 sm:$0xff]  }
 0x22c   :  { %8448 = vmatpush1.bf16.msra.mxu0 %v12272_v57  ;;  %7761 = vmatprep.subr.bf16.mxu1 %v12277_v58  ;;  %v12356_v57 = vld [vmem:[%s17746_s1 + $0x1980] ss:$8 sps:$4 sm:$0xff]   ;;  %v12361_v58 = vld [vmem:[%s17746_s1 + $0x994] ss:$8 sps:$4 sm:$0xff]  }
 0x22d   :  { %8449 = vmatprep.subr.bf16.mxu0 %v12280_v59  ;;  %v12364_v59 = vld [vmem:[%s17746_s1 + $0x1994] ss:$8 sps:$4 sm:$0xff]  }
 0x22f   :  { %7762 = vmatpush1.bf16.msra.mxu1 %v12275_v60  ;;  %v12359_v60 = vld [vmem:[%s17746_s1 + $0x990] ss:$8 sps:$4 sm:$0xff]  }
 0x230   :  { %8450 = vmatpush1.bf16.msra.mxu0 %v12278_v35  ;;  %7763 = vmatprep.subr.bf16.mxu1 %v12283_v45  ;;  %v12362_v35 = vld [vmem:[%s17746_s1 + $0x1990] ss:$8 sps:$4 sm:$0xff]   ;;  %v12367_v45 = vld [vmem:[%s17746_s1 + $0x9a4] ss:$8 sps:$4 sm:$0xff]  }
 0x231   :  { %8451 = vmatprep.subr.bf16.mxu0 %v12286_v46  ;;  %v12370_v46 = vld [vmem:[%s17746_s1 + $0x19a4] ss:$8 sps:$4 sm:$0xff]  }
 0x233   :  { %7764 = vmatpush1.bf16.msra.mxu1 %v12281_v0  ;;  %v12365_v0 = vld [vmem:[%s17746_s1 + $0x9a0] ss:$8 sps:$4 sm:$0xff]  }
 0x234   :  { %8452 = vmatpush1.bf16.msra.mxu0 %v12284_v1  ;;  %7765 = vmatprep.subr.bf16.mxu1 %v12289_v2  ;;  %v12368_v1 = vld [vmem:[%s17746_s1 + $0x19a0] ss:$8 sps:$4 sm:$0xff]   ;;  %v12373_v2 = vld [vmem:[%s17746_s1 + $0x9b4] ss:$8 sps:$4 sm:$0xff]  }
 0x235   :  { %8453 = vmatprep.subr.bf16.mxu0 %v12292_v3  ;;  %v12376_v3 = vld [vmem:[%s17746_s1 + $0x19b4] ss:$8 sps:$4 sm:$0xff]  }
 0x237   :  { %7766 = vmatpush1.bf16.msra.mxu1 %v12287_v4  ;;  %v12371_v4 = vld [vmem:[%s17746_s1 + $0x9b0] ss:$8 sps:$4 sm:$0xff]  }
 0x238   :  { %8454 = vmatpush1.bf16.msra.mxu0 %v12290_v43  ;;  %7767 = vmatprep.subr.bf16.mxu1 %v12295_v53  ;;  %v12374_v43 = vld [vmem:[%s17746_s1 + $0x19b0] ss:$8 sps:$4 sm:$0xff]   ;;  %v12379_v53 = vld [vmem:[%s17746_s1 + $0x9c4] ss:$8 sps:$4 sm:$0xff]  }
 0x239   :  { %8455 = vmatprep.subr.bf16.mxu0 %v12298_v54  ;;  %v12382_v54 = vld [vmem:[%s17746_s1 + $0x19c4] ss:$8 sps:$4 sm:$0xff]  }
 0x23b   :  { %7768 = vmatpush1.bf16.msra.mxu1 %v12293_v8  ;;  %v12377_v8 = vld [vmem:[%s17746_s1 + $0x9c0] ss:$8 sps:$4 sm:$0xff]  }
 0x23c   :  { %8456 = vmatpush1.bf16.msra.mxu0 %v12296_v9  ;;  %7769 = vmatprep.subr.bf16.mxu1 %v12301_v10  ;;  %v12380_v9 = vld [vmem:[%s17746_s1 + $0x19c0] ss:$8 sps:$4 sm:$0xff]   ;;  %v12385_v10 = vld [vmem:[%s17746_s1 + $0x9d4] ss:$8 sps:$4 sm:$0xff]  }
 0x23d   :  { %8457 = vmatprep.subr.bf16.mxu0 %v12304_v11  ;;  %v12388_v11 = vld [vmem:[%s17746_s1 + $0x19d4] ss:$8 sps:$4 sm:$0xff]  }
 0x23f   :  { %7770 = vmatpush1.bf16.msra.mxu1 %v12299_v12  ;;  %v12383_v12 = vld [vmem:[%s17746_s1 + $0x9d0] ss:$8 sps:$4 sm:$0xff]  }
 0x240   :  { %8458 = vmatpush1.bf16.msra.mxu0 %v12302_v47  ;;  %7782 = vmatprep.subr.bf16.mxu1 %v12307_v61  ;;  %v12386_v47 = vld [vmem:[%s17746_s1 + $0x19d0] ss:$8 sps:$4 sm:$0xff]   ;;  %v12391_v61 = vld [vmem:[%s17746_s1 + $0x9e4] ss:$8 sps:$4 sm:$0xff]  }
 0x241   :  { %8470 = vmatprep.subr.bf16.mxu0 %v12310_v62  ;;  %v12394_v62 = vld [vmem:[%s17746_s1 + $0x19e4] ss:$8 sps:$4 sm:$0xff]  }
 0x242   :  { %7772 = vmatmul.mubr.bf16.vlgmr.msra.gmra.mrb[0].mxu1 %v9954_v16  ;;  %v12389_v16 = vld [vmem:[%s17746_s1 + $0x9e0] ss:$8 sps:$4 sm:$0xff]  }
 0x243   :  { %8460 = vmatmul.mubr.bf16.vlgmr.msra.gmra.mrb[0].mxu0 %v9986_v17  ;;  %7783 = vmatpush1.bf16.msra.mxu1 %v12305_v18  ;;  %v12392_v17 = vld [vmem:[%s17746_s1 + $0x19e0] ss:$8 sps:$4 sm:$0xff]   ;;  %v12397_v18 = vld [vmem:[%s17746_s1 + $0x9f4] ss:$8 sps:$4 sm:$0xff]  }
 0x244   :  { %8471 = vmatpush1.bf16.msra.mxu0 %v12308_v19  ;;  %7784 = vmatprep.subr.bf16.mxu1 %v12313_v20  ;;  %v12400_v19 = vld [vmem:[%s17746_s1 + $0x19f4] ss:$8 sps:$4 sm:$0xff]   ;;  %v12395_v20 = vld [vmem:[%s17746_s1 + $0x9f0] ss:$8 sps:$4 sm:$0xff]  }
 0x245   :  { %8472 = vmatprep.subr.bf16.mxu0 %v12316_v55  ;;  %7814 = vmatprep.mubr.bf16.mxu1 %v9957_v5  ;;  %v12398_v55 = vld [vmem:[%s17746_s1 + $0x19f0] ss:$8 sps:$4 sm:$0xff]   ;;  %v12403_v5 = vld [vmem:[%s17746_s1 + $0xa04] ss:$8 sps:$4 sm:$0xff]  }
 0x246   :  { %8502 = vmatprep.mubr.bf16.mxu0 %v9989_v6  ;;  %v12406_v6 = vld [vmem:[%s17746_s1 + $0x1a04] ss:$8 sps:$4 sm:$0xff]  }
 0x247   :  { %7785 = vmatpush1.bf16.msra.mxu1 %v12311_v7  ;;  %v15610_v7 = vld [vmem:[%s17747_s0 + $0x50] sm:$0xff] }
 0x248   :  { %8473 = vmatpush1.bf16.msra.mxu0 %v12314_v21  ;;  %7786 = vmatprep.subr.bf16.mxu1 %v12319_v22  ;;  %v15615_v21 = vld [vmem:[%s17747_s0 + $0x170] sm:$0xff] }
 0x249   :  { %8474 = vmatprep.subr.bf16.mxu0 %v12322_v23  ;;  %v15620_v22 = vld [vmem:[%s17747_s0 + $0xd0] sm:$0xff] }
 0x24a   :  { %v15625_v23 = vld [vmem:[%s17747_s0 + $0x1f0] sm:$0xff] }
 0x24b   :  { %7787 = vmatpush1.bf16.msra.mxu1 %v12317_v26  ;;  %v9956_v26 = vcombine.low %v15390_v63, %v15395_v13  ;;  %v12412_v63 = vld [vmem:[%s17746_s1 + $0x1a14] ss:$8 sps:$4 sm:$0xff]   ;;  %v9959_v13 = vcombine.high %v15610_v7, %v15615_v21 }
 0x24c   :  { %8475 = vmatpush1.bf16.msra.mxu0 %v12320_v27  ;;  %7788 = vmatprep.subr.bf16.mxu1 %v12325_v32  ;;  %v9988_v27 = vcombine.low %v15400_v14, %v15405_v15  ;;  %v12401_v32 = vld [vmem:[%s17746_s1 + $0xa00] ss:$8 sps:$4 sm:$0xff]   ;;  %v9991_v14 = vcombine.high %v15620_v22, %v15625_v23  ;;  %v12407_v15 = vld [vmem:[%s17746_s1 + $0xa10] ss:$8 sps:$4 sm:$0xff]  }
 0x24d   :  { %8476 = vmatprep.subr.bf16.mxu0 %v12328_v33  ;;  %v12404_v33 = vld [vmem:[%s17746_s1 + $0x1a00] ss:$8 sps:$4 sm:$0xff]  }
 0x24f   :  { %7789 = vmatpush1.bf16.msra.mxu1 %v12323_v36  ;;  %v12409_v36 = vld [vmem:[%s17746_s1 + $0xa14] ss:$8 sps:$4 sm:$0xff]  }
 0x250   :  { %8477 = vmatpush1.bf16.msra.mxu0 %v12326_v24  ;;  %7790 = vmatprep.subr.bf16.mxu1 %v12331_v25  ;;  %v12410_v24 = vld [vmem:[%s17746_s1 + $0x1a10] ss:$8 sps:$4 sm:$0xff]   ;;  %v12415_v25 = vld [vmem:[%s17746_s1 + $0xa24] ss:$8 sps:$4 sm:$0xff]  }
 0x251   :  { %8478 = vmatprep.subr.bf16.mxu0 %v12334_v29  ;;  %v12418_v29 = vld [vmem:[%s17746_s1 + $0x1a24] ss:$8 sps:$4 sm:$0xff]  }
 0x253   :  { %7791 = vmatpush1.bf16.msra.mxu1 %v12329_v30  ;;  %v12413_v30 = vld [vmem:[%s17746_s1 + $0xa20] ss:$8 sps:$4 sm:$0xff]  }
 0x254   :  { %8479 = vmatpush1.bf16.msra.mxu0 %v12332_v37  ;;  %7792 = vmatprep.subr.bf16.mxu1 %v12337_v40  ;;  %v12416_v37 = vld [vmem:[%s17746_s1 + $0x1a20] ss:$8 sps:$4 sm:$0xff]   ;;  %v12421_v40 = vld [vmem:[%s17746_s1 + $0xa34] ss:$8 sps:$4 sm:$0xff]  }
 0x255   :  { %8480 = vmatprep.subr.bf16.mxu0 %v12340_v41  ;;  %v12424_v41 = vld [vmem:[%s17746_s1 + $0x1a34] ss:$8 sps:$4 sm:$0xff]  }
 0x257   :  { %7793 = vmatpush1.bf16.msra.mxu1 %v12335_v44  ;;  %v12419_v44 = vld [vmem:[%s17746_s1 + $0xa30] ss:$8 sps:$4 sm:$0xff]  }
 0x258   :  { %8481 = vmatpush1.bf16.msra.mxu0 %v12338_v28  ;;  %7794 = vmatprep.subr.bf16.mxu1 %v12343_v31  ;;  %v12422_v28 = vld [vmem:[%s17746_s1 + $0x1a30] ss:$8 sps:$4 sm:$0xff]   ;;  %v12427_v31 = vld [vmem:[%s17746_s1 + $0xa44] ss:$8 sps:$4 sm:$0xff]  }
 0x259   :  { %8482 = vmatprep.subr.bf16.mxu0 %v12346_v34  ;;  %v12430_v34 = vld [vmem:[%s17746_s1 + $0x1a44] ss:$8 sps:$4 sm:$0xff]  }
 0x25b   :  { %7795 = vmatpush1.bf16.msra.mxu1 %v12341_v48  ;;  %v12425_v48 = vld [vmem:[%s17746_s1 + $0xa40] ss:$8 sps:$4 sm:$0xff]  }
 0x25c   :  { %8483 = vmatpush1.bf16.msra.mxu0 %v12344_v49  ;;  %7796 = vmatprep.subr.bf16.mxu1 %v12349_v50  ;;  %v12428_v49 = vld [vmem:[%s17746_s1 + $0x1a40] ss:$8 sps:$4 sm:$0xff]   ;;  %v12433_v50 = vld [vmem:[%s17746_s1 + $0xa54] ss:$8 sps:$4 sm:$0xff]  }
 0x25d   :  { %8484 = vmatprep.subr.bf16.mxu0 %v12352_v51  ;;  %v12436_v51 = vld [vmem:[%s17746_s1 + $0x1a54] ss:$8 sps:$4 sm:$0xff]  }
 0x25f   :  { %7797 = vmatpush1.bf16.msra.mxu1 %v12347_v52  ;;  %v12431_v52 = vld [vmem:[%s17746_s1 + $0xa50] ss:$8 sps:$4 sm:$0xff]  }
 0x260   :  { %8485 = vmatpush1.bf16.msra.mxu0 %v12350_v38  ;;  %7798 = vmatprep.subr.bf16.mxu1 %v12355_v39  ;;  %v12434_v38 = vld [vmem:[%s17746_s1 + $0x1a50] ss:$8 sps:$4 sm:$0xff]   ;;  %v12439_v39 = vld [vmem:[%s17746_s1 + $0xa64] ss:$8 sps:$4 sm:$0xff]  }
 0x261   :  { %8486 = vmatprep.subr.bf16.mxu0 %v12358_v42  ;;  %v12442_v42 = vld [vmem:[%s17746_s1 + $0x1a64] ss:$8 sps:$4 sm:$0xff]  }
 0x263   :  { %7799 = vmatpush1.bf16.msra.mxu1 %v12353_v56  ;;  %v12437_v56 = vld [vmem:[%s17746_s1 + $0xa60] ss:$8 sps:$4 sm:$0xff]  }
 0x264   :  { %8487 = vmatpush1.bf16.msra.mxu0 %v12356_v57  ;;  %7800 = vmatprep.subr.bf16.mxu1 %v12361_v58  ;;  %v12440_v57 = vld [vmem:[%s17746_s1 + $0x1a60] ss:$8 sps:$4 sm:$0xff]   ;;  %v12445_v58 = vld [vmem:[%s17746_s1 + $0xa74] ss:$8 sps:$4 sm:$0xff]  }
 0x265   :  { %8488 = vmatprep.subr.bf16.mxu0 %v12364_v59  ;;  %v12448_v59 = vld [vmem:[%s17746_s1 + $0x1a74] ss:$8 sps:$4 sm:$0xff]  }
 0x267   :  { %7801 = vmatpush1.bf16.msra.mxu1 %v12359_v60  ;;  %v12443_v60 = vld [vmem:[%s17746_s1 + $0xa70] ss:$8 sps:$4 sm:$0xff]  }
 0x268   :  { %8489 = vmatpush1.bf16.msra.mxu0 %v12362_v35  ;;  %7802 = vmatprep.subr.bf16.mxu1 %v12367_v45  ;;  %v12446_v35 = vld [vmem:[%s17746_s1 + $0x1a70] ss:$8 sps:$4 sm:$0xff]   ;;  %v12451_v45 = vld [vmem:[%s17746_s1 + $0xa84] ss:$8 sps:$4 sm:$0xff]  }
 0x269   :  { %8490 = vmatprep.subr.bf16.mxu0 %v12370_v46  ;;  %v12454_v46 = vld [vmem:[%s17746_s1 + $0x1a84] ss:$8 sps:$4 sm:$0xff]  }
 0x26b   :  { %7803 = vmatpush1.bf16.msra.mxu1 %v12365_v0  ;;  %v12449_v0 = vld [vmem:[%s17746_s1 + $0xa80] ss:$8 sps:$4 sm:$0xff]  }
 0x26c   :  { %8491 = vmatpush1.bf16.msra.mxu0 %v12368_v1  ;;  %7804 = vmatprep.subr.bf16.mxu1 %v12373_v2  ;;  %v12452_v1 = vld [vmem:[%s17746_s1 + $0x1a80] ss:$8 sps:$4 sm:$0xff]   ;;  %v12457_v2 = vld [vmem:[%s17746_s1 + $0xa94] ss:$8 sps:$4 sm:$0xff]  }
 0x26d   :  { %8492 = vmatprep.subr.bf16.mxu0 %v12376_v3  ;;  %v12460_v3 = vld [vmem:[%s17746_s1 + $0x1a94] ss:$8 sps:$4 sm:$0xff]  }
 0x26f   :  { %7805 = vmatpush1.bf16.msra.mxu1 %v12371_v4  ;;  %v12455_v4 = vld [vmem:[%s17746_s1 + $0xa90] ss:$8 sps:$4 sm:$0xff]  }
 0x270   :  { %8493 = vmatpush1.bf16.msra.mxu0 %v12374_v43  ;;  %7806 = vmatprep.subr.bf16.mxu1 %v12379_v53  ;;  %v12458_v43 = vld [vmem:[%s17746_s1 + $0x1a90] ss:$8 sps:$4 sm:$0xff]   ;;  %v12463_v53 = vld [vmem:[%s17746_s1 + $0xaa4] ss:$8 sps:$4 sm:$0xff]  }
 0x271   :  { %8494 = vmatprep.subr.bf16.mxu0 %v12382_v54  ;;  %v12466_v54 = vld [vmem:[%s17746_s1 + $0x1aa4] ss:$8 sps:$4 sm:$0xff]  }
 0x273   :  { %7807 = vmatpush1.bf16.msra.mxu1 %v12377_v8  ;;  %v12461_v8 = vld [vmem:[%s17746_s1 + $0xaa0] ss:$8 sps:$4 sm:$0xff]  }
 0x274   :  { %8495 = vmatpush1.bf16.msra.mxu0 %v12380_v9  ;;  %7808 = vmatprep.subr.bf16.mxu1 %v12385_v10  ;;  %v12464_v9 = vld [vmem:[%s17746_s1 + $0x1aa0] ss:$8 sps:$4 sm:$0xff]   ;;  %v12469_v10 = vld [vmem:[%s17746_s1 + $0xab4] ss:$8 sps:$4 sm:$0xff]  }
 0x275   :  { %8496 = vmatprep.subr.bf16.mxu0 %v12388_v11  ;;  %v12472_v11 = vld [vmem:[%s17746_s1 + $0x1ab4] ss:$8 sps:$4 sm:$0xff]  }
 0x277   :  { %7809 = vmatpush1.bf16.msra.mxu1 %v12383_v12  ;;  %v12467_v12 = vld [vmem:[%s17746_s1 + $0xab0] ss:$8 sps:$4 sm:$0xff]  }
 0x278   :  { %8497 = vmatpush1.bf16.msra.mxu0 %v12386_v47  ;;  %7810 = vmatprep.subr.bf16.mxu1 %v12391_v61  ;;  %v12470_v47 = vld [vmem:[%s17746_s1 + $0x1ab0] ss:$8 sps:$4 sm:$0xff]   ;;  %v12475_v61 = vld [vmem:[%s17746_s1 + $0xac4] ss:$8 sps:$4 sm:$0xff]  }
 0x279   :  { %8498 = vmatprep.subr.bf16.mxu0 %v12394_v62  ;;  %v12478_v62 = vld [vmem:[%s17746_s1 + $0x1ac4] ss:$8 sps:$4 sm:$0xff]  }
 0x27b   :  { %7811 = vmatpush1.bf16.msra.mxu1 %v12389_v16  ;;  %v12473_v16 = vld [vmem:[%s17746_s1 + $0xac0] ss:$8 sps:$4 sm:$0xff]  }
 0x27c   :  { %8499 = vmatpush1.bf16.msra.mxu0 %v12392_v17  ;;  %7812 = vmatprep.subr.bf16.mxu1 %v12397_v18  ;;  %v12476_v17 = vld [vmem:[%s17746_s1 + $0x1ac0] ss:$8 sps:$4 sm:$0xff]   ;;  %v12481_v18 = vld [vmem:[%s17746_s1 + $0xad4] ss:$8 sps:$4 sm:$0xff]  }
 0x27d   :  { %8500 = vmatprep.subr.bf16.mxu0 %v12400_v19  ;;  %v12484_v19 = vld [vmem:[%s17746_s1 + $0x1ad4] ss:$8 sps:$4 sm:$0xff]  }
 0x27f   :  { %7813 = vmatpush1.bf16.msra.mxu1 %v12395_v20  ;;  %v12479_v20 = vld [vmem:[%s17746_s1 + $0xad0] ss:$8 sps:$4 sm:$0xff]  }
 0x280   :  { %8501 = vmatpush1.bf16.msra.mxu0 %v12398_v55  ;;  %7825 = vmatprep.subr.bf16.mxu1 %v12403_v5  ;;  %v12482_v55 = vld [vmem:[%s17746_s1 + $0x1ad0] ss:$8 sps:$4 sm:$0xff]   ;;  %v12487_v5 = vld [vmem:[%s17746_s1 + $0xae4] ss:$8 sps:$4 sm:$0xff]  }
 0x281   :  { %8513 = vmatprep.subr.bf16.mxu0 %v12406_v6  ;;  %v12490_v6 = vld [vmem:[%s17746_s1 + $0x1ae4] ss:$8 sps:$4 sm:$0xff]  }
 0x282   :  { %7815 = vmatmul.mubr.bf16.vlgmr.msra.gmra.mrb[0].mxu1 %v9956_v26  ;;  %v12485_v26 = vld [vmem:[%s17746_s1 + $0xae0] ss:$8 sps:$4 sm:$0xff]  }
 0x283   :  { %8503 = vmatmul.mubr.bf16.vlgmr.msra.gmra.mrb[0].mxu0 %v9988_v27  ;;  %7826 = vmatpush1.bf16.msra.mxu1 %v12401_v32  ;;  %v12488_v27 = vld [vmem:[%s17746_s1 + $0x1ae0] ss:$8 sps:$4 sm:$0xff]   ;;  %v12493_v32 = vld [vmem:[%s17746_s1 + $0xaf4] ss:$8 sps:$4 sm:$0xff]  }
 0x284   :  { %8514 = vmatpush1.bf16.msra.mxu0 %v12404_v33  ;;  %7827 = vmatprep.subr.bf16.mxu1 %v12409_v36  ;;  %v12496_v33 = vld [vmem:[%s17746_s1 + $0x1af4] ss:$8 sps:$4 sm:$0xff]   ;;  %v12491_v36 = vld [vmem:[%s17746_s1 + $0xaf0] ss:$8 sps:$4 sm:$0xff]  }
 0x285   :  { %8515 = vmatprep.subr.bf16.mxu0 %v12412_v63  ;;  %7857 = vmatprep.mubr.bf16.mxu1 %v9959_v13  ;;  %v12494_v63 = vld [vmem:[%s17746_s1 + $0x1af0] ss:$8 sps:$4 sm:$0xff]   ;;  %v12499_v13 = vld [vmem:[%s17746_s1 + $0xb04] ss:$8 sps:$4 sm:$0xff]  }
 0x286   :  { %8545 = vmatprep.mubr.bf16.mxu0 %v9991_v14  ;;  %v12502_v14 = vld [vmem:[%s17746_s1 + $0x1b04] ss:$8 sps:$4 sm:$0xff]  }
 0x287   :  { %7828 = vmatpush1.bf16.msra.mxu1 %v12407_v15  ;;  %v15830_v15 = vld [vmem:[%s17747_s0 + $0x58] sm:$0xff] }
 0x288   :  { %8516 = vmatpush1.bf16.msra.mxu0 %v12410_v24  ;;  %7829 = vmatprep.subr.bf16.mxu1 %v12415_v25  ;;  %v9958_v24 = vcombine.low %v15610_v7, %v15615_v21  ;;  %v9990_v25 = vcombine.low %v15620_v22, %v15625_v23  ;;  %v12497_v7 = vld [vmem:[%s17746_s1 + $0xb00] ss:$8 sps:$4 sm:$0xff]   ;;  %v12505_v22 = vld [vmem:[%s17746_s1 + $0xb14] ss:$8 sps:$4 sm:$0xff]  }
 0x289   :  { %8517 = vmatprep.subr.bf16.mxu0 %v12418_v29  ;;  %v15839_v29 = vld [vmem:[%s17747_s0 + $0x178] sm:$0xff]  ;;  %v12500_v21 = vld [vmem:[%s17746_s1 + $0x1b00] ss:$8 sps:$4 sm:$0xff]  }
 0x28a   :  { %v12508_v23 = vld [vmem:[%s17746_s1 + $0x1b14] ss:$8 sps:$4 sm:$0xff]  }
 0x28b   :  { %7830 = vmatpush1.bf16.msra.mxu1 %v12413_v30  ;;  %v15844_v30 = vld [vmem:[%s17747_s0 + $0xd8] sm:$0xff] }
 0x28c   :  { %8518 = vmatpush1.bf16.msra.mxu0 %v12416_v37  ;;  %7831 = vmatprep.subr.bf16.mxu1 %v12421_v40  ;;  %v15849_v37 = vld [vmem:[%s17747_s0 + $0x1f8] sm:$0xff]  ;;  %v9961_v40 = vcombine.high %v15830_v15, %v15839_v29 }
 0x28d   :  { %8519 = vmatprep.subr.bf16.mxu0 %v12424_v41  ;;  %v9993_v41 = vcombine.high %v15844_v30, %v15849_v37 }
 0x28f   :  { %7832 = vmatpush1.bf16.msra.mxu1 %v12419_v44  ;;  %v12503_v44 = vld [vmem:[%s17746_s1 + $0xb10] ss:$8 sps:$4 sm:$0xff]  }
 0x290   :  { %8520 = vmatpush1.bf16.msra.mxu0 %v12422_v28  ;;  %7833 = vmatprep.subr.bf16.mxu1 %v12427_v31  ;;  %v12506_v28 = vld [vmem:[%s17746_s1 + $0x1b10] ss:$8 sps:$4 sm:$0xff]   ;;  %v12511_v31 = vld [vmem:[%s17746_s1 + $0xb24] ss:$8 sps:$4 sm:$0xff]  }
 0x291   :  { %8521 = vmatprep.subr.bf16.mxu0 %v12430_v34  ;;  %v12514_v34 = vld [vmem:[%s17746_s1 + $0x1b24] ss:$8 sps:$4 sm:$0xff]  }
 0x293   :  { %7834 = vmatpush1.bf16.msra.mxu1 %v12425_v48  ;;  %v12509_v48 = vld [vmem:[%s17746_s1 + $0xb20] ss:$8 sps:$4 sm:$0xff]  }
 0x294   :  { %8522 = vmatpush1.bf16.msra.mxu0 %v12428_v49  ;;  %7835 = vmatprep.subr.bf16.mxu1 %v12433_v50  ;;  %v12512_v49 = vld [vmem:[%s17746_s1 + $0x1b20] ss:$8 sps:$4 sm:$0xff]   ;;  %v12517_v50 = vld [vmem:[%s17746_s1 + $0xb34] ss:$8 sps:$4 sm:$0xff]  }
 0x295   :  { %8523 = vmatprep.subr.bf16.mxu0 %v12436_v51  ;;  %v12520_v51 = vld [vmem:[%s17746_s1 + $0x1b34] ss:$8 sps:$4 sm:$0xff]  }
 0x297   :  { %7836 = vmatpush1.bf16.msra.mxu1 %v12431_v52  ;;  %v12515_v52 = vld [vmem:[%s17746_s1 + $0xb30] ss:$8 sps:$4 sm:$0xff]  }
 0x298   :  { %8524 = vmatpush1.bf16.msra.mxu0 %v12434_v38  ;;  %7837 = vmatprep.subr.bf16.mxu1 %v12439_v39  ;;  %v12518_v38 = vld [vmem:[%s17746_s1 + $0x1b30] ss:$8 sps:$4 sm:$0xff]   ;;  %v12523_v39 = vld [vmem:[%s17746_s1 + $0xb44] ss:$8 sps:$4 sm:$0xff]  }
 0x299   :  { %8525 = vmatprep.subr.bf16.mxu0 %v12442_v42  ;;  %v12526_v42 = vld [vmem:[%s17746_s1 + $0x1b44] ss:$8 sps:$4 sm:$0xff]  }
 0x29b   :  { %7838 = vmatpush1.bf16.msra.mxu1 %v12437_v56  ;;  %v12521_v56 = vld [vmem:[%s17746_s1 + $0xb40] ss:$8 sps:$4 sm:$0xff]  }
 0x29c   :  { %8526 = vmatpush1.bf16.msra.mxu0 %v12440_v57  ;;  %7839 = vmatprep.subr.bf16.mxu1 %v12445_v58  ;;  %v12524_v57 = vld [vmem:[%s17746_s1 + $0x1b40] ss:$8 sps:$4 sm:$0xff]   ;;  %v12529_v58 = vld [vmem:[%s17746_s1 + $0xb54] ss:$8 sps:$4 sm:$0xff]  }
 0x29d   :  { %8527 = vmatprep.subr.bf16.mxu0 %v12448_v59  ;;  %v12532_v59 = vld [vmem:[%s17746_s1 + $0x1b54] ss:$8 sps:$4 sm:$0xff]  }
 0x29f   :  { %7840 = vmatpush1.bf16.msra.mxu1 %v12443_v60  ;;  %v12527_v60 = vld [vmem:[%s17746_s1 + $0xb50] ss:$8 sps:$4 sm:$0xff]  }
 0x2a0   :  { %8528 = vmatpush1.bf16.msra.mxu0 %v12446_v35  ;;  %7841 = vmatprep.subr.bf16.mxu1 %v12451_v45  ;;  %v12530_v35 = vld [vmem:[%s17746_s1 + $0x1b50] ss:$8 sps:$4 sm:$0xff]   ;;  %v12535_v45 = vld [vmem:[%s17746_s1 + $0xb64] ss:$8 sps:$4 sm:$0xff]  }
 0x2a1   :  { %8529 = vmatprep.subr.bf16.mxu0 %v12454_v46  ;;  %v12538_v46 = vld [vmem:[%s17746_s1 + $0x1b64] ss:$8 sps:$4 sm:$0xff]  }
 0x2a3   :  { %7842 = vmatpush1.bf16.msra.mxu1 %v12449_v0  ;;  %v12533_v0 = vld [vmem:[%s17746_s1 + $0xb60] ss:$8 sps:$4 sm:$0xff]  }
 0x2a4   :  { %8530 = vmatpush1.bf16.msra.mxu0 %v12452_v1  ;;  %7843 = vmatprep.subr.bf16.mxu1 %v12457_v2  ;;  %v12536_v1 = vld [vmem:[%s17746_s1 + $0x1b60] ss:$8 sps:$4 sm:$0xff]   ;;  %v12541_v2 = vld [vmem:[%s17746_s1 + $0xb74] ss:$8 sps:$4 sm:$0xff]  }
 0x2a5   :  { %8531 = vmatprep.subr.bf16.mxu0 %v12460_v3  ;;  %v12544_v3 = vld [vmem:[%s17746_s1 + $0x1b74] ss:$8 sps:$4 sm:$0xff]  }
 0x2a7   :  { %7844 = vmatpush1.bf16.msra.mxu1 %v12455_v4  ;;  %v12539_v4 = vld [vmem:[%s17746_s1 + $0xb70] ss:$8 sps:$4 sm:$0xff]  }
 0x2a8   :  { %8532 = vmatpush1.bf16.msra.mxu0 %v12458_v43  ;;  %7845 = vmatprep.subr.bf16.mxu1 %v12463_v53  ;;  %v12542_v43 = vld [vmem:[%s17746_s1 + $0x1b70] ss:$8 sps:$4 sm:$0xff]   ;;  %v12547_v53 = vld [vmem:[%s17746_s1 + $0xb84] ss:$8 sps:$4 sm:$0xff]  }
 0x2a9   :  { %8533 = vmatprep.subr.bf16.mxu0 %v12466_v54  ;;  %v12550_v54 = vld [vmem:[%s17746_s1 + $0x1b84] ss:$8 sps:$4 sm:$0xff]  }
 0x2ab   :  { %7846 = vmatpush1.bf16.msra.mxu1 %v12461_v8  ;;  %v12545_v8 = vld [vmem:[%s17746_s1 + $0xb80] ss:$8 sps:$4 sm:$0xff]  }
 0x2ac   :  { %8534 = vmatpush1.bf16.msra.mxu0 %v12464_v9  ;;  %7847 = vmatprep.subr.bf16.mxu1 %v12469_v10  ;;  %v12548_v9 = vld [vmem:[%s17746_s1 + $0x1b80] ss:$8 sps:$4 sm:$0xff]   ;;  %v12553_v10 = vld [vmem:[%s17746_s1 + $0xb94] ss:$8 sps:$4 sm:$0xff]  }
 0x2ad   :  { %8535 = vmatprep.subr.bf16.mxu0 %v12472_v11  ;;  %v12556_v11 = vld [vmem:[%s17746_s1 + $0x1b94] ss:$8 sps:$4 sm:$0xff]  }
 0x2af   :  { %7848 = vmatpush1.bf16.msra.mxu1 %v12467_v12  ;;  %v12551_v12 = vld [vmem:[%s17746_s1 + $0xb90] ss:$8 sps:$4 sm:$0xff]  }
 0x2b0   :  { %8536 = vmatpush1.bf16.msra.mxu0 %v12470_v47  ;;  %7849 = vmatprep.subr.bf16.mxu1 %v12475_v61  ;;  %v12554_v47 = vld [vmem:[%s17746_s1 + $0x1b90] ss:$8 sps:$4 sm:$0xff]   ;;  %v12559_v61 = vld [vmem:[%s17746_s1 + $0xba4] ss:$8 sps:$4 sm:$0xff]  }
 0x2b1   :  { %8537 = vmatprep.subr.bf16.mxu0 %v12478_v62  ;;  %v12562_v62 = vld [vmem:[%s17746_s1 + $0x1ba4] ss:$8 sps:$4 sm:$0xff]  }
 0x2b3   :  { %7850 = vmatpush1.bf16.msra.mxu1 %v12473_v16  ;;  %v12557_v16 = vld [vmem:[%s17746_s1 + $0xba0] ss:$8 sps:$4 sm:$0xff]  }
 0x2b4   :  { %8538 = vmatpush1.bf16.msra.mxu0 %v12476_v17  ;;  %7851 = vmatprep.subr.bf16.mxu1 %v12481_v18  ;;  %v12560_v17 = vld [vmem:[%s17746_s1 + $0x1ba0] ss:$8 sps:$4 sm:$0xff]   ;;  %v12565_v18 = vld [vmem:[%s17746_s1 + $0xbb4] ss:$8 sps:$4 sm:$0xff]  }
 0x2b5   :  { %8539 = vmatprep.subr.bf16.mxu0 %v12484_v19  ;;  %v12568_v19 = vld [vmem:[%s17746_s1 + $0x1bb4] ss:$8 sps:$4 sm:$0xff]  }
 0x2b7   :  { %7852 = vmatpush1.bf16.msra.mxu1 %v12479_v20  ;;  %v12563_v20 = vld [vmem:[%s17746_s1 + $0xbb0] ss:$8 sps:$4 sm:$0xff]  }
 0x2b8   :  { %8540 = vmatpush1.bf16.msra.mxu0 %v12482_v55  ;;  %7853 = vmatprep.subr.bf16.mxu1 %v12487_v5  ;;  %v12566_v55 = vld [vmem:[%s17746_s1 + $0x1bb0] ss:$8 sps:$4 sm:$0xff]   ;;  %v12571_v5 = vld [vmem:[%s17746_s1 + $0xbc4] ss:$8 sps:$4 sm:$0xff]  }
 0x2b9   :  { %8541 = vmatprep.subr.bf16.mxu0 %v12490_v6  ;;  %v12574_v6 = vld [vmem:[%s17746_s1 + $0x1bc4] ss:$8 sps:$4 sm:$0xff]  }
 0x2bb   :  { %7854 = vmatpush1.bf16.msra.mxu1 %v12485_v26  ;;  %v12569_v26 = vld [vmem:[%s17746_s1 + $0xbc0] ss:$8 sps:$4 sm:$0xff]  }
 0x2bc   :  { %8542 = vmatpush1.bf16.msra.mxu0 %v12488_v27  ;;  %7855 = vmatprep.subr.bf16.mxu1 %v12493_v32  ;;  %v12572_v27 = vld [vmem:[%s17746_s1 + $0x1bc0] ss:$8 sps:$4 sm:$0xff]   ;;  %v12577_v32 = vld [vmem:[%s17746_s1 + $0xbd4] ss:$8 sps:$4 sm:$0xff]  }
 0x2bd   :  { %8543 = vmatprep.subr.bf16.mxu0 %v12496_v33  ;;  %v12580_v33 = vld [vmem:[%s17746_s1 + $0x1bd4] ss:$8 sps:$4 sm:$0xff]  }
 0x2bf   :  { %7856 = vmatpush1.bf16.msra.mxu1 %v12491_v36  ;;  %v12575_v36 = vld [vmem:[%s17746_s1 + $0xbd0] ss:$8 sps:$4 sm:$0xff]  }
 0x2c0   :  { %8544 = vmatpush1.bf16.msra.mxu0 %v12494_v63  ;;  %7868 = vmatprep.subr.bf16.mxu1 %v12499_v13  ;;  %v12578_v63 = vld [vmem:[%s17746_s1 + $0x1bd0] ss:$8 sps:$4 sm:$0xff]   ;;  %v12583_v13 = vld [vmem:[%s17746_s1 + $0xbe4] ss:$8 sps:$4 sm:$0xff]  }
 0x2c1   :  { %8556 = vmatprep.subr.bf16.mxu0 %v12502_v14  ;;  %v12586_v14 = vld [vmem:[%s17746_s1 + $0x1be4] ss:$8 sps:$4 sm:$0xff]  }
 0x2c2   :  { %7858 = vmatmul.mubr.bf16.vlgmr.msra.gmra.mrb[0].mxu1 %v9958_v24  ;;  %v12581_v24 = vld [vmem:[%s17746_s1 + $0xbe0] ss:$8 sps:$4 sm:$0xff]  }
 0x2c3   :  { %8546 = vmatmul.mubr.bf16.vlgmr.msra.gmra.mrb[0].mxu0 %v9990_v25  ;;  %7869 = vmatpush1.bf16.msra.mxu1 %v12497_v7  ;;  %v12584_v25 = vld [vmem:[%s17746_s1 + $0x1be0] ss:$8 sps:$4 sm:$0xff]   ;;  %v12589_v7 = vld [vmem:[%s17746_s1 + $0xbf4] ss:$8 sps:$4 sm:$0xff]  }
 0x2c4   :  { %8557 = vmatpush1.bf16.msra.mxu0 %v12500_v21  ;;  %7870 = vmatprep.subr.bf16.mxu1 %v12505_v22  ;;  %v12592_v21 = vld [vmem:[%s17746_s1 + $0x1bf4] ss:$8 sps:$4 sm:$0xff]   ;;  %v12587_v22 = vld [vmem:[%s17746_s1 + $0xbf0] ss:$8 sps:$4 sm:$0xff]  }
 0x2c5   :  { %8558 = vmatprep.subr.bf16.mxu0 %v12508_v23  ;;  %7900 = vmatprep.mubr.bf16.mxu1 %v9961_v40  ;;  %v12590_v23 = vld [vmem:[%s17746_s1 + $0x1bf0] ss:$8 sps:$4 sm:$0xff]   ;;  %v12595_v40 = vld [vmem:[%s17746_s1 + $0xc04] ss:$8 sps:$4 sm:$0xff]  }
 0x2c6   :  { %8588 = vmatprep.mubr.bf16.mxu0 %v9993_v41  ;;  %v12598_v41 = vld [vmem:[%s17746_s1 + $0x1c04] ss:$8 sps:$4 sm:$0xff]  }
 0x2c7   :  { %7871 = vmatpush1.bf16.msra.mxu1 %v12503_v44  ;;  %v16050_v44 = vld [vmem:[%s17747_s0 + $0x60] sm:$0xff] }
 0x2c8   :  { %8559 = vmatpush1.bf16.msra.mxu0 %v12506_v28  ;;  %7872 = vmatprep.subr.bf16.mxu1 %v12511_v31  ;;  %v9960_v28 = vcombine.low %v15830_v15, %v15839_v29  ;;  %v9992_v31 = vcombine.low %v15844_v30, %v15849_v37  ;;  %v12593_v15 = vld [vmem:[%s17746_s1 + $0xc00] ss:$8 sps:$4 sm:$0xff]   ;;  %v12601_v30 = vld [vmem:[%s17746_s1 + $0xc14] ss:$8 sps:$4 sm:$0xff]  }
 0x2c9   :  { %8560 = vmatprep.subr.bf16.mxu0 %v12514_v34  ;;  %v16059_v34 = vld [vmem:[%s17747_s0 + $0x180] sm:$0xff]  ;;  %v12604_v37 = vld [vmem:[%s17746_s1 + $0x1c14] ss:$8 sps:$4 sm:$0xff]  }
 0x2ca   :  { %v12596_v29 = vld [vmem:[%s17746_s1 + $0x1c00] ss:$8 sps:$4 sm:$0xff]  }
 0x2cb   :  { %7873 = vmatpush1.bf16.msra.mxu1 %v12509_v48  ;;  %v16064_v48 = vld [vmem:[%s17747_s0 + $0xe0] sm:$0xff] }
 0x2cc   :  { %8561 = vmatpush1.bf16.msra.mxu0 %v12512_v49  ;;  %7874 = vmatprep.subr.bf16.mxu1 %v12517_v50  ;;  %v16069_v49 = vld [vmem:[%s17747_s0 + $0x200] sm:$0xff]  ;;  %v9963_v50 = vcombine.high %v16050_v44, %v16059_v34 }
 0x2cd   :  { %8562 = vmatprep.subr.bf16.mxu0 %v12520_v51  ;;  %v9995_v51 = vcombine.high %v16064_v48, %v16069_v49 }
 0x2cf   :  { %7875 = vmatpush1.bf16.msra.mxu1 %v12515_v52  ;;  %v12599_v52 = vld [vmem:[%s17746_s1 + $0xc10] ss:$8 sps:$4 sm:$0xff]  }
 0x2d0   :  { %8563 = vmatpush1.bf16.msra.mxu0 %v12518_v38  ;;  %7876 = vmatprep.subr.bf16.mxu1 %v12523_v39  ;;  %v12602_v38 = vld [vmem:[%s17746_s1 + $0x1c10] ss:$8 sps:$4 sm:$0xff]   ;;  %v12607_v39 = vld [vmem:[%s17746_s1 + $0xc24] ss:$8 sps:$4 sm:$0xff]  }
 0x2d1   :  { %8564 = vmatprep.subr.bf16.mxu0 %v12526_v42  ;;  %v12610_v42 = vld [vmem:[%s17746_s1 + $0x1c24] ss:$8 sps:$4 sm:$0xff]  }
 0x2d3   :  { %7877 = vmatpush1.bf16.msra.mxu1 %v12521_v56  ;;  %v12605_v56 = vld [vmem:[%s17746_s1 + $0xc20] ss:$8 sps:$4 sm:$0xff]  }
 0x2d4   :  { %8565 = vmatpush1.bf16.msra.mxu0 %v12524_v57  ;;  %7878 = vmatprep.subr.bf16.mxu1 %v12529_v58  ;;  %v12608_v57 = vld [vmem:[%s17746_s1 + $0x1c20] ss:$8 sps:$4 sm:$0xff]   ;;  %v12613_v58 = vld [vmem:[%s17746_s1 + $0xc34] ss:$8 sps:$4 sm:$0xff]  }
 0x2d5   :  { %8566 = vmatprep.subr.bf16.mxu0 %v12532_v59  ;;  %v12616_v59 = vld [vmem:[%s17746_s1 + $0x1c34] ss:$8 sps:$4 sm:$0xff]  }
 0x2d7   :  { %7879 = vmatpush1.bf16.msra.mxu1 %v12527_v60  ;;  %v12611_v60 = vld [vmem:[%s17746_s1 + $0xc30] ss:$8 sps:$4 sm:$0xff]  }
 0x2d8   :  { %8567 = vmatpush1.bf16.msra.mxu0 %v12530_v35  ;;  %7880 = vmatprep.subr.bf16.mxu1 %v12535_v45  ;;  %v12614_v35 = vld [vmem:[%s17746_s1 + $0x1c30] ss:$8 sps:$4 sm:$0xff]   ;;  %v12619_v45 = vld [vmem:[%s17746_s1 + $0xc44] ss:$8 sps:$4 sm:$0xff]  }
 0x2d9   :  { %8568 = vmatprep.subr.bf16.mxu0 %v12538_v46  ;;  %v12622_v46 = vld [vmem:[%s17746_s1 + $0x1c44] ss:$8 sps:$4 sm:$0xff]  }
 0x2db   :  { %7881 = vmatpush1.bf16.msra.mxu1 %v12533_v0  ;;  %v12617_v0 = vld [vmem:[%s17746_s1 + $0xc40] ss:$8 sps:$4 sm:$0xff]  }
 0x2dc   :  { %8569 = vmatpush1.bf16.msra.mxu0 %v12536_v1  ;;  %7882 = vmatprep.subr.bf16.mxu1 %v12541_v2  ;;  %v12620_v1 = vld [vmem:[%s17746_s1 + $0x1c40] ss:$8 sps:$4 sm:$0xff]   ;;  %v12625_v2 = vld [vmem:[%s17746_s1 + $0xc54] ss:$8 sps:$4 sm:$0xff]  }
 0x2dd   :  { %8570 = vmatprep.subr.bf16.mxu0 %v12544_v3  ;;  %v12628_v3 = vld [vmem:[%s17746_s1 + $0x1c54] ss:$8 sps:$4 sm:$0xff]  }
 0x2df   :  { %7883 = vmatpush1.bf16.msra.mxu1 %v12539_v4  ;;  %v12623_v4 = vld [vmem:[%s17746_s1 + $0xc50] ss:$8 sps:$4 sm:$0xff]  }
 0x2e0   :  { %8571 = vmatpush1.bf16.msra.mxu0 %v12542_v43  ;;  %7884 = vmatprep.subr.bf16.mxu1 %v12547_v53  ;;  %v12626_v43 = vld [vmem:[%s17746_s1 + $0x1c50] ss:$8 sps:$4 sm:$0xff]   ;;  %v12631_v53 = vld [vmem:[%s17746_s1 + $0xc64] ss:$8 sps:$4 sm:$0xff]  }
 0x2e1   :  { %8572 = vmatprep.subr.bf16.mxu0 %v12550_v54  ;;  %v12634_v54 = vld [vmem:[%s17746_s1 + $0x1c64] ss:$8 sps:$4 sm:$0xff]  }
 0x2e3   :  { %7885 = vmatpush1.bf16.msra.mxu1 %v12545_v8  ;;  %v12629_v8 = vld [vmem:[%s17746_s1 + $0xc60] ss:$8 sps:$4 sm:$0xff]  }
 0x2e4   :  { %8573 = vmatpush1.bf16.msra.mxu0 %v12548_v9  ;;  %7886 = vmatprep.subr.bf16.mxu1 %v12553_v10  ;;  %v12632_v9 = vld [vmem:[%s17746_s1 + $0x1c60] ss:$8 sps:$4 sm:$0xff]   ;;  %v12637_v10 = vld [vmem:[%s17746_s1 + $0xc74] ss:$8 sps:$4 sm:$0xff]  }
 0x2e5   :  { %8574 = vmatprep.subr.bf16.mxu0 %v12556_v11  ;;  %v12640_v11 = vld [vmem:[%s17746_s1 + $0x1c74] ss:$8 sps:$4 sm:$0xff]  }
 0x2e7   :  { %7887 = vmatpush1.bf16.msra.mxu1 %v12551_v12  ;;  %v12635_v12 = vld [vmem:[%s17746_s1 + $0xc70] ss:$8 sps:$4 sm:$0xff]  }
 0x2e8   :  { %8575 = vmatpush1.bf16.msra.mxu0 %v12554_v47  ;;  %7888 = vmatprep.subr.bf16.mxu1 %v12559_v61  ;;  %v12638_v47 = vld [vmem:[%s17746_s1 + $0x1c70] ss:$8 sps:$4 sm:$0xff]   ;;  %v12643_v61 = vld [vmem:[%s17746_s1 + $0xc84] ss:$8 sps:$4 sm:$0xff]  }
 0x2e9   :  { %8576 = vmatprep.subr.bf16.mxu0 %v12562_v62  ;;  %v12646_v62 = vld [vmem:[%s17746_s1 + $0x1c84] ss:$8 sps:$4 sm:$0xff]  }
 0x2eb   :  { %7889 = vmatpush1.bf16.msra.mxu1 %v12557_v16  ;;  %v12641_v16 = vld [vmem:[%s17746_s1 + $0xc80] ss:$8 sps:$4 sm:$0xff]  }
 0x2ec   :  { %8577 = vmatpush1.bf16.msra.mxu0 %v12560_v17  ;;  %7890 = vmatprep.subr.bf16.mxu1 %v12565_v18  ;;  %v12644_v17 = vld [vmem:[%s17746_s1 + $0x1c80] ss:$8 sps:$4 sm:$0xff]   ;;  %v12649_v18 = vld [vmem:[%s17746_s1 + $0xc94] ss:$8 sps:$4 sm:$0xff]  }
 0x2ed   :  { %8578 = vmatprep.subr.bf16.mxu0 %v12568_v19  ;;  %v12652_v19 = vld [vmem:[%s17746_s1 + $0x1c94] ss:$8 sps:$4 sm:$0xff]  }
 0x2ef   :  { %7891 = vmatpush1.bf16.msra.mxu1 %v12563_v20  ;;  %v12647_v20 = vld [vmem:[%s17746_s1 + $0xc90] ss:$8 sps:$4 sm:$0xff]  }
 0x2f0   :  { %8579 = vmatpush1.bf16.msra.mxu0 %v12566_v55  ;;  %7892 = vmatprep.subr.bf16.mxu1 %v12571_v5  ;;  %v12650_v55 = vld [vmem:[%s17746_s1 + $0x1c90] ss:$8 sps:$4 sm:$0xff]   ;;  %v12655_v5 = vld [vmem:[%s17746_s1 + $0xca4] ss:$8 sps:$4 sm:$0xff]  }
 0x2f1   :  { %8580 = vmatprep.subr.bf16.mxu0 %v12574_v6  ;;  %v12658_v6 = vld [vmem:[%s17746_s1 + $0x1ca4] ss:$8 sps:$4 sm:$0xff]  }
 0x2f3   :  { %7893 = vmatpush1.bf16.msra.mxu1 %v12569_v26  ;;  %v12653_v26 = vld [vmem:[%s17746_s1 + $0xca0] ss:$8 sps:$4 sm:$0xff]  }
 0x2f4   :  { %8581 = vmatpush1.bf16.msra.mxu0 %v12572_v27  ;;  %7894 = vmatprep.subr.bf16.mxu1 %v12577_v32  ;;  %v12656_v27 = vld [vmem:[%s17746_s1 + $0x1ca0] ss:$8 sps:$4 sm:$0xff]   ;;  %v12661_v32 = vld [vmem:[%s17746_s1 + $0xcb4] ss:$8 sps:$4 sm:$0xff]  }
 0x2f5   :  { %8582 = vmatprep.subr.bf16.mxu0 %v12580_v33  ;;  %v12664_v33 = vld [vmem:[%s17746_s1 + $0x1cb4] ss:$8 sps:$4 sm:$0xff]  }
 0x2f7   :  { %7895 = vmatpush1.bf16.msra.mxu1 %v12575_v36  ;;  %v12659_v36 = vld [vmem:[%s17746_s1 + $0xcb0] ss:$8 sps:$4 sm:$0xff]  }
 0x2f8   :  { %8583 = vmatpush1.bf16.msra.mxu0 %v12578_v63  ;;  %7896 = vmatprep.subr.bf16.mxu1 %v12583_v13  ;;  %v12662_v63 = vld [vmem:[%s17746_s1 + $0x1cb0] ss:$8 sps:$4 sm:$0xff]   ;;  %v12667_v13 = vld [vmem:[%s17746_s1 + $0xcc4] ss:$8 sps:$4 sm:$0xff]  }
 0x2f9   :  { %8584 = vmatprep.subr.bf16.mxu0 %v12586_v14  ;;  %v12670_v14 = vld [vmem:[%s17746_s1 + $0x1cc4] ss:$8 sps:$4 sm:$0xff]  }
 0x2fb   :  { %7897 = vmatpush1.bf16.msra.mxu1 %v12581_v24  ;;  %v12665_v24 = vld [vmem:[%s17746_s1 + $0xcc0] ss:$8 sps:$4 sm:$0xff]  }
 0x2fc   :  { %8585 = vmatpush1.bf16.msra.mxu0 %v12584_v25  ;;  %7898 = vmatprep.subr.bf16.mxu1 %v12589_v7  ;;  %v12668_v25 = vld [vmem:[%s17746_s1 + $0x1cc0] ss:$8 sps:$4 sm:$0xff]   ;;  %v12673_v7 = vld [vmem:[%s17746_s1 + $0xcd4] ss:$8 sps:$4 sm:$0xff]  }
 0x2fd   :  { %8586 = vmatprep.subr.bf16.mxu0 %v12592_v21  ;;  %v12676_v21 = vld [vmem:[%s17746_s1 + $0x1cd4] ss:$8 sps:$4 sm:$0xff]  }
 0x2ff   :  { %7899 = vmatpush1.bf16.msra.mxu1 %v12587_v22  ;;  %v12671_v22 = vld [vmem:[%s17746_s1 + $0xcd0] ss:$8 sps:$4 sm:$0xff]  }
 0x300   :  { %8587 = vmatpush1.bf16.msra.mxu0 %v12590_v23  ;;  %7911 = vmatprep.subr.bf16.mxu1 %v12595_v40  ;;  %v12674_v23 = vld [vmem:[%s17746_s1 + $0x1cd0] ss:$8 sps:$4 sm:$0xff]   ;;  %v12679_v40 = vld [vmem:[%s17746_s1 + $0xce4] ss:$8 sps:$4 sm:$0xff]  }
 0x301   :  { %8599 = vmatprep.subr.bf16.mxu0 %v12598_v41  ;;  %v12682_v41 = vld [vmem:[%s17746_s1 + $0x1ce4] ss:$8 sps:$4 sm:$0xff]  }
 0x302   :  { %7901 = vmatmul.mubr.bf16.vlgmr.msra.gmra.mrb[0].mxu1 %v9960_v28  ;;  %v12677_v28 = vld [vmem:[%s17746_s1 + $0xce0] ss:$8 sps:$4 sm:$0xff]  }
 0x303   :  { %8589 = vmatmul.mubr.bf16.vlgmr.msra.gmra.mrb[0].mxu0 %v9992_v31  ;;  %7912 = vmatpush1.bf16.msra.mxu1 %v12593_v15  ;;  %v12680_v31 = vld [vmem:[%s17746_s1 + $0x1ce0] ss:$8 sps:$4 sm:$0xff]   ;;  %v12685_v15 = vld [vmem:[%s17746_s1 + $0xcf4] ss:$8 sps:$4 sm:$0xff]  }
 0x304   :  { %8600 = vmatpush1.bf16.msra.mxu0 %v12596_v29  ;;  %7913 = vmatprep.subr.bf16.mxu1 %v12601_v30  ;;  %v12688_v29 = vld [vmem:[%s17746_s1 + $0x1cf4] ss:$8 sps:$4 sm:$0xff]   ;;  %v12683_v30 = vld [vmem:[%s17746_s1 + $0xcf0] ss:$8 sps:$4 sm:$0xff]  }
 0x305   :  { %8601 = vmatprep.subr.bf16.mxu0 %v12604_v37  ;;  %7943 = vmatprep.mubr.bf16.mxu1 %v9963_v50  ;;  %v12686_v37 = vld [vmem:[%s17746_s1 + $0x1cf0] ss:$8 sps:$4 sm:$0xff]   ;;  %v12691_v50 = vld [vmem:[%s17746_s1 + $0xd04] ss:$8 sps:$4 sm:$0xff]  }
 0x306   :  { %8631 = vmatprep.mubr.bf16.mxu0 %v9995_v51  ;;  %v12694_v51 = vld [vmem:[%s17746_s1 + $0x1d04] ss:$8 sps:$4 sm:$0xff]  }
 0x307   :  { %7914 = vmatpush1.bf16.msra.mxu1 %v12599_v52  ;;  %v16270_v52 = vld [vmem:[%s17747_s0 + $0x68] sm:$0xff] }
 0x308   :  { %8602 = vmatpush1.bf16.msra.mxu0 %v12602_v38  ;;  %7915 = vmatprep.subr.bf16.mxu1 %v12607_v39  ;;  %v9962_v38 = vcombine.low %v16050_v44, %v16059_v34  ;;  %v9994_v39 = vcombine.low %v16064_v48, %v16069_v49  ;;  %v12689_v44 = vld [vmem:[%s17746_s1 + $0xd00] ss:$8 sps:$4 sm:$0xff]   ;;  %v12697_v48 = vld [vmem:[%s17746_s1 + $0xd14] ss:$8 sps:$4 sm:$0xff]  }
 0x309   :  { %8603 = vmatprep.subr.bf16.mxu0 %v12610_v42  ;;  %v16279_v42 = vld [vmem:[%s17747_s0 + $0x188] sm:$0xff]  ;;  %v12700_v49 = vld [vmem:[%s17746_s1 + $0x1d14] ss:$8 sps:$4 sm:$0xff]  }
 0x30a   :  { %v12692_v34 = vld [vmem:[%s17746_s1 + $0x1d00] ss:$8 sps:$4 sm:$0xff]  }
 0x30b   :  { %7916 = vmatpush1.bf16.msra.mxu1 %v12605_v56  ;;  %v16284_v56 = vld [vmem:[%s17747_s0 + $0xe8] sm:$0xff] }
 0x30c   :  { %8604 = vmatpush1.bf16.msra.mxu0 %v12608_v57  ;;  %7917 = vmatprep.subr.bf16.mxu1 %v12613_v58  ;;  %v16289_v57 = vld [vmem:[%s17747_s0 + $0x208] sm:$0xff]  ;;  %v9965_v58 = vcombine.high %v16270_v52, %v16279_v42 }
 0x30d   :  { %8605 = vmatprep.subr.bf16.mxu0 %v12616_v59  ;;  %v9997_v59 = vcombine.high %v16284_v56, %v16289_v57 }
 0x30f   :  { %7918 = vmatpush1.bf16.msra.mxu1 %v12611_v60  ;;  %v12695_v60 = vld [vmem:[%s17746_s1 + $0xd10] ss:$8 sps:$4 sm:$0xff]  }
 0x310   :  { %8606 = vmatpush1.bf16.msra.mxu0 %v12614_v35  ;;  %7919 = vmatprep.subr.bf16.mxu1 %v12619_v45  ;;  %v12698_v35 = vld [vmem:[%s17746_s1 + $0x1d10] ss:$8 sps:$4 sm:$0xff]   ;;  %v12703_v45 = vld [vmem:[%s17746_s1 + $0xd24] ss:$8 sps:$4 sm:$0xff]  }
 0x311   :  { %8607 = vmatprep.subr.bf16.mxu0 %v12622_v46  ;;  %v12706_v46 = vld [vmem:[%s17746_s1 + $0x1d24] ss:$8 sps:$4 sm:$0xff]  }
 0x313   :  { %7920 = vmatpush1.bf16.msra.mxu1 %v12617_v0  ;;  %v12701_v0 = vld [vmem:[%s17746_s1 + $0xd20] ss:$8 sps:$4 sm:$0xff]  }
 0x314   :  { %8608 = vmatpush1.bf16.msra.mxu0 %v12620_v1  ;;  %7921 = vmatprep.subr.bf16.mxu1 %v12625_v2  ;;  %v12704_v1 = vld [vmem:[%s17746_s1 + $0x1d20] ss:$8 sps:$4 sm:$0xff]   ;;  %v12709_v2 = vld [vmem:[%s17746_s1 + $0xd34] ss:$8 sps:$4 sm:$0xff]  }
 0x315   :  { %8609 = vmatprep.subr.bf16.mxu0 %v12628_v3  ;;  %v12712_v3 = vld [vmem:[%s17746_s1 + $0x1d34] ss:$8 sps:$4 sm:$0xff]  }
 0x317   :  { %7922 = vmatpush1.bf16.msra.mxu1 %v12623_v4  ;;  %v12707_v4 = vld [vmem:[%s17746_s1 + $0xd30] ss:$8 sps:$4 sm:$0xff]  }
 0x318   :  { %8610 = vmatpush1.bf16.msra.mxu0 %v12626_v43  ;;  %7923 = vmatprep.subr.bf16.mxu1 %v12631_v53  ;;  %v12710_v43 = vld [vmem:[%s17746_s1 + $0x1d30] ss:$8 sps:$4 sm:$0xff]   ;;  %v12715_v53 = vld [vmem:[%s17746_s1 + $0xd44] ss:$8 sps:$4 sm:$0xff]  }
 0x319   :  { %8611 = vmatprep.subr.bf16.mxu0 %v12634_v54  ;;  %v12718_v54 = vld [vmem:[%s17746_s1 + $0x1d44] ss:$8 sps:$4 sm:$0xff]  }
 0x31b   :  { %7924 = vmatpush1.bf16.msra.mxu1 %v12629_v8  ;;  %v12713_v8 = vld [vmem:[%s17746_s1 + $0xd40] ss:$8 sps:$4 sm:$0xff]  }
 0x31c   :  { %8612 = vmatpush1.bf16.msra.mxu0 %v12632_v9  ;;  %7925 = vmatprep.subr.bf16.mxu1 %v12637_v10  ;;  %v12716_v9 = vld [vmem:[%s17746_s1 + $0x1d40] ss:$8 sps:$4 sm:$0xff]   ;;  %v12721_v10 = vld [vmem:[%s17746_s1 + $0xd54] ss:$8 sps:$4 sm:$0xff]  }
 0x31d   :  { %8613 = vmatprep.subr.bf16.mxu0 %v12640_v11  ;;  %v12724_v11 = vld [vmem:[%s17746_s1 + $0x1d54] ss:$8 sps:$4 sm:$0xff]  }
 0x31f   :  { %7926 = vmatpush1.bf16.msra.mxu1 %v12635_v12  ;;  %v12719_v12 = vld [vmem:[%s17746_s1 + $0xd50] ss:$8 sps:$4 sm:$0xff]  }
 0x320   :  { %8614 = vmatpush1.bf16.msra.mxu0 %v12638_v47  ;;  %7927 = vmatprep.subr.bf16.mxu1 %v12643_v61  ;;  %v12722_v47 = vld [vmem:[%s17746_s1 + $0x1d50] ss:$8 sps:$4 sm:$0xff]   ;;  %v12727_v61 = vld [vmem:[%s17746_s1 + $0xd64] ss:$8 sps:$4 sm:$0xff]  }
 0x321   :  { %8615 = vmatprep.subr.bf16.mxu0 %v12646_v62  ;;  %v12730_v62 = vld [vmem:[%s17746_s1 + $0x1d64] ss:$8 sps:$4 sm:$0xff]  }
 0x323   :  { %7928 = vmatpush1.bf16.msra.mxu1 %v12641_v16  ;;  %v12725_v16 = vld [vmem:[%s17746_s1 + $0xd60] ss:$8 sps:$4 sm:$0xff]  }
 0x324   :  { %8616 = vmatpush1.bf16.msra.mxu0 %v12644_v17  ;;  %7929 = vmatprep.subr.bf16.mxu1 %v12649_v18  ;;  %v12728_v17 = vld [vmem:[%s17746_s1 + $0x1d60] ss:$8 sps:$4 sm:$0xff]   ;;  %v12733_v18 = vld [vmem:[%s17746_s1 + $0xd74] ss:$8 sps:$4 sm:$0xff]  }
 0x325   :  { %8617 = vmatprep.subr.bf16.mxu0 %v12652_v19  ;;  %v12736_v19 = vld [vmem:[%s17746_s1 + $0x1d74] ss:$8 sps:$4 sm:$0xff]  }
 0x327   :  { %7930 = vmatpush1.bf16.msra.mxu1 %v12647_v20  ;;  %v12731_v20 = vld [vmem:[%s17746_s1 + $0xd70] ss:$8 sps:$4 sm:$0xff]  }
 0x328   :  { %8618 = vmatpush1.bf16.msra.mxu0 %v12650_v55  ;;  %7931 = vmatprep.subr.bf16.mxu1 %v12655_v5  ;;  %v12734_v55 = vld [vmem:[%s17746_s1 + $0x1d70] ss:$8 sps:$4 sm:$0xff]   ;;  %v12739_v5 = vld [vmem:[%s17746_s1 + $0xd84] ss:$8 sps:$4 sm:$0xff]  }
 0x329   :  { %8619 = vmatprep.subr.bf16.mxu0 %v12658_v6  ;;  %v12742_v6 = vld [vmem:[%s17746_s1 + $0x1d84] ss:$8 sps:$4 sm:$0xff]  }
 0x32b   :  { %7932 = vmatpush1.bf16.msra.mxu1 %v12653_v26  ;;  %v12737_v26 = vld [vmem:[%s17746_s1 + $0xd80] ss:$8 sps:$4 sm:$0xff]  }
 0x32c   :  { %8620 = vmatpush1.bf16.msra.mxu0 %v12656_v27  ;;  %7933 = vmatprep.subr.bf16.mxu1 %v12661_v32  ;;  %v12740_v27 = vld [vmem:[%s17746_s1 + $0x1d80] ss:$8 sps:$4 sm:$0xff]   ;;  %v12745_v32 = vld [vmem:[%s17746_s1 + $0xd94] ss:$8 sps:$4 sm:$0xff]  }
 0x32d   :  { %8621 = vmatprep.subr.bf16.mxu0 %v12664_v33  ;;  %v12748_v33 = vld [vmem:[%s17746_s1 + $0x1d94] ss:$8 sps:$4 sm:$0xff]  }
 0x32f   :  { %7934 = vmatpush1.bf16.msra.mxu1 %v12659_v36  ;;  %v12743_v36 = vld [vmem:[%s17746_s1 + $0xd90] ss:$8 sps:$4 sm:$0xff]  }
 0x330   :  { %8622 = vmatpush1.bf16.msra.mxu0 %v12662_v63  ;;  %7935 = vmatprep.subr.bf16.mxu1 %v12667_v13  ;;  %v12746_v63 = vld [vmem:[%s17746_s1 + $0x1d90] ss:$8 sps:$4 sm:$0xff]   ;;  %v12751_v13 = vld [vmem:[%s17746_s1 + $0xda4] ss:$8 sps:$4 sm:$0xff]  }
 0x331   :  { %8623 = vmatprep.subr.bf16.mxu0 %v12670_v14  ;;  %v12754_v14 = vld [vmem:[%s17746_s1 + $0x1da4] ss:$8 sps:$4 sm:$0xff]  }
 0x333   :  { %7936 = vmatpush1.bf16.msra.mxu1 %v12665_v24  ;;  %v12749_v24 = vld [vmem:[%s17746_s1 + $0xda0] ss:$8 sps:$4 sm:$0xff]  }
 0x334   :  { %8624 = vmatpush1.bf16.msra.mxu0 %v12668_v25  ;;  %7937 = vmatprep.subr.bf16.mxu1 %v12673_v7  ;;  %v12752_v25 = vld [vmem:[%s17746_s1 + $0x1da0] ss:$8 sps:$4 sm:$0xff]   ;;  %v12757_v7 = vld [vmem:[%s17746_s1 + $0xdb4] ss:$8 sps:$4 sm:$0xff]  }
 0x335   :  { %8625 = vmatprep.subr.bf16.mxu0 %v12676_v21  ;;  %v12760_v21 = vld [vmem:[%s17746_s1 + $0x1db4] ss:$8 sps:$4 sm:$0xff]  }
 0x337   :  { %7938 = vmatpush1.bf16.msra.mxu1 %v12671_v22  ;;  %v12755_v22 = vld [vmem:[%s17746_s1 + $0xdb0] ss:$8 sps:$4 sm:$0xff]  }
 0x338   :  { %8626 = vmatpush1.bf16.msra.mxu0 %v12674_v23  ;;  %7939 = vmatprep.subr.bf16.mxu1 %v12679_v40  ;;  %v12758_v23 = vld [vmem:[%s17746_s1 + $0x1db0] ss:$8 sps:$4 sm:$0xff]   ;;  %v12763_v40 = vld [vmem:[%s17746_s1 + $0xdc4] ss:$8 sps:$4 sm:$0xff]  }
 0x339   :  { %8627 = vmatprep.subr.bf16.mxu0 %v12682_v41  ;;  %v12766_v41 = vld [vmem:[%s17746_s1 + $0x1dc4] ss:$8 sps:$4 sm:$0xff]  }
 0x33b   :  { %7940 = vmatpush1.bf16.msra.mxu1 %v12677_v28  ;;  %v12761_v28 = vld [vmem:[%s17746_s1 + $0xdc0] ss:$8 sps:$4 sm:$0xff]  }
 0x33c   :  { %8628 = vmatpush1.bf16.msra.mxu0 %v12680_v31  ;;  %7941 = vmatprep.subr.bf16.mxu1 %v12685_v15  ;;  %v12764_v31 = vld [vmem:[%s17746_s1 + $0x1dc0] ss:$8 sps:$4 sm:$0xff]   ;;  %v12769_v15 = vld [vmem:[%s17746_s1 + $0xdd4] ss:$8 sps:$4 sm:$0xff]  }
 0x33d   :  { %8629 = vmatprep.subr.bf16.mxu0 %v12688_v29  ;;  %v12772_v29 = vld [vmem:[%s17746_s1 + $0x1dd4] ss:$8 sps:$4 sm:$0xff]  }
 0x33f   :  { %7942 = vmatpush1.bf16.msra.mxu1 %v12683_v30  ;;  %v12767_v30 = vld [vmem:[%s17746_s1 + $0xdd0] ss:$8 sps:$4 sm:$0xff]  }
 0x340   :  { %8630 = vmatpush1.bf16.msra.mxu0 %v12686_v37  ;;  %7954 = vmatprep.subr.bf16.mxu1 %v12691_v50  ;;  %v12770_v37 = vld [vmem:[%s17746_s1 + $0x1dd0] ss:$8 sps:$4 sm:$0xff]   ;;  %v12775_v50 = vld [vmem:[%s17746_s1 + $0xde4] ss:$8 sps:$4 sm:$0xff]  }
 0x341   :  { %8642 = vmatprep.subr.bf16.mxu0 %v12694_v51  ;;  %v12778_v51 = vld [vmem:[%s17746_s1 + $0x1de4] ss:$8 sps:$4 sm:$0xff]  }
 0x342   :  { %7944 = vmatmul.mubr.bf16.vlgmr.msra.gmra.mrb[0].mxu1 %v9962_v38  ;;  %v12773_v38 = vld [vmem:[%s17746_s1 + $0xde0] ss:$8 sps:$4 sm:$0xff]  }
 0x343   :  { %8632 = vmatmul.mubr.bf16.vlgmr.msra.gmra.mrb[0].mxu0 %v9994_v39  ;;  %7955 = vmatpush1.bf16.msra.mxu1 %v12689_v44  ;;  %v12776_v39 = vld [vmem:[%s17746_s1 + $0x1de0] ss:$8 sps:$4 sm:$0xff]   ;;  %v12781_v44 = vld [vmem:[%s17746_s1 + $0xdf4] ss:$8 sps:$4 sm:$0xff]  }
 0x344   :  { %8643 = vmatpush1.bf16.msra.mxu0 %v12692_v34  ;;  %7956 = vmatprep.subr.bf16.mxu1 %v12697_v48  ;;  %v12784_v34 = vld [vmem:[%s17746_s1 + $0x1df4] ss:$8 sps:$4 sm:$0xff]   ;;  %v12779_v48 = vld [vmem:[%s17746_s1 + $0xdf0] ss:$8 sps:$4 sm:$0xff]  }
 0x345   :  { %8644 = vmatprep.subr.bf16.mxu0 %v12700_v49  ;;  %7986 = vmatprep.mubr.bf16.mxu1 %v9965_v58  ;;  %v12782_v49 = vld [vmem:[%s17746_s1 + $0x1df0] ss:$8 sps:$4 sm:$0xff]   ;;  %v12787_v58 = vld [vmem:[%s17746_s1 + $0xe04] ss:$8 sps:$4 sm:$0xff]  }
 0x346   :  { %8674 = vmatprep.mubr.bf16.mxu0 %v9997_v59  ;;  %v12790_v59 = vld [vmem:[%s17746_s1 + $0x1e04] ss:$8 sps:$4 sm:$0xff]  }
 0x347   :  { %7957 = vmatpush1.bf16.msra.mxu1 %v12695_v60  ;;  %v16490_v60 = vld [vmem:[%s17747_s0 + $0x70] sm:$0xff] }
 0x348   :  { %8645 = vmatpush1.bf16.msra.mxu0 %v12698_v35  ;;  %7958 = vmatprep.subr.bf16.mxu1 %v12703_v45  ;;  %v9964_v35 = vcombine.low %v16270_v52, %v16279_v42  ;;  %v9996_v45 = vcombine.low %v16284_v56, %v16289_v57  ;;  %v12785_v52 = vld [vmem:[%s17746_s1 + $0xe00] ss:$8 sps:$4 sm:$0xff]   ;;  %v12793_v56 = vld [vmem:[%s17746_s1 + $0xe14] ss:$8 sps:$4 sm:$0xff]  }
 0x349   :  { %8646 = vmatprep.subr.bf16.mxu0 %v12706_v46  ;;  %v16499_v46 = vld [vmem:[%s17747_s0 + $0x190] sm:$0xff]  ;;  %v12788_v42 = vld [vmem:[%s17746_s1 + $0x1e00] ss:$8 sps:$4 sm:$0xff]  }
 0x34a   :  { %v12796_v57 = vld [vmem:[%s17746_s1 + $0x1e14] ss:$8 sps:$4 sm:$0xff]  }
 0x34b   :  { %7959 = vmatpush1.bf16.msra.mxu1 %v12701_v0  ;;  %v16504_v0 = vld [vmem:[%s17747_s0 + $0xf0] sm:$0xff] }
 0x34c   :  { %8647 = vmatpush1.bf16.msra.mxu0 %v12704_v1  ;;  %7960 = vmatprep.subr.bf16.mxu1 %v12709_v2  ;;  %v16509_v1 = vld [vmem:[%s17747_s0 + $0x210] sm:$0xff]  ;;  %v9967_v2 = vcombine.high %v16490_v60, %v16499_v46 }
 0x34d   :  { %8648 = vmatprep.subr.bf16.mxu0 %v12712_v3  ;;  %v9999_v3 = vcombine.high %v16504_v0, %v16509_v1 }
 0x34f   :  { %7961 = vmatpush1.bf16.msra.mxu1 %v12707_v4  ;;  %v12791_v4 = vld [vmem:[%s17746_s1 + $0xe10] ss:$8 sps:$4 sm:$0xff]  }
 0x350   :  { %8649 = vmatpush1.bf16.msra.mxu0 %v12710_v43  ;;  %7962 = vmatprep.subr.bf16.mxu1 %v12715_v53  ;;  %v12794_v43 = vld [vmem:[%s17746_s1 + $0x1e10] ss:$8 sps:$4 sm:$0xff]   ;;  %v12799_v53 = vld [vmem:[%s17746_s1 + $0xe24] ss:$8 sps:$4 sm:$0xff]  }
 0x351   :  { %8650 = vmatprep.subr.bf16.mxu0 %v12718_v54  ;;  %v12802_v54 = vld [vmem:[%s17746_s1 + $0x1e24] ss:$8 sps:$4 sm:$0xff]  }
 0x353   :  { %7963 = vmatpush1.bf16.msra.mxu1 %v12713_v8  ;;  %v12797_v8 = vld [vmem:[%s17746_s1 + $0xe20] ss:$8 sps:$4 sm:$0xff]  }
 0x354   :  { %8651 = vmatpush1.bf16.msra.mxu0 %v12716_v9  ;;  %7964 = vmatprep.subr.bf16.mxu1 %v12721_v10  ;;  %v12800_v9 = vld [vmem:[%s17746_s1 + $0x1e20] ss:$8 sps:$4 sm:$0xff]   ;;  %v12805_v10 = vld [vmem:[%s17746_s1 + $0xe34] ss:$8 sps:$4 sm:$0xff]  }
 0x355   :  { %8652 = vmatprep.subr.bf16.mxu0 %v12724_v11  ;;  %v12808_v11 = vld [vmem:[%s17746_s1 + $0x1e34] ss:$8 sps:$4 sm:$0xff]  }
 0x357   :  { %7965 = vmatpush1.bf16.msra.mxu1 %v12719_v12  ;;  %v12803_v12 = vld [vmem:[%s17746_s1 + $0xe30] ss:$8 sps:$4 sm:$0xff]  }
 0x358   :  { %8653 = vmatpush1.bf16.msra.mxu0 %v12722_v47  ;;  %7966 = vmatprep.subr.bf16.mxu1 %v12727_v61  ;;  %v12806_v47 = vld [vmem:[%s17746_s1 + $0x1e30] ss:$8 sps:$4 sm:$0xff]   ;;  %v12811_v61 = vld [vmem:[%s17746_s1 + $0xe44] ss:$8 sps:$4 sm:$0xff]  }
 0x359   :  { %8654 = vmatprep.subr.bf16.mxu0 %v12730_v62  ;;  %v12814_v62 = vld [vmem:[%s17746_s1 + $0x1e44] ss:$8 sps:$4 sm:$0xff]  }
 0x35b   :  { %7967 = vmatpush1.bf16.msra.mxu1 %v12725_v16  ;;  %v12809_v16 = vld [vmem:[%s17746_s1 + $0xe40] ss:$8 sps:$4 sm:$0xff]  }
 0x35c   :  { %8655 = vmatpush1.bf16.msra.mxu0 %v12728_v17  ;;  %7968 = vmatprep.subr.bf16.mxu1 %v12733_v18  ;;  %v12812_v17 = vld [vmem:[%s17746_s1 + $0x1e40] ss:$8 sps:$4 sm:$0xff]   ;;  %v12817_v18 = vld [vmem:[%s17746_s1 + $0xe54] ss:$8 sps:$4 sm:$0xff]  }
 0x35d   :  { %8656 = vmatprep.subr.bf16.mxu0 %v12736_v19  ;;  %v12820_v19 = vld [vmem:[%s17746_s1 + $0x1e54] ss:$8 sps:$4 sm:$0xff]  }
 0x35f   :  { %7969 = vmatpush1.bf16.msra.mxu1 %v12731_v20  ;;  %v12815_v20 = vld [vmem:[%s17746_s1 + $0xe50] ss:$8 sps:$4 sm:$0xff]  }
 0x360   :  { %8657 = vmatpush1.bf16.msra.mxu0 %v12734_v55  ;;  %7970 = vmatprep.subr.bf16.mxu1 %v12739_v5  ;;  %v12818_v55 = vld [vmem:[%s17746_s1 + $0x1e50] ss:$8 sps:$4 sm:$0xff]   ;;  %v12823_v5 = vld [vmem:[%s17746_s1 + $0xe64] ss:$8 sps:$4 sm:$0xff]  }
 0x361   :  { %8658 = vmatprep.subr.bf16.mxu0 %v12742_v6  ;;  %v12826_v6 = vld [vmem:[%s17746_s1 + $0x1e64] ss:$8 sps:$4 sm:$0xff]  }
 0x363   :  { %7971 = vmatpush1.bf16.msra.mxu1 %v12737_v26  ;;  %v12821_v26 = vld [vmem:[%s17746_s1 + $0xe60] ss:$8 sps:$4 sm:$0xff]  }
 0x364   :  { %8659 = vmatpush1.bf16.msra.mxu0 %v12740_v27  ;;  %7972 = vmatprep.subr.bf16.mxu1 %v12745_v32  ;;  %v12824_v27 = vld [vmem:[%s17746_s1 + $0x1e60] ss:$8 sps:$4 sm:$0xff]   ;;  %v12829_v32 = vld [vmem:[%s17746_s1 + $0xe74] ss:$8 sps:$4 sm:$0xff]  }
 0x365   :  { %8660 = vmatprep.subr.bf16.mxu0 %v12748_v33  ;;  %v12832_v33 = vld [vmem:[%s17746_s1 + $0x1e74] ss:$8 sps:$4 sm:$0xff]  }
 0x367   :  { %7973 = vmatpush1.bf16.msra.mxu1 %v12743_v36  ;;  %v12827_v36 = vld [vmem:[%s17746_s1 + $0xe70] ss:$8 sps:$4 sm:$0xff]  }
 0x368   :  { %8661 = vmatpush1.bf16.msra.mxu0 %v12746_v63  ;;  %7974 = vmatprep.subr.bf16.mxu1 %v12751_v13  ;;  %v12830_v63 = vld [vmem:[%s17746_s1 + $0x1e70] ss:$8 sps:$4 sm:$0xff]   ;;  %v12835_v13 = vld [vmem:[%s17746_s1 + $0xe84] ss:$8 sps:$4 sm:$0xff]  }
 0x369   :  { %8662 = vmatprep.subr.bf16.mxu0 %v12754_v14  ;;  %v12838_v14 = vld [vmem:[%s17746_s1 + $0x1e84] ss:$8 sps:$4 sm:$0xff]  }
 0x36b   :  { %7975 = vmatpush1.bf16.msra.mxu1 %v12749_v24  ;;  %v12833_v24 = vld [vmem:[%s17746_s1 + $0xe80] ss:$8 sps:$4 sm:$0xff]  }
 0x36c   :  { %8663 = vmatpush1.bf16.msra.mxu0 %v12752_v25  ;;  %7976 = vmatprep.subr.bf16.mxu1 %v12757_v7  ;;  %v12836_v25 = vld [vmem:[%s17746_s1 + $0x1e80] ss:$8 sps:$4 sm:$0xff]   ;;  %v12841_v7 = vld [vmem:[%s17746_s1 + $0xe94] ss:$8 sps:$4 sm:$0xff]  }
 0x36d   :  { %8664 = vmatprep.subr.bf16.mxu0 %v12760_v21  ;;  %v12844_v21 = vld [vmem:[%s17746_s1 + $0x1e94] ss:$8 sps:$4 sm:$0xff]  }
 0x36f   :  { %7977 = vmatpush1.bf16.msra.mxu1 %v12755_v22  ;;  %v12839_v22 = vld [vmem:[%s17746_s1 + $0xe90] ss:$8 sps:$4 sm:$0xff]  }
 0x370   :  { %8665 = vmatpush1.bf16.msra.mxu0 %v12758_v23  ;;  %7978 = vmatprep.subr.bf16.mxu1 %v12763_v40  ;;  %v12842_v23 = vld [vmem:[%s17746_s1 + $0x1e90] ss:$8 sps:$4 sm:$0xff]   ;;  %v12847_v40 = vld [vmem:[%s17746_s1 + $0xea4] ss:$8 sps:$4 sm:$0xff]  }
 0x371   :  { %8666 = vmatprep.subr.bf16.mxu0 %v12766_v41  ;;  %v12850_v41 = vld [vmem:[%s17746_s1 + $0x1ea4] ss:$8 sps:$4 sm:$0xff]  }
 0x373   :  { %7979 = vmatpush1.bf16.msra.mxu1 %v12761_v28  ;;  %v12845_v28 = vld [vmem:[%s17746_s1 + $0xea0] ss:$8 sps:$4 sm:$0xff]  }
 0x374   :  { %8667 = vmatpush1.bf16.msra.mxu0 %v12764_v31  ;;  %7980 = vmatprep.subr.bf16.mxu1 %v12769_v15  ;;  %v12848_v31 = vld [vmem:[%s17746_s1 + $0x1ea0] ss:$8 sps:$4 sm:$0xff]   ;;  %v12853_v15 = vld [vmem:[%s17746_s1 + $0xeb4] ss:$8 sps:$4 sm:$0xff]  }
 0x375   :  { %8668 = vmatprep.subr.bf16.mxu0 %v12772_v29  ;;  %v12856_v29 = vld [vmem:[%s17746_s1 + $0x1eb4] ss:$8 sps:$4 sm:$0xff]  }
 0x377   :  { %7981 = vmatpush1.bf16.msra.mxu1 %v12767_v30  ;;  %v12851_v30 = vld [vmem:[%s17746_s1 + $0xeb0] ss:$8 sps:$4 sm:$0xff]  }
 0x378   :  { %8669 = vmatpush1.bf16.msra.mxu0 %v12770_v37  ;;  %7982 = vmatprep.subr.bf16.mxu1 %v12775_v50  ;;  %v12854_v37 = vld [vmem:[%s17746_s1 + $0x1eb0] ss:$8 sps:$4 sm:$0xff]   ;;  %v12859_v50 = vld [vmem:[%s17746_s1 + $0xec4] ss:$8 sps:$4 sm:$0xff]  }
 0x379   :  { %8670 = vmatprep.subr.bf16.mxu0 %v12778_v51  ;;  %v12862_v51 = vld [vmem:[%s17746_s1 + $0x1ec4] ss:$8 sps:$4 sm:$0xff]  }
 0x37b   :  { %7983 = vmatpush1.bf16.msra.mxu1 %v12773_v38  ;;  %v12857_v38 = vld [vmem:[%s17746_s1 + $0xec0] ss:$8 sps:$4 sm:$0xff]  }
 0x37c   :  { %8671 = vmatpush1.bf16.msra.mxu0 %v12776_v39  ;;  %7984 = vmatprep.subr.bf16.mxu1 %v12781_v44  ;;  %v12860_v39 = vld [vmem:[%s17746_s1 + $0x1ec0] ss:$8 sps:$4 sm:$0xff]   ;;  %v12865_v44 = vld [vmem:[%s17746_s1 + $0xed4] ss:$8 sps:$4 sm:$0xff]  }
 0x37d   :  { %8672 = vmatprep.subr.bf16.mxu0 %v12784_v34  ;;  %v12868_v34 = vld [vmem:[%s17746_s1 + $0x1ed4] ss:$8 sps:$4 sm:$0xff]  }
 0x37f   :  { %7985 = vmatpush1.bf16.msra.mxu1 %v12779_v48  ;;  %v12863_v48 = vld [vmem:[%s17746_s1 + $0xed0] ss:$8 sps:$4 sm:$0xff]  }
 0x380   :  { %8673 = vmatpush1.bf16.msra.mxu0 %v12782_v49  ;;  %7997 = vmatprep.subr.bf16.mxu1 %v12787_v58  ;;  %v12866_v49 = vld [vmem:[%s17746_s1 + $0x1ed0] ss:$8 sps:$4 sm:$0xff]   ;;  %v12871_v58 = vld [vmem:[%s17746_s1 + $0xee4] ss:$8 sps:$4 sm:$0xff]  }
 0x381   :  { %8685 = vmatprep.subr.bf16.mxu0 %v12790_v59  ;;  %v12874_v59 = vld [vmem:[%s17746_s1 + $0x1ee4] ss:$8 sps:$4 sm:$0xff]  }
 0x382   :  { %7987 = vmatmul.mubr.bf16.vlgmr.msra.gmra.mrb[0].mxu1 %v9964_v35  ;;  %v12869_v35 = vld [vmem:[%s17746_s1 + $0xee0] ss:$8 sps:$4 sm:$0xff]  }
 0x383   :  { %8675 = vmatmul.mubr.bf16.vlgmr.msra.gmra.mrb[0].mxu0 %v9996_v45  ;;  %7998 = vmatpush1.bf16.msra.mxu1 %v12785_v52  ;;  %v12872_v45 = vld [vmem:[%s17746_s1 + $0x1ee0] ss:$8 sps:$4 sm:$0xff]   ;;  %v12877_v52 = vld [vmem:[%s17746_s1 + $0xef4] ss:$8 sps:$4 sm:$0xff]  }
 0x384   :  { %8686 = vmatpush1.bf16.msra.mxu0 %v12788_v42  ;;  %7999 = vmatprep.subr.bf16.mxu1 %v12793_v56  ;;  %v12880_v42 = vld [vmem:[%s17746_s1 + $0x1ef4] ss:$8 sps:$4 sm:$0xff]   ;;  %v12875_v56 = vld [vmem:[%s17746_s1 + $0xef0] ss:$8 sps:$4 sm:$0xff]  }
 0x385   :  { %8687 = vmatprep.subr.bf16.mxu0 %v12796_v57  ;;  %8029 = vmatprep.mubr.bf16.mxu1 %v9967_v2  ;;  %v12878_v57 = vld [vmem:[%s17746_s1 + $0x1ef0] ss:$8 sps:$4 sm:$0xff]   ;;  %v12883_v2 = vld [vmem:[%s17746_s1 + $0xf04] ss:$8 sps:$4 sm:$0xff]  }
 0x386   :  { %8717 = vmatprep.mubr.bf16.mxu0 %v9999_v3  ;;  %v12886_v3 = vld [vmem:[%s17746_s1 + $0x1f04] ss:$8 sps:$4 sm:$0xff]  }
 0x387   :  { %8000 = vmatpush1.bf16.msra.mxu1 %v12791_v4  ;;  %v16710_v4 = vld [vmem:[%s17747_s0 + $0x78] sm:$0xff] }
 0x388   :  { %8688 = vmatpush1.bf16.msra.mxu0 %v12794_v43  ;;  %8001 = vmatprep.subr.bf16.mxu1 %v12799_v53  ;;  %v9966_v43 = vcombine.low %v16490_v60, %v16499_v46  ;;  %v9998_v53 = vcombine.low %v16504_v0, %v16509_v1  ;;  %v12881_v60 = vld [vmem:[%s17746_s1 + $0xf00] ss:$8 sps:$4 sm:$0xff]   ;;  %v12889_v0 = vld [vmem:[%s17746_s1 + $0xf14] ss:$8 sps:$4 sm:$0xff]  }
 0x389   :  { %8689 = vmatprep.subr.bf16.mxu0 %v12802_v54  ;;  %v16719_v54 = vld [vmem:[%s17747_s0 + $0x198] sm:$0xff]  ;;  %v12884_v46 = vld [vmem:[%s17746_s1 + $0x1f00] ss:$8 sps:$4 sm:$0xff]  }
 0x38a   :  { %v12892_v1 = vld [vmem:[%s17746_s1 + $0x1f14] ss:$8 sps:$4 sm:$0xff]  }
 0x38b   :  { %8002 = vmatpush1.bf16.msra.mxu1 %v12797_v8  ;;  %v16724_v8 = vld [vmem:[%s17747_s0 + $0xf8] sm:$0xff] }
 0x38c   :  { %8690 = vmatpush1.bf16.msra.mxu0 %v12800_v9  ;;  %8003 = vmatprep.subr.bf16.mxu1 %v12805_v10  ;;  %v16729_v9 = vld [vmem:[%s17747_s0 + $0x218] sm:$0xff]  ;;  %v9969_v10 = vcombine.high %v16710_v4, %v16719_v54 }
 0x38d   :  { %8691 = vmatprep.subr.bf16.mxu0 %v12808_v11  ;;  %v10001_v11 = vcombine.high %v16724_v8, %v16729_v9 }
 0x38f   :  { %8004 = vmatpush1.bf16.msra.mxu1 %v12803_v12  ;;  %v12887_v12 = vld [vmem:[%s17746_s1 + $0xf10] ss:$8 sps:$4 sm:$0xff]  }
 0x390   :  { %8692 = vmatpush1.bf16.msra.mxu0 %v12806_v47  ;;  %8005 = vmatprep.subr.bf16.mxu1 %v12811_v61  ;;  %v12890_v47 = vld [vmem:[%s17746_s1 + $0x1f10] ss:$8 sps:$4 sm:$0xff]   ;;  %v12895_v61 = vld [vmem:[%s17746_s1 + $0xf24] ss:$8 sps:$4 sm:$0xff]  }
 0x391   :  { %8693 = vmatprep.subr.bf16.mxu0 %v12814_v62  ;;  %v12898_v62 = vld [vmem:[%s17746_s1 + $0x1f24] ss:$8 sps:$4 sm:$0xff]  }
 0x393   :  { %8006 = vmatpush1.bf16.msra.mxu1 %v12809_v16  ;;  %v12893_v16 = vld [vmem:[%s17746_s1 + $0xf20] ss:$8 sps:$4 sm:$0xff]  }
 0x394   :  { %8694 = vmatpush1.bf16.msra.mxu0 %v12812_v17  ;;  %8007 = vmatprep.subr.bf16.mxu1 %v12817_v18  ;;  %v12896_v17 = vld [vmem:[%s17746_s1 + $0x1f20] ss:$8 sps:$4 sm:$0xff]   ;;  %v12901_v18 = vld [vmem:[%s17746_s1 + $0xf34] ss:$8 sps:$4 sm:$0xff]  }
 0x395   :  { %8695 = vmatprep.subr.bf16.mxu0 %v12820_v19  ;;  %v12904_v19 = vld [vmem:[%s17746_s1 + $0x1f34] ss:$8 sps:$4 sm:$0xff]  }
 0x397   :  { %8008 = vmatpush1.bf16.msra.mxu1 %v12815_v20  ;;  %v12899_v20 = vld [vmem:[%s17746_s1 + $0xf30] ss:$8 sps:$4 sm:$0xff]  }
 0x398   :  { %8696 = vmatpush1.bf16.msra.mxu0 %v12818_v55  ;;  %8009 = vmatprep.subr.bf16.mxu1 %v12823_v5  ;;  %v12902_v55 = vld [vmem:[%s17746_s1 + $0x1f30] ss:$8 sps:$4 sm:$0xff]   ;;  %v12907_v5 = vld [vmem:[%s17746_s1 + $0xf44] ss:$8 sps:$4 sm:$0xff]  }
 0x399   :  { %8697 = vmatprep.subr.bf16.mxu0 %v12826_v6  ;;  %v12910_v6 = vld [vmem:[%s17746_s1 + $0x1f44] ss:$8 sps:$4 sm:$0xff]  }
 0x39b   :  { %8010 = vmatpush1.bf16.msra.mxu1 %v12821_v26  ;;  %v12905_v26 = vld [vmem:[%s17746_s1 + $0xf40] ss:$8 sps:$4 sm:$0xff]  }
 0x39c   :  { %8698 = vmatpush1.bf16.msra.mxu0 %v12824_v27  ;;  %8011 = vmatprep.subr.bf16.mxu1 %v12829_v32  ;;  %v12908_v27 = vld [vmem:[%s17746_s1 + $0x1f40] ss:$8 sps:$4 sm:$0xff]   ;;  %v12913_v32 = vld [vmem:[%s17746_s1 + $0xf54] ss:$8 sps:$4 sm:$0xff]  }
 0x39d   :  { %8699 = vmatprep.subr.bf16.mxu0 %v12832_v33  ;;  %v12916_v33 = vld [vmem:[%s17746_s1 + $0x1f54] ss:$8 sps:$4 sm:$0xff]  }
 0x39f   :  { %8012 = vmatpush1.bf16.msra.mxu1 %v12827_v36  ;;  %v12911_v36 = vld [vmem:[%s17746_s1 + $0xf50] ss:$8 sps:$4 sm:$0xff]  }
 0x3a0   :  { %8700 = vmatpush1.bf16.msra.mxu0 %v12830_v63  ;;  %8013 = vmatprep.subr.bf16.mxu1 %v12835_v13  ;;  %v12914_v63 = vld [vmem:[%s17746_s1 + $0x1f50] ss:$8 sps:$4 sm:$0xff]   ;;  %v12919_v13 = vld [vmem:[%s17746_s1 + $0xf64] ss:$8 sps:$4 sm:$0xff]  }
 0x3a1   :  { %8701 = vmatprep.subr.bf16.mxu0 %v12838_v14  ;;  %v12922_v14 = vld [vmem:[%s17746_s1 + $0x1f64] ss:$8 sps:$4 sm:$0xff]  }
 0x3a3   :  { %8014 = vmatpush1.bf16.msra.mxu1 %v12833_v24  ;;  %v12917_v24 = vld [vmem:[%s17746_s1 + $0xf60] ss:$8 sps:$4 sm:$0xff]  }
 0x3a4   :  { %8702 = vmatpush1.bf16.msra.mxu0 %v12836_v25  ;;  %8015 = vmatprep.subr.bf16.mxu1 %v12841_v7  ;;  %v12920_v25 = vld [vmem:[%s17746_s1 + $0x1f60] ss:$8 sps:$4 sm:$0xff]   ;;  %v12925_v7 = vld [vmem:[%s17746_s1 + $0xf74] ss:$8 sps:$4 sm:$0xff]  }
 0x3a5   :  { %8703 = vmatprep.subr.bf16.mxu0 %v12844_v21  ;;  %v12928_v21 = vld [vmem:[%s17746_s1 + $0x1f74] ss:$8 sps:$4 sm:$0xff]  }
 0x3a7   :  { %8016 = vmatpush1.bf16.msra.mxu1 %v12839_v22  ;;  %v12923_v22 = vld [vmem:[%s17746_s1 + $0xf70] ss:$8 sps:$4 sm:$0xff]  }
 0x3a8   :  { %8704 = vmatpush1.bf16.msra.mxu0 %v12842_v23  ;;  %8017 = vmatprep.subr.bf16.mxu1 %v12847_v40  ;;  %v12926_v23 = vld [vmem:[%s17746_s1 + $0x1f70] ss:$8 sps:$4 sm:$0xff]   ;;  %v12931_v40 = vld [vmem:[%s17746_s1 + $0xf84] ss:$8 sps:$4 sm:$0xff]  }
 0x3a9   :  { %8705 = vmatprep.subr.bf16.mxu0 %v12850_v41  ;;  %v12934_v41 = vld [vmem:[%s17746_s1 + $0x1f84] ss:$8 sps:$4 sm:$0xff]  }
 0x3ab   :  { %8018 = vmatpush1.bf16.msra.mxu1 %v12845_v28  ;;  %v12929_v28 = vld [vmem:[%s17746_s1 + $0xf80] ss:$8 sps:$4 sm:$0xff]  }
 0x3ac   :  { %8706 = vmatpush1.bf16.msra.mxu0 %v12848_v31  ;;  %8019 = vmatprep.subr.bf16.mxu1 %v12853_v15  ;;  %v12932_v31 = vld [vmem:[%s17746_s1 + $0x1f80] ss:$8 sps:$4 sm:$0xff]   ;;  %v12937_v15 = vld [vmem:[%s17746_s1 + $0xf94] ss:$8 sps:$4 sm:$0xff]  }
 0x3ad   :  { %8707 = vmatprep.subr.bf16.mxu0 %v12856_v29  ;;  %v12940_v29 = vld [vmem:[%s17746_s1 + $0x1f94] ss:$8 sps:$4 sm:$0xff]  }
 0x3af   :  { %8020 = vmatpush1.bf16.msra.mxu1 %v12851_v30  ;;  %v12935_v30 = vld [vmem:[%s17746_s1 + $0xf90] ss:$8 sps:$4 sm:$0xff]  }
 0x3b0   :  { %8708 = vmatpush1.bf16.msra.mxu0 %v12854_v37  ;;  %8021 = vmatprep.subr.bf16.mxu1 %v12859_v50  ;;  %v12938_v37 = vld [vmem:[%s17746_s1 + $0x1f90] ss:$8 sps:$4 sm:$0xff]   ;;  %v12943_v50 = vld [vmem:[%s17746_s1 + $0xfa4] ss:$8 sps:$4 sm:$0xff]  }
 0x3b1   :  { %8709 = vmatprep.subr.bf16.mxu0 %v12862_v51  ;;  %v12946_v51 = vld [vmem:[%s17746_s1 + $0x1fa4] ss:$8 sps:$4 sm:$0xff]  }
 0x3b3   :  { %8022 = vmatpush1.bf16.msra.mxu1 %v12857_v38  ;;  %v12941_v38 = vld [vmem:[%s17746_s1 + $0xfa0] ss:$8 sps:$4 sm:$0xff]  }
 0x3b4   :  { %8710 = vmatpush1.bf16.msra.mxu0 %v12860_v39  ;;  %8023 = vmatprep.subr.bf16.mxu1 %v12865_v44  ;;  %v12944_v39 = vld [vmem:[%s17746_s1 + $0x1fa0] ss:$8 sps:$4 sm:$0xff]   ;;  %v12949_v44 = vld [vmem:[%s17746_s1 + $0xfb4] ss:$8 sps:$4 sm:$0xff]  }
 0x3b5   :  { %8711 = vmatprep.subr.bf16.mxu0 %v12868_v34  ;;  %v12952_v34 = vld [vmem:[%s17746_s1 + $0x1fb4] ss:$8 sps:$4 sm:$0xff]  }
 0x3b7   :  { %8024 = vmatpush1.bf16.msra.mxu1 %v12863_v48  ;;  %v12947_v48 = vld [vmem:[%s17746_s1 + $0xfb0] ss:$8 sps:$4 sm:$0xff]  }
 0x3b8   :  { %8712 = vmatpush1.bf16.msra.mxu0 %v12866_v49  ;;  %8025 = vmatprep.subr.bf16.mxu1 %v12871_v58  ;;  %v12950_v49 = vld [vmem:[%s17746_s1 + $0x1fb0] ss:$8 sps:$4 sm:$0xff]   ;;  %v12955_v58 = vld [vmem:[%s17746_s1 + $0xfc4] ss:$8 sps:$4 sm:$0xff]  }
 0x3b9   :  { %8713 = vmatprep.subr.bf16.mxu0 %v12874_v59  ;;  %v12958_v59 = vld [vmem:[%s17746_s1 + $0x1fc4] ss:$8 sps:$4 sm:$0xff]  }
 0x3bb   :  { %8026 = vmatpush1.bf16.msra.mxu1 %v12869_v35  ;;  %v12953_v35 = vld [vmem:[%s17746_s1 + $0xfc0] ss:$8 sps:$4 sm:$0xff]  }
 0x3bc   :  { %8714 = vmatpush1.bf16.msra.mxu0 %v12872_v45  ;;  %8027 = vmatprep.subr.bf16.mxu1 %v12877_v52  ;;  %v12956_v45 = vld [vmem:[%s17746_s1 + $0x1fc0] ss:$8 sps:$4 sm:$0xff]   ;;  %v12961_v52 = vld [vmem:[%s17746_s1 + $0xfd4] ss:$8 sps:$4 sm:$0xff]  }
 0x3bd   :  { %8715 = vmatprep.subr.bf16.mxu0 %v12880_v42  ;;  %v12964_v42 = vld [vmem:[%s17746_s1 + $0x1fd4] ss:$8 sps:$4 sm:$0xff]  }
 0x3bf   :  { %8028 = vmatpush1.bf16.msra.mxu1 %v12875_v56  ;;  %v12959_v56 = vld [vmem:[%s17746_s1 + $0xfd0] ss:$8 sps:$4 sm:$0xff]  }
 0x3c0   :  { %8716 = vmatpush1.bf16.msra.mxu0 %v12878_v57  ;;  %8040 = vmatprep.subr.bf16.mxu1 %v12883_v2  ;;  %v12962_v57 = vld [vmem:[%s17746_s1 + $0x1fd0] ss:$8 sps:$4 sm:$0xff]   ;;  %v12967_v2 = vld [vmem:[%s17746_s1 + $0xfe4] ss:$8 sps:$4 sm:$0xff]  }
 0x3c1   :  { %8728 = vmatprep.subr.bf16.mxu0 %v12886_v3  ;;  %v12970_v3 = vld [vmem:[%s17746_s1 + $0x1fe4] ss:$8 sps:$4 sm:$0xff]  }
 0x3c2   :  { %8030 = vmatmul.mubr.bf16.vlgmr.msra.gmra.mrb[0].mxu1 %v9966_v43  ;;  %v12965_v43 = vld [vmem:[%s17746_s1 + $0xfe0] ss:$8 sps:$4 sm:$0xff]  }
 0x3c3   :  { %8718 = vmatmul.mubr.bf16.vlgmr.msra.gmra.mrb[0].mxu0 %v9998_v53  ;;  %8041 = vmatpush1.bf16.msra.mxu1 %v12881_v60  ;;  %v12968_v53 = vld [vmem:[%s17746_s1 + $0x1fe0] ss:$8 sps:$4 sm:$0xff]   ;;  %v12973_v60 = vld [vmem:[%s17746_s1 + $0xff4] ss:$8 sps:$4 sm:$0xff]  }
 0x3c4   :  { %8729 = vmatpush1.bf16.msra.mxu0 %v12884_v46  ;;  %8042 = vmatprep.subr.bf16.mxu1 %v12889_v0  ;;  %v12976_v46 = vld [vmem:[%s17746_s1 + $0x1ff4] ss:$8 sps:$4 sm:$0xff]   ;;  %v12971_v0 = vld [vmem:[%s17746_s1 + $0xff0] ss:$8 sps:$4 sm:$0xff]  }
 0x3c5   :  { %8730 = vmatprep.subr.bf16.mxu0 %v12892_v1  ;;  %8072 = vmatprep.mubr.bf16.mxu1 %v9969_v10  ;;  %v12974_v1 = vld [vmem:[%s17746_s1 + $0x1ff0] ss:$8 sps:$4 sm:$0xff]   ;;  %v12979_v10 = vld [vmem:[%s17746_s1 + $0x2004] ss:$8 sps:$4 sm:$0xff]  }
 0x3c6   :  { %8760 = vmatprep.mubr.bf16.mxu0 %v10001_v11  ;;  %v16927_v11 = vld [vmem:[%s17747_s0 + $0x100] sm:$0xff] }
 0x3c7   :  { %8043 = vmatpush1.bf16.msra.mxu1 %v12887_v12  ;;  %v16932_v12 = vld [vmem:[%s17747_s0 + $0x220] sm:$0xff] }
 0x3c8   :  { %8731 = vmatpush1.bf16.msra.mxu0 %v12890_v47  ;;  %8044 = vmatprep.subr.bf16.mxu1 %v12895_v61  ;;  %v9968_v47 = vcombine.low %v16710_v4, %v16719_v54  ;;  %v10000_v61 = vcombine.low %v16724_v8, %v16729_v9  ;;  %v12980_v4 = vld [vmem:[%s17746_s1 + $0x2010] ss:$8 sps:$4 sm:$0xff]   ;;  %v12985_v54 = vld [vmem:[%s17746_s1 + $0x2024] ss:$8 sps:$4 sm:$0xff]   ;;  %v12983_v8 = vld [vmem:[%s17746_s1 + $0x2020] ss:$8 sps:$4 sm:$0xff]  }
 0x3c9   :  { %8732 = vmatprep.subr.bf16.mxu0 %v12898_v62  ;;  %v12977_v62 = vld [vmem:[%s17746_s1 + $0x2000] ss:$8 sps:$4 sm:$0xff]   ;;  %v12988_v9 = vld [vmem:[%s17746_s1 + $0x2034] ss:$8 sps:$4 sm:$0xff]  }
 0x3cb   :  { %8045 = vmatpush1.bf16.msra.mxu1 %v12893_v16  ;;  %v10003_v16 = vcombine.high %v16927_v11, %v16932_v12 }
 0x3cc   :  { %8733 = vmatpush1.bf16.msra.mxu0 %v12896_v17  ;;  %8046 = vmatprep.subr.bf16.mxu1 %v12901_v18  ;;  %v12982_v17 = vld [vmem:[%s17746_s1 + $0x2014] ss:$8 sps:$4 sm:$0xff]   ;;  %v12986_v18 = vld [vmem:[%s17746_s1 + $0x2030] ss:$8 sps:$4 sm:$0xff]  }
 0x3cd   :  { %8734 = vmatprep.subr.bf16.mxu0 %v12904_v19  ;;  %v12991_v19 = vld [vmem:[%s17746_s1 + $0x2044] ss:$8 sps:$4 sm:$0xff]  }
 0x3cf   :  { %8047 = vmatpush1.bf16.msra.mxu1 %v12899_v20  ;;  %v12989_v20 = vld [vmem:[%s17746_s1 + $0x2040] ss:$8 sps:$4 sm:$0xff]  }
 0x3d0   :  { %8735 = vmatpush1.bf16.msra.mxu0 %v12902_v55  ;;  %8048 = vmatprep.subr.bf16.mxu1 %v12907_v5  ;;  %v12994_v55 = vld [vmem:[%s17746_s1 + $0x2054] ss:$8 sps:$4 sm:$0xff]   ;;  %v12992_v5 = vld [vmem:[%s17746_s1 + $0x2050] ss:$8 sps:$4 sm:$0xff]  }
 0x3d1   :  { %8736 = vmatprep.subr.bf16.mxu0 %v12910_v6  ;;  %v12997_v6 = vld [vmem:[%s17746_s1 + $0x2064] ss:$8 sps:$4 sm:$0xff]  }
 0x3d3   :  { %8049 = vmatpush1.bf16.msra.mxu1 %v12905_v26  ;;  %v12995_v26 = vld [vmem:[%s17746_s1 + $0x2060] ss:$8 sps:$4 sm:$0xff]  }
 0x3d4   :  { %8737 = vmatpush1.bf16.msra.mxu0 %v12908_v27  ;;  %8050 = vmatprep.subr.bf16.mxu1 %v12913_v32  ;;  %v13000_v27 = vld [vmem:[%s17746_s1 + $0x2074] ss:$8 sps:$4 sm:$0xff]   ;;  %v12998_v32 = vld [vmem:[%s17746_s1 + $0x2070] ss:$8 sps:$4 sm:$0xff]  }
 0x3d5   :  { %8738 = vmatprep.subr.bf16.mxu0 %v12916_v33  ;;  %v13003_v33 = vld [vmem:[%s17746_s1 + $0x2084] ss:$8 sps:$4 sm:$0xff]  }
 0x3d7   :  { %8051 = vmatpush1.bf16.msra.mxu1 %v12911_v36  ;;  %v13001_v36 = vld [vmem:[%s17746_s1 + $0x2080] ss:$8 sps:$4 sm:$0xff]  }
 0x3d8   :  { %8739 = vmatpush1.bf16.msra.mxu0 %v12914_v63  ;;  %8052 = vmatprep.subr.bf16.mxu1 %v12919_v13  ;;  %v13006_v63 = vld [vmem:[%s17746_s1 + $0x2094] ss:$8 sps:$4 sm:$0xff]   ;;  %v13004_v13 = vld [vmem:[%s17746_s1 + $0x2090] ss:$8 sps:$4 sm:$0xff]  }
 0x3d9   :  { %8740 = vmatprep.subr.bf16.mxu0 %v12922_v14  ;;  %v13009_v14 = vld [vmem:[%s17746_s1 + $0x20a4] ss:$8 sps:$4 sm:$0xff]  }
 0x3db   :  { %8053 = vmatpush1.bf16.msra.mxu1 %v12917_v24  ;;  %v13007_v24 = vld [vmem:[%s17746_s1 + $0x20a0] ss:$8 sps:$4 sm:$0xff]  }
 0x3dc   :  { %8741 = vmatpush1.bf16.msra.mxu0 %v12920_v25  ;;  %8054 = vmatprep.subr.bf16.mxu1 %v12925_v7  ;;  %v13012_v25 = vld [vmem:[%s17746_s1 + $0x20b4] ss:$8 sps:$4 sm:$0xff]   ;;  %v13010_v7 = vld [vmem:[%s17746_s1 + $0x20b0] ss:$8 sps:$4 sm:$0xff]  }
 0x3dd   :  { %8742 = vmatprep.subr.bf16.mxu0 %v12928_v21  ;;  %v13015_v21 = vld [vmem:[%s17746_s1 + $0x20c4] ss:$8 sps:$4 sm:$0xff]  }
 0x3df   :  { %8055 = vmatpush1.bf16.msra.mxu1 %v12923_v22  ;;  %v13013_v22 = vld [vmem:[%s17746_s1 + $0x20c0] ss:$8 sps:$4 sm:$0xff]  }
 0x3e0   :  { %8743 = vmatpush1.bf16.msra.mxu0 %v12926_v23  ;;  %8056 = vmatprep.subr.bf16.mxu1 %v12931_v40  ;;  %v13018_v23 = vld [vmem:[%s17746_s1 + $0x20d4] ss:$8 sps:$4 sm:$0xff]   ;;  %v13016_v40 = vld [vmem:[%s17746_s1 + $0x20d0] ss:$8 sps:$4 sm:$0xff]  }
 0x3e1   :  { %8744 = vmatprep.subr.bf16.mxu0 %v12934_v41  ;;  %v13021_v41 = vld [vmem:[%s17746_s1 + $0x20e4] ss:$8 sps:$4 sm:$0xff]  }
 0x3e3   :  { %8057 = vmatpush1.bf16.msra.mxu1 %v12929_v28  ;;  %v13019_v28 = vld [vmem:[%s17746_s1 + $0x20e0] ss:$8 sps:$4 sm:$0xff]  }
 0x3e4   :  { %8745 = vmatpush1.bf16.msra.mxu0 %v12932_v31  ;;  %8058 = vmatprep.subr.bf16.mxu1 %v12937_v15  ;;  %v13024_v31 = vld [vmem:[%s17746_s1 + $0x20f4] ss:$8 sps:$4 sm:$0xff]   ;;  %v13022_v15 = vld [vmem:[%s17746_s1 + $0x20f0] ss:$8 sps:$4 sm:$0xff]  }
 0x3e5   :  { %8746 = vmatprep.subr.bf16.mxu0 %v12940_v29  ;;  %v13027_v29 = vld [vmem:[%s17746_s1 + $0x2104] ss:$8 sps:$4 sm:$0xff]  }
 0x3e7   :  { %8059 = vmatpush1.bf16.msra.mxu1 %v12935_v30  ;;  %v17039_v30 = vld [vmem:[%s17747_s0 + $0x108] sm:$0xff] }
 0x3e8   :  { %8747 = vmatpush1.bf16.msra.mxu0 %v12938_v37  ;;  %8060 = vmatprep.subr.bf16.mxu1 %v12943_v50  ;;  %v17044_v37 = vld [vmem:[%s17747_s0 + $0x228] sm:$0xff]  ;;  %v10002_v50 = vcombine.low %v16927_v11, %v16932_v12 }
 0x3e9   :  { %8748 = vmatprep.subr.bf16.mxu0 %v12946_v51  ;;  %v13025_v51 = vld [vmem:[%s17746_s1 + $0x2100] ss:$8 sps:$4 sm:$0xff]   ;;  %v13063_v11 = vld [vmem:[%s17746_s1 + $0x21c4] ss:$8 sps:$4 sm:$0xff]  }
 0x3ea   :  { %v13061_v12 = vld [vmem:[%s17746_s1 + $0x21c0] ss:$8 sps:$4 sm:$0xff]  }
 0x3eb   :  { %8061 = vmatpush1.bf16.msra.mxu1 %v12941_v38  ;;  %v10005_v38 = vcombine.high %v17039_v30, %v17044_v37 }
 0x3ec   :  { %8749 = vmatpush1.bf16.msra.mxu0 %v12944_v39  ;;  %8062 = vmatprep.subr.bf16.mxu1 %v12949_v44  ;;  %v13030_v39 = vld [vmem:[%s17746_s1 + $0x2114] ss:$8 sps:$4 sm:$0xff]   ;;  %v13028_v44 = vld [vmem:[%s17746_s1 + $0x2110] ss:$8 sps:$4 sm:$0xff]  }
 0x3ed   :  { %8750 = vmatprep.subr.bf16.mxu0 %v12952_v34  ;;  %v13033_v34 = vld [vmem:[%s17746_s1 + $0x2124] ss:$8 sps:$4 sm:$0xff]  }
 0x3ef   :  { %8063 = vmatpush1.bf16.msra.mxu1 %v12947_v48  ;;  %v13031_v48 = vld [vmem:[%s17746_s1 + $0x2120] ss:$8 sps:$4 sm:$0xff]  }
 0x3f0   :  { %8751 = vmatpush1.bf16.msra.mxu0 %v12950_v49  ;;  %8064 = vmatprep.subr.bf16.mxu1 %v12955_v58  ;;  %v13036_v49 = vld [vmem:[%s17746_s1 + $0x2134] ss:$8 sps:$4 sm:$0xff]   ;;  %v13034_v58 = vld [vmem:[%s17746_s1 + $0x2130] ss:$8 sps:$4 sm:$0xff]  }
 0x3f1   :  { %8752 = vmatprep.subr.bf16.mxu0 %v12958_v59  ;;  %v13039_v59 = vld [vmem:[%s17746_s1 + $0x2144] ss:$8 sps:$4 sm:$0xff]  }
 0x3f3   :  { %8065 = vmatpush1.bf16.msra.mxu1 %v12953_v35  ;;  %v13037_v35 = vld [vmem:[%s17746_s1 + $0x2140] ss:$8 sps:$4 sm:$0xff]  }
 0x3f4   :  { %8753 = vmatpush1.bf16.msra.mxu0 %v12956_v45  ;;  %8066 = vmatprep.subr.bf16.mxu1 %v12961_v52  ;;  %v13042_v45 = vld [vmem:[%s17746_s1 + $0x2154] ss:$8 sps:$4 sm:$0xff]   ;;  %v13040_v52 = vld [vmem:[%s17746_s1 + $0x2150] ss:$8 sps:$4 sm:$0xff]  }
 0x3f5   :  { %8754 = vmatprep.subr.bf16.mxu0 %v12964_v42  ;;  %v13045_v42 = vld [vmem:[%s17746_s1 + $0x2164] ss:$8 sps:$4 sm:$0xff]  }
 0x3f7   :  { %8067 = vmatpush1.bf16.msra.mxu1 %v12959_v56  ;;  %v13043_v56 = vld [vmem:[%s17746_s1 + $0x2160] ss:$8 sps:$4 sm:$0xff]  }
 0x3f8   :  { %8755 = vmatpush1.bf16.msra.mxu0 %v12962_v57  ;;  %8068 = vmatprep.subr.bf16.mxu1 %v12967_v2  ;;  %v13048_v57 = vld [vmem:[%s17746_s1 + $0x2174] ss:$8 sps:$4 sm:$0xff]   ;;  %v13046_v2 = vld [vmem:[%s17746_s1 + $0x2170] ss:$8 sps:$4 sm:$0xff]  }
 0x3f9   :  { %8756 = vmatprep.subr.bf16.mxu0 %v12970_v3  ;;  %v13051_v3 = vld [vmem:[%s17746_s1 + $0x2184] ss:$8 sps:$4 sm:$0xff]  }
 0x3fb   :  { %8069 = vmatpush1.bf16.msra.mxu1 %v12965_v43  ;;  %v13049_v43 = vld [vmem:[%s17746_s1 + $0x2180] ss:$8 sps:$4 sm:$0xff]  }
 0x3fc   :  { %8757 = vmatpush1.bf16.msra.mxu0 %v12968_v53  ;;  %8070 = vmatprep.subr.bf16.mxu1 %v12973_v60  ;;  %v13054_v53 = vld [vmem:[%s17746_s1 + $0x2194] ss:$8 sps:$4 sm:$0xff]   ;;  %v13052_v60 = vld [vmem:[%s17746_s1 + $0x2190] ss:$8 sps:$4 sm:$0xff]  }
 0x3fd   :  { %8758 = vmatprep.subr.bf16.mxu0 %v12976_v46  ;;  %v13057_v46 = vld [vmem:[%s17746_s1 + $0x21a4] ss:$8 sps:$4 sm:$0xff]  }
 0x3ff   :  { %8071 = vmatpush1.bf16.msra.mxu1 %v12971_v0  ;;  %v13055_v0 = vld [vmem:[%s17746_s1 + $0x21a0] ss:$8 sps:$4 sm:$0xff]  }
 0x400   :  { %8759 = vmatpush1.bf16.msra.mxu0 %v12974_v1  ;;  %v13060_v1 = vld [vmem:[%s17746_s1 + $0x21b4] ss:$8 sps:$4 sm:$0xff]  }
 0x401   :  { %8771 = vmatprep.subr.bf16.mxu0 %v12979_v10  ;;  %v13058_v10 = vld [vmem:[%s17746_s1 + $0x21b0] ss:$8 sps:$4 sm:$0xff]  }
 0x402   :  { %8073 = vmatmul.mubr.bf16.vlgmr.msra.gmra.mrb[0].mxu1 %v9968_v47  ;;  %v13066_v47 = vld [vmem:[%s17746_s1 + $0x21d4] ss:$8 sps:$4 sm:$0xff]  }
 0x403   :  { %8761 = vmatmul.mubr.bf16.vlgmr.msra.gmra.mrb[0].mxu0 %v10000_v61  ;;  %v13064_v61 = vld [vmem:[%s17746_s1 + $0x21d0] ss:$8 sps:$4 sm:$0xff]  }
 0x404   :  { %8772 = vmatpush1.bf16.msra.mxu0 %v12977_v62  ;;  %8803 = vmatprep.mubr.bf16.mxu0 %v10003_v16  ;;  %v13069_v62 = vld [vmem:[%s17746_s1 + $0x21e4] ss:$8 sps:$4 sm:$0xff]   ;;  %v13067_v16 = vld [vmem:[%s17746_s1 + $0x21e0] ss:$8 sps:$4 sm:$0xff]  }
 0x405   :  { %8773 = vmatprep.subr.bf16.mxu0 %v12982_v17  ;;  %v13072_v17 = vld [vmem:[%s17746_s1 + $0x21f4] ss:$8 sps:$4 sm:$0xff]  }
 0x408   :  { %8774 = vmatpush1.bf16.msra.mxu0 %v12980_v4  ;;  %v13070_v4 = vld [vmem:[%s17746_s1 + $0x21f0] ss:$8 sps:$4 sm:$0xff]  }
 0x409   :  { %8775 = vmatprep.subr.bf16.mxu0 %v12985_v54  ;;  %v13075_v54 = vld [vmem:[%s17746_s1 + $0x2204] ss:$8 sps:$4 sm:$0xff]  }
 0x40c   :  { %8776 = vmatpush1.bf16.msra.mxu0 %v12983_v8  ;;  %v17149_v8 = vld [vmem:[%s17747_s0 + $0x110] sm:$0xff] }
 0x40d   :  { %8777 = vmatprep.subr.bf16.mxu0 %v12988_v9  ;;  %v17154_v9 = vld [vmem:[%s17747_s0 + $0x230] sm:$0xff] }
 0x410   :  { %8778 = vmatpush1.bf16.msra.mxu0 %v12986_v18  ;;  %v10004_v18 = vcombine.low %v17039_v30, %v17044_v37  ;;  %v13184_v30 = vld [vmem:[%s17748_s3 + $0x50] ss:$8 sps:$4 sm:$0xff]   ;;  %v13096_v37 = vld [vmem:[%s17746_s1 + $0x2274] ss:$8 sps:$4 sm:$0xff]  }
 0x411   :  { %8779 = vmatprep.subr.bf16.mxu0 %v12991_v19  ;;  %v13073_v19 = vld [vmem:[%s17746_s1 + $0x2200] ss:$8 sps:$4 sm:$0xff]  }
 0x414   :  { %8780 = vmatpush1.bf16.msra.mxu0 %v12989_v20  ;;  %v10007_v20 = vcombine.high %v17149_v8, %v17154_v9 }
 0x415   :  { %8781 = vmatprep.subr.bf16.mxu0 %v12994_v55  ;;  %v13078_v55 = vld [vmem:[%s17746_s1 + $0x2214] ss:$8 sps:$4 sm:$0xff]  }
 0x418   :  { %8782 = vmatpush1.bf16.msra.mxu0 %v12992_v5  ;;  %v13076_v5 = vld [vmem:[%s17746_s1 + $0x2210] ss:$8 sps:$4 sm:$0xff]  }
 0x419   :  { %8783 = vmatprep.subr.bf16.mxu0 %v12997_v6  ;;  %v13081_v6 = vld [vmem:[%s17746_s1 + $0x2224] ss:$8 sps:$4 sm:$0xff]  }
 0x41c   :  { %8784 = vmatpush1.bf16.msra.mxu0 %v12995_v26  ;;  %v13169_v26 = vld [vmem:[%s17748_s3] ss:$8 sps:$4 sm:$0xff]  }
 0x41d   :  { %8785 = vmatprep.subr.bf16.mxu0 %v13000_v27  ;;  %v13171_v27 = vld [vmem:[%s17748_s3 + $0x4] ss:$8 sps:$4 sm:$0xff]  }
 0x41e   :  { %9165 = vmatprep.subr.bf16.mxu1 %v13171_v27 }
 0x41f   :  { %9166 = vmatpush1.bf16.msra.mxu1 %v13169_v26 }
 0x420   :  { %8786 = vmatpush1.bf16.msra.mxu0 %v12998_v32  ;;  %v13174_v32 = vld [vmem:[%s17748_s3 + $0x14] ss:$8 sps:$4 sm:$0xff]  }
 0x421   :  { %8787 = vmatprep.subr.bf16.mxu0 %v13003_v33  ;;  %v13079_v33 = vld [vmem:[%s17746_s1 + $0x2220] ss:$8 sps:$4 sm:$0xff]   ;;  %9167 = vmatprep.subr.bf16.mxu1 %v13174_v32 }
 0x424   :  { %8788 = vmatpush1.bf16.msra.mxu0 %v13001_v36  ;;  %v13084_v36 = vld [vmem:[%s17746_s1 + $0x2234] ss:$8 sps:$4 sm:$0xff]  }
 0x425   :  { %8789 = vmatprep.subr.bf16.mxu0 %v13006_v63  ;;  %v13172_v63 = vld [vmem:[%s17748_s3 + $0x10] ss:$8 sps:$4 sm:$0xff]  }
 0x426   :  { %9168 = vmatpush1.bf16.msra.mxu1 %v13172_v63  ;;  %v13144_v63 = vld [vmem:[%s17746_s1 + $0x2374] ss:$8 sps:$4 sm:$0xff]  }
 0x428   :  { %8790 = vmatpush1.bf16.msra.mxu0 %v13004_v13  ;;  %v13177_v13 = vld [vmem:[%s17748_s3 + $0x24] ss:$8 sps:$4 sm:$0xff]  }
 0x429   :  { %8791 = vmatprep.subr.bf16.mxu0 %v13009_v14  ;;  %v13082_v14 = vld [vmem:[%s17746_s1 + $0x2230] ss:$8 sps:$4 sm:$0xff]   ;;  %9169 = vmatprep.subr.bf16.mxu1 %v13177_v13 }
 0x42a   :  { %v13142_v13 = vld [vmem:[%s17746_s1 + $0x2370] ss:$8 sps:$4 sm:$0xff]  }
 0x42c   :  { %8792 = vmatpush1.bf16.msra.mxu0 %v13007_v24  ;;  %v13087_v24 = vld [vmem:[%s17746_s1 + $0x2244] ss:$8 sps:$4 sm:$0xff]  }
 0x42d   :  { %8793 = vmatprep.subr.bf16.mxu0 %v13012_v25  ;;  %v13175_v25 = vld [vmem:[%s17748_s3 + $0x20] ss:$8 sps:$4 sm:$0xff]  }
 0x42e   :  { %9170 = vmatpush1.bf16.msra.mxu1 %v13175_v25  ;;  %v13150_v25 = vld [vmem:[%s17746_s1 + $0x2394] ss:$8 sps:$4 sm:$0xff]  }
 0x430   :  { %8794 = vmatpush1.bf16.msra.mxu0 %v13010_v7  ;;  %v13180_v7 = vld [vmem:[%s17748_s3 + $0x34] ss:$8 sps:$4 sm:$0xff]  }
 0x431   :  { %8795 = vmatprep.subr.bf16.mxu0 %v13015_v21  ;;  %v13085_v21 = vld [vmem:[%s17746_s1 + $0x2240] ss:$8 sps:$4 sm:$0xff]   ;;  %9171 = vmatprep.subr.bf16.mxu1 %v13180_v7  ;;  %v13148_v7 = vld [vmem:[%s17746_s1 + $0x2390] ss:$8 sps:$4 sm:$0xff]  }
 0x434   :  { %8796 = vmatpush1.bf16.msra.mxu0 %v13013_v22  ;;  %v13090_v22 = vld [vmem:[%s17746_s1 + $0x2254] ss:$8 sps:$4 sm:$0xff]  }
 0x435   :  { %8797 = vmatprep.subr.bf16.mxu0 %v13018_v23  ;;  %v13178_v23 = vld [vmem:[%s17748_s3 + $0x30] ss:$8 sps:$4 sm:$0xff]  }
 0x436   :  { %9172 = vmatpush1.bf16.msra.mxu1 %v13178_v23  ;;  %v13156_v23 = vld [vmem:[%s17746_s1 + $0x23b4] ss:$8 sps:$4 sm:$0xff]  }
 0x438   :  { %8798 = vmatpush1.bf16.msra.mxu0 %v13016_v40  ;;  %v13183_v40 = vld [vmem:[%s17748_s3 + $0x44] ss:$8 sps:$4 sm:$0xff]  }
 0x439   :  { %8799 = vmatprep.subr.bf16.mxu0 %v13021_v41  ;;  %v13088_v41 = vld [vmem:[%s17746_s1 + $0x2250] ss:$8 sps:$4 sm:$0xff]   ;;  %9173 = vmatprep.subr.bf16.mxu1 %v13183_v40 }
 0x43a   :  { %v13154_v40 = vld [vmem:[%s17746_s1 + $0x23b0] ss:$8 sps:$4 sm:$0xff]  }
 0x43c   :  { %8800 = vmatpush1.bf16.msra.mxu0 %v13019_v28  ;;  %v13181_v28 = vld [vmem:[%s17748_s3 + $0x40] ss:$8 sps:$4 sm:$0xff]  }
 0x43d   :  { %8801 = vmatprep.subr.bf16.mxu0 %v13024_v31  ;;  %v13093_v31 = vld [vmem:[%s17746_s1 + $0x2264] ss:$8 sps:$4 sm:$0xff]   ;;  %9174 = vmatpush1.bf16.msra.mxu1 %v13181_v28  ;;  %v13157_v28 = vld [vmem:[%s17746_s1 + $0x23c0] ss:$8 sps:$4 sm:$0xff]  }
 0x440   :  { %8802 = vmatpush1.bf16.msra.mxu0 %v13022_v15  ;;  %v13186_v15 = vld [vmem:[%s17748_s3 + $0x54] ss:$8 sps:$4 sm:$0xff]  }
 0x441   :  { %8814 = vmatprep.subr.bf16.mxu0 %v13027_v29  ;;  %v13091_v29 = vld [vmem:[%s17746_s1 + $0x2260] ss:$8 sps:$4 sm:$0xff]   ;;  %9175 = vmatprep.subr.bf16.mxu1 %v13186_v15  ;;  %v13160_v15 = vld [vmem:[%s17746_s1 + $0x23d0] ss:$8 sps:$4 sm:$0xff]  }
 0x442   :  { %9176 = vmatpush1.bf16.msra.mxu1 %v13184_v30  ;;  %v13163_v30 = vld [vmem:[%s17746_s1 + $0x23e0] ss:$8 sps:$4 sm:$0xff]  }
 0x443   :  { %8804 = vmatmul.mubr.bf16.vlgmr.msra.gmra.mrb[0].mxu0 %v10002_v50  ;;  %v13189_v50 = vld [vmem:[%s17748_s3 + $0x64] ss:$8 sps:$4 sm:$0xff]  }
 0x444   :  { %8815 = vmatpush1.bf16.msra.mxu0 %v13025_v51  ;;  %8846 = vmatprep.mubr.bf16.mxu0 %v10005_v38  ;;  %v13094_v51 = vld [vmem:[%s17746_s1 + $0x2270] ss:$8 sps:$4 sm:$0xff]   ;;  %v13187_v38 = vld [vmem:[%s17748_s3 + $0x60] ss:$8 sps:$4 sm:$0xff]  }
 0x445   :  { %8816 = vmatprep.subr.bf16.mxu0 %v13030_v39  ;;  %v13099_v39 = vld [vmem:[%s17746_s1 + $0x2284] ss:$8 sps:$4 sm:$0xff]   ;;  %9177 = vmatprep.subr.bf16.mxu1 %v13189_v50  ;;  %v13166_v50 = vld [vmem:[%s17746_s1 + $0x23f0] ss:$8 sps:$4 sm:$0xff]  }
 0x446   :  { %9178 = vmatpush1.bf16.msra.mxu1 %v13187_v38  ;;  %v13201_v38 = vld [vmem:[%s17748_s3 + $0xa4] ss:$8 sps:$4 sm:$0xff]  }
 0x448   :  { %8817 = vmatpush1.bf16.msra.mxu0 %v13028_v44  ;;  %v13192_v44 = vld [vmem:[%s17748_s3 + $0x74] ss:$8 sps:$4 sm:$0xff]  }
 0x449   :  { %8818 = vmatprep.subr.bf16.mxu0 %v13033_v34  ;;  %v13097_v34 = vld [vmem:[%s17746_s1 + $0x2280] ss:$8 sps:$4 sm:$0xff]   ;;  %9179 = vmatprep.subr.bf16.mxu1 %v13192_v44  ;;  %v13204_v44 = vld [vmem:[%s17748_s3 + $0xb4] ss:$8 sps:$4 sm:$0xff]  }
 0x44c   :  { %8819 = vmatpush1.bf16.msra.mxu0 %v13031_v48  ;;  %v13190_v48 = vld [vmem:[%s17748_s3 + $0x70] ss:$8 sps:$4 sm:$0xff]  }
 0x44d   :  { %8820 = vmatprep.subr.bf16.mxu0 %v13036_v49  ;;  %v13102_v49 = vld [vmem:[%s17746_s1 + $0x2294] ss:$8 sps:$4 sm:$0xff]   ;;  %9180 = vmatpush1.bf16.msra.mxu1 %v13190_v48  ;;  %v13207_v48 = vld [vmem:[%s17748_s3 + $0xc4] ss:$8 sps:$4 sm:$0xff]  }
 0x450   :  { %8821 = vmatpush1.bf16.msra.mxu0 %v13034_v58  ;;  %v13195_v58 = vld [vmem:[%s17748_s3 + $0x84] ss:$8 sps:$4 sm:$0xff]  }
 0x451   :  { %8822 = vmatprep.subr.bf16.mxu0 %v13039_v59  ;;  %v13100_v59 = vld [vmem:[%s17746_s1 + $0x2290] ss:$8 sps:$4 sm:$0xff]   ;;  %9181 = vmatprep.subr.bf16.mxu1 %v13195_v58  ;;  %v13210_v58 = vld [vmem:[%s17748_s3 + $0xd4] ss:$8 sps:$4 sm:$0xff]  }
 0x454   :  { %8823 = vmatpush1.bf16.msra.mxu0 %v13037_v35  ;;  %v13193_v35 = vld [vmem:[%s17748_s3 + $0x80] ss:$8 sps:$4 sm:$0xff]  }
 0x455   :  { %8824 = vmatprep.subr.bf16.mxu0 %v13042_v45  ;;  %v13105_v45 = vld [vmem:[%s17746_s1 + $0x22a4] ss:$8 sps:$4 sm:$0xff]   ;;  %9182 = vmatpush1.bf16.msra.mxu1 %v13193_v35 }
 0x456   :  { %v13213_v35 = vld [vmem:[%s17748_s3 + $0xe4] ss:$8 sps:$4 sm:$0xff]  }
 0x458   :  { %8825 = vmatpush1.bf16.msra.mxu0 %v13040_v52  ;;  %v13198_v52 = vld [vmem:[%s17748_s3 + $0x94] ss:$8 sps:$4 sm:$0xff]  }
 0x459   :  { %8826 = vmatprep.subr.bf16.mxu0 %v13045_v42  ;;  %v13103_v42 = vld [vmem:[%s17746_s1 + $0x22a0] ss:$8 sps:$4 sm:$0xff]   ;;  %9183 = vmatprep.subr.bf16.mxu1 %v13198_v52  ;;  %v13216_v52 = vld [vmem:[%s17748_s3 + $0xf4] ss:$8 sps:$4 sm:$0xff]  }
 0x45c   :  { %8827 = vmatpush1.bf16.msra.mxu0 %v13043_v56  ;;  %v13196_v56 = vld [vmem:[%s17748_s3 + $0x90] ss:$8 sps:$4 sm:$0xff]  }
 0x45d   :  { %8828 = vmatprep.subr.bf16.mxu0 %v13048_v57  ;;  %v13108_v57 = vld [vmem:[%s17746_s1 + $0x22b4] ss:$8 sps:$4 sm:$0xff]   ;;  %9184 = vmatpush1.bf16.msra.mxu1 %v13196_v56  ;;  %v13219_v56 = vld [vmem:[%s17749_s5 + $0x4] ss:$8 sps:$4 sm:$0xff]  }
 0x45e   :  { %9185 = vmatprep.subr.bf16.mxu1 %v13201_v38  ;;  %v13238_v38 = vld [vmem:[%s17749_s5 + $0x70] ss:$8 sps:$4 sm:$0xff]  }
 0x460   :  { %8829 = vmatpush1.bf16.msra.mxu0 %v13046_v2  ;;  %v13106_v2 = vld [vmem:[%s17746_s1 + $0x22b0] ss:$8 sps:$4 sm:$0xff]  }
 0x461   :  { %8830 = vmatprep.subr.bf16.mxu0 %v13051_v3  ;;  %v13111_v3 = vld [vmem:[%s17746_s1 + $0x22c4] ss:$8 sps:$4 sm:$0xff]  }
 0x464   :  { %8831 = vmatpush1.bf16.msra.mxu0 %v13049_v43  ;;  %v13109_v43 = vld [vmem:[%s17746_s1 + $0x22c0] ss:$8 sps:$4 sm:$0xff]  }
 0x465   :  { %8832 = vmatprep.subr.bf16.mxu0 %v13054_v53  ;;  %v13114_v53 = vld [vmem:[%s17746_s1 + $0x22d4] ss:$8 sps:$4 sm:$0xff]  }
 0x468   :  { %8833 = vmatpush1.bf16.msra.mxu0 %v13052_v60  ;;  %v13112_v60 = vld [vmem:[%s17746_s1 + $0x22d0] ss:$8 sps:$4 sm:$0xff]  }
 0x469   :  { %8834 = vmatprep.subr.bf16.mxu0 %v13057_v46  ;;  %v13117_v46 = vld [vmem:[%s17746_s1 + $0x22e4] ss:$8 sps:$4 sm:$0xff]  }
 0x46c   :  { %8835 = vmatpush1.bf16.msra.mxu0 %v13055_v0  ;;  %v13115_v0 = vld [vmem:[%s17746_s1 + $0x22e0] ss:$8 sps:$4 sm:$0xff]  }
 0x46d   :  { %8836 = vmatprep.subr.bf16.mxu0 %v13060_v1  ;;  %v13120_v1 = vld [vmem:[%s17746_s1 + $0x22f4] ss:$8 sps:$4 sm:$0xff]  }
 0x470   :  { %8837 = vmatpush1.bf16.msra.mxu0 %v13058_v10  ;;  %v13118_v10 = vld [vmem:[%s17746_s1 + $0x22f0] ss:$8 sps:$4 sm:$0xff]  }
 0x471   :  { %8838 = vmatprep.subr.bf16.mxu0 %v13063_v11  ;;  %v13123_v11 = vld [vmem:[%s17746_s1 + $0x2304] ss:$8 sps:$4 sm:$0xff]  }
 0x474   :  { %8839 = vmatpush1.bf16.msra.mxu0 %v13061_v12  ;;  %v17319_v12 = vld [vmem:[%s17747_s0 + $0x118] sm:$0xff] }
 0x475   :  { %8840 = vmatprep.subr.bf16.mxu0 %v13066_v47  ;;  %v17324_v47 = vld [vmem:[%s17747_s0 + $0x238] sm:$0xff] }
 0x478   :  { %8841 = vmatpush1.bf16.msra.mxu0 %v13064_v61  ;;  %v10006_v61 = vcombine.low %v17149_v8, %v17154_v9  ;;  %v13127_v8 = vld [vmem:[%s17746_s1 + $0x2320] ss:$8 sps:$4 sm:$0xff]   ;;  %v13132_v9 = vld [vmem:[%s17746_s1 + $0x2334] ss:$8 sps:$4 sm:$0xff]  }
 0x479   :  { %8842 = vmatprep.subr.bf16.mxu0 %v13069_v62  ;;  %v13121_v62 = vld [vmem:[%s17746_s1 + $0x2300] ss:$8 sps:$4 sm:$0xff]  }
 0x47c   :  { %8843 = vmatpush1.bf16.msra.mxu0 %v13067_v16  ;;  %v10009_v16 = vcombine.high %v17319_v12, %v17324_v47 }
 0x47d   :  { %8844 = vmatprep.subr.bf16.mxu0 %v13072_v17  ;;  %v13126_v17 = vld [vmem:[%s17746_s1 + $0x2314] ss:$8 sps:$4 sm:$0xff]  }
 0x480   :  { %8845 = vmatpush1.bf16.msra.mxu0 %v13070_v4  ;;  %v13124_v4 = vld [vmem:[%s17746_s1 + $0x2310] ss:$8 sps:$4 sm:$0xff]  }
 0x481   :  { %8857 = vmatprep.subr.bf16.mxu0 %v13075_v54  ;;  %v13129_v54 = vld [vmem:[%s17746_s1 + $0x2324] ss:$8 sps:$4 sm:$0xff]  }
 0x483   :  { %8847 = vmatmul.mubr.bf16.vlgmr.msra.gmra.mrb[0].mxu0 %v10004_v18  ;;  %v13130_v18 = vld [vmem:[%s17746_s1 + $0x2330] ss:$8 sps:$4 sm:$0xff]  }
 0x484   :  { %8858 = vmatpush1.bf16.msra.mxu0 %v13073_v19  ;;  %8889 = vmatprep.mubr.bf16.mxu0 %v10007_v20  ;;  %v13135_v19 = vld [vmem:[%s17746_s1 + $0x2344] ss:$8 sps:$4 sm:$0xff]   ;;  %v13133_v20 = vld [vmem:[%s17746_s1 + $0x2340] ss:$8 sps:$4 sm:$0xff]  }
 0x485   :  { %8859 = vmatprep.subr.bf16.mxu0 %v13078_v55  ;;  %v13138_v55 = vld [vmem:[%s17746_s1 + $0x2354] ss:$8 sps:$4 sm:$0xff]  }
 0x488   :  { %8860 = vmatpush1.bf16.msra.mxu0 %v13076_v5  ;;  %v13136_v5 = vld [vmem:[%s17746_s1 + $0x2350] ss:$8 sps:$4 sm:$0xff]  }
 0x489   :  { %8861 = vmatprep.subr.bf16.mxu0 %v13081_v6  ;;  %v13141_v6 = vld [vmem:[%s17746_s1 + $0x2364] ss:$8 sps:$4 sm:$0xff]  }
 0x48c   :  { %8862 = vmatpush1.bf16.msra.mxu0 %v13079_v33  ;;  %v13139_v33 = vld [vmem:[%s17746_s1 + $0x2360] ss:$8 sps:$4 sm:$0xff]  }
 0x48d   :  { %8863 = vmatprep.subr.bf16.mxu0 %v13084_v36 }
 0x490   :  { %8864 = vmatpush1.bf16.msra.mxu0 %v13082_v14  ;;  %v13147_v14 = vld [vmem:[%s17746_s1 + $0x2384] ss:$8 sps:$4 sm:$0xff]  }
 0x491   :  { %8865 = vmatprep.subr.bf16.mxu0 %v13087_v24  ;;  %v13145_v24 = vld [vmem:[%s17746_s1 + $0x2380] ss:$8 sps:$4 sm:$0xff]  }
 0x494   :  { %8866 = vmatpush1.bf16.msra.mxu0 %v13085_v21  ;;  %v13153_v21 = vld [vmem:[%s17746_s1 + $0x23a4] ss:$8 sps:$4 sm:$0xff]  }
 0x495   :  { %8867 = vmatprep.subr.bf16.mxu0 %v13090_v22  ;;  %v13151_v22 = vld [vmem:[%s17746_s1 + $0x23a0] ss:$8 sps:$4 sm:$0xff]  }
 0x498   :  { %8868 = vmatpush1.bf16.msra.mxu0 %v13088_v41  ;;  %v13159_v41 = vld [vmem:[%s17746_s1 + $0x23c4] ss:$8 sps:$4 sm:$0xff]  }
 0x499   :  { %8869 = vmatprep.subr.bf16.mxu0 %v13093_v31  ;;  %v13162_v31 = vld [vmem:[%s17746_s1 + $0x23d4] ss:$8 sps:$4 sm:$0xff]  }
 0x49c   :  { %8870 = vmatpush1.bf16.msra.mxu0 %v13091_v29  ;;  %v13165_v29 = vld [vmem:[%s17746_s1 + $0x23e4] ss:$8 sps:$4 sm:$0xff]  }
 0x49d   :  { %8871 = vmatprep.subr.bf16.mxu0 %v13096_v37  ;;  %v13168_v37 = vld [vmem:[%s17746_s1 + $0x23f4] ss:$8 sps:$4 sm:$0xff]  }
 0x4a0   :  { %8872 = vmatpush1.bf16.msra.mxu0 %v13094_v51  ;;  %v10008_v51 = vcombine.low %v17319_v12, %v17324_v47 }
 0x4a1   :  { %8873 = vmatprep.subr.bf16.mxu0 %v13099_v39  ;;  %v13199_v39 = vld [vmem:[%s17748_s3 + $0xa0] ss:$8 sps:$4 sm:$0xff]  }
 0x4a2   :  { %9186 = vmatpush1.bf16.msra.mxu1 %v13199_v39  ;;  %v13243_v39 = vld [vmem:[%s17749_s5 + $0x84] ss:$8 sps:$4 sm:$0xff]  }
 0x4a3   :  { %9187 = vmatprep.subr.bf16.mxu1 %v13204_v44  ;;  %v13241_v44 = vld [vmem:[%s17749_s5 + $0x80] ss:$8 sps:$4 sm:$0xff]  }
 0x4a4   :  { %8874 = vmatpush1.bf16.msra.mxu0 %v13097_v34  ;;  %v13202_v34 = vld [vmem:[%s17748_s3 + $0xb0] ss:$8 sps:$4 sm:$0xff]  }
 0x4a5   :  { %8875 = vmatprep.subr.bf16.mxu0 %v13102_v49  ;;  %v13205_v49 = vld [vmem:[%s17748_s3 + $0xc0] ss:$8 sps:$4 sm:$0xff]  }
 0x4a6   :  { %9188 = vmatpush1.bf16.msra.mxu1 %v13202_v34  ;;  %v13246_v34 = vld [vmem:[%s17749_s5 + $0x94] ss:$8 sps:$4 sm:$0xff]  }
 0x4a7   :  { %9189 = vmatprep.subr.bf16.mxu1 %v13207_v48  ;;  %v13244_v48 = vld [vmem:[%s17749_s5 + $0x90] ss:$8 sps:$4 sm:$0xff]  }
 0x4a8   :  { %8876 = vmatpush1.bf16.msra.mxu0 %v13100_v59  ;;  %v13208_v59 = vld [vmem:[%s17748_s3 + $0xd0] ss:$8 sps:$4 sm:$0xff]  }
 0x4a9   :  { %8877 = vmatprep.subr.bf16.mxu0 %v13105_v45  ;;  %v13211_v45 = vld [vmem:[%s17748_s3 + $0xe0] ss:$8 sps:$4 sm:$0xff]  }
 0x4aa   :  { %9190 = vmatpush1.bf16.msra.mxu1 %v13205_v49  ;;  %v13249_v49 = vld [vmem:[%s17749_s5 + $0xa4] ss:$8 sps:$4 sm:$0xff]  }
 0x4ab   :  { %9191 = vmatprep.subr.bf16.mxu1 %v13210_v58  ;;  %v13247_v58 = vld [vmem:[%s17749_s5 + $0xa0] ss:$8 sps:$4 sm:$0xff]  }
 0x4ac   :  { %8878 = vmatpush1.bf16.msra.mxu0 %v13103_v42  ;;  %v13214_v42 = vld [vmem:[%s17748_s3 + $0xf0] ss:$8 sps:$4 sm:$0xff]  }
 0x4ad   :  { %8879 = vmatprep.subr.bf16.mxu0 %v13108_v57  ;;  %v1265_v57 = vlaneseq }
 0x4ae   :  { %9192 = vmatpush1.bf16.msra.mxu1 %v13208_v59  ;;  %v13252_v59 = vld [vmem:[%s17749_s5 + $0xb4] ss:$8 sps:$4 sm:$0xff]  }
 0x4af   :  { %9193 = vmatprep.subr.bf16.mxu1 %v13213_v35  ;;  %v13250_v35 = vld [vmem:[%s17749_s5 + $0xb0] ss:$8 sps:$4 sm:$0xff]  }
 0x4b0   :  { %8880 = vmatpush1.bf16.msra.mxu0 %v13106_v2  ;;  %v1266_v2 = vshrl.u32 %v1265_v57, 7  ;;  %v13261_v57 = vld [vmem:[%s17749_s5 + $0xe4] ss:$8 sps:$4 sm:$0xff]  }
 0x4b1   :  { %8881 = vmatprep.subr.bf16.mxu0 %v13111_v3 }
 0x4b2   :  { %9194 = vmatpush1.bf16.msra.mxu1 %v13211_v45  ;;  %v17472_v3 = vsub.s32 0, %v1266_v2  ;;  %v13255_v45 = vld [vmem:[%s17749_s5 + $0xc4] ss:$8 sps:$4 sm:$0xff]  }
 0x4b3   :  { %9195 = vmatprep.subr.bf16.mxu1 %v13216_v52  ;;  %v13253_v52 = vld [vmem:[%s17749_s5 + $0xc0] ss:$8 sps:$4 sm:$0xff]  }
 0x4b4   :  { %8882 = vmatpush1.bf16.msra.mxu0 %v13109_v43  ;;  %v1263_v43 = vld [vmem:[%s17750_s2] sm:$0x3] }
 0x4b5   :  { %8883 = vmatprep.subr.bf16.mxu0 %v13114_v53  ;;  %v17477_v53 = vsub.s32 1, %v1266_v2  ;;  %v13259_v2 = vld [vmem:[%s17749_s5 + $0xe0] ss:$8 sps:$4 sm:$0xff]  }
 0x4b6   :  { %9196 = vmatpush1.bf16.msra.mxu1 %v13214_v42  ;;  %v13258_v42 = vld [vmem:[%s17749_s5 + $0xd4] ss:$8 sps:$4 sm:$0xff]  }
 0x4b7   :  { %9430 = vmatprep.subr.bf16.mxu1 %v13219_v56  ;;  %v13256_v56 = vld [vmem:[%s17749_s5 + $0xd0] ss:$8 sps:$4 sm:$0xff]  }
 0x4b8   :  { %8884 = vmatpush1.bf16.msra.mxu0 %v13112_v60  ;;  %v1268_v60 = vrot.slane %v1263_v43, %v17472_v3 }
 0x4b9   :  { %8885 = vmatprep.subr.bf16.mxu0 %v13117_v46  ;;  %v1272_v46 = vrot.slane %v1263_v43, %v17477_v53  ;;  %v13264_v43 = vld [vmem:[%s17749_s5 + $0xf4] ss:$8 sps:$4 sm:$0xff]  }
 0x4bc   :  { %8886 = vmatpush1.bf16.msra.mxu0 %v13115_v0 }
 0x4bd   :  { %8887 = vmatprep.subr.bf16.mxu0 %v13120_v1 }
 0x4c0   :  { %8888 = vmatpush1.bf16.msra.mxu0 %v13118_v10 }
 0x4c1   :  { %8900 = vmatprep.subr.bf16.mxu0 %v13123_v11 }
 0x4c3   :  { %8890 = vmatmul.mubr.bf16.vlgmr.msra.gmra.mrb[0].mxu0 %v10006_v61 }
 0x4c4   :  { %8901 = vmatpush1.bf16.msra.mxu0 %v13121_v62  ;;  %8932 = vmatprep.mubr.bf16.mxu0 %v10009_v16 }
 0x4c5   :  { %8902 = vmatprep.subr.bf16.mxu0 %v13126_v17 }
 0x4c8   :  { %8903 = vmatpush1.bf16.msra.mxu0 %v13124_v4 }
 0x4c9   :  { %8904 = vmatprep.subr.bf16.mxu0 %v13129_v54 }
 0x4cc   :  { %8905 = vmatpush1.bf16.msra.mxu0 %v13127_v8 }
 0x4cd   :  { %8906 = vmatprep.subr.bf16.mxu0 %v13132_v9 }
 0x4d0   :  { %8907 = vmatpush1.bf16.msra.mxu0 %v13130_v18 }
 0x4d1   :  { %8908 = vmatprep.subr.bf16.mxu0 %v13135_v19 }
 0x4d4   :  { %8909 = vmatpush1.bf16.msra.mxu0 %v13133_v20 }
 0x4d5   :  { %8910 = vmatprep.subr.bf16.mxu0 %v13138_v55  ;;  %v17366_v26 = vpop.f32.mrb[0].mxu1 }
 0x4d6   :  { %v17368_v27 = vpop.f32.mrb[1].mxu1  ;;  %v11297_v0 = vadd.f32 %v17366_v26, %v1268_v60 }
 0x4d7   :  { %v17370_v32 = vpop.f32.mrb[2].mxu1  ;;  %v11299_v1 = vadd.f32 %v17368_v27, %v1272_v46 }
 0x4d8   :  { %8911 = vmatpush1.bf16.msra.mxu0 %v13136_v5  ;;  %v17375_v36 = vpop.f32.mrb[3].mxu1  ;;  %v11301_v11 = vadd.f32 %v17370_v32, %v1268_v60  ;;  %v13262_v60 = vld [vmem:[%s17749_s5 + $0xf0] ss:$8 sps:$4 sm:$0xff]  }
 0x4d9   :  { %8912 = vmatprep.subr.bf16.mxu0 %v13141_v6  ;;  %v11303_v61 = vadd.f32 %v17375_v36, %v1272_v46  ;;  %v13267_v46 = vld [vmem:[%s17751_s7 + $0x4] ss:$8 sps:$4 sm:$0xff]  }
 0x4dc   :  { %8913 = vmatpush1.bf16.msra.mxu0 %v13139_v33 }
 0x4dd   :  { %8914 = vmatprep.subr.bf16.mxu0 %v13144_v63 }
 0x4e0   :  { %8915 = vmatpush1.bf16.msra.mxu0 %v13142_v13 }
 0x4e1   :  { %8916 = vmatprep.subr.bf16.mxu0 %v13147_v14 }
 0x4e4   :  { %8917 = vmatpush1.bf16.msra.mxu0 %v13145_v24 }
 0x4e5   :  { %8918 = vmatprep.subr.bf16.mxu0 %v13150_v25 }
 0x4e8   :  { %8919 = vmatpush1.bf16.msra.mxu0 %v13148_v7  ;;  %v13217_v7 = vld [vmem:[%s17749_s5] ss:$8 sps:$4 sm:$0xff]  }
 0x4e9   :  { %8920 = vmatprep.subr.bf16.mxu0 %v13153_v21  ;;  %v13222_v21 = vld [vmem:[%s17749_s5 + $0x14] ss:$8 sps:$4 sm:$0xff]  }
 0x4ec   :  { %8921 = vmatpush1.bf16.msra.mxu0 %v13151_v22  ;;  %v13220_v22 = vld [vmem:[%s17749_s5 + $0x10] ss:$8 sps:$4 sm:$0xff]  }
 0x4ed   :  { %8922 = vmatprep.subr.bf16.mxu0 %v13156_v23  ;;  %v13225_v23 = vld [vmem:[%s17749_s5 + $0x24] ss:$8 sps:$4 sm:$0xff]  }
 0x4f0   :  { %8923 = vmatpush1.bf16.msra.mxu0 %v13154_v40  ;;  %v13223_v40 = vld [vmem:[%s17749_s5 + $0x20] ss:$8 sps:$4 sm:$0xff]  }
 0x4f1   :  { %8924 = vmatprep.subr.bf16.mxu0 %v13159_v41  ;;  %v13228_v41 = vld [vmem:[%s17749_s5 + $0x34] ss:$8 sps:$4 sm:$0xff]  }
 0x4f4   :  { %8925 = vmatpush1.bf16.msra.mxu0 %v13157_v28  ;;  %v13226_v28 = vld [vmem:[%s17749_s5 + $0x30] ss:$8 sps:$4 sm:$0xff]  }
 0x4f5   :  { %8926 = vmatprep.subr.bf16.mxu0 %v13162_v31  ;;  %v13231_v31 = vld [vmem:[%s17749_s5 + $0x44] ss:$8 sps:$4 sm:$0xff]  }
 0x4f8   :  { %8927 = vmatpush1.bf16.msra.mxu0 %v13160_v15  ;;  %v13229_v15 = vld [vmem:[%s17749_s5 + $0x40] ss:$8 sps:$4 sm:$0xff]  }
 0x4f9   :  { %8928 = vmatprep.subr.bf16.mxu0 %v13165_v29  ;;  %v13234_v29 = vld [vmem:[%s17749_s5 + $0x54] ss:$8 sps:$4 sm:$0xff]  }
 0x4fc   :  { %8929 = vmatpush1.bf16.msra.mxu0 %v13163_v30  ;;  %v13232_v30 = vld [vmem:[%s17749_s5 + $0x50] ss:$8 sps:$4 sm:$0xff]  }
 0x4fd   :  { %8930 = vmatprep.subr.bf16.mxu0 %v13168_v37  ;;  %v13237_v37 = vld [vmem:[%s17749_s5 + $0x64] ss:$8 sps:$4 sm:$0xff]  }
 0x500   :  { %8931 = vmatpush1.bf16.msra.mxu0 %v13166_v50  ;;  %v13235_v50 = vld [vmem:[%s17749_s5 + $0x60] ss:$8 sps:$4 sm:$0xff]  }
 0x503   :  { %8933 = vmatmul.mubr.bf16.vlgmr.msra.gmra.mrb[0].mxu0 %v10008_v51  ;;  %v13240_v51 = vld [vmem:[%s17749_s5 + $0x74] ss:$8 sps:$4 sm:$0xff]  }
 0x5d6   :  { %v8934_v10 = vpop.f32.mrb[0].mxu0 }
 0x5d7   :  { %v11298_v12 = vadd.f32 %v11297_v0, %v8934_v10  ;;  %v8936_v47 = vpop.f32.mrb[1].mxu0  ;;  %v8993_v0 = vld [vmem:[%s17752_s4] sm:$0x3] }
 0x5d8   :  { %v11300_v62 = vadd.f32 %v11299_v1, %v8936_v47  ;;  %v8938_v16 = vpop.f32.mrb[2].mxu0  ;;  %v8998_v1 = vrot.slane %v8993_v0, %v17472_v3  ;;  %v9002_v10 = vrot.slane %v8993_v0, %v17477_v53 }
 0x5d9   :  { %v8943_v17 = vmul.f32 0.5, %v11298_v12  ;;  %v11302_v4 = vadd.f32 %v11301_v11, %v8938_v16  ;;  %v8940_v54 = vpop.f32.mrb[3].mxu0 }
 0x5da   :  { %v8944_v8 = vmul.f32 0.5, %v11300_v62  ;;  %v11304_v9 = vadd.f32 %v11303_v61, %v8940_v54 }
 0x5db   :  { %13329 = vtanh.f32 %v8943_v17  ;;  %v8945_v18 = vmul.f32 0.5, %v11302_v4 }
 0x5dc   :  { %13331 = vtanh.f32 %v8944_v8  ;;  %v8946_v19 = vmul.f32 0.5, %v11304_v9 }
 0x5dd   :  { %13333 = vtanh.f32 %v8945_v18 }
 0x5de   :  { %13335 = vtanh.f32 %v8946_v19 }
 0x5e5   :  { %v13330_v20 = vpop.eup %13329 }
 0x5e6   :  { %v13332_v55 = vpop.eup %13331  ;;  %v8951_v5 = vadd.f32 1.0, %v13330_v20 }
 0x5e7   :  { %v13334_v6 = vpop.eup %13333  ;;  %v8952_v26 = vadd.f32 1.0, %v13332_v55 }
 0x5e8   :  { %v13336_v27 = vpop.eup %13335  ;;  %v8953_v32 = vadd.f32 1.0, %v13334_v6  ;;  %v8955_v36 = vmul.f32 0.5, %v8951_v5 }
 0x5e9   :  { %v8954_v33 = vadd.f32 1.0, %v13336_v27  ;;  %v8956_v13 = vmul.f32 0.5, %v8952_v26 }
 0x5ea   :  { %v8957_v63 = vmul.f32 0.5, %v8953_v32 }
 0x5eb   :  { %v8958_v14 = vmul.f32 0.5, %v8954_v33 }
 0x5ec   :  { %v8959_v24 = vpack.c.bf16 %v8957_v63, %v8955_v36 }
 0x5ed   :  { %v8960_v25 = vpack.c.bf16 %v8958_v14, %v8956_v13 }
 0x5ef   :  { %9197 = vmatprep.mubr.bf16.mxu1 %v8960_v25  ;;  %v13265_v25 = vld [vmem:[%s17751_s7] ss:$8 sps:$4 sm:$0xff]  }
 0x5f0   :  { %9198 = vmatmul.mubr.bf16.vlgmr.msra.gmra.mrb[4].mxu1 %v8959_v24 }
 0x5f1   :  { %9431 = vmatpush1.bf16.msra.mxu1 %v13217_v7  ;;  %v13270_v7 = vld [vmem:[%s17751_s7 + $0x14] ss:$8 sps:$4 sm:$0xff]  }
 0x5f2   :  { %9432 = vmatprep.subr.bf16.mxu1 %v13222_v21  ;;  %v13268_v21 = vld [vmem:[%s17751_s7 + $0x10] ss:$8 sps:$4 sm:$0xff]  }
 0x5f5   :  { %9433 = vmatpush1.bf16.msra.mxu1 %v13220_v22  ;;  %v13273_v22 = vld [vmem:[%s17751_s7 + $0x24] ss:$8 sps:$4 sm:$0xff]  }
 0x5f6   :  { %9434 = vmatprep.subr.bf16.mxu1 %v13225_v23  ;;  %v13271_v23 = vld [vmem:[%s17751_s7 + $0x20] ss:$8 sps:$4 sm:$0xff]  }
 0x5f9   :  { %9435 = vmatpush1.bf16.msra.mxu1 %v13223_v40  ;;  %v13276_v40 = vld [vmem:[%s17751_s7 + $0x34] ss:$8 sps:$4 sm:$0xff]  }
 0x5fa   :  { %9436 = vmatprep.subr.bf16.mxu1 %v13228_v41  ;;  %v13274_v41 = vld [vmem:[%s17751_s7 + $0x30] ss:$8 sps:$4 sm:$0xff]  }
 0x5fd   :  { %9437 = vmatpush1.bf16.msra.mxu1 %v13226_v28  ;;  %v13279_v28 = vld [vmem:[%s17751_s7 + $0x44] ss:$8 sps:$4 sm:$0xff]  }
 0x5fe   :  { %9438 = vmatprep.subr.bf16.mxu1 %v13231_v31  ;;  %v13277_v31 = vld [vmem:[%s17751_s7 + $0x40] ss:$8 sps:$4 sm:$0xff]  }
 0x601   :  { %9439 = vmatpush1.bf16.msra.mxu1 %v13229_v15  ;;  %v13282_v15 = vld [vmem:[%s17751_s7 + $0x54] ss:$8 sps:$4 sm:$0xff]  }
 0x602   :  { %9440 = vmatprep.subr.bf16.mxu1 %v13234_v29  ;;  %v13280_v29 = vld [vmem:[%s17751_s7 + $0x50] ss:$8 sps:$4 sm:$0xff]  }
 0x605   :  { %9441 = vmatpush1.bf16.msra.mxu1 %v13232_v30  ;;  %v13285_v30 = vld [vmem:[%s17751_s7 + $0x64] ss:$8 sps:$4 sm:$0xff]  }
 0x606   :  { %9442 = vmatprep.subr.bf16.mxu1 %v13237_v37  ;;  %v13283_v37 = vld [vmem:[%s17751_s7 + $0x60] ss:$8 sps:$4 sm:$0xff]  }
 0x609   :  { %9443 = vmatpush1.bf16.msra.mxu1 %v13235_v50  ;;  %v13288_v50 = vld [vmem:[%s17751_s7 + $0x74] ss:$8 sps:$4 sm:$0xff]  }
 0x60a   :  { %9444 = vmatprep.subr.bf16.mxu1 %v13240_v51  ;;  %v13286_v51 = vld [vmem:[%s17751_s7 + $0x70] ss:$8 sps:$4 sm:$0xff]  }
 0x60d   :  { %9445 = vmatpush1.bf16.msra.mxu1 %v13238_v38  ;;  %v13291_v38 = vld [vmem:[%s17751_s7 + $0x84] ss:$8 sps:$4 sm:$0xff]  }
 0x60e   :  { %9446 = vmatprep.subr.bf16.mxu1 %v13243_v39  ;;  %v13289_v39 = vld [vmem:[%s17751_s7 + $0x80] ss:$8 sps:$4 sm:$0xff]  }
 0x611   :  { %9447 = vmatpush1.bf16.msra.mxu1 %v13241_v44  ;;  %v13294_v44 = vld [vmem:[%s17751_s7 + $0x94] ss:$8 sps:$4 sm:$0xff]  }
 0x612   :  { %9448 = vmatprep.subr.bf16.mxu1 %v13246_v34  ;;  %v13292_v34 = vld [vmem:[%s17751_s7 + $0x90] ss:$8 sps:$4 sm:$0xff]  }
 0x615   :  { %9449 = vmatpush1.bf16.msra.mxu1 %v13244_v48  ;;  %v13297_v48 = vld [vmem:[%s17751_s7 + $0xa4] ss:$8 sps:$4 sm:$0xff]  }
 0x616   :  { %9450 = vmatprep.subr.bf16.mxu1 %v13249_v49  ;;  %v13295_v49 = vld [vmem:[%s17751_s7 + $0xa0] ss:$8 sps:$4 sm:$0xff]  }
 0x619   :  { %9451 = vmatpush1.bf16.msra.mxu1 %v13247_v58  ;;  %v13300_v58 = vld [vmem:[%s17751_s7 + $0xb4] ss:$8 sps:$4 sm:$0xff]  }
 0x61a   :  { %9452 = vmatprep.subr.bf16.mxu1 %v13252_v59  ;;  %v13298_v59 = vld [vmem:[%s17751_s7 + $0xb0] ss:$8 sps:$4 sm:$0xff]  }
 0x61d   :  { %9453 = vmatpush1.bf16.msra.mxu1 %v13250_v35  ;;  %v13303_v35 = vld [vmem:[%s17751_s7 + $0xc4] ss:$8 sps:$4 sm:$0xff]  }
 0x61e   :  { %9454 = vmatprep.subr.bf16.mxu1 %v13255_v45  ;;  %v13301_v45 = vld [vmem:[%s17751_s7 + $0xc0] ss:$8 sps:$4 sm:$0xff]  }
 0x621   :  { %9455 = vmatpush1.bf16.msra.mxu1 %v13253_v52  ;;  %v13306_v52 = vld [vmem:[%s17751_s7 + $0xd4] ss:$8 sps:$4 sm:$0xff]  }
 0x622   :  { %9456 = vmatprep.subr.bf16.mxu1 %v13258_v42  ;;  %v13304_v42 = vld [vmem:[%s17751_s7 + $0xd0] ss:$8 sps:$4 sm:$0xff]  }
 0x625   :  { %9457 = vmatpush1.bf16.msra.mxu1 %v13256_v56  ;;  %v13309_v56 = vld [vmem:[%s17751_s7 + $0xe4] ss:$8 sps:$4 sm:$0xff]  }
 0x626   :  { %9458 = vmatprep.subr.bf16.mxu1 %v13261_v57  ;;  %v13307_v57 = vld [vmem:[%s17751_s7 + $0xe0] ss:$8 sps:$4 sm:$0xff]  }
 0x629   :  { %9459 = vmatpush1.bf16.msra.mxu1 %v13259_v2  ;;  %v13312_v2 = vld [vmem:[%s17751_s7 + $0xf4] ss:$8 sps:$4 sm:$0xff]  }
 0x62a   :  { %9460 = vmatprep.subr.bf16.mxu1 %v13264_v43  ;;  %v13310_v43 = vld [vmem:[%s17751_s7 + $0xf0] ss:$8 sps:$4 sm:$0xff]  }
 0x62d   :  { %9461 = vmatpush1.bf16.msra.mxu1 %v13262_v60  ;;  %v13313_v60 = vld [vmem:[%s17753_s9 + $0x40] sm:$0xff]  }
 0x62e   :  { %9695 = vmatprep.subr.bf16.mxu1 %v13267_v46  ;;  %v9258_v46 = vld [vmem:[%s17754_s6] sm:$0x3] }
 0x62f   :  { %v9263_v0 = vrot.slane %v9258_v46, %v17472_v3 }
 0x6c3   :  { %v9199_v11 = vpop.f32.mrb[4].mxu1 }
 0x6c4   :  { %v9200_v12 = vadd.f32 %v9199_v11, %v8998_v1  ;;  %v9201_v47 = vpop.f32.mrb[5].mxu1 }
 0x6c5   :  { %v9202_v61 = vadd.f32 %v9201_v47, %v9002_v10  ;;  %v9203_v62 = vpop.f32.mrb[6].mxu1 }
 0x6c6   :  { %v9208_v16 = vmul.f32 0.5, %v9200_v12  ;;  %v9204_v17 = vadd.f32 %v9203_v62, %v8998_v1  ;;  %v9205_v4 = vpop.f32.mrb[7].mxu1  ;;  %v9267_v1 = vrot.slane %v9258_v46, %v17477_v53 }
 0x6c7   :  { %v9209_v54 = vmul.f32 0.5, %v9202_v61  ;;  %v9206_v8 = vadd.f32 %v9205_v4, %v9002_v10 }
 0x6c8   :  { %13337 = vtanh.f32 %v9208_v16  ;;  %v9210_v9 = vmul.f32 0.5, %v9204_v17 }
 0x6c9   :  { %13339 = vtanh.f32 %v9209_v54  ;;  %v9211_v18 = vmul.f32 0.5, %v9206_v8 }
 0x6ca   :  { %13341 = vtanh.f32 %v9210_v9 }
 0x6cb   :  { %13343 = vtanh.f32 %v9211_v18 }
 0x6d2   :  { %v13338_v19 = vpop.eup %13337 }
 0x6d3   :  { %v13340_v20 = vpop.eup %13339  ;;  %v9216_v55 = vadd.f32 1.0, %v13338_v19 }
 0x6d4   :  { %v13342_v5 = vpop.eup %13341  ;;  %v9217_v6 = vadd.f32 1.0, %v13340_v20 }
 0x6d5   :  { %v13344_v26 = vpop.eup %13343  ;;  %v9218_v27 = vadd.f32 1.0, %v13342_v5  ;;  %v9220_v33 = vmul.f32 0.5, %v9216_v55 }
 0x6d6   :  { %v9219_v32 = vadd.f32 1.0, %v13344_v26  ;;  %v9221_v63 = vmul.f32 0.5, %v9217_v6 }
 0x6d7   :  { %v9222_v36 = vmul.f32 0.5, %v9218_v27 }
 0x6d8   :  { %v9223_v13 = vmul.f32 0.5, %v9219_v32 }
 0x6d9   :  { %v9224_v14 = vpack.c.bf16 %v9222_v36, %v9220_v33 }
 0x6da   :  { %v9225_v24 = vpack.c.bf16 %v9223_v13, %v9221_v63 }
 0x6dc   :  { %9462 = vmatprep.mubr.bf16.mxu1 %v9225_v24  ;;  %v13314_v24 = vld [vmem:[%s17753_s9] sm:$0xff]  }
 0x6dd   :  { %9463 = vmatmul.mubr.bf16.vlgmr.msra.gmra.mrb[8].mxu1 %v9224_v14 }
 0x6de   :  { %9696 = vmatpush1.bf16.msra.mxu1 %v13265_v25  ;;  %v13315_v25 = vld [vmem:[%s17753_s9 + $0x48] sm:$0xff]  }
 0x6df   :  { %9697 = vmatprep.subr.bf16.mxu1 %v13270_v7  ;;  %v13316_v7 = vld [vmem:[%s17753_s9 + $0x8] sm:$0xff]  }
 0x6e2   :  { %9698 = vmatpush1.bf16.msra.mxu1 %v13268_v21  ;;  %v13317_v21 = vld [vmem:[%s17753_s9 + $0x50] sm:$0xff]  }
 0x6e3   :  { %9699 = vmatprep.subr.bf16.mxu1 %v13273_v22  ;;  %v13318_v22 = vld [vmem:[%s17753_s9 + $0x10] sm:$0xff]  }
 0x6e6   :  { %9700 = vmatpush1.bf16.msra.mxu1 %v13271_v23  ;;  %v13319_v23 = vld [vmem:[%s17753_s9 + $0x58] sm:$0xff]  }
 0x6e7   :  { %9701 = vmatprep.subr.bf16.mxu1 %v13276_v40  ;;  %v13320_v40 = vld [vmem:[%s17753_s9 + $0x18] sm:$0xff]  }
 0x6ea   :  { %9702 = vmatpush1.bf16.msra.mxu1 %v13274_v41  ;;  %v13321_v41 = vld [vmem:[%s17753_s9 + $0x60] sm:$0xff]  }
 0x6eb   :  { %9703 = vmatprep.subr.bf16.mxu1 %v13279_v28  ;;  %v13322_v28 = vld [vmem:[%s17753_s9 + $0x20] sm:$0xff]  }
 0x6ee   :  { %9704 = vmatpush1.bf16.msra.mxu1 %v13277_v31  ;;  %v13323_v31 = vld [vmem:[%s17753_s9 + $0x68] sm:$0xff]  }
 0x6ef   :  { %9705 = vmatprep.subr.bf16.mxu1 %v13282_v15  ;;  %v13324_v15 = vld [vmem:[%s17753_s9 + $0x28] sm:$0xff]  }
 0x6f2   :  { %9706 = vmatpush1.bf16.msra.mxu1 %v13280_v29  ;;  %v13325_v29 = vld [vmem:[%s17753_s9 + $0x70] sm:$0xff]  }
 0x6f3   :  { %9707 = vmatprep.subr.bf16.mxu1 %v13285_v30  ;;  %v13326_v30 = vld [vmem:[%s17753_s9 + $0x30] sm:$0xff]  }
 0x6f6   :  { %9708 = vmatpush1.bf16.msra.mxu1 %v13283_v37  ;;  %v13327_v37 = vld [vmem:[%s17753_s9 + $0x78] sm:$0xff]  }
 0x6f7   :  { %9709 = vmatprep.subr.bf16.mxu1 %v13288_v50  ;;  %v13328_v50 = vld [vmem:[%s17753_s9 + $0x38] sm:$0xff]  }
 0x6fa   :  { %9710 = vmatpush1.bf16.msra.mxu1 %v13286_v51  ;;  %v9523_v51 = vld [vmem:[%s17755_s8] sm:$0x3] }
 0x6fb   :  { %9711 = vmatprep.subr.bf16.mxu1 %v13291_v38  ;;  %v9528_v38 = vrot.slane %v9523_v51, %v17472_v3 }
 0x6fe   :  { %9712 = vmatpush1.bf16.msra.mxu1 %v13289_v39  ;;  %v9532_v39 = vrot.slane %v9523_v51, %v17477_v53 }
 0x6ff   :  { %9713 = vmatprep.subr.bf16.mxu1 %v13294_v44 }
 0x702   :  { %9714 = vmatpush1.bf16.msra.mxu1 %v13292_v34 }
 0x703   :  { %9715 = vmatprep.subr.bf16.mxu1 %v13297_v48 }
 0x706   :  { %9716 = vmatpush1.bf16.msra.mxu1 %v13295_v49 }
 0x707   :  { %9717 = vmatprep.subr.bf16.mxu1 %v13300_v58 }
 0x70a   :  { %9718 = vmatpush1.bf16.msra.mxu1 %v13298_v59 }
 0x70b   :  { %9719 = vmatprep.subr.bf16.mxu1 %v13303_v35 }
 0x70e   :  { %9720 = vmatpush1.bf16.msra.mxu1 %v13301_v45 }
 0x70f   :  { %9721 = vmatprep.subr.bf16.mxu1 %v13306_v52 }
 0x712   :  { %9722 = vmatpush1.bf16.msra.mxu1 %v13304_v42 }
 0x713   :  { %9723 = vmatprep.subr.bf16.mxu1 %v13309_v56 }
 0x716   :  { %9724 = vmatpush1.bf16.msra.mxu1 %v13307_v57 }
 0x717   :  { %9725 = vmatprep.subr.bf16.mxu1 %v13312_v2 }
 0x71a   :  { %9726 = vmatpush1.bf16.msra.mxu1 %v13310_v43 }
 0x71b   :  { %11275 = vmatprep.subr.bf16.mxu1 %v13313_v60 }
 0x7b0   :  { %v9464_v10 = vpop.f32.mrb[8].mxu1 }
 0x7b1   :  { %v9465_v11 = vadd.f32 %v9464_v10, %v9263_v0  ;;  %v9466_v12 = vpop.f32.mrb[9].mxu1 }
 0x7b2   :  { %v9467_v47 = vadd.f32 %v9466_v12, %v9267_v1  ;;  %v9468_v61 = vpop.f32.mrb[10].mxu1 }
 0x7b3   :  { %v9473_v62 = vmul.f32 0.5, %v9465_v11  ;;  %v9469_v16 = vadd.f32 %v9468_v61, %v9263_v0  ;;  %v9470_v17 = vpop.f32.mrb[11].mxu1 }
 0x7b4   :  { %v9474_v4 = vmul.f32 0.5, %v9467_v47  ;;  %v9471_v54 = vadd.f32 %v9470_v17, %v9267_v1  ;;  %v11258_v17 = vld [vmem:[%s17756_s10] ss:$0 sm:$0xff] }
 0x7b5   :  { %13345 = vtanh.f32 %v9473_v62  ;;  %v9475_v8 = vmul.f32 0.5, %v9469_v16 }
 0x7b6   :  { %13347 = vtanh.f32 %v9474_v4  ;;  %v9476_v9 = vmul.f32 0.5, %v9471_v54 }
 0x7b7   :  { %13349 = vtanh.f32 %v9475_v8 }
 0x7b8   :  { %13351 = vtanh.f32 %v9476_v9 }
 0x7bf   :  { %v13346_v18 = vpop.eup %13345 }
 0x7c0   :  { %v13348_v19 = vpop.eup %13347  ;;  %v9481_v20 = vadd.f32 1.0, %v13346_v18 }
 0x7c1   :  { %v13350_v55 = vpop.eup %13349  ;;  %v9482_v5 = vadd.f32 1.0, %v13348_v19 }
 0x7c2   :  { %v13352_v6 = vpop.eup %13351  ;;  %v9483_v26 = vadd.f32 1.0, %v13350_v55  ;;  %v9485_v32 = vmul.f32 0.5, %v9481_v20 }
 0x7c3   :  { %v9484_v27 = vadd.f32 1.0, %v13352_v6  ;;  %v9486_v36 = vmul.f32 0.5, %v9482_v5 }
 0x7c4   :  { %v9487_v33 = vmul.f32 0.5, %v9483_v26 }
 0x7c5   :  { %v9488_v63 = vmul.f32 0.5, %v9484_v27 }
 0x7c6   :  { %v9489_v13 = vpack.c.bf16 %v9487_v33, %v9485_v32 }
 0x7c7   :  { %v9490_v14 = vpack.c.bf16 %v9488_v63, %v9486_v36 }
 0x7c9   :  { %9727 = vmatprep.mubr.bf16.mxu1 %v9490_v14 }
 0x7ca   :  { %9728 = vmatmul.mubr.bf16.vlgmr.msra.gmra.mrb[12].mxu1 %v9489_v13 }
 0x7cb   :  { %11276 = vmatpush3.bf16.msra.mxu1 %v13314_v24 }
 0x7cc   :  { %11277 = vmatprep.subr.bf16.mxu1 %v13315_v25 }
 0x7cf   :  { %11278 = vmatpush3.bf16.msra.mxu1 %v13316_v7 }
 0x7d0   :  { %11279 = vmatprep.subr.bf16.mxu1 %v13317_v21 }
 0x7d3   :  { %11280 = vmatpush3.bf16.msra.mxu1 %v13318_v22 }
 0x7d4   :  { %11281 = vmatprep.subr.bf16.mxu1 %v13319_v23 }
 0x7d7   :  { %11282 = vmatpush3.bf16.msra.mxu1 %v13320_v40 }
 0x7d8   :  { %11283 = vmatprep.subr.bf16.mxu1 %v13321_v41 }
 0x7db   :  { %11284 = vmatpush3.bf16.msra.mxu1 %v13322_v28 }
 0x7dc   :  { %11285 = vmatprep.subr.bf16.mxu1 %v13323_v31 }
 0x7df   :  { %11286 = vmatpush3.bf16.msra.mxu1 %v13324_v15 }
 0x7e0   :  { %11287 = vmatprep.subr.bf16.mxu1 %v13325_v29 }
 0x7e3   :  { %11288 = vmatpush3.bf16.msra.mxu1 %v13326_v30 }
 0x7e4   :  { %11289 = vmatprep.subr.bf16.mxu1 %v13327_v37 }
 0x7e7   :  { %11290 = vmatpush3.bf16.msra.mxu1 %v13328_v50 }
 0x89d   :  { %v9729_v44 = vpop.f32.mrb[12].mxu1 }
 0x89e   :  { %v9730_v34 = vadd.f32 %v9729_v44, %v9528_v38  ;;  %v9731_v48 = vpop.f32.mrb[13].mxu1 }
 0x89f   :  { %v9732_v49 = vadd.f32 %v9731_v48, %v9532_v39  ;;  %v9733_v58 = vpop.f32.mrb[14].mxu1 }
 0x8a0   :  { %v9738_v59 = vmul.f32 0.5, %v9730_v34  ;;  %v9734_v35 = vadd.f32 %v9733_v58, %v9528_v38  ;;  %v9735_v45 = vpop.f32.mrb[15].mxu1 }
 0x8a1   :  { %v9739_v52 = vmul.f32 0.5, %v9732_v49  ;;  %v9736_v42 = vadd.f32 %v9735_v45, %v9532_v39 }
 0x8a2   :  { %13353 = vtanh.f32 %v9738_v59  ;;  %v9740_v56 = vmul.f32 0.5, %v9734_v35 }
 0x8a3   :  { %13355 = vtanh.f32 %v9739_v52  ;;  %v9741_v57 = vmul.f32 0.5, %v9736_v42 }
 0x8a4   :  { %13357 = vtanh.f32 %v9740_v56 }
 0x8a5   :  { %13359 = vtanh.f32 %v9741_v57 }
 0x8ac   :  { %v13354_v2 = vpop.eup %13353 }
 0x8ad   :  { %v13356_v3 = vpop.eup %13355  ;;  %v9746_v43 = vadd.f32 1.0, %v13354_v2 }
 0x8ae   :  { %v13358_v53 = vpop.eup %13357  ;;  %v9747_v60 = vadd.f32 1.0, %v13356_v3 }
 0x8af   :  { %v13360_v46 = vpop.eup %13359  ;;  %v9748_v0 = vadd.f32 1.0, %v13358_v53  ;;  %v9750_v10 = vmul.f32 0.5, %v9746_v43 }
 0x8b0   :  { %v9749_v1 = vadd.f32 1.0, %v13360_v46  ;;  %v9751_v12 = vmul.f32 0.5, %v9747_v60 }
 0x8b1   :  { %v9752_v11 = vmul.f32 0.5, %v9748_v0 }
 0x8b2   :  { %v9753_v47 = vmul.f32 0.5, %v9749_v1 }
 0x8b3   :  { %v9754_v61 = vpack.c.bf16 %v9752_v11, %v9750_v10 }
 0x8b4   :  { %v9755_v62 = vpack.c.bf16 %v9753_v47, %v9751_v12 }
 0x8b6   :  { %9923 = vmatprep.mubr.bf16.mxu1 %v9755_v62 }
 0x8b7   :  { %9924 = vmatmul.mubr.bf16.vlgmr.msra.gmra.mrb[16].mxu1 %v9754_v61 }
 0x98a   :  { %v11291_v16 = vpop.f32.mrb[16].mxu1 }
 0x98b   :  { %v11292_v4 = vpop.f32.mrb[17].mxu1 }
 0x98c   :  { %v11293_v54 = vadd.f32 %v11292_v4, %v11291_v16  ;;  %v11294_v8 = vpop.f32.mrb[18].mxu1 }
 0x98d   :  { %v11295_v9 = vpop.f32.mrb[19].mxu1 }
 0x98e   :  { %v9926_v18 = vadd.f32 %v11293_v54, %v11258_v17  ;;  %v11296_v19 = vadd.f32 %v11295_v9, %v11294_v8 }
 0x990   :  { %9932 = vst [vmem:[%s17757_s11] sm:$0xff] %v9926_v18  ;;  %v9929_v20 = vadd.f32 %v11296_v19, %v11258_v17 }
 0x992   :  { %9933 = vst [vmem:[%s17757_s11 + $0x8] sm:$0xff] %v9929_v20 }

</bundles_post_ra>
